<compile_context>
chip_gen: v5e
topology: v5e:2x2
jax: 0.10.0
libtpu: 0.0.40
codegen_flags: <defaults>
</compile_context>

<pallas_src>
import jax
import jax.numpy as jnp
from jax.experimental import pallas as pl
from jax.experimental.pallas import tpu as pltpu

BN_EPS = 1e-5


def _vmem_limit_bytes():
    # Generation-aware scoped-VMEM cap (v7x has 64 MiB physical VMEM).
    try:
        cap = int(pltpu.get_tpu_info().vmem_capacity_bytes)
    except Exception:
        cap = 64 * 1024 * 1024
    return max(32 * 1024 * 1024, min((cap * 3) // 4, 96 * 1024 * 1024))


def _round_up(x, m):
    return (x + m - 1) // m * m


# ---------------------------------------------------------------------------
# Kernel bodies
# ---------------------------------------------------------------------------
def _conv3x3x3_tail(p, w_ref, o_ref, st_ref, pad_ref):
    """Shared conv tail: VMEM zero-halo -> im2col -> MXU matmul -> y + stats.

    p:       [Dq, Hq, Wq, Cin] f32 activation (unpadded)
    w_ref:   [Kpad, Cout]      bf16 flattened (kd,kh,kw,ci) weights, K zero-pad
    o_ref:   [Dq*Hq*Wq, Cout]  f32 raw conv output (pre-BN)
    st_ref:  [2, Cout]         f32 per-block [sum(y); sum(y*y)]
    pad_ref: [Dq+2, Hq+2, Wq+2, Cin] f32 VMEM scratch (zero halo)
    """
    Dq, Hq, Wq, Cin = p.shape
    K = 27 * Cin
    Kpad = w_ref.shape[0]
    M = Dq * Hq * Wq

    # Zero halo built in VMEM (no host-side jnp.pad HBM round trip).
    pad_ref[...] = jnp.zeros(pad_ref.shape, pad_ref.dtype)
    pad_ref[1:Dq + 1, 1:Hq + 1, 1:Wq + 1, :] = p
    pz = pad_ref[...].astype(jnp.bfloat16)        # bf16 before the 27 slices

    cols = []
    for kd in range(3):
        for kh in range(3):
            for kw in range(3):
                cols.append(pz[kd:kd + Dq, kh:kh + Hq, kw:kw + Wq, :])
    patches = jnp.concatenate(cols, axis=-1)       # [Dq, Hq, Wq, 27*Cin]
    patches = patches.reshape(M, K)                # minor dim preserved
    if Kpad > K:                                   # pad K to a 128 multiple
        patches = jnp.concatenate(
            [patches, jnp.zeros((M, Kpad - K), patches.dtype)], axis=-1)

    y = jnp.dot(patches, w_ref[...], preferred_element_type=jnp.float32)
    o_ref[...] = y
    st_ref[...] = jnp.concatenate(
        [jnp.sum(y, axis=0, keepdims=True),
         jnp.sum(y * y, axis=0, keepdims=True)], axis=0)


def _pool_conv_stats_kernel(x_ref, w_ref, o_ref, st_ref, pad_ref):
    # x_ref: [D, H, W, Cin] raw (unpooled, unpadded) input for one batch.
    D, H, W, Cin = x_ref.shape
    Dp, Hp, Wp = D // 2, H // 2, W // 2
    x = x_ref[...]
    x = x.reshape(Dp, 2, H, W, Cin)
    x = jnp.maximum(x[:, 0], x[:, 1])                        # depth pool
    x = x.reshape(Dp, Hp, 2, W, Cin)
    x = jnp.maximum(x[:, :, 0], x[:, :, 1])                  # height pool
    x = x.reshape(Dp, Hp, Wp, 2, Cin)
    x = jnp.maximum(x[:, :, :, 0, :], x[:, :, :, 1, :])      # width pool
    _conv3x3x3_tail(x, w_ref, o_ref, st_ref, pad_ref)


def _bn_conv_stats_kernel(y_ref, sc_ref, sh_ref, w_ref, o_ref, st_ref, pad_ref):
    # y_ref: [Dq, Hq, Wq, Cin] previous conv's raw (pre-BN) output.
    sc = sc_ref[...].reshape(1, 1, 1, -1)
    sh = sh_ref[...].reshape(1, 1, 1, -1)
    a = jnp.maximum(y_ref[...] * sc + sh, 0.0)               # fused BN + ReLU
    _conv3x3x3_tail(a, w_ref, o_ref, st_ref, pad_ref)


def _bn_relu_kernel(y_ref, sc_ref, sh_ref, o_ref):
    # Lane-dense elementwise: y/o: [TR, H*W*C]; scale/shift: [1, H*W*C].
    o_ref[...] = jnp.maximum(y_ref[...] * sc_ref[...] + sh_ref[...], 0.0)


# ---------------------------------------------------------------------------
# Wrappers
# ---------------------------------------------------------------------------
def _flatten_weight(w, kpad):
    k = w.shape[0] * w.shape[1] * w.shape[2] * w.shape[3]
    wf = w.reshape(k, w.shape[-1]).astype(jnp.bfloat16)
    return jnp.pad(wf, ((0, kpad - k), (0, 0)))    # tiny, one-time, trace side


def pool_conv_stats(x_cl, w):
    """MaxPool3d(2) fused with Conv3d(3,pad=1); returns raw y + BN partials."""
    N, D, H, W, Cin = x_cl.shape
    Dp, Hp, Wp = D // 2, H // 2, W // 2
    Cout = w.shape[-1]
    M = Dp * Hp * Wp
    Kpad = _round_up(27 * Cin, 128)
    w_flat = _flatten_weight(w, Kpad)
    y, st = pl.pallas_call(
        _pool_conv_stats_kernel,
        out_shape=(jax.ShapeDtypeStruct((N, M, Cout), jnp.float32),
                   jax.ShapeDtypeStruct((N, 2, Cout), jnp.float32)),
        grid=(N,),
        in_specs=[
            pl.BlockSpec((None, D, H, W, Cin), lambda n: (n, 0, 0, 0, 0)),
            pl.BlockSpec((Kpad, Cout), lambda n: (0, 0)),     # VMEM-resident
        ],
        out_specs=(
            pl.BlockSpec((None, M, Cout), lambda n: (n, 0, 0)),
            pl.BlockSpec((None, 2, Cout), lambda n: (n, 0, 0)),
        ),
        scratch_shapes=[pltpu.VMEM((Dp + 2, Hp + 2, Wp + 2, Cin), jnp.float32)],
        compiler_params=pltpu.CompilerParams(
            dimension_semantics=("parallel",),
            vmem_limit_bytes=_vmem_limit_bytes()),
    )(x_cl, w_flat)
    return y.reshape(N, Dp, Hp, Wp, Cout), st


def bn_conv_stats(y_prev, scale, shift, w):
    """Previous layer's BN+ReLU fused into this Conv3d(3,pad=1)."""
    N, Dq, Hq, Wq, Cin = y_prev.shape
    Cout = w.shape[-1]
    M = Dq * Hq * Wq
    Kpad = _round_up(27 * Cin, 128)
    w_flat = _flatten_weight(w, Kpad)
    sc = scale.reshape(1, Cin).astype(jnp.float32)
    sh = shift.reshape(1, Cin).astype(jnp.float32)
    y, st = pl.pallas_call(
        _bn_conv_stats_kernel,
        out_shape=(jax.ShapeDtypeStruct((N, M, Cout), jnp.float32),
                   jax.ShapeDtypeStruct((N, 2, Cout), jnp.float32)),
        grid=(N,),
        in_specs=[
            pl.BlockSpec((None, Dq, Hq, Wq, Cin), lambda n: (n, 0, 0, 0, 0)),
            pl.BlockSpec((1, Cin), lambda n: (0, 0)),
            pl.BlockSpec((1, Cin), lambda n: (0, 0)),
            pl.BlockSpec((Kpad, Cout), lambda n: (0, 0)),
        ],
        out_specs=(
            pl.BlockSpec((None, M, Cout), lambda n: (n, 0, 0)),
            pl.BlockSpec((None, 2, Cout), lambda n: (n, 0, 0)),
        ),
        scratch_shapes=[pltpu.VMEM((Dq + 2, Hq + 2, Wq + 2, Cin), jnp.float32)],
        compiler_params=pltpu.CompilerParams(
            dimension_semantics=("parallel",),
            vmem_limit_bytes=_vmem_limit_bytes()),
    )(y_prev, sc, sh, w_flat)
    return y.reshape(N, Dq, Hq, Wq, Cout), st


def _bn_coeffs(stats, gamma, beta, count):
    tot = jnp.sum(stats, axis=0)                   # [2, C], tiny XLA reduce
    mean = tot[0] / count
    # E[y^2]-E[y]^2 in f32; fine at this scale (see header note on cancellation).
    var = tot[1] / count - mean * mean
    scale = gamma * jax.lax.rsqrt(var + BN_EPS)
    shift = beta - mean * scale
    return scale, shift


def _row_tile(rows, cols, budget_bytes=4 * 1024 * 1024):
    # Byte-budgeted row tile (always a divisor of rows).
    cap = max(8, budget_bytes // (cols * 4))
    t = rows
    while t > cap and t % 2 == 0:
        t //= 2
    return t


def bn_relu_apply(y, scale, shift):
    """Final BN+ReLU on a lane-dense [N*D, H*W*C] slab."""
    N, Dq, Hq, Wq, C = y.shape
    rows, cols = N * Dq, Hq * Wq * C
    tr = _row_tile(rows, cols)
    y2 = y.reshape(rows, cols)                     # free, contiguous reshape
    sc_row = jnp.tile(scale, Hq * Wq).reshape(1, cols)
    sh_row = jnp.tile(shift, Hq * Wq).reshape(1, cols)
    out = pl.pallas_call(
        _bn_relu_kernel,
        out_shape=jax.ShapeDtypeStruct((rows, cols), jnp.float32),
        grid=(rows // tr,),
        in_specs=[
            pl.BlockSpec((tr, cols), lambda i: (i, 0)),
            pl.BlockSpec((1, cols), lambda i: (0, 0)),
            pl.BlockSpec((1, cols), lambda i: (0, 0)),
        ],
        out_specs=pl.BlockSpec((tr, cols), lambda i: (i, 0)),
        compiler_params=pltpu.CompilerParams(
            dimension_semantics=("parallel",),
            vmem_limit_bytes=_vmem_limit_bytes()),
    )(y2, sc_row, sh_row)
    return out.reshape(N, Dq, Hq, Wq, C)


def down_forward(x_ncdhw, params):
    """Down.forward: x [N, Cin, D, H, W] -> [N, Cout, D/2, H/2, W/2]."""
    x = jnp.transpose(x_ncdhw, (0, 2, 3, 4, 1))    # channels-last
    (w1, _b1, g1, be1), (w2, _b2, g2, be2) = params
    # Conv bias intentionally unused: training-mode BN cancels it exactly.
    y1, st1 = pool_conv_stats(x, w1)
    n_elems = y1.shape[0] * y1.shape[1] * y1.shape[2] * y1.shape[3]
    sc1, sh1 = _bn_coeffs(st1, g1, be1, n_elems)
    y2, st2 = bn_conv_stats(y1, sc1, sh1, w2)
    sc2, sh2 = _bn_coeffs(st2, g2, be2, n_elems)
    out = bn_relu_apply(y2, sc2, sh2)
    return jnp.transpose(out, (0, 4, 1, 2, 3))     # NCDHW


# ---------------------------------------------------------------------------
# Pure-JAX f32 reference (numerical sanity check)
# ---------------------------------------------------------------------------
def _ref_block(x, w, b, g, be):
    y = jax.lax.conv_general_dilated(
        x, w, window_strides=(1, 1, 1), padding="SAME",
        dimension_numbers=("NDHWC", "DHWIO", "NDHWC")) + b
    mean = jnp.mean(y, axis=(0, 1, 2, 3))
    var = jnp.mean((y - mean) ** 2, axis=(0, 1, 2, 3))
    y = (y - mean) * jax.lax.rsqrt(var + BN_EPS) * g + be
    return jnp.maximum(y, 0.0)


def down_reference(x_ncdhw, params):
    x = jnp.transpose(x_ncdhw, (0, 2, 3, 4, 1))
    N, D, H, W, C = x.shape
    x = x.reshape(N, D // 2, 2, H // 2, 2, W // 2, 2, C).max(axis=(2, 4, 6))
    for (w, b, g, be) in params:
        x = _ref_block(x, w, b, g, be)
    return jnp.transpose(x, (0, 4, 1, 2, 3))


# ---------------------------------------------------------------------------
# main
# ---------------------------------------------------------------------------
if __name__ == "__main__":
    key = jax.random.PRNGKey(0)
    kx, kw1, kb1, kw2, kb2 = jax.random.split(key, 5)

    N, C_IN, C_OUT = 2, 4, 8
    D = H = W = 8                      # after MaxPool3d(2): 4x4x4

    x = jax.random.normal(kx, (N, C_IN, D, H, W), dtype=jnp.float32)

    # Conv3d weights stored as [3, 3, 3, Cin, Cout].
    fan1 = C_IN * 27
    w1 = jax.random.uniform(kw1, (3, 3, 3, C_IN, C_OUT), jnp.float32,
                            -1.0 / jnp.sqrt(fan1), 1.0 / jnp.sqrt(fan1))
    b1 = jax.random.uniform(kb1, (C_OUT,), jnp.float32,
                            -1.0 / jnp.sqrt(fan1), 1.0 / jnp.sqrt(fan1))
    fan2 = C_OUT * 27
    w2 = jax.random.uniform(kw2, (3, 3, 3, C_OUT, C_OUT), jnp.float32,
                            -1.0 / jnp.sqrt(fan2), 1.0 / jnp.sqrt(fan2))
    b2 = jax.random.uniform(kb2, (C_OUT,), jnp.float32,
                            -1.0 / jnp.sqrt(fan2), 1.0 / jnp.sqrt(fan2))
    # BatchNorm3d default init: gamma = 1, beta = 0.
    g1 = jnp.ones((C_OUT,), jnp.float32)
    be1 = jnp.zeros((C_OUT,), jnp.float32)
    g2 = jnp.ones((C_OUT,), jnp.float32)
    be2 = jnp.zeros((C_OUT,), jnp.float32)

    params = ((w1, b1, g1, be1), (w2, b2, g2, be2))

    out = jax.jit(down_forward)(x, params)
    out = jax.block_until_ready(out)

    assert out.shape == (N, C_OUT, D // 2, H // 2, W // 2), out.shape

    ref = down_reference(x, params)
    # bf16 MXU operands give ~0.5-1% relative rounding after two BN-normalized
    # conv layers; compare against the f32 reference with a matching tolerance.
    assert jnp.allclose(out, ref, atol=3e-2, rtol=3e-2), (
        float(jnp.max(jnp.abs(out - ref))))

    print("KERNEL_OK")
</pallas_src>

<mosaic_0001>
module attributes {stable_mosaic.version = 11 : i64} {
  func.func @_bn_conv_stats_kernel(%arg0: i32, %arg1: memref<1x4x4x4x8xf32, #tpu.memory_space<vmem>>, %arg2: memref<1x8xf32, #tpu.memory_space<vmem>>, %arg3: memref<1x8xf32, #tpu.memory_space<vmem>>, %arg4: memref<256x8xbf16, #tpu.memory_space<vmem>>, %arg5: memref<1x64x8xf32, #tpu.memory_space<vmem>>, %arg6: memref<1x2x8xf32, #tpu.memory_space<vmem>>, %arg7: memref<6x6x6x8xf32, #tpu.memory_space<vmem>>) attributes {dimension_semantics = [#tpu.dimension_semantics<parallel>], iteration_bounds = array<i64: 2>, scalar_prefetch = 0 : i64, scratch_operands = 1 : i64, tpu.core_type = #tpu.core_type<tc>, window_params = [{transform_indices = @transform_0, window_bounds = array<i64: 1, 4, 4, 4, 8>}, {pipeline_mode = #tpu.pipeline_mode<synchronous>, transform_indices = @transform_1, window_bounds = array<i64: 1, 8>}, {pipeline_mode = #tpu.pipeline_mode<synchronous>, transform_indices = @transform_2, window_bounds = array<i64: 1, 8>}, {pipeline_mode = #tpu.pipeline_mode<synchronous>, transform_indices = @transform_3, window_bounds = array<i64: 256, 8>}, {transform_indices = @transform_4, window_bounds = array<i64: 1, 64, 8>}, {transform_indices = @transform_5, window_bounds = array<i64: 1, 2, 8>}]} {
    %c0 = arith.constant 0 : index
    %c0_0 = arith.constant 0 : index
    %0 = vector.load %arg2[%c0, %c0_0] : memref<1x8xf32, #tpu.memory_space<vmem>>, vector<1x8xf32>
    %1 = vector.shape_cast %0 : vector<1x8xf32> to vector<1x1x1x8xf32>
    %c0_1 = arith.constant 0 : index
    %c0_2 = arith.constant 0 : index
    %2 = vector.load %arg3[%c0_1, %c0_2] : memref<1x8xf32, #tpu.memory_space<vmem>>, vector<1x8xf32>
    %3 = vector.shape_cast %2 : vector<1x8xf32> to vector<1x1x1x8xf32>
    %c0_3 = arith.constant 0 : index
    %c0_4 = arith.constant 0 : index
    %c0_5 = arith.constant 0 : index
    %c0_6 = arith.constant 0 : index
    %c0_7 = arith.constant 0 : index
    %4 = vector.load %arg1[%c0_3, %c0_4, %c0_5, %c0_6, %c0_7] : memref<1x4x4x4x8xf32, #tpu.memory_space<vmem>>, vector<1x4x4x4x8xf32>
    %5 = vector.shape_cast %4 : vector<1x4x4x4x8xf32> to vector<4x4x4x8xf32>
    %6 = vector.broadcast %1 : vector<1x1x1x8xf32> to vector<4x4x4x8xf32>
    %7 = arith.mulf %5, %6 : vector<4x4x4x8xf32>
    %8 = vector.broadcast %3 : vector<1x1x1x8xf32> to vector<4x4x4x8xf32>
    %9 = arith.addf %7, %8 : vector<4x4x4x8xf32>
    %cst = arith.constant 0.000000e+00 : f32
    %10 = vector.broadcast %cst : f32 to vector<4x4x4x8xf32>
    %11 = arith.maximumf %9, %10 : vector<4x4x4x8xf32>
    %cst_8 = arith.constant 0.000000e+00 : f32
    %12 = vector.broadcast %cst_8 : f32 to vector<6x6x6x8xf32>
    %c0_9 = arith.constant 0 : index
    %c0_10 = arith.constant 0 : index
    %c0_11 = arith.constant 0 : index
    %c0_12 = arith.constant 0 : index
    %13 = vector.load %arg7[%c0_9, %c0_10, %c0_11, %c0_12] : memref<6x6x6x8xf32, #tpu.memory_space<vmem>>, vector<6x6x6x8xf32>
    tpu.vector_store %arg7[%c0_9, %c0_10, %c0_11, %c0_12], %12 {strides = array<i32>} : memref<6x6x6x8xf32, #tpu.memory_space<vmem>>, vector<6x6x6x8xf32>,
    %c1 = arith.constant 1 : index
    %c1_13 = arith.constant 1 : index
    %c1_14 = arith.constant 1 : index
    %c0_15 = arith.constant 0 : index
    %14 = vector.load %arg7[%c1, %c1_13, %c1_14, %c0_15] : memref<6x6x6x8xf32, #tpu.memory_space<vmem>>, vector<4x4x4x8xf32>
    tpu.vector_store %arg7[%c1, %c1_13, %c1_14, %c0_15], %11 {strides = array<i32>} : memref<6x6x6x8xf32, #tpu.memory_space<vmem>>, vector<4x4x4x8xf32>,
    %c0_16 = arith.constant 0 : index
    %c0_17 = arith.constant 0 : index
    %c0_18 = arith.constant 0 : index
    %c0_19 = arith.constant 0 : index
    %15 = vector.load %arg7[%c0_16, %c0_17, %c0_18, %c0_19] : memref<6x6x6x8xf32, #tpu.memory_space<vmem>>, vector<6x6x6x8xf32>
    %16 = arith.truncf %15 : vector<6x6x6x8xf32> to vector<6x6x6x8xbf16>
    %17 = vector.extract_strided_slice %16 {offsets = [0, 0, 0, 0], sizes = [4, 4, 4, 8], strides = [1, 1, 1, 1]} : vector<6x6x6x8xbf16> to vector<4x4x4x8xbf16>
    %18 = vector.extract_strided_slice %16 {offsets = [0, 0, 1, 0], sizes = [4, 4, 4, 8], strides = [1, 1, 1, 1]} : vector<6x6x6x8xbf16> to vector<4x4x4x8xbf16>
    %19 = vector.extract_strided_slice %16 {offsets = [0, 0, 2, 0], sizes = [4, 4, 4, 8], strides = [1, 1, 1, 1]} : vector<6x6x6x8xbf16> to vector<4x4x4x8xbf16>
    %20 = vector.extract_strided_slice %16 {offsets = [0, 1, 0, 0], sizes = [4, 4, 4, 8], strides = [1, 1, 1, 1]} : vector<6x6x6x8xbf16> to vector<4x4x4x8xbf16>
    %21 = vector.extract_strided_slice %16 {offsets = [0, 1, 1, 0], sizes = [4, 4, 4, 8], strides = [1, 1, 1, 1]} : vector<6x6x6x8xbf16> to vector<4x4x4x8xbf16>
    %22 = vector.extract_strided_slice %16 {offsets = [0, 1, 2, 0], sizes = [4, 4, 4, 8], strides = [1, 1, 1, 1]} : vector<6x6x6x8xbf16> to vector<4x4x4x8xbf16>
    %23 = vector.extract_strided_slice %16 {offsets = [0, 2, 0, 0], sizes = [4, 4, 4, 8], strides = [1, 1, 1, 1]} : vector<6x6x6x8xbf16> to vector<4x4x4x8xbf16>
    %24 = vector.extract_strided_slice %16 {offsets = [0, 2, 1, 0], sizes = [4, 4, 4, 8], strides = [1, 1, 1, 1]} : vector<6x6x6x8xbf16> to vector<4x4x4x8xbf16>
    %25 = vector.extract_strided_slice %16 {offsets = [0, 2, 2, 0], sizes = [4, 4, 4, 8], strides = [1, 1, 1, 1]} : vector<6x6x6x8xbf16> to vector<4x4x4x8xbf16>
    %26 = vector.extract_strided_slice %16 {offsets = [1, 0, 0, 0], sizes = [4, 4, 4, 8], strides = [1, 1, 1, 1]} : vector<6x6x6x8xbf16> to vector<4x4x4x8xbf16>
    %27 = vector.extract_strided_slice %16 {offsets = [1, 0, 1, 0], sizes = [4, 4, 4, 8], strides = [1, 1, 1, 1]} : vector<6x6x6x8xbf16> to vector<4x4x4x8xbf16>
    %28 = vector.extract_strided_slice %16 {offsets = [1, 0, 2, 0], sizes = [4, 4, 4, 8], strides = [1, 1, 1, 1]} : vector<6x6x6x8xbf16> to vector<4x4x4x8xbf16>
    %29 = vector.extract_strided_slice %16 {offsets = [1, 1, 0, 0], sizes = [4, 4, 4, 8], strides = [1, 1, 1, 1]} : vector<6x6x6x8xbf16> to vector<4x4x4x8xbf16>
    %30 = vector.extract_strided_slice %16 {offsets = [1, 1, 1, 0], sizes = [4, 4, 4, 8], strides = [1, 1, 1, 1]} : vector<6x6x6x8xbf16> to vector<4x4x4x8xbf16>
    %31 = vector.extract_strided_slice %16 {offsets = [1, 1, 2, 0], sizes = [4, 4, 4, 8], strides = [1, 1, 1, 1]} : vector<6x6x6x8xbf16> to vector<4x4x4x8xbf16>
    %32 = vector.extract_strided_slice %16 {offsets = [1, 2, 0, 0], sizes = [4, 4, 4, 8], strides = [1, 1, 1, 1]} : vector<6x6x6x8xbf16> to vector<4x4x4x8xbf16>
    %33 = vector.extract_strided_slice %16 {offsets = [1, 2, 1, 0], sizes = [4, 4, 4, 8], strides = [1, 1, 1, 1]} : vector<6x6x6x8xbf16> to vector<4x4x4x8xbf16>
    %34 = vector.extract_strided_slice %16 {offsets = [1, 2, 2, 0], sizes = [4, 4, 4, 8], strides = [1, 1, 1, 1]} : vector<6x6x6x8xbf16> to vector<4x4x4x8xbf16>
    %35 = vector.extract_strided_slice %16 {offsets = [2, 0, 0, 0], sizes = [4, 4, 4, 8], strides = [1, 1, 1, 1]} : vector<6x6x6x8xbf16> to vector<4x4x4x8xbf16>
    %36 = vector.extract_strided_slice %16 {offsets = [2, 0, 1, 0], sizes = [4, 4, 4, 8], strides = [1, 1, 1, 1]} : vector<6x6x6x8xbf16> to vector<4x4x4x8xbf16>
    %37 = vector.extract_strided_slice %16 {offsets = [2, 0, 2, 0], sizes = [4, 4, 4, 8], strides = [1, 1, 1, 1]} : vector<6x6x6x8xbf16> to vector<4x4x4x8xbf16>
    %38 = vector.extract_strided_slice %16 {offsets = [2, 1, 0, 0], sizes = [4, 4, 4, 8], strides = [1, 1, 1, 1]} : vector<6x6x6x8xbf16> to vector<4x4x4x8xbf16>
    %39 = vector.extract_strided_slice %16 {offsets = [2, 1, 1, 0], sizes = [4, 4, 4, 8], strides = [1, 1, 1, 1]} : vector<6x6x6x8xbf16> to vector<4x4x4x8xbf16>
    %40 = vector.extract_strided_slice %16 {offsets = [2, 1, 2, 0], sizes = [4, 4, 4, 8], strides = [1, 1, 1, 1]} : vector<6x6x6x8xbf16> to vector<4x4x4x8xbf16>
    %41 = vector.extract_strided_slice %16 {offsets = [2, 2, 0, 0], sizes = [4, 4, 4, 8], strides = [1, 1, 1, 1]} : vector<6x6x6x8xbf16> to vector<4x4x4x8xbf16>
    %42 = vector.extract_strided_slice %16 {offsets = [2, 2, 1, 0], sizes = [4, 4, 4, 8], strides = [1, 1, 1, 1]} : vector<6x6x6x8xbf16> to vector<4x4x4x8xbf16>
    %43 = vector.extract_strided_slice %16 {offsets = [2, 2, 2, 0], sizes = [4, 4, 4, 8], strides = [1, 1, 1, 1]} : vector<6x6x6x8xbf16> to vector<4x4x4x8xbf16>
    %44 = tpu.concatenate %17, %18, %19, %20, %21, %22, %23, %24, %25, %26, %27, %28, %29, %30, %31, %32 in 3 : vector<4x4x4x8xbf16>, vector<4x4x4x8xbf16>, vector<4x4x4x8xbf16>, vector<4x4x4x8xbf16>, vector<4x4x4x8xbf16>, vector<4x4x4x8xbf16>, vector<4x4x4x8xbf16>, vector<4x4x4x8xbf16>, vector<4x4x4x8xbf16>, vector<4x4x4x8xbf16>, vector<4x4x4x8xbf16>, vector<4x4x4x8xbf16>, vector<4x4x4x8xbf16>, vector<4x4x4x8xbf16>, vector<4x4x4x8xbf16>, vector<4x4x4x8xbf16> -> vector<4x4x4x128xbf16>
    %45 = tpu.concatenate %33, %34, %35, %36, %37, %38, %39, %40, %41, %42, %43 in 3 : vector<4x4x4x8xbf16>, vector<4x4x4x8xbf16>, vector<4x4x4x8xbf16>, vector<4x4x4x8xbf16>, vector<4x4x4x8xbf16>, vector<4x4x4x8xbf16>, vector<4x4x4x8xbf16>, vector<4x4x4x8xbf16>, vector<4x4x4x8xbf16>, vector<4x4x4x8xbf16>, vector<4x4x4x8xbf16> -> vector<4x4x4x88xbf16>
    %46 = tpu.concatenate %44, %45 in 3 : vector<4x4x4x128xbf16>, vector<4x4x4x88xbf16> -> vector<4x4x4x216xbf16>
    %47 = vector.shape_cast %46 : vector<4x4x4x216xbf16> to vector<64x216xbf16>
    %cst_20 = arith.constant 0.000000e+00 : bf16
    %48 = vector.broadcast %cst_20 : bf16 to vector<64x40xbf16>
    %49 = tpu.concatenate %47, %48 in 1 : vector<64x216xbf16>, vector<64x40xbf16> -> vector<64x256xbf16>
    %c0_21 = arith.constant 0 : index
    %c0_22 = arith.constant 0 : index
    %50 = vector.load %arg4[%c0_21, %c0_22] : memref<256x8xbf16, #tpu.memory_space<vmem>>, vector<256x8xbf16>
    %cst_23 = arith.constant dense<0.000000e+00> : vector<64x8xf32>
    %51 = tpu.matmul %49, %50, %cst_23 {dimension_numbers = #tpu.dot_dimension_numbers<[1], [0], [0], [1], [0, 0, 1, 1], [], []>} : vector<64x256xbf16>, vector<256x8xbf16>, vector<64x8xf32> -> vector<64x8xf32>
    %c0_24 = arith.constant 0 : index
    %c0_25 = arith.constant 0 : index
    %c0_26 = arith.constant 0 : index
    %52 = vector.load %arg5[%c0_24, %c0_25, %c0_26] : memref<1x64x8xf32, #tpu.memory_space<vmem>>, vector<1x64x8xf32>
    %53 = vector.shape_cast %52 : vector<1x64x8xf32> to vector<64x8xf32>
    %54 = vector.shape_cast %51 : vector<64x8xf32> to vector<1x64x8xf32>
    tpu.vector_store %arg5[%c0_24, %c0_25, %c0_26], %54 {strides = array<i32>} : memref<1x64x8xf32, #tpu.memory_space<vmem>>, vector<1x64x8xf32>,
    %cst_27 = arith.constant dense<0.000000e+00> : vector<8xf32>
    %55 = vector.multi_reduction <add>, %51, %cst_27 [0] : vector<64x8xf32> to vector<8xf32>
    %56 = vector.shape_cast %55 : vector<8xf32> to vector<1x8xf32>
    %57 = arith.mulf %51, %51 : vector<64x8xf32>
    %cst_28 = arith.constant dense<0.000000e+00> : vector<8xf32>
    %58 = vector.multi_reduction <add>, %57, %cst_28 [0] : vector<64x8xf32> to vector<8xf32>
    %59 = vector.shape_cast %58 : vector<8xf32> to vector<1x8xf32>
    %60 = tpu.concatenate %56, %59 in 0 : vector<1x8xf32>, vector<1x8xf32> -> vector<2x8xf32>
    %c0_29 = arith.constant 0 : index
    %c0_30 = arith.constant 0 : index
    %c0_31 = arith.constant 0 : index
    %61 = vector.load %arg6[%c0_29, %c0_30, %c0_31] : memref<1x2x8xf32, #tpu.memory_space<vmem>>, vector<1x2x8xf32>
    %62 = vector.shape_cast %61 : vector<1x2x8xf32> to vector<2x8xf32>
    %63 = vector.shape_cast %60 : vector<2x8xf32> to vector<1x2x8xf32>
    tpu.vector_store %arg6[%c0_29, %c0_30, %c0_31], %63 {strides = array<i32>} : memref<1x2x8xf32, #tpu.memory_space<vmem>>, vector<1x2x8xf32>,
    return
  }
  func.func @transform_0(%arg0: i32) -> (i32, i32, i32, i32, i32) {
    %c0_i32 = arith.constant 0 : i32
    %c0_i32_0 = arith.constant 0 : i32
    %c0_i32_1 = arith.constant 0 : i32
    %c0_i32_2 = arith.constant 0 : i32
    %c0_i32_3 = arith.constant 0 : i32
    return %arg0, %c0_i32, %c0_i32_0, %c0_i32_1, %c0_i32_2 : i32, i32, i32, i32, i32
  }
  func.func @transform_1(%arg0: i32) -> (i32, i32) {
    %c0_i32 = arith.constant 0 : i32
    %c0_i32_0 = arith.constant 0 : i32
    %c0_i32_1 = arith.constant 0 : i32
    return %c0_i32, %c0_i32_0 : i32, i32
  }
  func.func @transform_2(%arg0: i32) -> (i32, i32) {
    %c0_i32 = arith.constant 0 : i32
    %c0_i32_0 = arith.constant 0 : i32
    %c0_i32_1 = arith.constant 0 : i32
    return %c0_i32, %c0_i32_0 : i32, i32
  }
  func.func @transform_3(%arg0: i32) -> (i32, i32) {
    %c0_i32 = arith.constant 0 : i32
    %c0_i32_0 = arith.constant 0 : i32
    %c0_i32_1 = arith.constant 0 : i32
    return %c0_i32, %c0_i32_0 : i32, i32
  }
  func.func @transform_4(%arg0: i32) -> (i32, i32, i32) {
    %c0_i32 = arith.constant 0 : i32
    %c0_i32_0 = arith.constant 0 : i32
    %c0_i32_1 = arith.constant 0 : i32
    return %arg0, %c0_i32, %c0_i32_0 : i32, i32, i32
  }
  func.func @transform_5(%arg0: i32) -> (i32, i32, i32) {
    %c0_i32 = arith.constant 0 : i32
    %c0_i32_0 = arith.constant 0 : i32
    %c0_i32_1 = arith.constant 0 : i32
    return %arg0, %c0_i32, %c0_i32_0 : i32, i32, i32
  }
}

module attributes {stable_mosaic.version = 11 : i64} {
  func.func @_pool_conv_stats_kernel(%arg0: i32, %arg1: memref<1x8x8x8x4xf32, #tpu.memory_space<vmem>>, %arg2: memref<128x8xbf16, #tpu.memory_space<vmem>>, %arg3: memref<1x64x8xf32, #tpu.memory_space<vmem>>, %arg4: memref<1x2x8xf32, #tpu.memory_space<vmem>>, %arg5: memref<6x6x6x4xf32, #tpu.memory_space<vmem>>) attributes {dimension_semantics = [#tpu.dimension_semantics<parallel>], iteration_bounds = array<i64: 2>, scalar_prefetch = 0 : i64, scratch_operands = 1 : i64, tpu.core_type = #tpu.core_type<tc>, window_params = [{transform_indices = @transform_0, window_bounds = array<i64: 1, 8, 8, 8, 4>}, {pipeline_mode = #tpu.pipeline_mode<synchronous>, transform_indices = @transform_1, window_bounds = array<i64: 128, 8>}, {transform_indices = @transform_2, window_bounds = array<i64: 1, 64, 8>}, {transform_indices = @transform_3, window_bounds = array<i64: 1, 2, 8>}]} {
    %c0 = arith.constant 0 : index
    %c0_0 = arith.constant 0 : index
    %c0_1 = arith.constant 0 : index
    %c0_2 = arith.constant 0 : index
    %c0_3 = arith.constant 0 : index
    %0 = vector.load %arg1[%c0, %c0_0, %c0_1, %c0_2, %c0_3] : memref<1x8x8x8x4xf32, #tpu.memory_space<vmem>>, vector<1x8x8x8x4xf32>
    %1 = vector.shape_cast %0 : vector<1x8x8x8x4xf32> to vector<8x8x8x4xf32>
    %2 = vector.shape_cast %1 : vector<8x8x8x4xf32> to vector<4x2x8x8x4xf32>
    %3 = vector.extract_strided_slice %2 {offsets = [0, 0, 0, 0, 0], sizes = [4, 1, 8, 8, 4], strides = [1, 1, 1, 1, 1]} : vector<4x2x8x8x4xf32> to vector<4x1x8x8x4xf32>
    %4 = vector.shape_cast %3 : vector<4x1x8x8x4xf32> to vector<4x8x8x4xf32>
    %5 = vector.extract_strided_slice %2 {offsets = [0, 1, 0, 0, 0], sizes = [4, 1, 8, 8, 4], strides = [1, 1, 1, 1, 1]} : vector<4x2x8x8x4xf32> to vector<4x1x8x8x4xf32>
    %6 = vector.shape_cast %5 : vector<4x1x8x8x4xf32> to vector<4x8x8x4xf32>
    %7 = arith.maximumf %4, %6 : vector<4x8x8x4xf32>
    %8 = vector.shape_cast %7 : vector<4x8x8x4xf32> to vector<4x4x2x8x4xf32>
    %9 = vector.extract_strided_slice %8 {offsets = [0, 0, 0, 0, 0], sizes = [4, 4, 1, 8, 4], strides = [1, 1, 1, 1, 1]} : vector<4x4x2x8x4xf32> to vector<4x4x1x8x4xf32>
    %10 = vector.shape_cast %9 : vector<4x4x1x8x4xf32> to vector<4x4x8x4xf32>
    %11 = vector.extract_strided_slice %8 {offsets = [0, 0, 1, 0, 0], sizes = [4, 4, 1, 8, 4], strides = [1, 1, 1, 1, 1]} : vector<4x4x2x8x4xf32> to vector<4x4x1x8x4xf32>
    %12 = vector.shape_cast %11 : vector<4x4x1x8x4xf32> to vector<4x4x8x4xf32>
    %13 = arith.maximumf %10, %12 : vector<4x4x8x4xf32>
    %14 = vector.shape_cast %13 : vector<4x4x8x4xf32> to vector<4x4x4x2x4xf32>
    %15 = vector.extract_strided_slice %14 {offsets = [0, 0, 0, 0, 0], sizes = [4, 4, 4, 1, 4], strides = [1, 1, 1, 1, 1]} : vector<4x4x4x2x4xf32> to vector<4x4x4x1x4xf32>
    %16 = vector.shape_cast %15 : vector<4x4x4x1x4xf32> to vector<4x4x4x4xf32>
    %17 = vector.extract_strided_slice %14 {offsets = [0, 0, 0, 1, 0], sizes = [4, 4, 4, 1, 4], strides = [1, 1, 1, 1, 1]} : vector<4x4x4x2x4xf32> to vector<4x4x4x1x4xf32>
    %18 = vector.shape_cast %17 : vector<4x4x4x1x4xf32> to vector<4x4x4x4xf32>
    %19 = arith.maximumf %16, %18 : vector<4x4x4x4xf32>
    %cst = arith.constant 0.000000e+00 : f32
    %20 = vector.broadcast %cst : f32 to vector<6x6x6x4xf32>
    %c0_4 = arith.constant 0 : index
    %c0_5 = arith.constant 0 : index
    %c0_6 = arith.constant 0 : index
    %c0_7 = arith.constant 0 : index
    %21 = vector.load %arg5[%c0_4, %c0_5, %c0_6, %c0_7] : memref<6x6x6x4xf32, #tpu.memory_space<vmem>>, vector<6x6x6x4xf32>
    tpu.vector_store %arg5[%c0_4, %c0_5, %c0_6, %c0_7], %20 {strides = array<i32>} : memref<6x6x6x4xf32, #tpu.memory_space<vmem>>, vector<6x6x6x4xf32>,
    %c1 = arith.constant 1 : index
    %c1_8 = arith.constant 1 : index
    %c1_9 = arith.constant 1 : index
    %c0_10 = arith.constant 0 : index
    %22 = vector.load %arg5[%c1, %c1_8, %c1_9, %c0_10] : memref<6x6x6x4xf32, #tpu.memory_space<vmem>>, vector<4x4x4x4xf32>
    tpu.vector_store %arg5[%c1, %c1_8, %c1_9, %c0_10], %19 {strides = array<i32>} : memref<6x6x6x4xf32, #tpu.memory_space<vmem>>, vector<4x4x4x4xf32>,
    %c0_11 = arith.constant 0 : index
    %c0_12 = arith.constant 0 : index
    %c0_13 = arith.constant 0 : index
    %c0_14 = arith.constant 0 : index
    %23 = vector.load %arg5[%c0_11, %c0_12, %c0_13, %c0_14] : memref<6x6x6x4xf32, #tpu.memory_space<vmem>>, vector<6x6x6x4xf32>
    %24 = arith.truncf %23 : vector<6x6x6x4xf32> to vector<6x6x6x4xbf16>
    %25 = vector.extract_strided_slice %24 {offsets = [0, 0, 0, 0], sizes = [4, 4, 4, 4], strides = [1, 1, 1, 1]} : vector<6x6x6x4xbf16> to vector<4x4x4x4xbf16>
    %26 = vector.extract_strided_slice %24 {offsets = [0, 0, 1, 0], sizes = [4, 4, 4, 4], strides = [1, 1, 1, 1]} : vector<6x6x6x4xbf16> to vector<4x4x4x4xbf16>
    %27 = vector.extract_strided_slice %24 {offsets = [0, 0, 2, 0], sizes = [4, 4, 4, 4], strides = [1, 1, 1, 1]} : vector<6x6x6x4xbf16> to vector<4x4x4x4xbf16>
    %28 = vector.extract_strided_slice %24 {offsets = [0, 1, 0, 0], sizes = [4, 4, 4, 4], strides = [1, 1, 1, 1]} : vector<6x6x6x4xbf16> to vector<4x4x4x4xbf16>
    %29 = vector.extract_strided_slice %24 {offsets = [0, 1, 1, 0], sizes = [4, 4, 4, 4], strides = [1, 1, 1, 1]} : vector<6x6x6x4xbf16> to vector<4x4x4x4xbf16>
    %30 = vector.extract_strided_slice %24 {offsets = [0, 1, 2, 0], sizes = [4, 4, 4, 4], strides = [1, 1, 1, 1]} : vector<6x6x6x4xbf16> to vector<4x4x4x4xbf16>
    %31 = vector.extract_strided_slice %24 {offsets = [0, 2, 0, 0], sizes = [4, 4, 4, 4], strides = [1, 1, 1, 1]} : vector<6x6x6x4xbf16> to vector<4x4x4x4xbf16>
    %32 = vector.extract_strided_slice %24 {offsets = [0, 2, 1, 0], sizes = [4, 4, 4, 4], strides = [1, 1, 1, 1]} : vector<6x6x6x4xbf16> to vector<4x4x4x4xbf16>
    %33 = vector.extract_strided_slice %24 {offsets = [0, 2, 2, 0], sizes = [4, 4, 4, 4], strides = [1, 1, 1, 1]} : vector<6x6x6x4xbf16> to vector<4x4x4x4xbf16>
    %34 = vector.extract_strided_slice %24 {offsets = [1, 0, 0, 0], sizes = [4, 4, 4, 4], strides = [1, 1, 1, 1]} : vector<6x6x6x4xbf16> to vector<4x4x4x4xbf16>
    %35 = vector.extract_strided_slice %24 {offsets = [1, 0, 1, 0], sizes = [4, 4, 4, 4], strides = [1, 1, 1, 1]} : vector<6x6x6x4xbf16> to vector<4x4x4x4xbf16>
    %36 = vector.extract_strided_slice %24 {offsets = [1, 0, 2, 0], sizes = [4, 4, 4, 4], strides = [1, 1, 1, 1]} : vector<6x6x6x4xbf16> to vector<4x4x4x4xbf16>
    %37 = vector.extract_strided_slice %24 {offsets = [1, 1, 0, 0], sizes = [4, 4, 4, 4], strides = [1, 1, 1, 1]} : vector<6x6x6x4xbf16> to vector<4x4x4x4xbf16>
    %38 = vector.extract_strided_slice %24 {offsets = [1, 1, 1, 0], sizes = [4, 4, 4, 4], strides = [1, 1, 1, 1]} : vector<6x6x6x4xbf16> to vector<4x4x4x4xbf16>
    %39 = vector.extract_strided_slice %24 {offsets = [1, 1, 2, 0], sizes = [4, 4, 4, 4], strides = [1, 1, 1, 1]} : vector<6x6x6x4xbf16> to vector<4x4x4x4xbf16>
    %40 = vector.extract_strided_slice %24 {offsets = [1, 2, 0, 0], sizes = [4, 4, 4, 4], strides = [1, 1, 1, 1]} : vector<6x6x6x4xbf16> to vector<4x4x4x4xbf16>
    %41 = vector.extract_strided_slice %24 {offsets = [1, 2, 1, 0], sizes = [4, 4, 4, 4], strides = [1, 1, 1, 1]} : vector<6x6x6x4xbf16> to vector<4x4x4x4xbf16>
    %42 = vector.extract_strided_slice %24 {offsets = [1, 2, 2, 0], sizes = [4, 4, 4, 4], strides = [1, 1, 1, 1]} : vector<6x6x6x4xbf16> to vector<4x4x4x4xbf16>
    %43 = vector.extract_strided_slice %24 {offsets = [2, 0, 0, 0], sizes = [4, 4, 4, 4], strides = [1, 1, 1, 1]} : vector<6x6x6x4xbf16> to vector<4x4x4x4xbf16>
    %44 = vector.extract_strided_slice %24 {offsets = [2, 0, 1, 0], sizes = [4, 4, 4, 4], strides = [1, 1, 1, 1]} : vector<6x6x6x4xbf16> to vector<4x4x4x4xbf16>
    %45 = vector.extract_strided_slice %24 {offsets = [2, 0, 2, 0], sizes = [4, 4, 4, 4], strides = [1, 1, 1, 1]} : vector<6x6x6x4xbf16> to vector<4x4x4x4xbf16>
    %46 = vector.extract_strided_slice %24 {offsets = [2, 1, 0, 0], sizes = [4, 4, 4, 4], strides = [1, 1, 1, 1]} : vector<6x6x6x4xbf16> to vector<4x4x4x4xbf16>
    %47 = vector.extract_strided_slice %24 {offsets = [2, 1, 1, 0], sizes = [4, 4, 4, 4], strides = [1, 1, 1, 1]} : vector<6x6x6x4xbf16> to vector<4x4x4x4xbf16>
    %48 = vector.extract_strided_slice %24 {offsets = [2, 1, 2, 0], sizes = [4, 4, 4, 4], strides = [1, 1, 1, 1]} : vector<6x6x6x4xbf16> to vector<4x4x4x4xbf16>
    %49 = vector.extract_strided_slice %24 {offsets = [2, 2, 0, 0], sizes = [4, 4, 4, 4], strides = [1, 1, 1, 1]} : vector<6x6x6x4xbf16> to vector<4x4x4x4xbf16>
    %50 = vector.extract_strided_slice %24 {offsets = [2, 2, 1, 0], sizes = [4, 4, 4, 4], strides = [1, 1, 1, 1]} : vector<6x6x6x4xbf16> to vector<4x4x4x4xbf16>
    %51 = vector.extract_strided_slice %24 {offsets = [2, 2, 2, 0], sizes = [4, 4, 4, 4], strides = [1, 1, 1, 1]} : vector<6x6x6x4xbf16> to vector<4x4x4x4xbf16>
    %52 = tpu.concatenate %25, %26, %27, %28, %29, %30, %31, %32, %33, %34, %35, %36, %37, %38, %39, %40 in 3 : vector<4x4x4x4xbf16>, vector<4x4x4x4xbf16>, vector<4x4x4x4xbf16>, vector<4x4x4x4xbf16>, vector<4x4x4x4xbf16>, vector<4x4x4x4xbf16>, vector<4x4x4x4xbf16>, vector<4x4x4x4xbf16>, vector<4x4x4x4xbf16>, vector<4x4x4x4xbf16>, vector<4x4x4x4xbf16>, vector<4x4x4x4xbf16>, vector<4x4x4x4xbf16>, vector<4x4x4x4xbf16>, vector<4x4x4x4xbf16>, vector<4x4x4x4xbf16> -> vector<4x4x4x64xbf16>
    %53 = tpu.concatenate %41, %42, %43, %44, %45, %46, %47, %48, %49, %50, %51 in 3 : vector<4x4x4x4xbf16>, vector<4x4x4x4xbf16>, vector<4x4x4x4xbf16>, vector<4x4x4x4xbf16>, vector<4x4x4x4xbf16>, vector<4x4x4x4xbf16>, vector<4x4x4x4xbf16>, vector<4x4x4x4xbf16>, vector<4x4x4x4xbf16>, vector<4x4x4x4xbf16>, vector<4x4x4x4xbf16> -> vector<4x4x4x44xbf16>
    %54 = tpu.concatenate %52, %53 in 3 : vector<4x4x4x64xbf16>, vector<4x4x4x44xbf16> -> vector<4x4x4x108xbf16>
    %55 = vector.shape_cast %54 : vector<4x4x4x108xbf16> to vector<64x108xbf16>
    %cst_15 = arith.constant 0.000000e+00 : bf16
    %56 = vector.broadcast %cst_15 : bf16 to vector<64x20xbf16>
    %57 = tpu.concatenate %55, %56 in 1 : vector<64x108xbf16>, vector<64x20xbf16> -> vector<64x128xbf16>
    %c0_16 = arith.constant 0 : index
    %c0_17 = arith.constant 0 : index
    %58 = vector.load %arg2[%c0_16, %c0_17] : memref<128x8xbf16, #tpu.memory_space<vmem>>, vector<128x8xbf16>
    %cst_18 = arith.constant dense<0.000000e+00> : vector<64x8xf32>
    %59 = tpu.matmul %57, %58, %cst_18 {dimension_numbers = #tpu.dot_dimension_numbers<[1], [0], [0], [1], [0, 0, 1, 1], [], []>} : vector<64x128xbf16>, vector<128x8xbf16>, vector<64x8xf32> -> vector<64x8xf32>
    %c0_19 = arith.constant 0 : index
    %c0_20 = arith.constant 0 : index
    %c0_21 = arith.constant 0 : index
    %60 = vector.load %arg3[%c0_19, %c0_20, %c0_21] : memref<1x64x8xf32, #tpu.memory_space<vmem>>, vector<1x64x8xf32>
    %61 = vector.shape_cast %60 : vector<1x64x8xf32> to vector<64x8xf32>
    %62 = vector.shape_cast %59 : vector<64x8xf32> to vector<1x64x8xf32>
    tpu.vector_store %arg3[%c0_19, %c0_20, %c0_21], %62 {strides = array<i32>} : memref<1x64x8xf32, #tpu.memory_space<vmem>>, vector<1x64x8xf32>,
    %cst_22 = arith.constant dense<0.000000e+00> : vector<8xf32>
    %63 = vector.multi_reduction <add>, %59, %cst_22 [0] : vector<64x8xf32> to vector<8xf32>
    %64 = vector.shape_cast %63 : vector<8xf32> to vector<1x8xf32>
    %65 = arith.mulf %59, %59 : vector<64x8xf32>
    %cst_23 = arith.constant dense<0.000000e+00> : vector<8xf32>
    %66 = vector.multi_reduction <add>, %65, %cst_23 [0] : vector<64x8xf32> to vector<8xf32>
    %67 = vector.shape_cast %66 : vector<8xf32> to vector<1x8xf32>
    %68 = tpu.concatenate %64, %67 in 0 : vector<1x8xf32>, vector<1x8xf32> -> vector<2x8xf32>
    %c0_24 = arith.constant 0 : index
    %c0_25 = arith.constant 0 : index
    %c0_26 = arith.constant 0 : index
    %69 = vector.load %arg4[%c0_24, %c0_25, %c0_26] : memref<1x2x8xf32, #tpu.memory_space<vmem>>, vector<1x2x8xf32>
    %70 = vector.shape_cast %69 : vector<1x2x8xf32> to vector<2x8xf32>
    %71 = vector.shape_cast %68 : vector<2x8xf32> to vector<1x2x8xf32>
    tpu.vector_store %arg4[%c0_24, %c0_25, %c0_26], %71 {strides = array<i32>} : memref<1x2x8xf32, #tpu.memory_space<vmem>>, vector<1x2x8xf32>,
    return
  }
  func.func @transform_0(%arg0: i32) -> (i32, i32, i32, i32, i32) {
    %c0_i32 = arith.constant 0 : i32
    %c0_i32_0 = arith.constant 0 : i32
    %c0_i32_1 = arith.constant 0 : i32
    %c0_i32_2 = arith.constant 0 : i32
    %c0_i32_3 = arith.constant 0 : i32
    return %arg0, %c0_i32, %c0_i32_0, %c0_i32_1, %c0_i32_2 : i32, i32, i32, i32, i32
  }
  func.func @transform_1(%arg0: i32) -> (i32, i32) {
    %c0_i32 = arith.constant 0 : i32
    %c0_i32_0 = arith.constant 0 : i32
    %c0_i32_1 = arith.constant 0 : i32
    return %c0_i32, %c0_i32_0 : i32, i32
  }
  func.func @transform_2(%arg0: i32) -> (i32, i32, i32) {
    %c0_i32 = arith.constant 0 : i32
    %c0_i32_0 = arith.constant 0 : i32
    %c0_i32_1 = arith.constant 0 : i32
    return %arg0, %c0_i32, %c0_i32_0 : i32, i32, i32
  }
  func.func @transform_3(%arg0: i32) -> (i32, i32, i32) {
    %c0_i32 = arith.constant 0 : i32
    %c0_i32_0 = arith.constant 0 : i32
    %c0_i32_1 = arith.constant 0 : i32
    return %arg0, %c0_i32, %c0_i32_0 : i32, i32, i32
  }
}

module attributes {stable_mosaic.version = 11 : i64} {
  func.func @_bn_relu_kernel(%arg0: i32, %arg1: memref<8x128xf32, #tpu.memory_space<vmem>>, %arg2: memref<1x128xf32, #tpu.memory_space<vmem>>, %arg3: memref<1x128xf32, #tpu.memory_space<vmem>>, %arg4: memref<8x128xf32, #tpu.memory_space<vmem>>) attributes {dimension_semantics = [#tpu.dimension_semantics<parallel>], iteration_bounds = array<i64: 1>, scalar_prefetch = 0 : i64, scratch_operands = 0 : i64, tpu.core_type = #tpu.core_type<tc>, window_params = [{transform_indices = @transform_0, window_bounds = array<i64: 8, 128>}, {pipeline_mode = #tpu.pipeline_mode<synchronous>, transform_indices = @transform_1, window_bounds = array<i64: 1, 128>}, {pipeline_mode = #tpu.pipeline_mode<synchronous>, transform_indices = @transform_2, window_bounds = array<i64: 1, 128>}, {transform_indices = @transform_3, window_bounds = array<i64: 8, 128>}]} {
    %c0 = arith.constant 0 : index
    %c0_0 = arith.constant 0 : index
    %0 = vector.load %arg1[%c0, %c0_0] : memref<8x128xf32, #tpu.memory_space<vmem>>, vector<8x128xf32>
    %c0_1 = arith.constant 0 : index
    %c0_2 = arith.constant 0 : index
    %1 = vector.load %arg2[%c0_1, %c0_2] : memref<1x128xf32, #tpu.memory_space<vmem>>, vector<1x128xf32>
    %2 = vector.broadcast %1 : vector<1x128xf32> to vector<8x128xf32>
    %3 = arith.mulf %0, %2 : vector<8x128xf32>
    %c0_3 = arith.constant 0 : index
    %c0_4 = arith.constant 0 : index
    %4 = vector.load %arg3[%c0_3, %c0_4] : memref<1x128xf32, #tpu.memory_space<vmem>>, vector<1x128xf32>
    %5 = vector.broadcast %4 : vector<1x128xf32> to vector<8x128xf32>
    %6 = arith.addf %3, %5 : vector<8x128xf32>
    %cst = arith.constant 0.000000e+00 : f32
    %7 = vector.broadcast %cst : f32 to vector<8x128xf32>
    %8 = arith.maximumf %6, %7 : vector<8x128xf32>
    %c0_5 = arith.constant 0 : index
    %c0_6 = arith.constant 0 : index
    %9 = vector.load %arg4[%c0_5, %c0_6] : memref<8x128xf32, #tpu.memory_space<vmem>>, vector<8x128xf32>
    tpu.vector_store %arg4[%c0_5, %c0_6], %8 {strides = array<i32>} : memref<8x128xf32, #tpu.memory_space<vmem>>, vector<8x128xf32>,
    return
  }
  func.func @transform_0(%arg0: i32) -> (i32, i32) {
    %c0_i32 = arith.constant 0 : i32
    %c0_i32_0 = arith.constant 0 : i32
    return %arg0, %c0_i32 : i32, i32
  }
  func.func @transform_1(%arg0: i32) -> (i32, i32) {
    %c0_i32 = arith.constant 0 : i32
    %c0_i32_0 = arith.constant 0 : i32
    %c0_i32_1 = arith.constant 0 : i32
    return %c0_i32, %c0_i32_0 : i32, i32
  }
  func.func @transform_2(%arg0: i32) -> (i32, i32) {
    %c0_i32 = arith.constant 0 : i32
    %c0_i32_0 = arith.constant 0 : i32
    %c0_i32_1 = arith.constant 0 : i32
    return %c0_i32, %c0_i32_0 : i32, i32
  }
  func.func @transform_3(%arg0: i32) -> (i32, i32) {
    %c0_i32 = arith.constant 0 : i32
    %c0_i32_0 = arith.constant 0 : i32
    return %arg0, %c0_i32 : i32, i32
  }
}

</mosaic_0001>

<bundles_post_ra>
// kernel: tile.13
= control target key start
LH: loop header
LB: loop body
LE: loop exit
PB: predicated region body
PF: predicated region fallthrough
CT: control target
= control target key end

     0   :  { %s28_s0 = inlined_call_operand.vmem [shape: f32[8], index: 0, kind: input, shape index: {}]   ;;  %s29_s1 = inlined_call_operand.vmem [shape: f32[16,8], index: 1, kind: output, shape index: {}]  }
   0x1   :  { %v4_v0 = vld [vmem:[%s28_s0] ss:$0 sm:$0xff] }
   0x2   :  { %5 = vst [vmem:[%s29_s1] sm:$0xff] %v4_v0 }
   0x3   :  { %8 = vst [vmem:[%s29_s1 + $0x8] sm:$0xff] %v4_v0 }

// kernel: tile.14
= control target key start
LH: loop header
LB: loop body
LE: loop exit
PB: predicated region body
PF: predicated region fallthrough
CT: control target
= control target key end

     0   :  { %s131_s10 = smov 120   ;;  %s132_s11 = smov 104   ;;  %vm3_vm0 = vcmask 64512   ;;  %vm9_vm1 = vcmask 1048512   ;;  %vm15_vm2 = vcmask 982912   ;;  %vm21_vm3 = vcmask 917312   ;;  %s207_s0 = inlined_call_operand.vmem [shape: f32[16,8], index: 0, kind: input, shape index: {}]   ;;  %s208_s1 = inlined_call_operand.vmem [shape: f32[1,128], index: 1, kind: output, shape index: {}]  }
   0x1   :  { %v101_v0 = vld [vmem:[%s207_s0 + $0xf] sm:$0x1]   ;;  %v103_v1 = vld [vmem:[%s207_s0 + $0xd] sm:$0x1]   ;;  %v105_v2 = vld [vmem:[%s207_s0 + $0xb] sm:$0x1]  }
   0x2   :  { %7 = vrot.lane.b32.xlu0 %v101_v0, %s131_s10  ;;  %19 = vrot.lane.b32.xlu1 %v103_v1, %s132_s11  ;;  %s133_s14 = smov 88   ;;  %v102_v3 = vld [vmem:[%s207_s0 + $0xe] sm:$0x1]   ;;  %v104_v4 = vld [vmem:[%s207_s0 + $0xc] sm:$0x1]   ;;  %s134_s19 = smov 112  }
   0x3   :  { %31 = vrot.lane.b32.xlu2 %v105_v2, %s133_s14  ;;  %s135_s20 = smov 96   ;;  %v106_v5 = vld [vmem:[%s207_s0 + $0xa] sm:$0x1]   ;;  %s136_s23 = smov 80   ;;  %v107_v6 = vld [vmem:[%s207_s0 + $0x9] sm:$0x1]  }
   0x4   :  { %v108_v7 = vld [vmem:[%s207_s0 + $0x8] sm:$0x1]   ;;  %s137_s28 = smov 72   ;;  %s138_s29 = smov 64   ;;  %v109_v8 = vld [vmem:[%s207_s0 + $0x7] sm:$0x1]  }
   0x5   :  { %s139_s3 = smov 56   ;;  %v110_v9 = vld [vmem:[%s207_s0 + $0x6] sm:$0x1]   ;;  %v111_v10 = vld [vmem:[%s207_s0 + $0x5] sm:$0x1]   ;;  %s140_s8 = smov 48  }
   0x6   :  { %s141_s9 = smov 40   ;;  %v112_v11 = vld [vmem:[%s207_s0 + $0x4] sm:$0x1]   ;;  %s142_s12 = smov 32   ;;  %v113_v12 = vld [vmem:[%s207_s0 + $0x3] sm:$0x1]  }
   0x7   :  { %v114_v13 = vld [vmem:[%s207_s0 + $0x2] sm:$0x1]   ;;  %s143_s17 = smov 24   ;;  %s144_s18 = smov 16   ;;  %v115_v14 = vld [vmem:[%s207_s0 + $0x1] sm:$0x1]  }
   0x8   :  { %s145_s21 = smov 8   ;;  %v2_v15 = vld [vmem:[%s207_s0] sm:$0x1]   ;;  %vm27_vm4 = vcmask 851712   ;;  %vm33_vm5 = vcmask 786112   ;;  %vm39_vm6 = vcmask 720512  }
   0x9   :  { %4 = vst.msk [vmem:[#allocation0] sm:$0x1] %vm3_vm0, %v2_v15   ;;  %vm45_vm7 = vcmask 654912   ;;  %vm51_vm8 = vcmask 589312   ;;  %vm57_vm9 = vcmask 523712   ;;  %vm63_vm10 = vcmask 458112  }
   0xa   :  { %13 = vrot.lane.b32.xlu0 %v102_v3, %s134_s19  ;;  %25 = vrot.lane.b32.xlu1 %v104_v4, %s135_s20  ;;  %vm69_vm11 = vcmask 392512   ;;  %vm75_vm12 = vcmask 326912   ;;  %vm81_vm13 = vcmask 261312   ;;  %vm87_vm14 = vcmask 195712  }
   0xb   :  { %37 = vrot.lane.b32.xlu2 %v106_v5, %s136_s23  ;;  %vm93_vm15 = vcmask 130112  }
  0x12   :  { %43 = vrot.lane.b32.xlu0 %v107_v6, %s137_s28  ;;  %49 = vrot.lane.b32.xlu1 %v108_v7, %s138_s29 }
  0x13   :  { %55 = vrot.lane.b32.xlu2 %v109_v8, %s139_s3 }
  0x1a   :  { %61 = vrot.lane.b32.xlu0 %v110_v9, %s140_s8  ;;  %67 = vrot.lane.b32.xlu1 %v111_v10, %s141_s9 }
  0x1b   :  { %73 = vrot.lane.b32.xlu2 %v112_v11, %s142_s12 }
  0x22   :  { %79 = vrot.lane.b32.xlu0 %v113_v12, %s143_s17  ;;  %85 = vrot.lane.b32.xlu1 %v114_v13, %s144_s18 }
  0x23   :  { %91 = vrot.lane.b32.xlu2 %v115_v14, %s145_s21 }
  0x5d   :  { %v32_v16 = vpop.permute.xlu2 %31  }
  0x65   :  { %v38_v17 = vpop.permute.xlu2 %37  }
  0x6d   :  { %v56_v18 = vpop.permute.xlu2 %55  }
  0x74   :  { %v8_v19 = vpop.permute.xlu0 %7   ;;  %v20_v20 = vpop.permute.xlu1 %19  }
  0x75   :  { %10 = vst.msk [vmem:[#allocation0] sm:$0x1] %vm9_vm1, %v8_v19   ;;  %v74_v21 = vpop.permute.xlu2 %73  }
  0x7c   :  { %v14_v22 = vpop.permute.xlu0 %13   ;;  %v26_v23 = vpop.permute.xlu1 %25  }
  0x7d   :  { %16 = vst.msk [vmem:[#allocation0] sm:$0x1] %vm15_vm2, %v14_v22   ;;  %v92_v24 = vpop.permute.xlu2 %91  }
  0x7e   :  { %22 = vst.msk [vmem:[#allocation0] sm:$0x1] %vm21_vm3, %v20_v20  }
  0x7f   :  { %28 = vst.msk [vmem:[#allocation0] sm:$0x1] %vm27_vm4, %v26_v23  }
  0x80   :  { %34 = vst.msk [vmem:[#allocation0] sm:$0x1] %vm33_vm5, %v32_v16  }
  0x81   :  { %40 = vst.msk [vmem:[#allocation0] sm:$0x1] %vm39_vm6, %v38_v17  }
  0x84   :  { %v44_v25 = vpop.permute.xlu0 %43   ;;  %v50_v26 = vpop.permute.xlu1 %49  }
  0x85   :  { %46 = vst.msk [vmem:[#allocation0] sm:$0x1] %vm45_vm7, %v44_v25  }
  0x86   :  { %52 = vst.msk [vmem:[#allocation0] sm:$0x1] %vm51_vm8, %v50_v26  }
  0x87   :  { %58 = vst.msk [vmem:[#allocation0] sm:$0x1] %vm57_vm9, %v56_v18  }
  0x8c   :  { %v62_v27 = vpop.permute.xlu0 %61   ;;  %v68_v28 = vpop.permute.xlu1 %67  }
  0x8d   :  { %64 = vst.msk [vmem:[#allocation0] sm:$0x1] %vm63_vm10, %v62_v27  }
  0x8e   :  { %70 = vst.msk [vmem:[#allocation0] sm:$0x1] %vm69_vm11, %v68_v28  }
  0x8f   :  { %76 = vst.msk [vmem:[#allocation0] sm:$0x1] %vm75_vm12, %v74_v21  }
  0x94   :  { %v80_v29 = vpop.permute.xlu0 %79   ;;  %v86_v30 = vpop.permute.xlu1 %85  }
  0x95   :  { %82 = vst.msk [vmem:[#allocation0] sm:$0x1] %vm81_vm13, %v80_v29  }
  0x96   :  { %88 = vst.msk [vmem:[#allocation0] sm:$0x1] %vm87_vm14, %v86_v30  }
  0x97   :  { %94 = vst.msk [vmem:[#allocation0] sm:$0x1] %vm93_vm15, %v92_v24  }
  0x9e   :  { %v97_v31 = vld [vmem:[#allocation0] sm:$0x1] }
  0x9f   :  { %100 = vst [vmem:[%s208_s1] sm:$0x1] %v97_v31 }

// kernel: down_forward.5
= control target key start
LH: loop header
LB: loop body
LE: loop exit
PB: predicated region body
PF: predicated region fallthrough
CT: control target
= control target key end

     0   :  { %s65_s0 = inlined_call_operand.vmem [shape: f32[8,128], index: 0, kind: input, shape index: {}]   ;;  %s66_s1 = inlined_call_operand.vmem [shape: f32[1,128], index: 1, kind: input, shape index: {}]   ;;  %s67_s2 = inlined_call_operand.vmem [shape: f32[1,128], index: 2, kind: input, shape index: {}]   ;;  %s68_s3 = inlined_call_operand.vmem [shape: f32[8,128], index: 3, kind: output, shape index: {}]  }
   0x1   :  { %v14_v0 = vld [vmem:[%s65_s0] sm:$0xff] }
   0x2   :  { %v31_v1 = vld [vmem:[%s66_s1] ss:$0 sm:$0xff] }
   0x3   :  { %v32_v2 = vld [vmem:[%s67_s2] ss:$0 sm:$0xff]  ;;  %v19_v3 = vmul.f32 %v31_v1, %v14_v0 }
   0x5   :  { %v24_v4 = vadd.f32 %v32_v2, %v19_v3 }
   0x7   :  { %v25_v5 = vmax.f32 %v24_v4, 0.0 }
   0x9   :  { %26 = vst [vmem:[%s68_s3] sm:$0xff] %v25_v5 }

// kernel: down_forward.4
= control target key start
LH: loop header
LB: loop body
LE: loop exit
PB: predicated region body
PF: predicated region fallthrough
CT: control target
= control target key end

     0   :  { %s3101_s18 = smov 0   ;;  %s5922_s0 = inlined_call_operand.vmem [shape: f32[2,4,4,4,8], index: 0, kind: input, shape index: {}]   ;;  %s5923_s1 = inlined_call_operand.vmem [shape: f32[1,8], index: 1, kind: input, shape index: {}]   ;;  %s5924_s2 = inlined_call_operand.vmem [shape: f32[1,8], index: 2, kind: input, shape index: {}]   ;;  %s5925_s3 = inlined_call_operand.vmem [shape: bf16[256,8], index: 3, kind: input, shape index: {}]   ;;  %s5926_s4 = inlined_call_operand.vmem [shape: f32[2,64,8], index: 4, kind: output, shape index: {0}]   ;;  %s5927_s5 = inlined_call_operand.vmem [shape: f32[2,2,8], index: 5, kind: output, shape index: {1}]  }
   0x1 LB: > { %s2905_s19 = sadd.s32 4294967295, %s3053_s18   ;;  %p2909_p0 = scmp.ge.s32.totalorder %s3053_s18, 1  ;;  %s3053_s18 = sphi %s3101_s18, %s16_s18  }
   0x2   : > { %p190_p1 = scmp.lt.s32.totalorder %s3053_s18, 3 }
   0x4   : > { %p191_p2 = pnand %p2909_p0, %p190_p1 }
   0x6   : > { %194 = sbr.rel (%p191_p2) target bundleno = 1304 (0x518), region = 36 }
   0xb   : > { %vm309_vm0 = vcmask 62464   ;;  %v3055_v0 = vmov 0.0   ;;  %p222_p3 = scmp.lt.s32.totalorder %s2905_s19, 1  ;;  %v3194_v31 = vld [vmem:[%s5923_s1] ss:$0 sm:$0xff]  ;;  %s3056_s26 = smov 8  }
   0xc   : > { %316 = vst.msk [vmem:[#allocation2 + $0x30] sm:$0x3f] %vm309_vm0, %v3055_v0  ;;  %v3218_v42 = vld [vmem:[%s5924_s2] ss:$0 sm:$0xff]  ;;  %vm347_vm1 = vcmask 60416   ;;  %s3057_s29 = smov 16  }
   0xd   : > { %310 = vst.msk [vmem:[#allocation2] sm:$0x3f] %vm309_vm0, %v3055_v0  ;;  %s6583_s19 = smov (!%p222_p3, %s2905_s19), 1  ;;  %s3058_s30 = smov 24   ;;  %vm1238_vm2 = vcmask 64512   ;;  %vm1287_vm3 = vcmask 130048  }
   0xe   : > { %311 = vst.msk [vmem:[#allocation2 + $0x8] sm:$0x3f] %vm309_vm0, %v3055_v0  ;;  %s2985_s20 = sshll.u32 %s6583_s19, 6  ;;  %s3059_s6 = smov 32   ;;  %vm1320_vm4 = vcmask 195584   ;;  %vm1353_vm5 = vcmask 261120  }
   0xf   : > { %312 = vst.msk [vmem:[#allocation2 + $0x10] sm:$0x3f] %vm309_vm0, %v3055_v0  ;;  %s3185_s23 = scalar_lea.vmem %s5922_s0, %s2985_s20  ;;  %s3060_s7 = smov 40   ;;  %vm1386_vm6 = vcmask 326656   ;;  %vm1419_vm7 = vcmask 392192   ;;  %vm1452_vm8 = vcmask 457728  }
  0x10   : > { %313 = vst.msk [vmem:[#allocation2 + $0x18] sm:$0x3f] %vm309_vm0, %v3055_v0  ;;  %v241_v37 = vld [vmem:[%s3185_s23 + $0x8] sm:$0xf]  ;;  %v239_v43 = vld [vmem:[%s3185_s23] sm:$0xf] }
  0x11   : > { %314 = vst.msk [vmem:[#allocation2 + $0x20] sm:$0x3f] %vm309_vm0, %v3055_v0  ;;  %v260_v46 = vmul.f32 %v3194_v31, %v241_v37  ;;  %v244_v47 = vld [vmem:[%s3185_s23 + $0x14] sm:$0xf]  ;;  %v240_v49 = vld [vmem:[%s3185_s23 + $0x4] sm:$0xf]  ;;  %v258_v52 = vmul.f32 %v3194_v31, %v239_v43 }
  0x12   : > { %315 = vst.msk [vmem:[#allocation2 + $0x28] sm:$0x3f] %vm309_vm0, %v3055_v0  ;;  %v245_v53 = vld [vmem:[%s3185_s23 + $0x18] sm:$0xf]  ;;  %v263_v57 = vmul.f32 %v3194_v31, %v244_v47  ;;  %v247_v58 = vld [vmem:[%s3185_s23 + $0x20] sm:$0xf]  ;;  %v259_v61 = vmul.f32 %v3194_v31, %v240_v49 }
  0x13   : > { %v370_v1 = vld [vmem:[#allocation2 + $0x30] sm:$0x3f]  ;;  %317 = vst.msk [vmem:[#allocation2 + $0x38] sm:$0x3f] %vm309_vm0, %v3055_v0  ;;  %v279_v60 = vadd.f32 %v3218_v42, %v260_v46  ;;  %v243_v62 = vld [vmem:[%s3185_s23 + $0x10] sm:$0xf] }
  0x14   : > { %v3125_v2 = vpack.c.bf16 %v370_v1, %v370_v1  ;;  %318 = vst.msk [vmem:[#allocation2 + $0x40] sm:$0x3f] %vm309_vm0, %v3055_v0  ;;  %v364_v3 = vld [vmem:[#allocation2] sm:$0x3f]  ;;  %s3061_s8 = smov 48   ;;  %s3062_s9 = smov 56  }
  0x15   : > { %319 = vst.msk [vmem:[#allocation2 + $0x48] sm:$0x3f] %vm309_vm0, %v3055_v0  ;;  %v3131_v4 = vpack.c.bf16 %v364_v3, %v364_v3  ;;  %v365_v5 = vld [vmem:[#allocation2 + $0x8] sm:$0x3f]  ;;  %v264_v3 = vmul.f32 %v3194_v31, %v245_v53  ;;  %s3063_s10 = smov 64   ;;  %s3064_s11 = smov 72  }
  0x16   : > { %6071 = vst [vmem:[#allocation3_spill] sm:$0xff] %v3125_v2  ;;  %v456_v6 = vunpack.c.l.b16 %v3125_v2  ;;  %v366_v7 = vld [vmem:[#allocation2 + $0x10] sm:$0x3f]  ;;  %v3136_v8 = vpack.c.bf16 %v365_v5, %v365_v5  ;;  %v248_v5 = vld [vmem:[%s3185_s23 + $0x24] sm:$0xf]  ;;  %s3065_s12 = smov 80  }
  0x17   : > { %6072 = vst [vmem:[#allocation4_spill] sm:$0xff] %v3131_v4  ;;  %v3142_v9 = vpack.c.bf16 %v366_v7, %v366_v7  ;;  %v452_v10 = vunpack.c.l.b16 %v3131_v4  ;;  %v367_v11 = vld [vmem:[#allocation2 + $0x18] sm:$0x3f]  ;;  %v266_v7 = vmul.f32 %v3194_v31, %v247_v58  ;;  %s3066_s13 = smov 88   ;;  %s3067_s21 = smov 96   ;;  %vm1485_vm9 = vcmask 523264  }
  0x18   : > { %320 = vst.msk [vmem:[#allocation2 + $0x50] sm:$0x3f] %vm309_vm0, %v3055_v0  ;;  %v3145_v12 = vpack.c.b16 %v456_v6, %v456_v6  ;;  %v3149_v13 = vpack.c.bf16 %v367_v11, %v367_v11  ;;  %v453_v14 = vunpack.c.l.b16 %v3136_v8  ;;  %v277_v6 = vadd.f32 %v3218_v42, %v258_v52  ;;  %s3068_s22 = smov 104   ;;  %s3070_s24 = smov 120  }
  0x19   : > { %6073 = vst [vmem:[#allocation5_spill] sm:$0xff] %v3136_v8  ;;  %v454_v15 = vunpack.c.l.b16 %v3142_v9  ;;  %v3155_v16 = vpack.c.b16 %v452_v10, %v452_v10  ;;  %v249_v10 = vld [vmem:[%s3185_s23 + $0x28] sm:$0xf]  ;;  %vm1518_vm10 = vcmask 588800   ;;  %vm1551_vm11 = vcmask 654336  }
  0x1a   : > { %321 = vst.msk [vmem:[#allocation2 + $0x58] sm:$0x3f] %vm309_vm0, %v3055_v0  ;;  %v513_v17 = vshrl.u32 %v3145_v12, 16  ;;  %v515_v18 = vshll.u32 %v3145_v12, 16  ;;  %v455_v19 = vunpack.c.l.b16 %v3149_v13  ;;  %v3162_v20 = vpack.c.b16 %v453_v14, %v453_v14 }
  0x1b   : > { %6074 = vst [vmem:[#allocation6_spill] sm:$0xff] %v3142_v9  ;;  %v3167_v21 = vpack.c.b16 %v454_v15, %v454_v15  ;;  %v485_v22 = vshrl.u32 %v3155_v16, 16  ;;  %v487_v23 = vshll.u32 %v3155_v16, 16  ;;  %v282_v15 = vadd.f32 %v3218_v42, %v263_v57 }
  0x1c   : > { %322 = vst.msk [vmem:[#allocation2 + $0x60] sm:$0x3f] %vm309_vm0, %v3055_v0  ;;  %v517_v24 = vrot.slane %v515_v18, 1  ;;  %v3173_v25 = vpack.c.b16 %v455_v19, %v455_v19  ;;  %v494_v29 = vshll.u32 %v3162_v20, 16  ;;  %v492_v39 = vshrl.u32 %v3162_v20, 16 }
  0x1d   : > { %6075 = vst [vmem:[#allocation7_spill] sm:$0xff] %v3149_v13  ;;  %v499_v26 = vshrl.u32 %v3167_v21, 16  ;;  %v501_v27 = vshll.u32 %v3167_v21, 16  ;;  %v489_v28 = vrot.slane %v487_v23, 1  ;;  %v295_v18 = vmax.f32 %v279_v60, 0.0 }
  0x1e   : > { %323 = vst.msk [vmem:[#allocation2 + $0x68] sm:$0x3f] %vm309_vm0, %v3055_v0  ;;  %v3187_v30 = vor.u32 %v517_v24, %v513_v17  ;;  %v508_v35 = vshll.u32 %v3173_v25, 16  ;;  %v496_v40 = vrot.slane %v494_v29, 1  ;;  %v506_v44 = vshrl.u32 %v3173_v25, 16 }
  0x1f   : > { %324 = vst.msk [vmem:[#allocation2 + $0x70] sm:$0x3f] %vm309_vm0, %v3055_v0  ;;  %v503_v32 = vrot.slane %v501_v27, 1  ;;  %v490_v33 = vor.u32 %v489_v28, %v485_v22  ;;  %v262_v17 = vmul.f32 %v3194_v31, %v243_v62  ;;  %v278_v19 = vadd.f32 %v3218_v42, %v259_v61 }
  0x20   : > { %325 = vst.msk [vmem:[#allocation2 + $0x78] sm:$0x3f] %vm309_vm0, %v3055_v0  ;;  %604 = vrot.lane.b32.xlu2 %v3187_v30, %s3056_s26  ;;  %v510_v45 = vrot.slane %v508_v35, 1  ;;  %v3235_v50 = vor.u32 %v496_v40, %v492_v39  ;;  %v267_v22 = vmul.f32 %v3194_v31, %v248_v5  ;;  %v268_v27 = vmul.f32 %v3194_v31, %v249_v10 }
  0x21   : > { %326 = vst.msk [vmem:[#allocation2 + $0x80] sm:$0x3f] %vm309_vm0, %v3055_v0  ;;  %v3208_v38 = vor.u32 %v503_v32, %v499_v26  ;;  %596 = vrot.lane.b32.xlu0 %v490_v33, %s3056_s26  ;;  %v283_v26 = vadd.f32 %v3218_v42, %v264_v3  ;;  %v293_v28 = vmax.f32 %v277_v6, 0.0  ;;  %v285_v29 = vadd.f32 %v3218_v42, %v266_v7 }
  0x22   : > { %327 = vst.msk [vmem:[#allocation2 + $0x88] sm:$0x3f] %vm309_vm0, %v3055_v0  ;;  %v3249_v59 = vor.u32 %v510_v45, %v506_v44  ;;  %v298_v33 = vmax.f32 %v282_v15, 0.0  ;;  %v294_v35 = vmax.f32 %v278_v19, 0.0  ;;  %v286_v37 = vadd.f32 %v3218_v42, %v267_v22 }
  0x23   : > { %328 = vst.msk [vmem:[#allocation2 + $0x90] sm:$0x3f] %vm309_vm0, %v3055_v0  ;;  %v376_v34 = vld [vmem:[#allocation2 + $0x60] sm:$0x3f]  ;;  %600 = vrot.lane.b32.xlu1 %v3208_v38, %s3056_s26  ;;  %v299_v40 = vmax.f32 %v283_v26, 0.0  ;;  %v301_v43 = vmax.f32 %v285_v29, 0.0 }
  0x24   : > { %329 = vst.msk [vmem:[#allocation2 + $0x98] sm:$0x3f] %vm309_vm0, %v3055_v0  ;;  %v3203_v36 = vpack.c.bf16 %v376_v34, %v376_v34  ;;  %v281_v34 = vadd.f32 %v3218_v42, %v262_v17  ;;  %v302_v44 = vmax.f32 %v286_v37, 0.0  ;;  %vm1584_vm12 = vcmask 719872  }
  0x25   : > { %330 = vst.msk [vmem:[#allocation2 + $0xa0] sm:$0x3f] %vm309_vm0, %v3055_v0  ;;  %vm1617_vm13 = vcmask 785408   ;;  %vm1650_vm14 = vcmask 850944   ;;  %vm1683_vm15 = vcmask 916480  }
  0x26   : > { %6076 = vst [vmem:[#allocation8_spill] sm:$0xff] %v3203_v36  ;;  %v460_v41 = vunpack.c.l.b16 %v3203_v36 }
  0x27   : > { %331 = vst.msk [vmem:[#allocation2 + $0xa8] sm:$0x3f] %vm309_vm0, %v3055_v0 }
  0x28   : > { %332 = vst.msk [vmem:[#allocation2 + $0xb0] sm:$0x3f] %vm309_vm0, %v3055_v0  ;;  %v3230_v48 = vpack.c.b16 %v460_v41, %v460_v41  ;;  %v287_v41 = vadd.f32 %v3218_v42, %v268_v27 }
  0x29   : > { %333 = vst.msk [vmem:[#allocation2 + $0xb8] sm:$0x3f] %vm309_vm0, %v3055_v0  ;;  %598 = vrot.lane.b32.xlu0 %v3235_v50, %s3056_s26 }
  0x2a   : > { %334 = vst.msk [vmem:[#allocation2 + $0xc0] sm:$0x3f] %vm309_vm0, %v3055_v0  ;;  %v382_v51 = vld [vmem:[#allocation2 + $0x90] sm:$0x3f]  ;;  %v5943_v54 = vshrl.u32 %v3230_v48, 16  ;;  %v5941_v55 = vshll.u32 %v3230_v48, 16 }
  0x2b   : > { %6077 = vst [vmem:[#allocation9_spill] sm:$0xff] %v3230_v48  ;;  %v3243_v56 = vpack.c.bf16 %v382_v51, %v382_v51  ;;  %602 = vrot.lane.b32.xlu1 %v3249_v59, %s3056_s26  ;;  %v303_v45 = vmax.f32 %v287_v41, 0.0 }
  0x2c   : > { %335 = vst.msk [vmem:[#allocation2 + $0xc8] sm:$0x3f] %vm309_vm0, %v3055_v0  ;;  %v545_v63 = vrot.slane %v5941_v55, 1 }
  0x2d   : > { %336 = vst.msk [vmem:[#allocation2 + $0xd0] sm:$0x3f] %vm309_vm0, %v3055_v0  ;;  %v464_v1 = vunpack.c.l.b16 %v3243_v56 }
  0x2e   : > { %6078 = vst [vmem:[#allocation10_spill] sm:$0xff] %v3243_v56  ;;  %v3272_v11 = vor.u32 %v545_v63, %v5943_v54 }
  0x2f   : > { %337 = vst.msk [vmem:[#allocation2 + $0xd8] sm:$0x3f] %vm309_vm0, %v3055_v0  ;;  %v3274_v14 = vpack.c.b16 %v464_v1, %v464_v1 }
  0x30   : > { %338 = vst.msk [vmem:[#allocation2 + $0xe0] sm:$0x3f] %vm309_vm0, %v3055_v0  ;;  %612 = vrot.lane.b32.xlu2 %v3272_v11, %s3056_s26 }
  0x31   : > { %339 = vst.msk [vmem:[#allocation2 + $0xe8] sm:$0x3f] %vm309_vm0, %v3055_v0  ;;  %v5931_v23 = vshrl.u32 %v3274_v14, 16  ;;  %v5929_v24 = vshll.u32 %v3274_v14, 16  ;;  %v5948_v54 = vrot.slane %v3274_v14, 1 }
  0x32   : > { %340 = vst.msk [vmem:[#allocation2 + $0xf0] sm:$0x3f] %vm309_vm0, %v3055_v0 }
  0x33   : > { %6079 = vst [vmem:[#allocation11_spill] sm:$0xff] %v3272_v11  ;;  %v573_v32 = vrot.slane %v5929_v24, 1 }
  0x34   : > { %6080 = vst [vmem:[#allocation12_spill] sm:$0xff] %v3274_v14 }
  0x35   : > { %341 = vst.msk [vmem:[#allocation2 + $0xf8] sm:$0x3f] %vm309_vm0, %v3055_v0  ;;  %v3305_v39 = vor.u32 %v573_v32, %v5931_v23 }
  0x36   : > { %342 = vst.msk [vmem:[#allocation2 + $0x100] sm:$0x3f] %vm309_vm0, %v3055_v0 }
  0x37   : > { %343 = vst.msk [vmem:[#allocation2 + $0x108] sm:$0x3f] %vm309_vm0, %v3055_v0  ;;  %620 = vrot.lane.b32.xlu0 %v3305_v39, %s3056_s26 }
  0x38   : > { %344 = vst.msk [vmem:[#allocation2 + $0x110] sm:$0x3f] %vm309_vm0, %v3055_v0 }
  0x39   : > { %345 = vst.msk [vmem:[#allocation2 + $0x118] sm:$0x3f] %vm309_vm0, %v3055_v0  ;;  %v297_v0 = vmax.f32 %v281_v34, 0.0  ;;  %vm1716_vm0 = vcmask 982016  }
  0x3a   : > { %6081 = vst [vmem:[#allocation13_spill] sm:$0xff] %v3305_v39 }
  0x3b   : > { %350 = vst.msk [vmem:[#allocation2 + $0x49] sm:$0xf] %vm347_vm1, %v295_v18 }
  0x3c   : > { %348 = vst.msk [vmem:[#allocation2 + $0x39] sm:$0xf] %vm347_vm1, %v293_v28 }
  0x3d   : > { %353 = vst.msk [vmem:[#allocation2 + $0x71] sm:$0xf] %vm347_vm1, %v298_v33 }
  0x3e   : > { %349 = vst.msk [vmem:[#allocation2 + $0x41] sm:$0xf] %vm347_vm1, %v294_v35 }
  0x3f   : > { %354 = vst.msk [vmem:[#allocation2 + $0x79] sm:$0xf] %vm347_vm1, %v299_v40 }
  0x40   : > { %356 = vst.msk [vmem:[#allocation2 + $0x99] sm:$0xf] %vm347_vm1, %v301_v43 }
  0x41   : > { %352 = vst.msk [vmem:[#allocation2 + $0x69] sm:$0xf] %vm347_vm1, %v297_v0 }
  0x42   : > { %v373_v46 = vld [vmem:[#allocation2 + $0x48] sm:$0x3f]  ;;  %357 = vst.msk [vmem:[#allocation2 + $0xa1] sm:$0xf] %vm347_vm1, %v302_v44 }
  0x43   : > { %v3318_v47 = vpack.c.bf16 %v373_v46, %v373_v46  ;;  %v371_v49 = vld [vmem:[#allocation2 + $0x38] sm:$0x3f]  ;;  %358 = vst.msk [vmem:[#allocation2 + $0xa9] sm:$0xf] %vm347_vm1, %v303_v45 }
  0x44   : > { %v3321_v51 = vpack.c.bf16 %v371_v49, %v371_v49  ;;  %v378_v52 = vld [vmem:[#allocation2 + $0x70] sm:$0x3f] }
  0x45   : > { %6082 = vst [vmem:[#allocation14_spill] sm:$0xff] %v3318_v47  ;;  %v459_v53 = vunpack.c.l.b16 %v3318_v47  ;;  %v3324_v57 = vpack.c.bf16 %v378_v52, %v378_v52  ;;  %v372_v58 = vld [vmem:[#allocation2 + $0x40] sm:$0x3f] }
  0x46   : > { %v457_v60 = vunpack.c.l.b16 %v3321_v51  ;;  %v3327_v61 = vpack.c.bf16 %v372_v58, %v372_v58  ;;  %v379_v62 = vld [vmem:[#allocation2 + $0x78] sm:$0x3f] }
  0x47   : > { %6083 = vst [vmem:[#allocation15_spill] sm:$0xff] %v3324_v57  ;;  %v3329_v63 = vpack.c.b16 %v459_v53, %v459_v53  ;;  %v462_v1 = vunpack.c.l.b16 %v3324_v57  ;;  %v3332_v3 = vpack.c.bf16 %v379_v62, %v379_v62  ;;  %v383_v5 = vld [vmem:[#allocation2 + $0x98] sm:$0x3f] }
  0x48   : > { %6084 = vst [vmem:[#allocation16_spill] sm:$0xff] %v3327_v61  ;;  %v3334_v6 = vpack.c.b16 %v457_v60, %v457_v60  ;;  %v458_v7 = vunpack.c.l.b16 %v3327_v61  ;;  %v3337_v10 = vpack.c.bf16 %v383_v5, %v383_v5  ;;  %v377_v34 = vld [vmem:[#allocation2 + $0x68] sm:$0x3f] }
  0x49   : > { %6085 = vst [vmem:[#allocation17_spill] sm:$0xff] %v3332_v3  ;;  %v534_v15 = vshrl.u32 %v3329_v63, 16  ;;  %v536_v17 = vshll.u32 %v3329_v63, 16  ;;  %v3341_v18 = vpack.c.b16 %v462_v1, %v462_v1  ;;  %v463_v19 = vunpack.c.l.b16 %v3332_v3  ;;  %v384_v41 = vld [vmem:[#allocation2 + $0xa0] sm:$0x3f] }
  0x4a   : > { %6086 = vst [vmem:[#allocation18_spill] sm:$0xff] %v3337_v10  ;;  %v520_v22 = vshrl.u32 %v3334_v6, 16  ;;  %v522_v26 = vshll.u32 %v3334_v6, 16  ;;  %v3346_v27 = vpack.c.b16 %v458_v7, %v458_v7  ;;  %v465_v33 = vunpack.c.l.b16 %v3337_v10  ;;  %v385_v44 = vld [vmem:[#allocation2 + $0xa8] sm:$0x3f] }
  0x4b   : > { %v538_v28 = vrot.slane %v536_v17, 1  ;;  %v5938_v29 = vshll.u32 %v3341_v18, 16  ;;  %v3349_v32 = vpack.c.b16 %v463_v19, %v463_v19  ;;  %v5940_v46 = vshrl.u32 %v3341_v18, 16 }
  0x4c   : > { %v524_v35 = vrot.slane %v522_v26, 1  ;;  %v527_v37 = vshrl.u32 %v3346_v27, 16  ;;  %v529_v40 = vshll.u32 %v3346_v27, 16  ;;  %v3364_v53 = vpack.c.b16 %v465_v33, %v465_v33 }
  0x4d   : > { %v3354_v43 = vor.u32 %v538_v28, %v534_v15  ;;  %v5930_v0 = vshll.u32 %v3349_v32, 16  ;;  %v559_v52 = vrot.slane %v5938_v29, 1  ;;  %v3366_v58 = vpack.c.bf16 %v377_v34, %v377_v34 }
  0x4e   : > { %v3357_v45 = vor.u32 %v524_v35, %v520_v22  ;;  %v531_v49 = vrot.slane %v529_v40, 1  ;;  %6087 = vst [vmem:[#allocation19_spill] sm:$0xff] %v3364_v53  ;;  %v3368_v60 = vpack.c.bf16 %v384_v41, %v384_v41  ;;  %v5937_v1 = vshrl.u32 %v3349_v32, 16 }
  0x4f   : > { %610 = vrot.lane.b32.xlu1 %v3354_v43, %s3056_s26  ;;  %6088 = vst [vmem:[#allocation20_spill] sm:$0xff] %v3366_v58  ;;  %v566_v5 = vrot.slane %v5930_v0, 1  ;;  %v3377_v7 = vpack.c.bf16 %v385_v44, %v385_v44  ;;  %v461_v15 = vunpack.c.l.b16 %v3366_v58  ;;  %v3386_v22 = vor.u32 %v559_v52, %v5940_v46 }
  0x50   : > { %6089 = vst [vmem:[#allocation21_spill] sm:$0xff] %v3368_v60  ;;  %606 = vrot.lane.b32.xlu2 %v3357_v45, %s3056_s26  ;;  %v3372_v62 = vor.u32 %v531_v49, %v527_v37  ;;  %v466_v17 = vunpack.c.l.b16 %v3368_v60  ;;  %v5928_v26 = vshll.u32 %v3364_v53, 16  ;;  %v5936_v44 = vshrl.u32 %v3364_v53, 16 }
  0x51   : > { %6090 = vst [vmem:[#allocation22_spill] sm:$0xff] %v3377_v7  ;;  %v467_v19 = vunpack.c.l.b16 %v3377_v7  ;;  %v3389_v28 = vpack.c.b16 %v461_v15, %v461_v15  ;;  %v3395_v34 = vor.u32 %v566_v5, %v5937_v1  ;;  %v5944_v29 = vrot.slane %v3230_v48, 1 }
  0x52   : > { %608 = vrot.lane.b32.xlu0 %v3372_v62, %s3056_s26  ;;  %v3391_v33 = vpack.c.b16 %v466_v17, %v466_v17  ;;  %v580_v49 = vrot.slane %v5928_v26, 1 }
  0x53   : > { %6091 = vst [vmem:[#allocation23_spill] sm:$0xff] %v3389_v28  ;;  %v3397_v35 = vpack.c.b16 %v467_v19, %v467_v19  ;;  %v5942_v37 = vshrl.u32 %v3389_v28, 16  ;;  %v5939_v40 = vshll.u32 %v3389_v28, 16  ;;  %v3483_v46 = vrot.slane %v3389_v28, 1 }
  0x54   : > { %v5933_v41 = vshll.u32 %v3391_v33, 16  ;;  %v5935_v15 = vshrl.u32 %v3391_v33, 16  ;;  %v3421_v26 = vor.u32 %v580_v49, %v5936_v44  ;;  %v628_v49 = vrot.slane %v3155_v16, 1 }
  0x55   : > { %v552_v52 = vrot.slane %v5939_v40, 1  ;;  %v5932_v5 = vshll.u32 %v3397_v35, 16  ;;  %v5934_v24 = vshrl.u32 %v3397_v35, 16  ;;  %v5945_v16 = vrot.slane %v3145_v12, 1 }
  0x56   : > { %v587_v17 = vrot.slane %v5933_v41, 1  ;;  %6093 = vst [vmem:[#allocation25_spill] sm:$0xff] %v3421_v26  ;;  %v3466_v41 = vrot.slane %v3346_v27, 1  ;;  %v3521_v9 = vrot.slane %v3397_v35, 1 }
  0x57   : > { %616 = vrot.lane.b32.xlu1 %v3386_v22, %s3056_s26  ;;  %v3417_v19 = vor.u32 %v552_v52, %v5942_v37  ;;  %v594_v0 = vrot.slane %v5932_v5, 1  ;;  %v5946_v5 = vrot.slane %v3162_v20, 1 }
  0x58   : > { %618 = vrot.lane.b32.xlu2 %v3395_v34, %s3056_s26  ;;  %v3430_v23 = vor.u32 %v587_v17, %v5935_v15  ;;  %v3446_v17 = vrot.slane %v3167_v21, 1  ;;  %v3472_v15 = vrot.slane %v3329_v63, 1 }
  0x59   : > { %6092 = vst [vmem:[#allocation24_spill] sm:$0xff] %v3417_v19  ;;  %v3436_v52 = vor.u32 %v594_v0, %v5934_v24  ;;  %v3452_v0 = vrot.slane %v3173_v25, 1  ;;  %v242_v24 = vld [vmem:[%s3185_s23 + $0xc] sm:$0xf] }
  0x5a   : > { %614 = vrot.lane.b32.xlu0 %v3417_v19, %s3056_s26  ;;  %v261_v44 = vmul.f32 %v3194_v31, %v242_v24  ;;  %v246_v24 = vld [vmem:[%s3185_s23 + $0x1c] sm:$0xf] }
  0x5b   : > { %v265_v55 = vmul.f32 %v3194_v31, %v246_v24  ;;  %v250_v24 = vld [vmem:[%s3185_s23 + $0x2c] sm:$0xf] }
  0x5c   : > { %v280_v1 = vadd.f32 %v3218_v42, %v261_v44  ;;  %v3490_v44 = vrot.slane %v3341_v18, 1 }
  0x5d   : > { %v284_v37 = vadd.f32 %v3218_v42, %v265_v55  ;;  %v3507_v55 = vrot.slane %v3364_v53, 1 }
  0x5e   : > { %v296_v40 = vmax.f32 %v280_v1, 0.0  ;;  %v3497_v1 = vrot.slane %v3349_v32, 1 }
  0x5f   : > { %622 = vrot.lane.b32.xlu1 %v3421_v26, %s3056_s26 }
  0x60   : > { %624 = vrot.lane.b32.xlu2 %v3430_v23, %s3056_s26  ;;  %351 = vst.msk [vmem:[#allocation2 + $0x51] sm:$0xf] %vm347_vm1, %v296_v40  ;;  %v300_v40 = vmax.f32 %v284_v37, 0.0  ;;  %v3515_v37 = vrot.slane %v3391_v33, 1 }
  0x62   : > { %626 = vrot.lane.b32.xlu0 %v3436_v52, %s3056_s26  ;;  %355 = vst.msk [vmem:[#allocation2 + $0x81] sm:$0xf] %vm347_vm1, %v300_v40 }
  0x67   : > { %644 = vrot.lane.b32.xlu1 %v628_v49, %s3057_s29  ;;  %v3460_v49 = vrot.slane %v3334_v6, 1 }
  0x68   : > { %646 = vrot.lane.b32.xlu2 %v5946_v5, %s3057_s29  ;;  %v368_v5 = vld [vmem:[#allocation2 + $0x20] sm:$0x3f] }
  0x6a   : > { %648 = vrot.lane.b32.xlu0 %v3446_v17, %s3057_s29 }
  0x6f   : > { %650 = vrot.lane.b32.xlu1 %v3452_v0, %s3057_s29 }
  0x70   : > { %652 = vrot.lane.b32.xlu2 %v5945_v16, %s3057_s29 }
  0x72   : > { %654 = vrot.lane.b32.xlu0 %v3460_v49, %s3057_s29 }
  0x77   : > { %656 = vrot.lane.b32.xlu1 %v3466_v41, %s3057_s29 }
  0x78   : > { %658 = vrot.lane.b32.xlu2 %v3472_v15, %s3057_s29 }
  0x7a   : > { %660 = vrot.lane.b32.xlu0 %v5944_v29, %s3057_s29  ;;  %v269_v29 = vmul.f32 %v3194_v31, %v250_v24 }
  0x7c   : > { %v288_v16 = vadd.f32 %v3218_v42, %v269_v29  ;;  %v404_v29 = vpack.c.bf16 %v368_v5, %v368_v5 }
  0x7e   : > { %v304_v40 = vmax.f32 %v288_v16, 0.0  ;;  %v680_v24 = vunpack.c.l.b16 %v404_v29 }
  0x7f   : > { %662 = vrot.lane.b32.xlu1 %v3483_v46, %s3057_s29 }
  0x80   : > { %664 = vrot.lane.b32.xlu2 %v3490_v44, %s3057_s29  ;;  %359 = vst.msk [vmem:[#allocation2 + $0xb1] sm:$0xf] %vm347_vm1, %v304_v40  ;;  %v3531_v16 = vpack.c.b16 %v680_v24, %v680_v24  ;;  %v374_v40 = vld [vmem:[#allocation2 + $0x50] sm:$0x3f] }
  0x81   : > { %v3537_v5 = vpack.c.bf16 %v374_v40, %v374_v40  ;;  %v380_v40 = vld [vmem:[#allocation2 + $0x80] sm:$0x3f] }
  0x82   : > { %666 = vrot.lane.b32.xlu0 %v3497_v1, %s3057_s29  ;;  %v3554_v8 = vpack.c.bf16 %v380_v40, %v380_v40 }
  0x83   : > { %6095 = vst [vmem:[#allocation27_spill] sm:$0xff] %v3537_v5  ;;  %v681_v29 = vunpack.c.l.b16 %v3537_v5 }
  0x84   : > { %6097 = vst [vmem:[#allocation29_spill] sm:$0xff] %v3554_v8  ;;  %v682_v5 = vunpack.c.l.b16 %v3554_v8 }
  0x85   : > { %v3546_v24 = vpack.c.b16 %v681_v29, %v681_v29 }
  0x86   : > { %v3565_v10 = vpack.c.b16 %v682_v5, %v682_v5 }
  0x87   : > { %668 = vrot.lane.b32.xlu1 %v5948_v54, %s3057_s29  ;;  %v3533_v54 = vpop.permute.xlu2 %604  ;;  %v386_v29 = vld [vmem:[#allocation2 + $0xb0] sm:$0x3f] }
  0x88   : > { %670 = vrot.lane.b32.xlu2 %v3507_v55, %s3057_s29  ;;  %6094 = vst [vmem:[#allocation26_spill] sm:$0xff] %v3533_v54  ;;  %v3569_v40 = vpack.c.bf16 %v386_v29, %v386_v29 }
  0x8a   : > { %672 = vrot.lane.b32.xlu0 %v3515_v37, %s3057_s29  ;;  %6099 = vst [vmem:[#allocation31_spill] sm:$0xff] %v3569_v40 }
  0x8f   : > { %674 = vrot.lane.b32.xlu1 %v3521_v9, %s3057_s29  ;;  %v3550_v4 = vpop.permute.xlu2 %612 }
  0x90   : > { %688 = vrot.lane.b32.xlu2 %v3162_v20, %s3058_s30  ;;  %6096 = vst [vmem:[#allocation28_spill] sm:$0xff] %v3550_v4 }
  0x92   : > { %690 = vrot.lane.b32.xlu0 %v3167_v21, %s3058_s30 }
  0x93   : > { %v3556_v13 = vpop.permute.xlu0 %596 }
  0x94   : > { %6098 = vst [vmem:[#allocation30_spill] sm:$0xff] %v3556_v13  ;;  %v683_v13 = vunpack.c.l.b16 %v3569_v40 }
  0x95   : > { %v3571_v56 = vpop.permute.xlu1 %600 }
  0x96   : > { %6100 = vst [vmem:[#allocation32_spill] sm:$0xff] %v3571_v56  ;;  %v3584_v5 = vpack.c.b16 %v683_v13, %v683_v13  ;;  %v723_v56 = vshll.u32 %v3531_v16, 16  ;;  %v721_v13 = vshrl.u32 %v3531_v16, 16 }
  0x97   : > { %692 = vrot.lane.b32.xlu1 %v3173_v25, %s3058_s30 }
  0x98   : > { %694 = vrot.lane.b32.xlu2 %v3531_v16, %s3058_s30  ;;  %6103 = vst [vmem:[#allocation35_spill] sm:$0xff] %v3584_v5  ;;  %v725_v58 = vrot.slane %v723_v56, 1  ;;  %v728_v56 = vshrl.u32 %v3546_v24, 16 }
  0x9a   : > { %696 = vrot.lane.b32.xlu0 %v3334_v6, %s3058_s30 }
  0x9b   : > { %v3578_v8 = vpop.permute.xlu0 %598 }
  0x9c   : > { %6101 = vst [vmem:[#allocation33_spill] sm:$0xff] %v3578_v8 }
  0x9d   : > { %v3588_v29 = vpop.permute.xlu1 %602 }
  0x9e   : > { %6104 = vst [vmem:[#allocation36_spill] sm:$0xff] %v3588_v29  ;;  %v3602_v29 = vor.u32 %v725_v58, %v721_v13 }
  0x9f   : > { %698 = vrot.lane.b32.xlu1 %v3346_v27, %s3058_s30 }
  0xa0   : > { %700 = vrot.lane.b32.xlu2 %v3329_v63, %s3058_s30 }
  0xa2   : > { %702 = vrot.lane.b32.xlu0 %v3546_v24, %s3058_s30 }
  0xa7   : > { %704 = vrot.lane.b32.xlu1 %v3389_v28, %s3058_s30 }
  0xa8   : > { %706 = vrot.lane.b32.xlu2 %v3341_v18, %s3058_s30 }
  0xa9   : > { %v3595_v8 = vpop.permute.xlu0 %620 }
  0xaa   : > { %v3563_v7 = vpop.permute.xlu2 %606  ;;  %708 = vrot.lane.b32.xlu0 %v3349_v32, %s3058_s30  ;;  %6106 = vst [vmem:[#allocation38_spill] sm:$0xff] %v3595_v8 }
  0xaf   : > { %710 = vrot.lane.b32.xlu1 %v3565_v10, %s3058_s30 }
  0xb0   : > { %712 = vrot.lane.b32.xlu2 %v3364_v53, %s3058_s30 }
  0xb2   : > { %v3580_v57 = vpop.permute.xlu2 %618  ;;  %714 = vrot.lane.b32.xlu0 %v3391_v33, %s3058_s30 }
  0xb3   : > { %6102 = vst [vmem:[#allocation34_spill] sm:$0xff] %v3580_v57 }
  0xb7   : > { %716 = vrot.lane.b32.xlu1 %v3397_v35, %s3058_s30 }
  0xb8   : > { %718 = vrot.lane.b32.xlu2 %v3584_v5, %s3058_s30 }
  0xba   : > { %v3593_v40 = vpop.permute.xlu2 %624  ;;  %748 = vrot.lane.b32.xlu0 %v3235_v50, %s3059_s6  ;;  %v730_v50 = vshll.u32 %v3546_v24, 16 }
  0xbb   : > { %6105 = vst [vmem:[#allocation37_spill] sm:$0xff] %v3593_v40 }
  0xbc   : > { %v732_v58 = vrot.slane %v730_v50, 1  ;;  %v5964_v50 = vshrl.u32 %v3565_v10, 16 }
  0xbf   : > { %750 = vrot.lane.b32.xlu1 %v3208_v38, %s3059_s6 }
  0xc0   : > { %752 = vrot.lane.b32.xlu2 %v3249_v59, %s3059_s6 }
  0xc1   : > { %v3606_v47 = vpop.permute.xlu1 %610 }
  0xc2   : > { %6107 = vst [vmem:[#allocation39_spill] sm:$0xff] %v3606_v47  ;;  %v3608_v61 = vpop.permute.xlu2 %646  ;;  %754 = vrot.lane.b32.xlu0 %v3602_v29, %s3059_s6 }
  0xc3   : > { %6108 = vst [vmem:[#allocation40_spill] sm:$0xff] %v3608_v61  ;;  %v3626_v61 = vor.u32 %v732_v58, %v728_v56 }
  0xc4   : > { %v3613_v8 = vpop.permute.xlu0 %608 }
  0xc5   : > { %6109 = vst [vmem:[#allocation41_spill] sm:$0xff] %v3613_v8  ;;  %v5963_v8 = vshll.u32 %v3565_v10, 16 }
  0xc7   : > { %756 = vrot.lane.b32.xlu1 %v3357_v45, %s3059_s6 }
  0xc8   : > { %758 = vrot.lane.b32.xlu2 %v3372_v62, %s3059_s6 }
  0xc9   : > { %v3620_v13 = vpop.permute.xlu1 %616 }
  0xca   : > { %6110 = vst [vmem:[#allocation42_spill] sm:$0xff] %v3620_v13  ;;  %v3622_v47 = vpop.permute.xlu2 %652  ;;  %760 = vrot.lane.b32.xlu0 %v3354_v43, %s3059_s6  ;;  %v739_v13 = vrot.slane %v5963_v8, 1 }
  0xcb   : > { %6111 = vst [vmem:[#allocation43_spill] sm:$0xff] %v3622_v47 }
  0xcc   : > { %v3629_v60 = vpop.permute.xlu0 %614  ;;  %v3646_v56 = vor.u32 %v739_v13, %v5964_v50  ;;  %v5966_v13 = vshrl.u32 %v3584_v5, 16 }
  0xcd   : > { %6112 = vst [vmem:[#allocation44_spill] sm:$0xff] %v3629_v60  ;;  %v5965_v60 = vshll.u32 %v3584_v5, 16 }
  0xcf   : > { %762 = vrot.lane.b32.xlu1 %v3626_v61, %s3059_s6  ;;  %v746_v50 = vrot.slane %v5965_v60, 1 }
  0xd0   : > { %764 = vrot.lane.b32.xlu2 %v3417_v19, %s3059_s6 }
  0xd1   : > { %v3638_v47 = vpop.permute.xlu1 %622 }
  0xd2   : > { %6113 = vst [vmem:[#allocation45_spill] sm:$0xff] %v3638_v47  ;;  %v3640_v40 = vpop.permute.xlu2 %658  ;;  %766 = vrot.lane.b32.xlu0 %v3386_v22, %s3059_s6 }
  0xd3   : > { %6114 = vst [vmem:[#allocation46_spill] sm:$0xff] %v3640_v40  ;;  %v3670_v40 = vor.u32 %v746_v50, %v5966_v13 }
  0xd4   : > { %v3648_v58 = vpop.permute.xlu0 %626 }
  0xd5   : > { %6115 = vst [vmem:[#allocation47_spill] sm:$0xff] %v3648_v58 }
  0xd6   : > { %6119 = vst [vmem:[#allocation51_spill] sm:$0xff] %v3670_v40 }
  0xd7   : > { %768 = vrot.lane.b32.xlu1 %v3395_v34, %s3059_s6 }
  0xd8   : > { %770 = vrot.lane.b32.xlu2 %v3646_v56, %s3059_s6 }
  0xd9   : > { %v3655_v8 = vpop.permute.xlu1 %644 }
  0xda   : > { %6116 = vst [vmem:[#allocation48_spill] sm:$0xff] %v3655_v8  ;;  %v3657_v47 = vpop.permute.xlu2 %664  ;;  %772 = vrot.lane.b32.xlu0 %v3421_v26, %s3059_s6 }
  0xdb   : > { %6117 = vst [vmem:[#allocation49_spill] sm:$0xff] %v3657_v47 }
  0xdc   : > { %v3664_v58 = vpop.permute.xlu0 %648 }
  0xdd   : > { %6118 = vst [vmem:[#allocation50_spill] sm:$0xff] %v3664_v58  ;;  %v6123_v58 = vrot.slane %v3162_v20, 1 }
  0xdf   : > { %774 = vrot.lane.b32.xlu1 %v3430_v23, %s3059_s6 }
  0xe0   : > { %776 = vrot.lane.b32.xlu2 %v3436_v52, %s3059_s6 }
  0xe1   : > { %v3674_v8 = vpop.permute.xlu1 %650 }
  0xe2   : > { %6120 = vst [vmem:[#allocation52_spill] sm:$0xff] %v3674_v8  ;;  %v3676_v47 = vpop.permute.xlu2 %670  ;;  %778 = vrot.lane.b32.xlu0 %v3670_v40, %s3059_s6  ;;  %v5967_v8 = vrot.slane %v3531_v16, 1 }
  0xe3   : > { %6121 = vst [vmem:[#allocation53_spill] sm:$0xff] %v3676_v47 }
  0xe4   : > { %v3680_v60 = vpop.permute.xlu0 %654 }
  0xe5   : > { %6122 = vst [vmem:[#allocation54_spill] sm:$0xff] %v3680_v60 }
  0xe7   : > { %784 = vrot.lane.b32.xlu1 %v6123_v58, %s3060_s7 }
  0xe8   : > { %786 = vrot.lane.b32.xlu2 %v3446_v17, %s3060_s7 }
  0xe9   : > { %v3687_v50 = vpop.permute.xlu1 %656 }
  0xea   : > { %6124 = vst [vmem:[#allocation55_spill] sm:$0xff] %v3687_v50  ;;  %v3689_v13 = vpop.permute.xlu2 %688  ;;  %788 = vrot.lane.b32.xlu0 %v3452_v0, %s3060_s7 }
  0xeb   : > { %6125 = vst [vmem:[#allocation56_spill] sm:$0xff] %v3689_v13  ;;  %v3708_v13 = vrot.slane %v3546_v24, 1 }
  0xec   : > { %v3694_v47 = vpop.permute.xlu0 %660 }
  0xed   : > { %6126 = vst [vmem:[#allocation57_spill] sm:$0xff] %v3694_v47 }
  0xef   : > { %790 = vrot.lane.b32.xlu1 %v5967_v8, %s3060_s7 }
  0xf0   : > { %792 = vrot.lane.b32.xlu2 %v3460_v49, %s3060_s7 }
  0xf1   : > { %v3701_v20 = vpop.permute.xlu1 %662 }
  0xf2   : > { %6127 = vst [vmem:[#allocation58_spill] sm:$0xff] %v3701_v20  ;;  %v3703_v58 = vpop.permute.xlu2 %694  ;;  %794 = vrot.lane.b32.xlu0 %v3466_v41, %s3060_s7  ;;  %v3727_v20 = vrot.slane %v3565_v10, 1 }
  0xf3   : > { %6128 = vst [vmem:[#allocation59_spill] sm:$0xff] %v3703_v58 }
  0xf4   : > { %v3710_v50 = vpop.permute.xlu0 %666 }
  0xf5   : > { %6129 = vst [vmem:[#allocation60_spill] sm:$0xff] %v3710_v50 }
  0xf7   : > { %796 = vrot.lane.b32.xlu1 %v3472_v15, %s3060_s7 }
  0xf8   : > { %798 = vrot.lane.b32.xlu2 %v3708_v13, %s3060_s7 }
  0xf9   : > { %v3716_v8 = vpop.permute.xlu1 %668 }
  0xfa   : > { %6130 = vst [vmem:[#allocation61_spill] sm:$0xff] %v3716_v8  ;;  %v3718_v2 = vpop.permute.xlu2 %700  ;;  %800 = vrot.lane.b32.xlu0 %v3483_v46, %s3060_s7 }
  0xfb   : > { %6131 = vst [vmem:[#allocation62_spill] sm:$0xff] %v3718_v2 }
  0xfc   : > { %v3722_v58 = vpop.permute.xlu0 %672 }
  0xfd   : > { %6132 = vst [vmem:[#allocation63_spill] sm:$0xff] %v3722_v58  ;;  %v369_v58 = vld [vmem:[#allocation2 + $0x28] sm:$0x3f] }
  0xff   : > { %802 = vrot.lane.b32.xlu1 %v3490_v44, %s3060_s7 }
 0x100   : > { %804 = vrot.lane.b32.xlu2 %v3497_v1, %s3060_s7 }
 0x101   : > { %v3731_v54 = vpop.permute.xlu1 %674 }
 0x102   : > { %6133 = vst [vmem:[#allocation64_spill] sm:$0xff] %v3731_v54  ;;  %v3733_v50 = vpop.permute.xlu2 %706  ;;  %806 = vrot.lane.b32.xlu0 %v3727_v20, %s3060_s7  ;;  %v3750_v54 = vrot.slane %v3584_v5, 1 }
 0x103   : > { %6134 = vst [vmem:[#allocation65_spill] sm:$0xff] %v3733_v50  ;;  %v405_v50 = vpack.c.bf16 %v369_v58, %v369_v58  ;;  %v375_v58 = vld [vmem:[#allocation2 + $0x58] sm:$0x3f] }
 0x104   : > { %v3737_v8 = vpop.permute.xlu0 %690 }
 0x105   : > { %6135 = vst [vmem:[#allocation66_spill] sm:$0xff] %v3737_v8 }
 0x107   : > { %808 = vrot.lane.b32.xlu1 %v3507_v55, %s3060_s7 }
 0x108   : > { %810 = vrot.lane.b32.xlu2 %v3515_v37, %s3060_s7 }
 0x109   : > { %v3743_v2 = vpop.permute.xlu1 %692 }
 0x10a   : > { %6136 = vst [vmem:[#allocation67_spill] sm:$0xff] %v3743_v2  ;;  %v3745_v3 = vpop.permute.xlu2 %712  ;;  %812 = vrot.lane.b32.xlu0 %v3521_v9, %s3060_s7  ;;  %v820_v2 = vunpack.c.l.b16 %v405_v50 }
 0x10b   : > { %6137 = vst [vmem:[#allocation68_spill] sm:$0xff] %v3745_v3 }
 0x10c   : > { %v3752_v57 = vpop.permute.xlu0 %696  ;;  %v3764_v47 = vpack.c.b16 %v820_v2, %v820_v2 }
 0x10d   : > { %6138 = vst [vmem:[#allocation69_spill] sm:$0xff] %v3752_v57  ;;  %v3770_v57 = vpack.c.bf16 %v375_v58, %v375_v58  ;;  %v381_v58 = vld [vmem:[#allocation2 + $0x88] sm:$0x3f] }
 0x10f   : > { %814 = vrot.lane.b32.xlu1 %v3750_v54, %s3060_s7  ;;  %6142 = vst [vmem:[#allocation73_spill] sm:$0xff] %v3770_v57  ;;  %v821_v2 = vunpack.c.l.b16 %v3770_v57 }
 0x110   : > { %828 = vrot.lane.b32.xlu2 %v3167_v21, %s3061_s8 }
 0x111   : > { %v3758_v8 = vpop.permute.xlu1 %698 }
 0x112   : > { %6139 = vst [vmem:[#allocation70_spill] sm:$0xff] %v3758_v8  ;;  %v3760_v3 = vpop.permute.xlu2 %718  ;;  %830 = vrot.lane.b32.xlu0 %v3173_v25, %s3061_s8 }
 0x113   : > { %6140 = vst [vmem:[#allocation71_spill] sm:$0xff] %v3760_v3  ;;  %v3785_v3 = vpack.c.b16 %v821_v2, %v821_v2 }
 0x114   : > { %v3766_v36 = vpop.permute.xlu0 %702 }
 0x115   : > { %6141 = vst [vmem:[#allocation72_spill] sm:$0xff] %v3766_v36 }
 0x117   : > { %832 = vrot.lane.b32.xlu1 %v3531_v16, %s3061_s8 }
 0x118   : > { %834 = vrot.lane.b32.xlu2 %v3764_v47, %s3061_s8 }
 0x119   : > { %v3774_v21 = vpop.permute.xlu1 %704 }
 0x11a   : > { %6143 = vst [vmem:[#allocation74_spill] sm:$0xff] %v3774_v21  ;;  %v3776_v50 = vpop.permute.xlu2 %752  ;;  %836 = vrot.lane.b32.xlu0 %v3346_v27, %s3061_s8 }
 0x11b   : > { %6144 = vst [vmem:[#allocation75_spill] sm:$0xff] %v3776_v50  ;;  %v3795_v50 = vpack.c.bf16 %v381_v58, %v381_v58 }
 0x11c   : > { %v3781_v25 = vpop.permute.xlu0 %708 }
 0x11d   : > { %6145 = vst [vmem:[#allocation76_spill] sm:$0xff] %v3781_v25  ;;  %v822_v2 = vunpack.c.l.b16 %v3795_v50 }
 0x11e   : > { %6148 = vst [vmem:[#allocation79_spill] sm:$0xff] %v3795_v50 }
 0x11f   : > { %838 = vrot.lane.b32.xlu1 %v3329_v63, %s3061_s8  ;;  %v3810_v58 = vpack.c.b16 %v822_v2, %v822_v2 }
 0x120   : > { %840 = vrot.lane.b32.xlu2 %v3546_v24, %s3061_s8 }
 0x121   : > { %v3789_v36 = vpop.permute.xlu1 %710 }
 0x122   : > { %6146 = vst [vmem:[#allocation77_spill] sm:$0xff] %v3789_v36  ;;  %v3791_v21 = vpop.permute.xlu2 %758  ;;  %842 = vrot.lane.b32.xlu0 %v3785_v3, %s3061_s8  ;;  %v387_v36 = vld [vmem:[#allocation2 + $0xb8] sm:$0x3f] }
 0x123   : > { %6147 = vst [vmem:[#allocation78_spill] sm:$0xff] %v3791_v21  ;;  %v3812_v21 = vpack.c.bf16 %v387_v36, %v387_v36 }
 0x124   : > { %v3797_v57 = vpop.permute.xlu0 %714 }
 0x125   : > { %6149 = vst [vmem:[#allocation80_spill] sm:$0xff] %v3797_v57  ;;  %v823_v50 = vunpack.c.l.b16 %v3812_v21 }
 0x126   : > { %6152 = vst [vmem:[#allocation83_spill] sm:$0xff] %v3812_v21 }
 0x127   : > { %844 = vrot.lane.b32.xlu1 %v3341_v18, %s3061_s8  ;;  %v3827_v2 = vpack.c.b16 %v823_v50, %v823_v50  ;;  %v861_v50 = vshrl.u32 %v3764_v47, 16 }
 0x128   : > { %846 = vrot.lane.b32.xlu2 %v3349_v32, %s3061_s8 }
 0x129   : > { %v3804_v25 = vpop.permute.xlu1 %716  ;;  %6156 = vst [vmem:[#allocation87_spill] sm:$0xff] %v3827_v2 }
 0x12a   : > { %6150 = vst [vmem:[#allocation81_spill] sm:$0xff] %v3804_v25  ;;  %v3806_v4 = vpop.permute.xlu2 %764  ;;  %848 = vrot.lane.b32.xlu0 %v3565_v10, %s3061_s8 }
 0x12b   : > { %6151 = vst [vmem:[#allocation82_spill] sm:$0xff] %v3806_v4 }
 0x12c   : > { %v3814_v57 = vpop.permute.xlu0 %748 }
 0x12d   : > { %6153 = vst [vmem:[#allocation84_spill] sm:$0xff] %v3814_v57  ;;  %v863_v57 = vshll.u32 %v3764_v47, 16 }
 0x12f   : > { %850 = vrot.lane.b32.xlu1 %v3810_v58, %s3061_s8 }
 0x130   : > { %852 = vrot.lane.b32.xlu2 %v3391_v33, %s3061_s8 }
 0x131   : > { %v3821_v25 = vpop.permute.xlu1 %750 }
 0x132   : > { %6154 = vst [vmem:[#allocation85_spill] sm:$0xff] %v3821_v25  ;;  %v3823_v4 = vpop.permute.xlu2 %770  ;;  %854 = vrot.lane.b32.xlu0 %v3397_v35, %s3061_s8 }
 0x133   : > { %6155 = vst [vmem:[#allocation86_spill] sm:$0xff] %v3823_v4  ;;  %v865_v4 = vrot.slane %v863_v57, 1  ;;  %v868_v57 = vshrl.u32 %v3785_v3, 16 }
 0x134   : > { %v3829_v36 = vpop.permute.xlu0 %754 }
 0x135   : > { %6157 = vst [vmem:[#allocation88_spill] sm:$0xff] %v3829_v36  ;;  %v866_v8 = vor.u32 %v865_v4, %v861_v50  ;;  %v5985_v50 = vshll.u32 %v3810_v58, 16 }
 0x137   : > { %856 = vrot.lane.b32.xlu1 %v3584_v5, %s3061_s8 }
 0x138   : > { %858 = vrot.lane.b32.xlu2 %v3827_v2, %s3061_s8 }
 0x139   : > { %v3836_v21 = vpop.permute.xlu1 %756 }
 0x13a   : > { %6158 = vst [vmem:[#allocation89_spill] sm:$0xff] %v3836_v21  ;;  %v3838_v25 = vpop.permute.xlu2 %776  ;;  %888 = vrot.lane.b32.xlu0 %v3208_v38, %s3062_s9  ;;  %v870_v38 = vshll.u32 %v3785_v3, 16 }
 0x13b   : > { %6159 = vst [vmem:[#allocation90_spill] sm:$0xff] %v3838_v25 }
 0x13c   : > { %v3843_v36 = vpop.permute.xlu0 %760 }
 0x13d   : > { %6160 = vst [vmem:[#allocation91_spill] sm:$0xff] %v3843_v36 }
 0x13f   : > { %890 = vrot.lane.b32.xlu1 %v3249_v59, %s3062_s9  ;;  %v872_v59 = vrot.slane %v870_v38, 1  ;;  %v5987_v38 = vshrl.u32 %v3810_v58, 16 }
 0x140   : > { %892 = vrot.lane.b32.xlu2 %v3602_v29, %s3062_s9 }
 0x141   : > { %v3849_v60 = vpop.permute.xlu1 %762 }
 0x142   : > { %6161 = vst [vmem:[#allocation92_spill] sm:$0xff] %v3849_v60  ;;  %v3851_v21 = vpop.permute.xlu2 %786  ;;  %894 = vrot.lane.b32.xlu0 %v866_v8, %s3062_s9  ;;  %v3868_v8 = vor.u32 %v872_v59, %v868_v57 }
 0x143   : > { %6162 = vst [vmem:[#allocation93_spill] sm:$0xff] %v3851_v21 }
 0x144   : > { %v3855_v25 = vpop.permute.xlu0 %766  ;;  %6166 = vst [vmem:[#allocation97_spill] sm:$0xff] %v3868_v8 }
 0x145   : > { %6163 = vst [vmem:[#allocation94_spill] sm:$0xff] %v3855_v25 }
 0x147   : > { %896 = vrot.lane.b32.xlu1 %v3372_v62, %s3062_s9 }
 0x148   : > { %898 = vrot.lane.b32.xlu2 %v3354_v43, %s3062_s9 }
 0x149   : > { %v3862_v4 = vpop.permute.xlu1 %768 }
 0x14a   : > { %6164 = vst [vmem:[#allocation95_spill] sm:$0xff] %v3862_v4  ;;  %v3864_v29 = vpop.permute.xlu2 %792  ;;  %900 = vrot.lane.b32.xlu0 %v3626_v61, %s3062_s9  ;;  %v879_v4 = vrot.slane %v5985_v50, 1 }
 0x14b   : > { %6165 = vst [vmem:[#allocation96_spill] sm:$0xff] %v3864_v29 }
 0x14c   : > { %v3871_v21 = vpop.permute.xlu0 %772  ;;  %v3888_v57 = vor.u32 %v879_v4, %v5987_v38  ;;  %v5991_v4 = vshrl.u32 %v3827_v2, 16 }
 0x14d   : > { %6167 = vst [vmem:[#allocation98_spill] sm:$0xff] %v3871_v21  ;;  %v5990_v21 = vshll.u32 %v3827_v2, 16 }
 0x14e   : > { %6170 = vst [vmem:[#allocation101_spill] sm:$0xff] %v3888_v57 }
 0x14f   : > { %902 = vrot.lane.b32.xlu1 %v3868_v8, %s3062_s9  ;;  %v886_v38 = vrot.slane %v5990_v21, 1  ;;  %v252_v8 = vld [vmem:[%s3185_s23 + $0x34] sm:$0xf] }
 0x150   : > { %904 = vrot.lane.b32.xlu2 %v3386_v22, %s3062_s9 }
 0x151   : > { %v3880_v25 = vpop.permute.xlu1 %774 }
 0x152   : > { %6168 = vst [vmem:[#allocation99_spill] sm:$0xff] %v3880_v25  ;;  %v3882_v60 = vpop.permute.xlu2 %798  ;;  %906 = vrot.lane.b32.xlu0 %v3395_v34, %s3062_s9 }
 0x153   : > { %6169 = vst [vmem:[#allocation100_spill] sm:$0xff] %v3882_v60 }
 0x154   : > { %v3890_v59 = vpop.permute.xlu0 %778 }
 0x155   : > { %6171 = vst [vmem:[#allocation102_spill] sm:$0xff] %v3890_v59 }
 0x157   : > { %908 = vrot.lane.b32.xlu1 %v3646_v56, %s3062_s9 }
 0x158   : > { %910 = vrot.lane.b32.xlu2 %v3888_v57, %s3062_s9  ;;  %v3912_v57 = vor.u32 %v886_v38, %v5991_v4 }
 0x159   : > { %v3897_v50 = vpop.permute.xlu1 %784 }
 0x15a   : > { %6172 = vst [vmem:[#allocation103_spill] sm:$0xff] %v3897_v50  ;;  %v3899_v25 = vpop.permute.xlu2 %804  ;;  %912 = vrot.lane.b32.xlu0 %v3430_v23, %s3062_s9 }
 0x15b   : > { %6173 = vst [vmem:[#allocation104_spill] sm:$0xff] %v3899_v25 }
 0x15c   : > { %v3906_v59 = vpop.permute.xlu0 %788  ;;  %6175 = vst [vmem:[#allocation106_spill] sm:$0xff] %v3912_v57 }
 0x15d   : > { %6174 = vst [vmem:[#allocation105_spill] sm:$0xff] %v3906_v59  ;;  %v6180_v59 = vrot.slane %v3531_v16, 1  ;;  %v921_v16 = vrot.slane %v3785_v3, 1 }
 0x15f   : > { %914 = vrot.lane.b32.xlu1 %v3436_v52, %s3062_s9 }
 0x160   : > { %916 = vrot.lane.b32.xlu2 %v3670_v40, %s3062_s9 }
 0x161   : > { %v3916_v50 = vpop.permute.xlu1 %790 }
 0x162   : > { %6176 = vst [vmem:[#allocation107_spill] sm:$0xff] %v3916_v50  ;;  %v3918_v25 = vpop.permute.xlu2 %810  ;;  %918 = vrot.lane.b32.xlu0 %v3912_v57, %s3062_s9  ;;  %v920_v50 = vrot.slane %v3764_v47, 1 }
 0x163   : > { %6177 = vst [vmem:[#allocation108_spill] sm:$0xff] %v3918_v25 }
 0x164   : > { %v3922_v21 = vpop.permute.xlu0 %794 }
 0x167   : > { %924 = vrot.lane.b32.xlu1 %v3446_v17, %s3063_s10 }
 0x168   : > { %926 = vrot.lane.b32.xlu2 %v3452_v0, %s3063_s10 }
 0x169   : > { %v3928_v38 = vpop.permute.xlu1 %796 }
 0x16a   : > { %6178 = vst [vmem:[#allocation109_spill] sm:$0xff] %v3928_v38  ;;  %v3930_v4 = vpop.permute.xlu2 %828  ;;  %928 = vrot.lane.b32.xlu0 %v6180_v59, %s3063_s10 }
 0x16b   : > { %6179 = vst [vmem:[#allocation110_spill] sm:$0xff] %v3930_v4 }
 0x16c   : > { %v3936_v25 = vpop.permute.xlu0 %800 }
 0x16f   : > { %930 = vrot.lane.b32.xlu1 %v920_v50, %s3063_s10 }
 0x170   : > { %932 = vrot.lane.b32.xlu2 %v3466_v41, %s3063_s10 }
 0x171   : > { %v3941_v17 = vpop.permute.xlu1 %802 }
 0x172   : > { %6181 = vst [vmem:[#allocation111_spill] sm:$0xff] %v3941_v17  ;;  %v3943_v0 = vpop.permute.xlu2 %834  ;;  %934 = vrot.lane.b32.xlu0 %v3472_v15, %s3063_s10  ;;  %v253_v17 = vld [vmem:[%s3185_s23 + $0x38] sm:$0xf] }
 0x173   : > { %6182 = vst [vmem:[#allocation112_spill] sm:$0xff] %v3943_v0  ;;  %v922_v0 = vrot.slane %v3810_v58, 1  ;;  %v272_v38 = vmul.f32 %v3194_v31, %v253_v17 }
 0x174   : > { %v3948_v47 = vpop.permute.xlu0 %806 }
 0x175   : > { %6183 = vst [vmem:[#allocation113_spill] sm:$0xff] %v3948_v47 }
 0x177   : > { %936 = vrot.lane.b32.xlu1 %v3708_v13, %s3063_s10 }
 0x178   : > { %938 = vrot.lane.b32.xlu2 %v921_v16, %s3063_s10 }
 0x179   : > { %v3953_v50 = vpop.permute.xlu1 %808 }
 0x17a   : > { %6184 = vst [vmem:[#allocation114_spill] sm:$0xff] %v3953_v50  ;;  %v3955_v59 = vpop.permute.xlu2 %840  ;;  %940 = vrot.lane.b32.xlu0 %v3490_v44, %s3063_s10  ;;  %v251_v50 = vld [vmem:[%s3185_s23 + $0x30] sm:$0xf] }
 0x17b   : > { %6185 = vst [vmem:[#allocation115_spill] sm:$0xff] %v3955_v59  ;;  %v270_v60 = vmul.f32 %v3194_v31, %v251_v50  ;;  %v271_v59 = vmul.f32 %v3194_v31, %v252_v8 }
 0x17c   : > { %v3959_v4 = vpop.permute.xlu0 %812 }
 0x17d   : > { %6186 = vst [vmem:[#allocation116_spill] sm:$0xff] %v3959_v4  ;;  %v289_v4 = vadd.f32 %v3218_v42, %v270_v60  ;;  %v290_v29 = vadd.f32 %v3218_v42, %v271_v59 }
 0x17f   : > { %942 = vrot.lane.b32.xlu1 %v3497_v1, %s3063_s10  ;;  %v306_v50 = vmax.f32 %v290_v29, 0.0 }
 0x180   : > { %944 = vrot.lane.b32.xlu2 %v3727_v20, %s3063_s10 }
 0x181   : > { %v3966_v57 = vpop.permute.xlu1 %814  ;;  %361 = vst.msk [vmem:[#allocation2 + $0xd1] sm:$0xf] %vm347_vm1, %v306_v50 }
 0x182   : > { %6187 = vst [vmem:[#allocation117_spill] sm:$0xff] %v3966_v57  ;;  %v3968_v16 = vpop.permute.xlu2 %846  ;;  %946 = vrot.lane.b32.xlu0 %v922_v0, %s3063_s10  ;;  %v291_v57 = vadd.f32 %v3218_v42, %v272_v38  ;;  %v305_v0 = vmax.f32 %v289_v4, 0.0  ;;  %v923_v42 = vrot.slane %v3827_v2, 1 }
 0x183   : > { %6188 = vst [vmem:[#allocation118_spill] sm:$0xff] %v3968_v16 }
 0x184   : > { %v3977_v36 = vpop.permute.xlu0 %830  ;;  %v307_v16 = vmax.f32 %v291_v57, 0.0  ;;  %360 = vst.msk [vmem:[#allocation2 + $0xc9] sm:$0xf] %vm347_vm1, %v305_v0  ;;  %v388_v0 = vld [vmem:[#allocation2 + $0xc0] sm:$0x3f] }
 0x185   : > { %6189 = vst [vmem:[#allocation119_spill] sm:$0xff] %v3977_v36 }
 0x186   : > { %362 = vst.msk [vmem:[#allocation2 + $0xd9] sm:$0xf] %vm347_vm1, %v307_v16 }
 0x187   : > { %948 = vrot.lane.b32.xlu1 %v3515_v37, %s3063_s10 }
 0x188   : > { %950 = vrot.lane.b32.xlu2 %v3521_v9, %s3063_s10 }
 0x189   : > { %v3986_v8 = vpop.permute.xlu1 %832 }
 0x18a   : > { %6190 = vst [vmem:[#allocation120_spill] sm:$0xff] %v3986_v8  ;;  %v3988_v31 = vpop.permute.xlu2 %852  ;;  %952 = vrot.lane.b32.xlu0 %v3750_v54, %s3063_s10 }
 0x18b   : > { %6191 = vst [vmem:[#allocation121_spill] sm:$0xff] %v3988_v31  ;;  %v390_v31 = vld [vmem:[#allocation2 + $0xd0] sm:$0x3f] }
 0x18c   : > { %v3996_v60 = vpop.permute.xlu0 %836  ;;  %v4043_v2 = vpack.c.bf16 %v390_v31, %v390_v31 }
 0x18d   : > { %6192 = vst [vmem:[#allocation122_spill] sm:$0xff] %v3996_v60 }
 0x18e   : > { %6202 = vst [vmem:[#allocation132_spill] sm:$0xff] %v4043_v2 }
 0x18f   : > { %954 = vrot.lane.b32.xlu1 %v923_v42, %s3063_s10  ;;  %v424_v42 = vpack.c.bf16 %v388_v0, %v388_v0 }
 0x190   : > { %968 = vrot.lane.b32.xlu2 %v3145_v12, %s3064_s11 }
 0x191   : > { %v4001_v29 = vpop.permute.xlu1 %838 }
 0x192   : > { %v4003_v57 = vpop.permute.xlu2 %858  ;;  %970 = vrot.lane.b32.xlu0 %v3334_v6, %s3064_s11 }
 0x193   : > { %6193 = vst [vmem:[#allocation123_spill] sm:$0xff] %v4003_v57  ;;  %v960_v57 = vunpack.c.l.b16 %v424_v42 }
 0x194   : > { %v4007_v4 = vpop.permute.xlu0 %842 }
 0x195   : > { %6194 = vst [vmem:[#allocation124_spill] sm:$0xff] %v4007_v4  ;;  %v391_v4 = vld [vmem:[#allocation2 + $0xd8] sm:$0x3f] }
 0x197   : > { %972 = vrot.lane.b32.xlu1 %v3346_v27, %s3064_s11 }
 0x198   : > { %974 = vrot.lane.b32.xlu2 %v3329_v63, %s3064_s11 }
 0x199   : > { %v4013_v38 = vpop.permute.xlu1 %844 }
 0x19a   : > { %6195 = vst [vmem:[#allocation125_spill] sm:$0xff] %v4013_v38  ;;  %v4015_v17 = vpop.permute.xlu2 %892  ;;  %976 = vrot.lane.b32.xlu0 %v3230_v48, %s3064_s11 }
 0x19b   : > { %6196 = vst [vmem:[#allocation126_spill] sm:$0xff] %v4015_v17  ;;  %v389_v17 = vld [vmem:[#allocation2 + $0xc8] sm:$0x3f] }
 0x19c   : > { %v4019_v59 = vpop.permute.xlu0 %848  ;;  %v425_v36 = vpack.c.bf16 %v389_v17, %v389_v17 }
 0x19d   : > { %6197 = vst [vmem:[#allocation127_spill] sm:$0xff] %v4019_v59 }
 0x19e   : > { %v961_v0 = vunpack.c.l.b16 %v425_v36 }
 0x19f   : > { %978 = vrot.lane.b32.xlu1 %v3389_v28, %s3064_s11 }
 0x1a0   : > { %980 = vrot.lane.b32.xlu2 %v3341_v18, %s3064_s11  ;;  %v4053_v42 = vpack.c.b16 %v961_v0, %v961_v0 }
 0x1a1   : > { %v4025_v16 = vpop.permute.xlu1 %850 }
 0x1a2   : > { %6198 = vst [vmem:[#allocation128_spill] sm:$0xff] %v4025_v16  ;;  %v4027_v50 = vpop.permute.xlu2 %898  ;;  %982 = vrot.lane.b32.xlu0 %v3349_v32, %s3064_s11  ;;  %v4047_v16 = vpack.c.bf16 %v391_v4, %v391_v4 }
 0x1a3   : > { %6206 = vst [vmem:[#allocation136_spill] sm:$0xff] %v4053_v42 }
 0x1a4   : > { %v4031_v8 = vpop.permute.xlu0 %854  ;;  %6204 = vst [vmem:[#allocation134_spill] sm:$0xff] %v4047_v16  ;;  %v963_v36 = vunpack.c.l.b16 %v4047_v16 }
 0x1a5   : > { %6199 = vst [vmem:[#allocation129_spill] sm:$0xff] %v4031_v8  ;;  %v4045_v8 = vpack.c.b16 %v960_v57, %v960_v57 }
 0x1a7   : > { %984 = vrot.lane.b32.xlu1 %v3274_v14, %s3064_s11  ;;  %6203 = vst [vmem:[#allocation133_spill] sm:$0xff] %v4045_v8 }
 0x1a8   : > { %986 = vrot.lane.b32.xlu2 %v3364_v53, %s3064_s11 }
 0x1a9   : > { %v4037_v59 = vpop.permute.xlu1 %856 }
 0x1aa   : > { %6200 = vst [vmem:[#allocation130_spill] sm:$0xff] %v4037_v59  ;;  %v4039_v60 = vpop.permute.xlu2 %904  ;;  %988 = vrot.lane.b32.xlu0 %v3391_v33, %s3064_s11  ;;  %v962_v59 = vunpack.c.l.b16 %v4043_v2 }
 0x1ab   : > { %6201 = vst [vmem:[#allocation131_spill] sm:$0xff] %v4039_v60 }
 0x1ac   : > { %v4049_v17 = vpop.permute.xlu0 %888  ;;  %v4065_v4 = vpack.c.b16 %v962_v59, %v962_v59 }
 0x1ad   : > { %6205 = vst [vmem:[#allocation135_spill] sm:$0xff] %v4049_v17  ;;  %v4067_v17 = vpack.c.b16 %v963_v36, %v963_v36 }
 0x1af   : > { %990 = vrot.lane.b32.xlu1 %v3397_v35, %s3064_s11 }
 0x1b0   : > { %992 = vrot.lane.b32.xlu2 %v4045_v8, %s3064_s11 }
 0x1b1   : > { %v4059_v31 = vpop.permute.xlu1 %890 }
 0x1b2   : > { %6207 = vst [vmem:[#allocation137_spill] sm:$0xff] %v4059_v31  ;;  %v4061_v57 = vpop.permute.xlu2 %910  ;;  %994 = vrot.lane.b32.xlu0 %v4053_v42, %s3064_s11 }
 0x1b3   : > { %6208 = vst [vmem:[#allocation138_spill] sm:$0xff] %v4061_v57 }
 0x1b4   : > { %v4069_v0 = vpop.permute.xlu0 %894 }
 0x1b5   : > { %6209 = vst [vmem:[#allocation139_spill] sm:$0xff] %v4069_v0 }
 0x1b7   : > { %996 = vrot.lane.b32.xlu1 %v4065_v4, %s3064_s11 }
 0x1b8   : > { %998 = vrot.lane.b32.xlu2 %v4067_v17, %s3064_s11 }
 0x1b9   : > { %v4075_v2 = vpop.permute.xlu1 %896 }
 0x1ba   : > { %6210 = vst [vmem:[#allocation140_spill] sm:$0xff] %v4075_v2  ;;  %v4077_v31 = vpop.permute.xlu2 %916  ;;  %1028 = vrot.lane.b32.xlu0 %v3187_v30, %s3065_s12 }
 0x1bb   : > { %6211 = vst [vmem:[#allocation141_spill] sm:$0xff] %v4077_v31  ;;  %v6019_v31 = vshrl.u32 %v4065_v4, 16 }
 0x1bc   : > { %v4081_v59 = vpop.permute.xlu0 %900 }
 0x1bd   : > { %6212 = vst [vmem:[#allocation142_spill] sm:$0xff] %v4081_v59 }
 0x1bf   : > { %1030 = vrot.lane.b32.xlu1 %v3357_v45, %s3065_s12 }
 0x1c0   : > { %1032 = vrot.lane.b32.xlu2 %v3372_v62, %s3065_s12 }
 0x1c1   : > { %v4087_v36 = vpop.permute.xlu1 %902 }
 0x1c2   : > { %6213 = vst [vmem:[#allocation143_spill] sm:$0xff] %v4087_v36  ;;  %v4089_v16 = vpop.permute.xlu2 %926  ;;  %1034 = vrot.lane.b32.xlu0 %v3354_v43, %s3065_s12 }
 0x1c3   : > { %6214 = vst [vmem:[#allocation144_spill] sm:$0xff] %v4089_v16  ;;  %v6011_v16 = vshll.u32 %v4045_v8, 16 }
 0x1c4   : > { %v4093_v0 = vpop.permute.xlu0 %906 }
 0x1c5   : > { %6215 = vst [vmem:[#allocation145_spill] sm:$0xff] %v4093_v0 }
 0x1c7   : > { %1036 = vrot.lane.b32.xlu1 %v3272_v11, %s3065_s12 }
 0x1c8   : > { %1038 = vrot.lane.b32.xlu2 %v3417_v19, %s3065_s12 }
 0x1c9   : > { %v4099_v30 = vpop.permute.xlu1 %908 }
 0x1ca   : > { %6216 = vst [vmem:[#allocation146_spill] sm:$0xff] %v4099_v30  ;;  %v4101_v59 = vpop.permute.xlu2 %932  ;;  %1040 = vrot.lane.b32.xlu0 %v3386_v22, %s3065_s12  ;;  %v6014_v30 = vshrl.u32 %v4045_v8, 16 }
 0x1cb   : > { %6217 = vst [vmem:[#allocation147_spill] sm:$0xff] %v4101_v59  ;;  %v6013_v59 = vshll.u32 %v4053_v42, 16 }
 0x1cc   : > { %v4105_v36 = vpop.permute.xlu0 %912 }
 0x1cd   : > { %6218 = vst [vmem:[#allocation148_spill] sm:$0xff] %v4105_v36  ;;  %v1005_v36 = vrot.slane %v6011_v16, 1  ;;  %v6017_v16 = vshll.u32 %v4067_v17, 16 }
 0x1cf   : > { %1042 = vrot.lane.b32.xlu1 %v3395_v34, %s3065_s12 }
 0x1d0   : > { %1044 = vrot.lane.b32.xlu2 %v3305_v39, %s3065_s12  ;;  %v4129_v39 = vor.u32 %v1005_v36, %v6014_v30  ;;  %v1026_v30 = vrot.slane %v6017_v16, 1  ;;  %v6230_v16 = vrot.slane %v3145_v12, 1 }
 0x1d1   : > { %v4112_v11 = vpop.permute.xlu1 %914 }
 0x1d2   : > { %6219 = vst [vmem:[#allocation149_spill] sm:$0xff] %v4112_v11  ;;  %v4114_v0 = vpop.permute.xlu2 %938  ;;  %1046 = vrot.lane.b32.xlu0 %v3421_v26, %s3065_s12  ;;  %v6016_v11 = vshrl.u32 %v4053_v42, 16 }
 0x1d3   : > { %6220 = vst [vmem:[#allocation150_spill] sm:$0xff] %v4114_v0  ;;  %v1012_v0 = vrot.slane %v6013_v59, 1  ;;  %v6018_v59 = vshrl.u32 %v4067_v17, 16 }
 0x1d4   : > { %v4123_v2 = vpop.permute.xlu0 %918  ;;  %6222 = vst [vmem:[#allocation152_spill] sm:$0xff] %v4129_v39 }
 0x1d5   : > { %6221 = vst [vmem:[#allocation151_spill] sm:$0xff] %v4123_v2  ;;  %v6223_v2 = vshll.u32 %v4065_v4, 16  ;;  %v4148_v36 = vor.u32 %v1012_v0, %v6016_v11 }
 0x1d7   : > { %1048 = vrot.lane.b32.xlu1 %v3430_v23, %s3065_s12  ;;  %v1019_v57 = vrot.slane %v6223_v2, 1  ;;  %6226 = vst [vmem:[#allocation155_spill] sm:$0xff] %v4148_v36 }
 0x1d8   : > { %1050 = vrot.lane.b32.xlu2 %v3436_v52, %s3065_s12 }
 0x1d9   : > { %v4140_v47 = vpop.permute.xlu1 %924  ;;  %v4155_v38 = vor.u32 %v1019_v57, %v6019_v31 }
 0x1da   : > { %6224 = vst [vmem:[#allocation153_spill] sm:$0xff] %v4140_v47  ;;  %v4142_v60 = vpop.permute.xlu2 %944  ;;  %1052 = vrot.lane.b32.xlu0 %v4129_v39, %s3065_s12  ;;  %v4163_v47 = vor.u32 %v1026_v30, %v6018_v59 }
 0x1db   : > { %6225 = vst [vmem:[#allocation154_spill] sm:$0xff] %v4142_v60  ;;  %v254_v60 = vld [vmem:[%s3185_s23 + $0x3c] sm:$0xf]  ;;  %s3069_s23 = smov 112  }
 0x1dc   : > { %v4157_v2 = vpop.permute.xlu0 %928 }
 0x1dd   : > { %6227 = vst [vmem:[#allocation156_spill] sm:$0xff] %v4157_v2  ;;  %v6233_v2 = vrot.slane %v3230_v48, 1 }
 0x1df   : > { %1054 = vrot.lane.b32.xlu1 %v4148_v36, %s3065_s12 }
 0x1e0   : > { %1056 = vrot.lane.b32.xlu2 %v4155_v38, %s3065_s12 }
 0x1e1   : > { %v4167_v0 = vpop.permute.xlu1 %930 }
 0x1e2   : > { %6228 = vst [vmem:[#allocation157_spill] sm:$0xff] %v4167_v0  ;;  %v4169_v11 = vpop.permute.xlu2 %950  ;;  %1058 = vrot.lane.b32.xlu0 %v4163_v47, %s3065_s12 }
 0x1e3   : > { %6229 = vst [vmem:[#allocation158_spill] sm:$0xff] %v4169_v11 }
 0x1e4   : > { %v4173_v57 = vpop.permute.xlu0 %934 }
 0x1e7   : > { %1064 = vrot.lane.b32.xlu1 %v6230_v16, %s3066_s13 }
 0x1e8   : > { %1066 = vrot.lane.b32.xlu2 %v3460_v49, %s3066_s13 }
 0x1e9   : > { %v4180_v30 = vpop.permute.xlu1 %936 }
 0x1ea   : > { %6231 = vst [vmem:[#allocation159_spill] sm:$0xff] %v4180_v30  ;;  %v4182_v59 = vpop.permute.xlu2 %968  ;;  %1068 = vrot.lane.b32.xlu0 %v3466_v41, %s3066_s13  ;;  %v6029_v30 = vrot.slane %v4065_v4, 1 }
 0x1eb   : > { %6232 = vst [vmem:[#allocation160_spill] sm:$0xff] %v4182_v59 }
 0x1ec   : > { %v4186_v31 = vpop.permute.xlu0 %940 }
 0x1ef   : > { %1070 = vrot.lane.b32.xlu1 %v3472_v15, %s3066_s13 }
 0x1f0   : > { %1072 = vrot.lane.b32.xlu2 %v6233_v2, %s3066_s13  ;;  %v6239_v2 = vrot.slane %v3274_v14, 1  ;;  %v3045_v14 = vld [vmem:[%s5923_s1] ss:$0 sm:$0xff] }
 0x1f1   : > { %v4193_v12 = vpop.permute.xlu1 %942 }
 0x1f2   : > { %6234 = vst [vmem:[#allocation161_spill] sm:$0xff] %v4193_v12  ;;  %v4195_v16 = vpop.permute.xlu2 %974  ;;  %1074 = vrot.lane.b32.xlu0 %v3483_v46, %s3066_s13  ;;  %v273_v12 = vmul.f32 %v3045_v14, %v254_v60 }
 0x1f3   : > { %6235 = vst [vmem:[#allocation162_spill] sm:$0xff] %v4195_v16 }
 0x1f4   : > { %v4199_v59 = vpop.permute.xlu0 %946 }
 0x1f5   : > { %6236 = vst [vmem:[#allocation163_spill] sm:$0xff] %v4199_v59 }
 0x1f7   : > { %1076 = vrot.lane.b32.xlu1 %v3490_v44, %s3066_s13 }
 0x1f8   : > { %1078 = vrot.lane.b32.xlu2 %v3497_v1, %s3066_s13 }
 0x1f9   : > { %v4205_v39 = vpop.permute.xlu1 %948 }
 0x1fa   : > { %6237 = vst [vmem:[#allocation164_spill] sm:$0xff] %v4205_v39  ;;  %v4207_v0 = vpop.permute.xlu2 %980  ;;  %1080 = vrot.lane.b32.xlu0 %v6239_v2, %s3066_s13  ;;  %v1060_v39 = vrot.slane %v4045_v8, 1  ;;  %v6030_v2 = vrot.slane %v4053_v42, 1 }
 0x1fb   : > { %6238 = vst [vmem:[#allocation165_spill] sm:$0xff] %v4207_v0 }
 0x1fc   : > { %v4212_v16 = vpop.permute.xlu0 %952 }
 0x1fd   : > { %6240 = vst [vmem:[#allocation166_spill] sm:$0xff] %v4212_v16 }
 0x1ff   : > { %1082 = vrot.lane.b32.xlu1 %v3507_v55, %s3066_s13 }
 0x200   : > { %1084 = vrot.lane.b32.xlu2 %v3515_v37, %s3066_s13 }
 0x201   : > { %v4218_v48 = vpop.permute.xlu1 %954 }
 0x202   : > { %6241 = vst [vmem:[#allocation167_spill] sm:$0xff] %v4218_v48  ;;  %v4220_v11 = vpop.permute.xlu2 %986  ;;  %1086 = vrot.lane.b32.xlu0 %v3521_v9, %s3066_s13  ;;  %v3046_v48 = vld [vmem:[%s5924_s2] ss:$0 sm:$0xff] }
 0x203   : > { %6242 = vst [vmem:[#allocation168_spill] sm:$0xff] %v4220_v11  ;;  %v292_v11 = vadd.f32 %v3046_v48, %v273_v12  ;;  %v6028_v48 = vrot.slane %v4067_v17, 1 }
 0x204   : > { %v4230_v0 = vpop.permute.xlu0 %970 }
 0x205   : > { %6243 = vst [vmem:[#allocation169_spill] sm:$0xff] %v4230_v0  ;;  %v308_v8 = vmax.f32 %v292_v11, 0.0 }
 0x207   : > { %1088 = vrot.lane.b32.xlu1 %v1060_v39, %s3066_s13  ;;  %363 = vst.msk [vmem:[#allocation2 + $0xe1] sm:$0xf] %vm347_vm1, %v308_v8  ;;  %vm2494_vm1 = vcmask 1041408  }
 0x208   : > { %1090 = vrot.lane.b32.xlu2 %v6030_v2, %s3066_s13 }
 0x209   : > { %v4240_v16 = vpop.permute.xlu1 %972 }
 0x20a   : > { %6244 = vst [vmem:[#allocation170_spill] sm:$0xff] %v4240_v16  ;;  %v4242_v59 = vpop.permute.xlu2 %992  ;;  %1092 = vrot.lane.b32.xlu0 %v6029_v30, %s3066_s13 }
 0x20b   : > { %6245 = vst [vmem:[#allocation171_spill] sm:$0xff] %v4242_v59 }
 0x20c   : > { %v4249_v14 = vpop.permute.xlu0 %976 }
 0x20e   : > { %v392_v16 = vld [vmem:[#allocation2 + $0xe0] sm:$0x3f] }
 0x20f   : > { %1094 = vrot.lane.b32.xlu1 %v6028_v48, %s3066_s13 }
 0x210   : > { %1099 = vrot.lane.b32.xlu2 %v3334_v6, %s3067_s21 }
 0x211   : > { %v4256_v11 = vpop.permute.xlu1 %978 }
 0x212   : > { %v4258_v39 = vpop.permute.xlu2 %998  ;;  %1101 = vrot.lane.b32.xlu0 %v3346_v27, %s3067_s21 }
 0x213   : > { %6246 = vst [vmem:[#allocation172_spill] sm:$0xff] %v4258_v39  ;;  %v4298_v39 = vpack.c.bf16 %v392_v16, %v392_v16 }
 0x214   : > { %v4262_v8 = vpop.permute.xlu0 %982 }
 0x215   : > { %6247 = vst [vmem:[#allocation173_spill] sm:$0xff] %v4262_v8 }
 0x216   : > { %6253 = vst [vmem:[#allocation179_spill] sm:$0xff] %v4298_v39 }
 0x217   : > { %1103 = vrot.lane.b32.xlu1 %v3329_v63, %s3067_s21 }
 0x218   : > { %1105 = vrot.lane.b32.xlu2 %v3546_v24, %s3067_s21 }
 0x219   : > { %v4268_v60 = vpop.permute.xlu1 %984 }
 0x21a   : > { %v4270_v12 = vpop.permute.xlu2 %1032  ;;  %1107 = vrot.lane.b32.xlu0 %v3389_v28, %s3067_s21 }
 0x21b   : > { %6248 = vst [vmem:[#allocation174_spill] sm:$0xff] %v4270_v12 }
 0x21c   : > { %v4274_v6 = vpop.permute.xlu0 %988 }
 0x21d   : > { %6249 = vst [vmem:[#allocation175_spill] sm:$0xff] %v4274_v6 }
 0x21f   : > { %1109 = vrot.lane.b32.xlu1 %v3341_v18, %s3067_s21 }
 0x220   : > { %1111 = vrot.lane.b32.xlu2 %v3349_v32, %s3067_s21 }
 0x221   : > { %v4280_v48 = vpop.permute.xlu1 %990 }
 0x222   : > { %6250 = vst [vmem:[#allocation176_spill] sm:$0xff] %v4280_v48  ;;  %v4282_v30 = vpop.permute.xlu2 %1038  ;;  %1113 = vrot.lane.b32.xlu0 %v3565_v10, %s3067_s21 }
 0x224   : > { %v4286_v2 = vpop.permute.xlu0 %994 }
 0x225   : > { %6251 = vst [vmem:[#allocation177_spill] sm:$0xff] %v4286_v2 }
 0x227   : > { %1115 = vrot.lane.b32.xlu1 %v3364_v53, %s3067_s21  ;;  %v1097_v53 = vunpack.c.l.b16 %v4298_v39 }
 0x228   : > { %1117 = vrot.lane.b32.xlu2 %v3391_v33, %s3067_s21 }
 0x229   : > { %v4292_v12 = vpop.permute.xlu1 %996  ;;  %v4313_v6 = vpack.c.b16 %v1097_v53, %v1097_v53 }
 0x22a   : > { %6252 = vst [vmem:[#allocation178_spill] sm:$0xff] %v4292_v12  ;;  %v4294_v0 = vpop.permute.xlu2 %1044  ;;  %1119 = vrot.lane.b32.xlu0 %v3397_v35, %s3067_s21 }
 0x22c   : > { %v4300_v28 = vpop.permute.xlu0 %1028 }
 0x22d   : > { %6254 = vst [vmem:[#allocation180_spill] sm:$0xff] %v4300_v28 }
 0x22f   : > { %1121 = vrot.lane.b32.xlu1 %v3584_v5, %s3067_s21 }
 0x230   : > { %1123 = vrot.lane.b32.xlu2 %v4053_v42, %s3067_s21 }
 0x231   : > { %v4307_v2 = vpop.permute.xlu1 %1030 }
 0x232   : > { %6255 = vst [vmem:[#allocation181_spill] sm:$0xff] %v4307_v2  ;;  %v4309_v59 = vpop.permute.xlu2 %1050  ;;  %1125 = vrot.lane.b32.xlu0 %v4065_v4, %s3067_s21 }
 0x233   : > { %6256 = vst [vmem:[#allocation182_spill] sm:$0xff] %v4309_v59 }
 0x234   : > { %v4315_v16 = vpop.permute.xlu0 %1034 }
 0x235   : > { %6257 = vst [vmem:[#allocation183_spill] sm:$0xff] %v4315_v16 }
 0x237   : > { %1127 = vrot.lane.b32.xlu1 %v4067_v17, %s3067_s21 }
 0x238   : > { %1129 = vrot.lane.b32.xlu2 %v4313_v6, %s3067_s21 }
 0x239   : > { %v4321_v28 = vpop.permute.xlu1 %1036 }
 0x23a   : > { %v4323_v39 = vpop.permute.xlu2 %1056  ;;  %1138 = vrot.lane.b32.xlu0 %v3357_v45, %s3068_s22 }
 0x23b   : > { %6258 = vst [vmem:[#allocation184_spill] sm:$0xff] %v4323_v39 }
 0x23c   : > { %v4327_v2 = vpop.permute.xlu0 %1040 }
 0x23d   : > { %6259 = vst [vmem:[#allocation185_spill] sm:$0xff] %v4327_v2 }
 0x23f   : > { %1140 = vrot.lane.b32.xlu1 %v3372_v62, %s3068_s22 }
 0x240   : > { %1142 = vrot.lane.b32.xlu2 %v3354_v43, %s3068_s22 }
 0x241   : > { %v4333_v53 = vpop.permute.xlu1 %1042 }
 0x242   : > { %6260 = vst [vmem:[#allocation186_spill] sm:$0xff] %v4333_v53  ;;  %v4335_v16 = vpop.permute.xlu2 %1066  ;;  %1144 = vrot.lane.b32.xlu0 %v3626_v61, %s3068_s22 }
 0x243   : > { %6261 = vst [vmem:[#allocation187_spill] sm:$0xff] %v4335_v16 }
 0x244   : > { %v4339_v8 = vpop.permute.xlu0 %1046 }
 0x247   : > { %1146 = vrot.lane.b32.xlu1 %v3417_v19, %s3068_s22 }
 0x248   : > { %1148 = vrot.lane.b32.xlu2 %v3386_v22, %s3068_s22 }
 0x249   : > { %v4345_v45 = vpop.permute.xlu1 %1048 }
 0x24a   : > { %6262 = vst [vmem:[#allocation188_spill] sm:$0xff] %v4345_v45  ;;  %v4347_v62 = vpop.permute.xlu2 %1072  ;;  %1150 = vrot.lane.b32.xlu0 %v3395_v34, %s3068_s22  ;;  %v6044_v34 = vshll.u32 %v4313_v6, 16 }
 0x24c   : > { %v4351_v43 = vpop.permute.xlu0 %1052 }
 0x24d   : > { %6263 = vst [vmem:[#allocation189_spill] sm:$0xff] %v4351_v43 }
 0x24f   : > { %1152 = vrot.lane.b32.xlu1 %v3646_v56, %s3068_s22 }
 0x250   : > { %1154 = vrot.lane.b32.xlu2 %v3421_v26, %s3068_s22 }
 0x251   : > { %v4357_v16 = vpop.permute.xlu1 %1054 }
 0x252   : > { %6264 = vst [vmem:[#allocation190_spill] sm:$0xff] %v4357_v16  ;;  %v4359_v19 = vpop.permute.xlu2 %1078  ;;  %1156 = vrot.lane.b32.xlu0 %v3430_v23, %s3068_s22  ;;  %v6045_v16 = vshrl.u32 %v4313_v6, 16  ;;  %v1136_v23 = vrot.slane %v6044_v34, 1 }
 0x254   : > { %v4363_v22 = vpop.permute.xlu0 %1058 }
 0x255   : > { %6265 = vst [vmem:[#allocation191_spill] sm:$0xff] %v4363_v22 }
 0x257   : > { %1158 = vrot.lane.b32.xlu1 %v3436_v52, %s3068_s22  ;;  %v4385_v52 = vor.u32 %v1136_v23, %v6045_v16 }
 0x258   : > { %1160 = vrot.lane.b32.xlu2 %v3670_v40, %s3068_s22 }
 0x259   : > { %v4370_v43 = vpop.permute.xlu1 %1064  ;;  %6268 = vst [vmem:[#allocation194_spill] sm:$0xff] %v4385_v52 }
 0x25a   : > { %6266 = vst [vmem:[#allocation192_spill] sm:$0xff] %v4370_v43  ;;  %v4372_v26 = vpop.permute.xlu2 %1084  ;;  %1162 = vrot.lane.b32.xlu0 %v4148_v36, %s3068_s22 }
 0x25c   : > { %v4379_v22 = vpop.permute.xlu0 %1068 }
 0x25d   : > { %6267 = vst [vmem:[#allocation193_spill] sm:$0xff] %v4379_v22 }
 0x25f   : > { %1164 = vrot.lane.b32.xlu1 %v4155_v38, %s3068_s22 }
 0x260   : > { %1166 = vrot.lane.b32.xlu2 %v4163_v47, %s3068_s22 }
 0x261   : > { %v4389_v43 = vpop.permute.xlu1 %1070 }
 0x262   : > { %6269 = vst [vmem:[#allocation195_spill] sm:$0xff] %v4389_v43  ;;  %v4391_v36 = vpop.permute.xlu2 %1090  ;;  %1168 = vrot.lane.b32.xlu0 %v4385_v52, %s3068_s22 }
 0x264   : > { %v4395_v34 = vpop.permute.xlu0 %1074 }
 0x267   : > { %1171 = vrot.lane.b32.xlu1 %v3460_v49, %s3069_s23 }
 0x268   : > { %1173 = vrot.lane.b32.xlu2 %v3466_v41, %s3069_s23 }
 0x269   : > { %v4401_v23 = vpop.permute.xlu1 %1076 }
 0x26a   : > { %v4403_v16 = vpop.permute.xlu2 %1099  ;;  %1175 = vrot.lane.b32.xlu0 %v3472_v15, %s3069_s23 }
 0x26b   : > { %6270 = vst [vmem:[#allocation196_spill] sm:$0xff] %v4403_v16  ;;  %v6275_v16 = vrot.slane %v4065_v4, 1 }
 0x26c   : > { %v4407_v22 = vpop.permute.xlu0 %1080 }
 0x26f   : > { %1177 = vrot.lane.b32.xlu1 %v3708_v13, %s3069_s23 }
 0x270   : > { %1179 = vrot.lane.b32.xlu2 %v3483_v46, %s3069_s23 }
 0x271   : > { %v4413_v43 = vpop.permute.xlu1 %1082 }
 0x272   : > { %v4415_v49 = vpop.permute.xlu2 %1105  ;;  %1181 = vrot.lane.b32.xlu0 %v3490_v44, %s3069_s23 }
 0x273   : > { %6271 = vst [vmem:[#allocation197_spill] sm:$0xff] %v4415_v49  ;;  %v6277_v49 = vrot.slane %v4067_v17, 1 }
 0x274   : > { %v4419_v41 = vpop.permute.xlu0 %1086 }
 0x277   : > { %1183 = vrot.lane.b32.xlu1 %v3497_v1, %s3069_s23 }
 0x278   : > { %1185 = vrot.lane.b32.xlu2 %v3727_v20, %s3069_s23 }
 0x279   : > { %v4425_v15 = vpop.permute.xlu1 %1088 }
 0x27a   : > { %v4427_v13 = vpop.permute.xlu2 %1111  ;;  %1187 = vrot.lane.b32.xlu0 %v3507_v55, %s3069_s23  ;;  %v6274_v55 = vrot.slane %v4053_v42, 1 }
 0x27c   : > { %v4431_v46 = vpop.permute.xlu0 %1092 }
 0x27f   : > { %1189 = vrot.lane.b32.xlu1 %v3515_v37, %s3069_s23 }
 0x280   : > { %1191 = vrot.lane.b32.xlu2 %v3521_v9, %s3069_s23 }
 0x281   : > { %v4437_v44 = vpop.permute.xlu1 %1094 }
 0x282   : > { %6272 = vst [vmem:[#allocation198_spill] sm:$0xff] %v4437_v44  ;;  %v4439_v1 = vpop.permute.xlu2 %1117  ;;  %1193 = vrot.lane.b32.xlu0 %v3750_v54, %s3069_s23  ;;  %v1170_v54 = vrot.slane %v4313_v6, 1 }
 0x284   : > { %v4443_v20 = vpop.permute.xlu0 %1101 }
 0x285   : > { %6273 = vst [vmem:[#allocation199_spill] sm:$0xff] %v4443_v20  ;;  %v6280_v20 = vld [vmem:[#allocation70_spill] sm:$0xff] }
 0x287   : > { %1195 = vrot.lane.b32.xlu1 %v6274_v55, %s3069_s23 }
 0x288   : > { %1197 = vrot.lane.b32.xlu2 %v6275_v16, %s3069_s23 }
 0x289   : > { %v4451_v37 = vpop.permute.xlu1 %1103 }
 0x28a   : > { %6276 = vst [vmem:[#allocation200_spill] sm:$0xff] %v4451_v37  ;;  %v4453_v9 = vpop.permute.xlu2 %1123  ;;  %1199 = vrot.lane.b32.xlu0 %v6277_v49, %s3069_s23  ;;  %v1256_v49 = vsel %vm1238_vm2, %v3321_v51, %v3563_v7 }
 0x28c   : > { %v4459_v44 = vpop.permute.xlu0 %1107 }
 0x28f   : > { %1201 = vrot.lane.b32.xlu1 %v1170_v54, %s3069_s23  ;;  %v6279_v54 = vld [vmem:[#allocation54_spill] sm:$0xff] }
 0x290   : > { %1206 = vrot.lane.b32.xlu2 %v3346_v27, %s3070_s24  ;;  %v1299_v27 = vsel %vm1287_vm3, %v1256_v49, %v6279_v54  ;;  %v6283_v49 = vld [vmem:[#allocation28_spill] sm:$0xff] }
 0x291   : > { %v1110_v55 = vpop.permute.xlu1 %1109 }
 0x292   : > { %v4464_v16 = vpop.permute.xlu2 %1129  ;;  %1208 = vrot.lane.b32.xlu0 %v3329_v63, %s3070_s24  ;;  %v1332_v63 = vsel %vm1320_vm4, %v1299_v27, %v6280_v20 }
 0x293   : > { %6278 = vst [vmem:[#allocation201_spill] sm:$0xff] %v4464_v16  ;;  %v6281_v16 = vld [vmem:[#allocation78_spill] sm:$0xff] }
 0x294   : > { %v4468_v37 = vpop.permute.xlu0 %1113  ;;  %v1365_v52 = vsel %vm1353_vm5, %v1332_v63, %v6281_v16 }
 0x295   : > { %v1398_v7 = vsel %vm1386_vm6, %v1365_v52, %v3922_v21  ;;  %v6284_v21 = vld [vmem:[#allocation8_spill] sm:$0xff] }
 0x296   : > { %v1265_v52 = vsel %vm1238_vm2, %v6284_v21, %v6283_v49 }
 0x297   : > { %1210 = vrot.lane.b32.xlu1 %v3546_v24, %s3070_s24 }
 0x298   : > { %1212 = vrot.lane.b32.xlu2 %v3785_v3, %s3070_s24  ;;  %v1431_v3 = vsel %vm1419_vm7, %v1398_v7, %v4001_v29  ;;  %v6285_v29 = vld [vmem:[#allocation57_spill] sm:$0xff] }
 0x299   : > { %v1116_v42 = vpop.permute.xlu1 %1115  ;;  %v1464_v24 = vsel %vm1452_vm8, %v1431_v3, %v4027_v50  ;;  %v1305_v50 = vsel %vm1287_vm3, %v1265_v52, %v6285_v29  ;;  %v6287_v3 = vld [vmem:[#allocation82_spill] sm:$0xff]  ;;  %v6288_v52 = vld [vmem:[#allocation125_spill] sm:$0xff] }
 0x29a   : > { %v4483_v51 = vpop.permute.xlu2 %1142  ;;  %1214 = vrot.lane.b32.xlu0 %v3341_v18, %s3070_s24  ;;  %v1497_v16 = vsel %vm1485_vm9, %v1464_v24, %v4173_v57  ;;  %v6286_v57 = vld [vmem:[#allocation74_spill] sm:$0xff] }
 0x29b   : > { %6282 = vst [vmem:[#allocation54_spill] sm:$0xff] %v4483_v51  ;;  %v1530_v54 = vsel %vm1518_vm10, %v1497_v16, %v4256_v11  ;;  %v1338_v63 = vsel %vm1320_vm4, %v1305_v50, %v6286_v57  ;;  %v6304_v51 = vld [vmem:[#allocation21_spill] sm:$0xff] }
 0x29c   : > { %v4493_v20 = vpop.permute.xlu0 %1119  ;;  %v1563_v27 = vsel %vm1551_vm11, %v1530_v54, %v4282_v30  ;;  %v1371_v24 = vsel %vm1353_vm5, %v1338_v63, %v6287_v3  ;;  %v6289_v54 = vld [vmem:[#allocation131_spill] sm:$0xff]  ;;  %v6291_v63 = vld [vmem:[#allocation17_spill] sm:$0xff] }
 0x29d   : > { %v1596_v11 = vsel %vm1584_vm12, %v1563_v27, %v4395_v34  ;;  %v1404_v30 = vsel %vm1386_vm6, %v1371_v24, %v3936_v25  ;;  %v6290_v27 = vld [vmem:[#allocation34_spill] sm:$0xff]  ;;  %v6293_v24 = vld [vmem:[#allocation60_spill] sm:$0xff] }
 0x29e   : > { %v1629_v16 = vsel %vm1617_vm13, %v1596_v11, %v1110_v55  ;;  %v1437_v34 = vsel %vm1419_vm7, %v1404_v30, %v6288_v52  ;;  %v4535_v25 = vsel %vm1238_vm2, %v6291_v63, %v6290_v27 }
 0x29f   : > { %1216 = vrot.lane.b32.xlu1 %v3349_v32, %s3070_s24  ;;  %v1470_v29 = vsel %vm1452_vm8, %v1437_v34, %v6289_v54  ;;  %6292 = vst [vmem:[#allocation70_spill] sm:$0xff] %v4535_v25 }
 0x2a0   : > { %1218 = vrot.lane.b32.xlu2 %v3565_v10, %s3070_s24  ;;  %v1503_v55 = vsel %vm1485_vm9, %v1470_v29, %v4186_v31  ;;  %v6294_v31 = vld [vmem:[#allocation77_spill] sm:$0xff]  ;;  %v393_v29 = vld [vmem:[#allocation2 + $0xe8] sm:$0x3f] }
 0x2a1   : > { %v1122_v7 = vpop.permute.xlu1 %1121  ;;  %v1536_v11 = vsel %vm1518_vm10, %v1503_v55, %v4268_v60  ;;  %v6295_v55 = vld [vmem:[#allocation86_spill] sm:$0xff] }
 0x2a2   : > { %v1149_v49 = vpop.permute.xlu2 %1148  ;;  %1220 = vrot.lane.b32.xlu0 %v3810_v58, %s3070_s24 }
 0x2a3   : > { %v4520_v21 = vsel %vm1650_vm14, %v1629_v16, %v1149_v49  ;;  %v1311_v16 = vsel %vm1287_vm3, %v4535_v25, %v6293_v24  ;;  %v1569_v49 = vsel %vm1551_vm11, %v1536_v11, %v4294_v0  ;;  %v6296_v25 = vld [vmem:[#allocation113_spill] sm:$0xff] }
 0x2a4   : > { %v4528_v50 = vpop.permute.xlu0 %1125  ;;  %v1344_v30 = vsel %vm1320_vm4, %v1311_v16, %v6294_v31  ;;  %v1602_v34 = vsel %vm1584_vm12, %v1569_v49, %v4407_v22  ;;  %v6297_v16 = vld [vmem:[#allocation128_spill] sm:$0xff]  ;;  %v4566_v49 = vpack.c.bf16 %v393_v29, %v393_v29  ;;  %v6298_v31 = vld [vmem:[#allocation138_spill] sm:$0xff] }
 0x2a5   : > { %v1377_v27 = vsel %vm1353_vm5, %v1344_v30, %v6295_v55  ;;  %v1635_v63 = vsel %vm1617_vm13, %v1602_v34, %v1116_v42  ;;  %v6300_v42 = vld [vmem:[#allocation26_spill] sm:$0xff]  ;;  %v6301_v34 = vld [vmem:[#allocation3_spill] sm:$0xff] }
 0x2a6   : > { %v1410_v0 = vsel %vm1386_vm6, %v1377_v27, %v6296_v25  ;;  %v1253_v25 = vsel %vm1238_vm2, %v6301_v34, %v6300_v42  ;;  %v6302_v27 = vld [vmem:[#allocation163_spill] sm:$0xff]  ;;  %v6308_v34 = vld [vmem:[#allocation69_spill] sm:$0xff] }
 0x2a7   : > { %1222 = vrot.lane.b32.xlu1 %v3391_v33, %s3070_s24  ;;  %v1443_v22 = vsel %vm1419_vm7, %v1410_v0, %v6297_v16  ;;  %v6305_v0 = vld [vmem:[#allocation43_spill] sm:$0xff] }
 0x2a8   : > { %1224 = vrot.lane.b32.xlu2 %v3397_v35, %s3070_s24  ;;  %v1476_v30 = vsel %vm1452_vm8, %v1443_v22, %v6298_v31  ;;  %v1297_v29 = vsel %vm1287_vm3, %v1253_v25, %v6305_v0  ;;  %v6306_v22 = vld [vmem:[#allocation87_spill] sm:$0xff]  ;;  %v1204_v25 = vunpack.c.l.b16 %v4566_v49 }
 0x2a9   : > { %v4552_v60 = vpop.permute.xlu1 %1127  ;;  %v6307_v31 = vld [vmem:[#allocation63_spill] sm:$0xff] }
 0x2aa   : > { %v1155_v24 = vpop.permute.xlu2 %1154  ;;  %1226 = vrot.lane.b32.xlu0 %v3584_v5, %s3070_s24 }
 0x2ab   : > { %v4560_v11 = vsel %vm1650_vm14, %v1635_v63, %v1155_v24  ;;  %v1509_v63 = vsel %vm1485_vm9, %v1476_v30, %v6302_v27  ;;  %v6303_v24 = vld [vmem:[#allocation37_spill] sm:$0xff]  ;;  %v1330_v30 = vsel %vm1320_vm4, %v1297_v29, %v6308_v34  ;;  %v6313_v34 = vld [vmem:[#allocation16_spill] sm:$0xff] }
 0x2ac   : > { %v4570_v55 = vpop.permute.xlu0 %1138  ;;  %v4580_v54 = vsel %vm1238_vm2, %v6304_v51, %v6303_v24  ;;  %v1542_v16 = vsel %vm1518_vm10, %v1509_v63, %v4280_v48  ;;  %v6309_v27 = vld [vmem:[#allocation81_spill] sm:$0xff] }
 0x2ad   : > { %6299 = vst [vmem:[#allocation78_spill] sm:$0xff] %v4570_v55  ;;  %v1317_v42 = vsel %vm1287_vm3, %v4580_v54, %v6307_v31  ;;  %v1575_v51 = vsel %vm1551_vm11, %v1542_v16, %v4309_v59  ;;  %v6310_v24 = vld [vmem:[#allocation89_spill] sm:$0xff]  ;;  %v6314_v59 = vld [vmem:[#allocation90_spill] sm:$0xff] }
 0x2ae   : > { %v1350_v63 = vsel %vm1320_vm4, %v1317_v42, %v6309_v27  ;;  %v1363_v0 = vsel %vm1353_vm5, %v1330_v30, %v6310_v24  ;;  %v1608_v31 = vsel %vm1584_vm12, %v1575_v51, %v4419_v41  ;;  %v6312_v29 = vld [vmem:[#allocation41_spill] sm:$0xff]  ;;  %v6316_v30 = vld [vmem:[#allocation55_spill] sm:$0xff]  ;;  %v6317_v51 = vld [vmem:[#allocation116_spill] sm:$0xff] }
 0x2af   : > { %1228 = vrot.lane.b32.xlu1 %v6306_v22, %s3070_s24  ;;  %v4609_v16 = vsel %vm1238_vm2, %v6313_v34, %v6312_v29  ;;  %v1383_v55 = vsel %vm1353_vm5, %v1350_v63, %v6314_v59  ;;  %v6315_v22 = vld [vmem:[#allocation96_spill] sm:$0xff]  ;;  %v1641_v42 = vsel %vm1617_vm13, %v1608_v31, %v1122_v7  ;;  %v6320_v63 = vld [vmem:[#allocation130_spill] sm:$0xff]  ;;  %v4634_v59 = vpack.c.b16 %v1204_v25, %v1204_v25 }
 0x2b0   : > { %1230 = vrot.lane.b32.xlu2 %v4065_v4, %s3070_s24  ;;  %v1396_v5 = vsel %vm1386_vm6, %v1363_v0, %v6315_v22  ;;  %v1301_v41 = vsel %vm1287_vm3, %v4609_v16, %v6316_v30  ;;  %v1416_v24 = vsel %vm1386_vm6, %v1383_v55, %v6317_v51  ;;  %v6319_v22 = vld [vmem:[#allocation62_spill] sm:$0xff]  ;;  %v6321_v31 = vld [vmem:[#allocation140_spill] sm:$0xff]  ;;  %v6322_v55 = vld [vmem:[#allocation39_spill] sm:$0xff] }
 0x2b1   : > { %v4604_v48 = vpop.permute.xlu1 %1140  ;;  %v1334_v7 = vsel %vm1320_vm4, %v1301_v41, %v6319_v22  ;;  %v1449_v0 = vsel %vm1419_vm7, %v1416_v24, %v6320_v63  ;;  %v6323_v51 = vld [vmem:[#allocation14_spill] sm:$0xff]  ;;  %v6326_v41 = vld [vmem:[#allocation147_spill] sm:$0xff]  ;;  %v6327_v63 = vld [vmem:[#allocation44_spill] sm:$0xff] }
 0x2b2   : > { %6311 = vst [vmem:[#allocation28_spill] sm:$0xff] %v4604_v48  ;;  %v1161_v27 = vpop.permute.xlu2 %1160  ;;  %v6318_v48 = vld [vmem:[#allocation122_spill] sm:$0xff]  ;;  %1232 = vrot.lane.b32.xlu0 %v4067_v17, %s3070_s24 }
 0x2b3   : > { %v1429_v29 = vsel %vm1419_vm7, %v1396_v5, %v6318_v48  ;;  %v4624_v34 = vsel %vm1650_vm14, %v1641_v42, %v1161_v27  ;;  %v4639_v5 = vsel %vm1238_vm2, %v6323_v51, %v6322_v55  ;;  %v6324_v48 = vld [vmem:[#allocation91_spill] sm:$0xff]  ;;  %v6325_v42 = vld [vmem:[#allocation141_spill] sm:$0xff]  ;;  %v6330_v55 = vld [vmem:[#allocation166_spill] sm:$0xff] }
 0x2b4   : > { %v1462_v30 = vsel %vm1452_vm8, %v1429_v29, %v6321_v31  ;;  %v1367_v27 = vsel %vm1353_vm5, %v1334_v7, %v6324_v48  ;;  %v1482_v52 = vsel %vm1452_vm8, %v1449_v0, %v6325_v42  ;;  %v4647_v24 = vpop.permute.xlu0 %1144  ;;  %v6328_v29 = vld [vmem:[#allocation20_spill] sm:$0xff]  ;;  %v6329_v31 = vld [vmem:[#allocation109_spill] sm:$0xff]  ;;  %v6331_v48 = vld [vmem:[#allocation46_spill] sm:$0xff] }
 0x2b5   : > { %v1495_v22 = vsel %vm1485_vm9, %v1462_v30, %v6326_v41  ;;  %v1268_v25 = vsel %vm1238_vm2, %v6328_v29, %v6327_v63  ;;  %v1400_v3 = vsel %vm1386_vm6, %v1367_v27, %v6329_v31  ;;  %v1515_v51 = vsel %vm1485_vm9, %v1482_v52, %v6330_v55  ;;  %v6332_v30 = vld [vmem:[#allocation115_spill] sm:$0xff]  ;;  %v6333_v52 = vld [vmem:[#allocation72_spill] sm:$0xff] }
 0x2b6   : > { %v1528_v7 = vsel %vm1518_vm10, %v1495_v22, %v4249_v14  ;;  %v1303_v0 = vsel %vm1287_vm3, %v4639_v5, %v6331_v48  ;;  %v1433_v41 = vsel %vm1419_vm7, %v1400_v3, %v6332_v30  ;;  %v1548_v42 = vsel %vm1518_vm10, %v1515_v51, %v4292_v12  ;;  %v6334_v14 = vld [vmem:[#allocation142_spill] sm:$0xff]  ;;  %v6335_v31 = vld [vmem:[#allocation92_spill] sm:$0xff]  ;;  %v6336_v55 = vld [vmem:[#allocation159_spill] sm:$0xff] }
 0x2b7   : > { %v1561_v63 = vsel %vm1551_vm11, %v1528_v7, %v4321_v28  ;;  %1234 = vrot.lane.b32.xlu1 %v4313_v6, %s3070_s24  ;;  %v1336_v27 = vsel %vm1320_vm4, %v1303_v0, %v6333_v52  ;;  %v1466_v22 = vsel %vm1452_vm8, %v1433_v41, %v6334_v14  ;;  %v1581_v29 = vsel %vm1551_vm11, %v1548_v42, %v4323_v39  ;;  %v6337_v42 = vld [vmem:[#allocation100_spill] sm:$0xff]  ;;  %v6339_v14 = vld [vmem:[#allocation58_spill] sm:$0xff] }
 0x2b8   : > { %v1594_v3 = vsel %vm1584_vm12, %v1561_v63, %v4347_v62  ;;  %1236 = vrot.lane.b32.xlu2 %v4634_v59, %s3070_s24  ;;  %v1369_v28 = vsel %vm1353_vm5, %v1336_v27, %v6335_v31  ;;  %v1499_v51 = vsel %vm1485_vm9, %v1466_v22, %v6336_v55  ;;  %v1614_v7 = vsel %vm1584_vm12, %v1581_v29, %v4431_v46  ;;  %v6338_v62 = vld [vmem:[#allocation165_spill] sm:$0xff]  ;;  %v6340_v22 = vld [vmem:[#allocation124_spill] sm:$0xff] }
 0x2b9   : > { %v1627_v48 = vsel %vm1617_vm13, %v1594_v3, %v4459_v44  ;;  %v1147_v0 = vpop.permute.xlu1 %1146  ;;  %v1402_v30 = vsel %vm1386_vm6, %v1369_v28, %v6337_v42  ;;  %v1532_v41 = vsel %vm1518_vm10, %v1499_v51, %v6338_v62  ;;  %v1647_v63 = vsel %vm1617_vm13, %v1614_v7, %v4552_v60  ;;  %v6341_v60 = vld [vmem:[#allocation65_spill] sm:$0xff]  ;;  %v6342_v28 = vld [vmem:[#allocation143_spill] sm:$0xff]  ;;  %v6343_v51 = vld [vmem:[#allocation94_spill] sm:$0xff] }
 0x2ba   : > { %v4694_v52 = vsel %vm1650_vm14, %v1627_v48, %v1147_v0  ;;  %v1167_v27 = vpop.permute.xlu2 %1166  ;;  %v1307_v46 = vsel %vm1287_vm3, %v1268_v25, %v6339_v14  ;;  %v1435_v44 = vsel %vm1419_vm7, %v1402_v30, %v6340_v22  ;;  %v1565_v29 = vsel %vm1551_vm11, %v1532_v41, %v4327_v2  ;;  %1756 = vrot.lane.b32.xlu0 %v3626_v61, %s3056_s26  ;;  %v6344_v48 = vld [vmem:[#allocation150_spill] sm:$0xff]  ;;  %v6346_v41 = vld [vmem:[#allocation15_spill] sm:$0xff] }
 0x2bb   : > { %v4703_v3 = vsel %vm1650_vm14, %v1647_v63, %v1167_v27  ;;  %v1340_v31 = vsel %vm1320_vm4, %v1307_v46, %v6341_v60  ;;  %v1468_v55 = vsel %vm1452_vm8, %v1435_v44, %v6342_v28  ;;  %v1598_v25 = vsel %vm1584_vm12, %v1565_v29, %v4401_v23  ;;  %v6345_v61 = vld [vmem:[#allocation42_spill] sm:$0xff]  ;;  %v6347_v27 = vld [vmem:[#allocation111_spill] sm:$0xff]  ;;  %v6348_v46 = vld [vmem:[#allocation173_spill] sm:$0xff] }
 0x2bc   : > { %v1373_v7 = vsel %vm1353_vm5, %v1340_v31, %v6343_v51  ;;  %v1501_v0 = vsel %vm1485_vm9, %v1468_v55, %v6344_v48  ;;  %v1631_v42 = vsel %vm1617_vm13, %v1598_v25, %v4427_v13  ;;  %v1151_v30 = vpop.permute.xlu0 %1150  ;;  %v4722_v63 = vsel %vm1238_vm2, %v6346_v41, %v6345_v61  ;;  %v6349_v44 = vld [vmem:[#allocation49_spill] sm:$0xff]  ;;  %v6350_v13 = vld [vmem:[#allocation118_spill] sm:$0xff]  ;;  %v6352_v25 = vld [vmem:[#allocation76_spill] sm:$0xff] }
 0x2bd   : > { %v1406_v14 = vsel %vm1386_vm6, %v1373_v7, %v6347_v27  ;;  %v1534_v23 = vsel %vm1518_vm10, %v1501_v0, %v6348_v46  ;;  %v4729_v22 = vsel %vm1650_vm14, %v1631_v42, %v1151_v30  ;;  %v1309_v29 = vsel %vm1287_vm3, %v4722_v63, %v6349_v44  ;;  %v6351_v55 = vld [vmem:[#allocation97_spill] sm:$0xff]  ;;  %v6354_v30 = vld [vmem:[#allocation95_spill] sm:$0xff]  ;;  %v6356_v44 = vld [vmem:[#allocation38_spill] sm:$0xff] }
 0x2be   : > { %v1439_v31 = vsel %vm1419_vm7, %v1406_v14, %v6350_v13  ;;  %v1567_v28 = vsel %vm1551_vm11, %v1534_v23, %v4333_v53  ;;  %v1342_v7 = vsel %vm1320_vm4, %v1309_v29, %v6352_v25  ;;  %v6353_v48 = vld [vmem:[#allocation145_spill] sm:$0xff]  ;;  %v6357_v29 = vld [vmem:[#allocation10_spill] sm:$0xff]  ;;  %v6423_v51 = vld [vmem:[#allocation36_spill] sm:$0xff] }
 0x2bf   : > { %1758 = vrot.lane.b32.xlu1 %v6351_v55, %s3056_s26  ;;  %v1472_v0 = vsel %vm1452_vm8, %v1439_v31, %v6353_v48  ;;  %v1600_v42 = vsel %vm1584_vm12, %v1567_v28, %v4359_v19  ;;  %v1375_v61 = vsel %vm1353_vm5, %v1342_v7, %v6354_v30  ;;  %v6355_v41 = vld [vmem:[#allocation161_spill] sm:$0xff]  ;;  %v1277_v31 = vsel %vm1238_vm2, %v6357_v29, %v6356_v44  ;;  %v6358_v55 = vld [vmem:[#allocation104_spill] sm:$0xff] }
 0x2c0   : > { %1760 = vrot.lane.b32.xlu2 %v3646_v56, %s3056_s26  ;;  %v1505_v27 = vsel %vm1485_vm9, %v1472_v0, %v6355_v41  ;;  %v1633_v14 = vsel %vm1617_vm13, %v1600_v42, %v4468_v37  ;;  %v1408_v19 = vsel %vm1386_vm6, %v1375_v61, %v6358_v55  ;;  %v6359_v28 = vld [vmem:[#allocation168_spill] sm:$0xff]  ;;  %v6361_v0 = vld [vmem:[#allocation61_spill] sm:$0xff]  ;;  %v6362_v37 = vld [vmem:[#allocation127_spill] sm:$0xff] }
 0x2c1   : > { %v1153_v23 = vpop.permute.xlu1 %1152  ;;  %v1538_v39 = vsel %vm1518_vm10, %v1505_v27, %v6359_v28  ;;  %v1313_v41 = vsel %vm1287_vm3, %v1277_v31, %v6361_v0  ;;  %v1441_v42 = vsel %vm1419_vm7, %v1408_v19, %v6362_v37  ;;  %v6363_v29 = vld [vmem:[#allocation101_spill] sm:$0xff]  ;;  %v6364_v61 = vld [vmem:[#allocation68_spill] sm:$0xff]  ;;  %v6365_v55 = vld [vmem:[#allocation146_spill] sm:$0xff] }
 0x2c2   : > { %v4762_v12 = vsel %vm1650_vm14, %v1633_v14, %v1153_v23  ;;  %v4764_v7 = vpop.permute.xlu2 %1173  ;;  %v1571_v44 = vsel %vm1551_vm11, %v1538_v39, %v4339_v8  ;;  %1762 = vrot.lane.b32.xlu0 %v6363_v29, %s3056_s26  ;;  %v1346_v27 = vsel %vm1320_vm4, %v1313_v41, %v6364_v61  ;;  %v1474_v14 = vsel %vm1452_vm8, %v1441_v42, %v6365_v55  ;;  %v6366_v28 = vld [vmem:[#allocation45_spill] sm:$0xff]  ;;  %v6367_v31 = vld [vmem:[#allocation18_spill] sm:$0xff]  ;;  %v6428_v25 = vld [vmem:[#allocation52_spill] sm:$0xff] }
 0x2c3   : > { %6360 = vst [vmem:[#allocation8_spill] sm:$0xff] %v4764_v7  ;;  %v1604_v23 = vsel %vm1584_vm12, %v1571_v44, %v4413_v43  ;;  %v1280_v0 = vsel %vm1238_vm2, %v6367_v31, %v6366_v28  ;;  %v6368_v19 = vld [vmem:[#allocation98_spill] sm:$0xff]  ;;  %v6370_v61 = vld [vmem:[#allocation53_spill] sm:$0xff]  ;;  %v6372_v44 = vld [vmem:[#allocation175_spill] sm:$0xff] }
 0x2c4   : > { %v1379_v48 = vsel %vm1353_vm5, %v1346_v27, %v6368_v19  ;;  %v6369_v39 = vld [vmem:[#allocation154_spill] sm:$0xff]  ;;  %v1637_v13 = vsel %vm1617_vm13, %v1604_v23, %v4439_v1  ;;  %v1157_v41 = vpop.permute.xlu0 %1156  ;;  %v1315_v42 = vsel %vm1287_vm3, %v1280_v0, %v6370_v61  ;;  %v6373_v27 = vld [vmem:[#allocation80_spill] sm:$0xff]  ;;  %v6375_v61 = vld [vmem:[#allocation47_spill] sm:$0xff] }
 0x2c5   : > { %v1507_v8 = vsel %vm1485_vm9, %v1474_v14, %v6369_v39  ;;  %v6371_v55 = vld [vmem:[#allocation114_spill] sm:$0xff]  ;;  %v4796_v28 = vsel %vm1650_vm14, %v1637_v13, %v1157_v41  ;;  %v1348_v31 = vsel %vm1320_vm4, %v1315_v42, %v6373_v27  ;;  %v6374_v14 = vld [vmem:[#allocation121_spill] sm:$0xff]  ;;  %v6377_v13 = vld [vmem:[#allocation99_spill] sm:$0xff] }
 0x2c6   : > { %v1412_v43 = vsel %vm1386_vm6, %v1379_v48, %v6371_v55  ;;  %v1540_v37 = vsel %vm1518_vm10, %v1507_v8, %v6372_v44  ;;  %v6376_v55 = vld [vmem:[#allocation22_spill] sm:$0xff]  ;;  %v1381_v0 = vsel %vm1353_vm5, %v1348_v31, %v6377_v13  ;;  %v6378_v8 = vld [vmem:[#allocation148_spill] sm:$0xff]  ;;  %v6383_v13 = vld [vmem:[#allocation129_spill] sm:$0xff] }
 0x2c7   : > { %v1445_v39 = vsel %vm1419_vm7, %v1412_v43, %v6374_v14  ;;  %v1573_v1 = vsel %vm1551_vm11, %v1540_v37, %v4345_v45  ;;  %1764 = vrot.lane.b32.xlu1 %v3670_v40, %s3056_s26  ;;  %v4810_v23 = vsel %vm1238_vm2, %v6376_v55, %v6375_v61  ;;  %v6379_v37 = vld [vmem:[#allocation106_spill] sm:$0xff]  ;;  %v6380_v43 = vld [vmem:[#allocation64_spill] sm:$0xff]  ;;  %v6385_v14 = vld [vmem:[#allocation189_spill] sm:$0xff] }
 0x2c8   : > { %v1478_v41 = vsel %vm1452_vm8, %v1445_v39, %v6378_v8  ;;  %v1606_v42 = vsel %vm1584_vm12, %v1573_v1, %v4372_v26  ;;  %1766 = vrot.lane.b32.xlu2 %v6379_v37, %s3056_s26  ;;  %v1319_v48 = vsel %vm1287_vm3, %v4810_v23, %v6380_v43  ;;  %v6381_v45 = vld [vmem:[#allocation108_spill] sm:$0xff]  ;;  %v6384_v1 = vld [vmem:[#allocation171_spill] sm:$0xff] }
 0x2c9   : > { %v1414_v61 = vsel %vm1386_vm6, %v1381_v0, %v6381_v45  ;;  %v6382_v55 = vld [vmem:[#allocation164_spill] sm:$0xff]  ;;  %v1639_v31 = vsel %vm1617_vm13, %v1606_v42, %v4493_v20  ;;  %v1159_v39 = vpop.permute.xlu1 %1158 }
 0x2ca   : > { %v1511_v44 = vsel %vm1485_vm9, %v1478_v41, %v6382_v55  ;;  %v1447_v26 = vsel %vm1419_vm7, %v1414_v61, %v6383_v13  ;;  %v1672_v8 = vsel %vm1650_vm14, %v1639_v31, %v1159_v39  ;;  %v1180_v43 = vpop.permute.xlu2 %1179  ;;  %1768 = vrot.lane.b32.xlu0 %v4155_v38, %s3056_s26  ;;  %v6386_v41 = vshll.u32 %v4634_v59, 16  ;;  %v6388_v55 = vld [vmem:[#allocation149_spill] sm:$0xff]  ;;  %v6390_v39 = vld [vmem:[#allocation158_spill] sm:$0xff] }
 0x2cb   : > { %v1544_v27 = vsel %vm1518_vm10, %v1511_v44, %v6384_v1  ;;  %v4838_v0 = vsel %vm1683_vm15, %v4694_v52, %v1180_v43  ;;  %v6387_v44 = vld [vmem:[#allocation71_spill] sm:$0xff]  ;;  %v1480_v31 = vsel %vm1452_vm8, %v1447_v26, %v6388_v55 }
 0x2cc   : > { %v1577_v45 = vsel %vm1551_vm11, %v1544_v27, %v6385_v14  ;;  %v1754_v42 = vrot.slane %v6386_v41, 1  ;;  %v1352_v61 = vsel %vm1320_vm4, %v1319_v48, %v6387_v44  ;;  %v6389_v14 = vld [vmem:[#allocation102_spill] sm:$0xff]  ;;  %v1513_v1 = vsel %vm1485_vm9, %v1480_v31, %v6390_v39  ;;  %v1163_v20 = vpop.permute.xlu0 %1162  ;;  %v6391_v41 = vld [vmem:[#allocation117_spill] sm:$0xff] }
 0x2cd   : > { %v1610_v27 = vsel %vm1584_vm12, %v1577_v45, %v4425_v15  ;;  %v1385_v52 = vsel %vm1353_vm5, %v1352_v61, %v6389_v14  ;;  %v6392_v48 = vld [vmem:[#allocation177_spill] sm:$0xff]  ;;  %v6395_v61 = vld [vmem:[#allocation123_spill] sm:$0xff]  ;;  %v6396_v31 = vld [vmem:[#allocation190_spill] sm:$0xff] }
 0x2ce   : > { %v1643_v43 = vsel %vm1617_vm13, %v1610_v27, %v4453_v9  ;;  %v1418_v13 = vsel %vm1386_vm6, %v1385_v52, %v6391_v41  ;;  %v1546_v44 = vsel %vm1518_vm10, %v1513_v1, %v6392_v48  ;;  %v6393_v15 = vld [vmem:[#allocation9_spill] sm:$0xff]  ;;  %v6397_v9 = vshrl.u32 %v4634_v59, 16  ;;  %v6398_v52 = vld [vmem:[#allocation151_spill] sm:$0xff] }
 0x2cf   : > { %v4862_v26 = vsel %vm1650_vm14, %v1643_v43, %v1163_v20  ;;  %v6394_v45 = vshrl.u32 %v6393_v15, 16  ;;  %v1451_v14 = vsel %vm1419_vm7, %v1418_v13, %v6395_v61  ;;  %v1579_v39 = vsel %vm1551_vm11, %v1546_v44, %v6396_v31  ;;  %1770 = vrot.lane.b32.xlu1 %v4163_v47, %s3056_s26  ;;  %v6399_v43 = vld [vmem:[#allocation194_spill] sm:$0xff]  ;;  %v6400_v13 = vld [vmem:[#allocation23_spill] sm:$0xff]  ;;  %v6403_v31 = vld [vmem:[#allocation172_spill] sm:$0xff] }
 0x2d0   : > { %v4874_v27 = vor.u32 %v1754_v42, %v6397_v9  ;;  %v1484_v20 = vsel %vm1452_vm8, %v1451_v14, %v6398_v52  ;;  %v1612_v1 = vsel %vm1584_vm12, %v1579_v39, %v4391_v36  ;;  %1772 = vrot.lane.b32.xlu2 %v6399_v43, %s3056_s26  ;;  %v6401_v41 = vshrl.u32 %v6400_v13, 16  ;;  %v6402_v44 = vld [vmem:[#allocation167_spill] sm:$0xff] }
 0x2d1   : > { %v1788_v55 = vrot.slane %v6394_v45, 7  ;;  %v1517_v45 = vsel %vm1485_vm9, %v1484_v20, %v6402_v44  ;;  %v1645_v61 = vsel %vm1617_vm13, %v1612_v1, %v4528_v50  ;;  %v1165_v42 = vpop.permute.xlu1 %1164  ;;  %v6404_v36 = vld [vmem:[#allocation191_spill] sm:$0xff]  ;;  %v6405_v20 = vshll.u32 %v6393_v15, 16  ;;  %v6407_v44 = vld [vmem:[#allocation198_spill] sm:$0xff] }
 0x2d2   : > { %v1790_v48 = vrot.slane %v6401_v41, 7  ;;  %v1550_v9 = vsel %vm1518_vm10, %v1517_v45, %v6403_v31  ;;  %v1678_v14 = vsel %vm1650_vm14, %v1645_v61, %v1165_v42  ;;  %v1186_v52 = vpop.permute.xlu2 %1185  ;;  %1774 = vrot.lane.b32.xlu0 %v4874_v27, %s3056_s26  ;;  %v6406_v1 = vshrl.u32 %v3341_v18, 16 }
 0x2d3   : > { %v1583_v39 = vsel %vm1551_vm11, %v1550_v9, %v6404_v36  ;;  %v4895_v19 = vsel %vm1683_vm15, %v4762_v12, %v1186_v52  ;;  %v1789_v50 = vor.u32 %v1788_v55, %v6405_v20  ;;  %v6408_v61 = vshll.u32 %v6400_v13, 16  ;;  %v6409_v9 = vld [vmem:[#allocation201_spill] sm:$0xff] }
 0x2d4   : > { %v1792_v41 = vrot.slane %v6406_v1, 7  ;;  %v1616_v45 = vsel %vm1584_vm12, %v1583_v39, %v6407_v44  ;;  %v1169_v52 = vpop.permute.xlu0 %1168  ;;  %v6410_v55 = vshll.u32 %v3341_v18, 16  ;;  %v6411_v1 = vshrl.u32 %v3349_v32, 16  ;;  %v6412_v44 = vld [vmem:[#allocation12_spill] sm:$0xff] }
 0x2d5   : > { %v4907_v42 = vor.u32 %v1790_v48, %v6408_v61  ;;  %v1649_v12 = vsel %vm1617_vm13, %v1616_v45, %v6409_v9  ;;  %v6413_v31 = vshrl.u32 %v6412_v44, 16  ;;  %v6415_v18 = vshll.u32 %v3349_v32, 16 }
 0x2d6   : > { %v4912_v36 = vsel %vm1650_vm14, %v1649_v12, %v1169_v52  ;;  %v4917_v20 = vor.u32 %v1792_v41, %v6410_v55  ;;  %v1794_v39 = vrot.slane %v6411_v1, 7  ;;  %v6416_v41 = vld [vmem:[#allocation19_spill] sm:$0xff]  ;;  %v6418_v55 = vshll.u32 %v6412_v44, 16 }
 0x2d7   : > { %1840 = vrot.lane.b32.xlu1 %v1789_v50, %s3057_s29  ;;  %v1796_v48 = vrot.slane %v6413_v31, 7  ;;  %v6417_v12 = vshrl.u32 %v6416_v41, 16  ;;  %v394_v31 = vld [vmem:[#allocation2 + $0xf0] sm:$0x3f]  ;;  %v6421_v32 = vshrl.u32 %v3391_v33, 16 }
 0x2d8   : > { %1842 = vrot.lane.b32.xlu2 %v4907_v42, %s3057_s29  ;;  %v4934_v50 = vor.u32 %v1794_v39, %v6415_v18  ;;  %v430_v40 = vpack.c.bf16 %v394_v31, %v394_v31  ;;  %v6422_v18 = vshrl.u32 %v3397_v35, 16  ;;  %v6424_v31 = vld [vmem:[#allocation7_spill] sm:$0xff] }
 0x2d9   : > { %v4925_v45 = vpop.permute.xlu1 %1171  ;;  %v1798_v52 = vrot.slane %v6417_v12, 7  ;;  %v1797_v1 = vor.u32 %v1796_v48, %v6418_v55  ;;  %v1800_v39 = vrot.slane %v6421_v32, 7  ;;  %v396_v55 = vld [vmem:[#allocation2 + $0x100] sm:$0x3f]  ;;  %v1250_v30 = vsel %vm1238_vm2, %v6424_v31, %v6423_v51  ;;  %v6426_v32 = vld [vmem:[#allocation133_spill] sm:$0xff] }
 0x2da   : > { %6414 = vst [vmem:[#allocation57_spill] sm:$0xff] %v4925_v45  ;;  %v1192_v61 = vpop.permute.xlu2 %1191  ;;  %1844 = vrot.lane.b32.xlu0 %v4917_v20, %s3057_s29  ;;  %v395_v45 = vld [vmem:[#allocation2 + $0xf8] sm:$0x3f]  ;;  %v1802_v12 = vrot.slane %v6422_v18, 7  ;;  %v1780_v62 = vunpack.c.l.b16 %v430_v40  ;;  %v432_v60 = vpack.c.bf16 %v396_v55, %v396_v55  ;;  %v1295_v7 = vsel %vm1287_vm3, %v1250_v30, %v6428_v25  ;;  %v6431_v31 = vld [vmem:[#allocation59_spill] sm:$0xff]  ;;  %v6434_v30 = vld [vmem:[#allocation136_spill] sm:$0xff] }
 0x2db   : > { %v4928_v9 = vsel %vm1683_vm15, %v1672_v8, %v1192_v61  ;;  %v6420_v8 = vshll.u32 %v6416_v41, 16  ;;  %v431_v48 = vpack.c.bf16 %v395_v45, %v395_v45  ;;  %v6427_v45 = vshrl.u32 %v6426_v32, 16 }
 0x2dc   : > { %v4940_v37 = vpop.permute.xlu0 %1175  ;;  %v6429_v51 = vshll.u32 %v3397_v35, 16  ;;  %v1328_v41 = vsel %vm1320_vm4, %v1295_v7, %v6431_v31  ;;  %v4981_v55 = vpack.c.b16 %v1780_v62, %v1780_v62  ;;  %v6433_v35 = vshll.u32 %v6426_v32, 16  ;;  %v6438_v31 = vld [vmem:[#allocation112_spill] sm:$0xff] }
 0x2dd   : > { %6419 = vst [vmem:[#allocation74_spill] sm:$0xff] %v4940_v37  ;;  %v4946_v61 = vor.u32 %v1798_v52, %v6420_v8  ;;  %v1804_v18 = vrot.slane %v6427_v45, 7  ;;  %v1782_v7 = vunpack.c.l.b16 %v432_v60 }
 0x2de   : > { %v4971_v40 = vor.u32 %v1802_v12, %v6429_v51  ;;  %v6435_v12 = vshrl.u32 %v6434_v30, 16  ;;  %v6436_v51 = vld [vmem:[#allocation107_spill] sm:$0xff] }
 0x2df   : > { %1846 = vrot.lane.b32.xlu1 %v4934_v50, %s3057_s29  ;;  %v1805_v25 = vor.u32 %v1804_v18, %v6433_v35  ;;  %v6439_v35 = vld [vmem:[#allocation139_spill] sm:$0xff] }
 0x2e0   : > { %1848 = vrot.lane.b32.xlu2 %v1797_v1, %s3057_s29  ;;  %v6425_v1 = vshll.u32 %v3391_v33, 16  ;;  %6430 = vst [vmem:[#allocation34_spill] sm:$0xff] %v4971_v40  ;;  %v6432_v33 = vld [vmem:[#allocation88_spill] sm:$0xff] }
 0x2e1   : > { %v1178_v37 = vpop.permute.xlu1 %1177 }
 0x2e2   : > { %v1198_v2 = vpop.permute.xlu2 %1197  ;;  %1850 = vrot.lane.b32.xlu0 %v4946_v61, %s3057_s29  ;;  %v4963_v8 = vor.u32 %v1800_v39, %v6425_v1  ;;  %v1361_v39 = vsel %vm1353_vm5, %v1328_v41, %v6432_v33 }
 0x2e3   : > { %v4957_v52 = vsel %vm1683_vm15, %v1678_v14, %v1198_v2  ;;  %v1781_v2 = vunpack.c.l.b16 %v431_v48  ;;  %v397_v14 = vld [vmem:[#allocation2 + $0x108] sm:$0x3f]  ;;  %v1806_v48 = vrot.slane %v6435_v12, 7  ;;  %v1394_v41 = vsel %vm1386_vm6, %v1361_v39, %v6436_v51 }
 0x2e4   : > { %v1182_v53 = vpop.permute.xlu0 %1181  ;;  %v433_v45 = vpack.c.bf16 %v397_v14, %v397_v14  ;;  %v1427_v33 = vsel %vm1419_vm7, %v1394_v41, %v6438_v31  ;;  %v6441_v51 = vshll.u32 %v6434_v30, 16  ;;  %v5013_v31 = vpack.c.b16 %v1782_v7, %v1782_v7 }
 0x2e5   : > { %v4979_v1 = vsel %vm1683_vm15, %v4520_v21, %v1182_v53  ;;  %v6437_v53 = vshrl.u32 %v4065_v4, 16  ;;  %v4995_v62 = vpack.c.b16 %v1781_v2, %v1781_v2  ;;  %v1460_v12 = vsel %vm1452_vm8, %v1427_v33, %v6439_v35  ;;  %v6443_v33 = vld [vmem:[#allocation157_spill] sm:$0xff] }
 0x2e6   : > { %v5009_v2 = vor.u32 %v1806_v48, %v6441_v51  ;;  %v1783_v46 = vunpack.c.l.b16 %v433_v45  ;;  %v1493_v35 = vsel %vm1485_vm9, %v1460_v12, %v6443_v33  ;;  %v6446_v51 = vld [vmem:[#allocation183_spill] sm:$0xff]  ;;  %v6447_v45 = vshrl.u32 %v4981_v55, 16 }
 0x2e7   : > { %1852 = vrot.lane.b32.xlu1 %v4963_v8, %s3057_s29  ;;  %v1808_v21 = vrot.slane %v6437_v53, 7  ;;  %v6442_v53 = vshrl.u32 %v4067_v17, 16  ;;  %v6065_v39 = vshrl.u32 %v4995_v62, 16 }
 0x2e8   : > { %1854 = vrot.lane.b32.xlu2 %v4971_v40, %s3057_s29  ;;  %v1815_v12 = vrot.slane %v6447_v45, 7 }
 0x2e9   : > { %v1184_v18 = vpop.permute.xlu1 %1183  ;;  %v1810_v41 = vrot.slane %v6442_v53, 7  ;;  %v6070_v53 = vshll.u32 %v4981_v55, 16 }
 0x2ea   : > { %v1697_v60 = vsel %vm1683_vm15, %v4729_v22, %v1184_v18  ;;  %v5003_v14 = vpop.permute.xlu2 %1206  ;;  %1856 = vrot.lane.b32.xlu0 %v1805_v25, %s3057_s29  ;;  %v6444_v22 = vshll.u32 %v4065_v4, 16  ;;  %v6445_v25 = vld [vmem:[#allocation162_spill] sm:$0xff] }
 0x2eb   : > { %6440 = vst [vmem:[#allocation17_spill] sm:$0xff] %v5003_v14  ;;  %v1526_v14 = vsel %vm1518_vm10, %v1493_v35, %v6445_v25  ;;  %v6449_v35 = vshll.u32 %v4067_v17, 16  ;;  %v5042_v25 = vpack.c.b16 %v1783_v46, %v1783_v46 }
 0x2ec   : > { %v5019_v18 = vor.u32 %v1808_v21, %v6444_v22  ;;  %v1188_v48 = vpop.permute.xlu0 %1187  ;;  %v1559_v40 = vsel %vm1551_vm11, %v1526_v14, %v6446_v51  ;;  %v6448_v21 = vld [vmem:[#allocation195_spill] sm:$0xff]  ;;  %v6064_v14 = vshrl.u32 %v5013_v31, 16  ;;  %v6069_v51 = vshll.u32 %v4995_v62, 16 }
 0x2ed   : > { %v5028_v7 = vsel %vm1683_vm15, %v4560_v11, %v1188_v48  ;;  %v1592_v33 = vsel %vm1584_vm12, %v1559_v40, %v6448_v21  ;;  %v5039_v22 = vor.u32 %v1810_v41, %v6449_v35  ;;  %v6450_v11 = vld [vmem:[#allocation197_spill] sm:$0xff]  ;;  %v1822_v40 = vrot.slane %v6065_v39, 7 }
 0x2ee   : > { %v1625_v48 = vsel %vm1617_vm13, %v1592_v33, %v6450_v11  ;;  %v1818_v33 = vor.u32 %v6070_v53, %v1815_v12 }
 0x2ef   : > { %1858 = vrot.lane.b32.xlu1 %v5009_v2, %s3057_s29  ;;  %v1658_v45 = vsel %vm1650_vm14, %v1625_v48, %v4647_v24  ;;  %v1829_v24 = vrot.slane %v6064_v14, 7  ;;  %v6068_v48 = vshll.u32 %v5013_v31, 16 }
 0x2f0   : > { %1860 = vrot.lane.b32.xlu2 %v5019_v18, %s3057_s29  ;;  %v1691_v21 = vsel %vm1683_vm15, %v1658_v45, %v1178_v37  ;;  %v6066_v37 = vshrl.u32 %v5042_v25, 16 }
 0x2f1   : > { %v1190_v41 = vpop.permute.xlu1 %1189 }
 0x2f2   : > { %v1703_v46 = vsel %vm1683_vm15, %v4796_v28, %v1190_v41  ;;  %v1213_v35 = vpop.permute.xlu2 %1212  ;;  %1862 = vrot.lane.b32.xlu0 %v5039_v22, %s3057_s29  ;;  %v5069_v28 = vor.u32 %v6069_v51, %v1822_v40  ;;  %v5076_v41 = vor.u32 %v6068_v48, %v1829_v24 }
 0x2f3   : > { %v5059_v11 = vsel %vm1716_vm0, %v1691_v21, %v1213_v35  ;;  %v1836_v21 = vrot.slane %v6066_v37, 7  ;;  %v6067_v35 = vshll.u32 %v5042_v25, 16 }
 0x2f4   : > { %v1194_v45 = vpop.permute.xlu0 %1193 }
 0x2f5   : > { %v1707_v12 = vsel %vm1683_vm15, %v4624_v34, %v1194_v45 }
 0x2f7   : > { %1864 = vrot.lane.b32.xlu1 %v1818_v33, %s3057_s29  ;;  %v5092_v33 = vor.u32 %v6067_v35, %v1836_v21  ;;  %v6458_v35 = vld [vmem:[#allocation24_spill] sm:$0xff] }
 0x2f8   : > { %1866 = vrot.lane.b32.xlu2 %v5069_v28, %s3057_s29 }
 0x2f9   : > { %v1196_v40 = vpop.permute.xlu1 %1195 }
 0x2fa   : > { %v1709_v14 = vsel %vm1683_vm15, %v4862_v26, %v1196_v40  ;;  %v1219_v39 = vpop.permute.xlu2 %1218  ;;  %1868 = vrot.lane.b32.xlu0 %v5076_v41, %s3057_s29 }
 0x2fb   : > { %v5086_v34 = vsel %vm1716_vm0, %v1697_v60, %v1219_v39 }
 0x2fc   : > { %v1200_v24 = vpop.permute.xlu0 %1199 }
 0x2fd   : > { %v1713_v45 = vsel %vm1683_vm15, %v4703_v3, %v1200_v24 }
 0x2ff   : > { %1870 = vrot.lane.b32.xlu1 %v5092_v33, %s3057_s29 }
 0x300   : > { %1872 = vrot.lane.b32.xlu2 %v6393_v15, %s3058_s30 }
 0x301   : > { %v1202_v26 = vpop.permute.xlu1 %1201 }
 0x302   : > { %v1715_v60 = vsel %vm1683_vm15, %v4912_v36, %v1202_v26  ;;  %v1225_v39 = vpop.permute.xlu2 %1224  ;;  %1874 = vrot.lane.b32.xlu0 %v6412_v44, %s3058_s30 }
 0x303   : > { %v5103_v40 = vsel %vm1716_vm0, %v1703_v46, %v1225_v39 }
 0x304   : > { %v5107_v21 = vpop.permute.xlu0 %1208 }
 0x307   : > { %1876 = vrot.lane.b32.xlu1 %v6426_v32, %s3058_s30 }
 0x308   : > { %1878 = vrot.lane.b32.xlu2 %v6434_v30, %s3058_s30 }
 0x309   : > { %v5113_v3 = vpop.permute.xlu1 %1210 }
 0x30a   : > { %v1231_v15 = vpop.permute.xlu2 %1230  ;;  %1880 = vrot.lane.b32.xlu0 %v4065_v4, %s3058_s30 }
 0x30b   : > { %v5116_v36 = vsel %vm1716_vm0, %v1709_v14, %v1231_v15 }
 0x30c   : > { %6451 = vst [vmem:[#allocation60_spill] sm:$0xff] %v5116_v36  ;;  %v1215_v46 = vpop.permute.xlu0 %1214  ;;  %v6468_v36 = vld [vmem:[#allocation134_spill] sm:$0xff] }
 0x30d   : > { %v5122_v44 = vsel %vm1716_vm0, %v4838_v0, %v1215_v46  ;;  %v6453_v46 = vld [vmem:[#allocation11_spill] sm:$0xff] }
 0x30f   : > { %1882 = vrot.lane.b32.xlu1 %v4067_v17, %s3058_s30 }
 0x310   : > { %1884 = vrot.lane.b32.xlu2 %v4981_v55, %s3058_s30 }
 0x311   : > { %v1217_v32 = vpop.permute.xlu1 %1216 }
 0x312   : > { %v5130_v24 = vsel %vm1716_vm0, %v4979_v1, %v1217_v32  ;;  %v1237_v14 = vpop.permute.xlu2 %1236  ;;  %1886 = vrot.lane.b32.xlu0 %v4995_v62, %s3058_s30 }
 0x313   : > { %v5133_v26 = vsel %vm1716_vm0, %v1715_v60, %v1237_v14  ;;  %v6454_v14 = vshrl.u32 %v3565_v10, 16 }
 0x314   : > { %6452 = vst [vmem:[#allocation77_spill] sm:$0xff] %v5133_v26  ;;  %v1221_v0 = vpop.permute.xlu0 %1220 }
 0x315   : > { %v5139_v39 = vsel %vm1716_vm0, %v4895_v19, %v1221_v0  ;;  %v1923_v0 = vrot.slane %v6454_v14, 7 }
 0x317   : > { %1888 = vrot.lane.b32.xlu1 %v5013_v31, %s3058_s30 }
 0x318   : > { %1890 = vrot.lane.b32.xlu2 %v5042_v25, %s3058_s30 }
 0x319   : > { %v1223_v1 = vpop.permute.xlu1 %1222 }
 0x31a   : > { %v5147_v15 = vsel %vm1716_vm0, %v5028_v7, %v1223_v1  ;;  %v5149_v60 = vpop.permute.xlu2 %1760  ;;  %1900 = vrot.lane.b32.xlu0 %v6453_v46, %s3059_s6 }
 0x31c   : > { %v1227_v32 = vpop.permute.xlu0 %1226 }
 0x31d   : > { %v5155_v19 = vsel %vm1716_vm0, %v4928_v9, %v1227_v32  ;;  %v6455_v9 = vshll.u32 %v3565_v10, 16 }
 0x31f   : > { %1936 = vrot.lane.b32.xlu1 %v4907_v42, %s3060_s7  ;;  %v1924_v46 = vor.u32 %v1923_v0, %v6455_v9  ;;  %v6459_v9 = vshrl.u32 %v3810_v58, 16 }
 0x320   : > { %1938 = vrot.lane.b32.xlu2 %v4917_v20, %s3060_s7 }
 0x321   : > { %v1229_v7 = vpop.permute.xlu1 %1228  ;;  %v2013_v48 = vrot.slane %v6459_v9, 7 }
 0x322   : > { %v5164_v1 = vsel %vm1716_vm0, %v1707_v12, %v1229_v7  ;;  %v5166_v37 = vpop.permute.xlu2 %1766  ;;  %1940 = vrot.lane.b32.xlu0 %v4934_v50, %s3060_s7 }
 0x324   : > { %v1233_v32 = vpop.permute.xlu0 %1232 }
 0x325   : > { %v5174_v42 = vsel %vm1716_vm0, %v4957_v52, %v1233_v32 }
 0x326   : > { %6456 = vst [vmem:[#allocation86_spill] sm:$0xff] %v5174_v42  ;;  %v6466_v42 = vshrl.u32 %v4313_v6, 16 }
 0x327   : > { %1942 = vrot.lane.b32.xlu1 %v1924_v46, %s3060_s7 }
 0x328   : > { %1968 = vrot.lane.b32.xlu2 %v6400_v13, %s3061_s8 }
 0x329   : > { %v1235_v12 = vpop.permute.xlu1 %1234 }
 0x32a   : > { %v5180_v14 = vsel %vm1716_vm0, %v1713_v45, %v1235_v12  ;;  %v5182_v7 = vpop.permute.xlu2 %1772  ;;  %1990 = vrot.lane.b32.xlu0 %v6458_v35, %s3062_s9  ;;  %v6460_v45 = vshll.u32 %v3810_v58, 16 }
 0x32b   : > { %6457 = vst [vmem:[#allocation113_spill] sm:$0xff] %v5180_v14 }
 0x32c   : > { %v1757_v0 = vpop.permute.xlu0 %1756  ;;  %v2014_v32 = vor.u32 %v2013_v48, %v6460_v45  ;;  %v6461_v48 = vld [vmem:[#allocation79_spill] sm:$0xff] }
 0x32f   : > { %2026 = vrot.lane.b32.xlu1 %v4917_v20, %s3063_s10 }
 0x330   : > { %2028 = vrot.lane.b32.xlu2 %v4934_v50, %s3063_s10 }
 0x331   : > { %v1759_v13 = vpop.permute.xlu1 %1758 }
 0x332   : > { %v5192_v52 = vpop.permute.xlu2 %1842  ;;  %2030 = vrot.lane.b32.xlu0 %v1924_v46, %s3063_s10 }
 0x334   : > { %v1763_v12 = vpop.permute.xlu0 %1762 }
 0x335   : > { %v2111_v46 = vsel %vm1238_vm2, %v6461_v48, %v1763_v12  ;;  %v6465_v48 = vld [vmem:[#allocation27_spill] sm:$0xff] }
 0x337   : > { %2032 = vrot.lane.b32.xlu1 %v2014_v32, %s3063_s10  ;;  %v6462_v32 = vld [vmem:[#allocation152_spill] sm:$0xff] }
 0x338   : > { %2058 = vrot.lane.b32.xlu2 %v3565_v10, %s3064_s11 }
 0x339   : > { %v1765_v35 = vpop.permute.xlu1 %1764 }
 0x33a   : > { %v5200_v9 = vpop.permute.xlu2 %1848  ;;  %2060 = vrot.lane.b32.xlu0 %v3810_v58, %s3064_s11  ;;  %v6463_v58 = vld [vmem:[#allocation155_spill] sm:$0xff] }
 0x33c   : > { %v1769_v20 = vpop.permute.xlu0 %1768 }
 0x33f   : > { %2080 = vrot.lane.b32.xlu1 %v3646_v56, %s3065_s12 }
 0x340   : > { %2082 = vrot.lane.b32.xlu2 %v6363_v29, %s3065_s12  ;;  %v6464_v29 = vld [vmem:[#allocation31_spill] sm:$0xff] }
 0x341   : > { %v1771_v50 = vpop.permute.xlu1 %1770  ;;  %v2114_v53 = vsel %vm1238_vm2, %v6464_v29, %v1765_v35  ;;  %v1927_v35 = vrot.slane %v6466_v42, 7 }
 0x342   : > { %v1855_v45 = vpop.permute.xlu2 %1854  ;;  %1904 = vrot.lane.b32.xlu0 %v6462_v32, %s3059_s6 }
 0x343   : > { %v5211_v10 = vsel %vm1287_vm3, %v2111_v46, %v1855_v45  ;;  %v2102_v46 = vsel %vm1238_vm2, %v6465_v48, %v1757_v0  ;;  %v2123_v0 = vsel %vm1238_vm2, %v6468_v36, %v1771_v50  ;;  %v6470_v36 = vld [vmem:[#allocation29_spill] sm:$0xff] }
 0x344   : > { %v1775_v51 = vpop.permute.xlu0 %1774 }
 0x347   : > { %1906 = vrot.lane.b32.xlu1 %v6463_v58, %s3059_s6 }
 0x348   : > { %1908 = vrot.lane.b32.xlu2 %v4155_v38, %s3059_s6 }
 0x349   : > { %v1841_v56 = vpop.permute.xlu1 %1840 }
 0x34a   : > { %v1861_v26 = vpop.permute.xlu2 %1860  ;;  %1910 = vrot.lane.b32.xlu0 %v4163_v47, %s3059_s6 }
 0x34b   : > { %v5222_v12 = vsel %vm1287_vm3, %v2114_v53, %v1861_v26  ;;  %v6467_v53 = vld [vmem:[#allocation73_spill] sm:$0xff] }
 0x34c   : > { %v1845_v45 = vpop.permute.xlu0 %1844  ;;  %v2105_v26 = vsel %vm1238_vm2, %v6467_v53, %v1759_v13  ;;  %v2108_v13 = vsel %vm1238_vm2, %v6470_v36, %v5149_v60  ;;  %v2131_v53 = vsel %vm1287_vm3, %v4609_v16, %v1841_v56 }
 0x34d   : > { %v5229_v32 = vsel %vm1287_vm3, %v2102_v46, %v1845_v45 }
 0x34f   : > { %1952 = vrot.lane.b32.xlu1 %v5009_v2, %s3060_s7  ;;  %v6469_v2 = vshll.u32 %v4313_v6, 16 }
 0x350   : > { %1954 = vrot.lane.b32.xlu2 %v5019_v18, %s3060_s7 }
 0x351   : > { %v1847_v29 = vpop.permute.xlu1 %1846  ;;  %v1928_v42 = vor.u32 %v1927_v35, %v6469_v2 }
 0x352   : > { %v5242_v48 = vsel %vm1287_vm3, %v2105_v26, %v1847_v29  ;;  %v1867_v46 = vpop.permute.xlu2 %1866  ;;  %1956 = vrot.lane.b32.xlu0 %v5039_v22, %s3060_s7 }
 0x353   : > { %v5245_v45 = vsel %vm1287_vm3, %v2123_v0, %v1867_v46 }
 0x354   : > { %v5251_v14 = vpop.permute.xlu0 %1850 }
 0x357   : > { %1958 = vrot.lane.b32.xlu1 %v1928_v42, %s3060_s7 }
 0x358   : > { %1972 = vrot.lane.b32.xlu2 %v6434_v30, %s3061_s8 }
 0x359   : > { %v1853_v50 = vpop.permute.xlu1 %1852 }
 0x35a   : > { %v5262_v26 = vsel %vm1287_vm3, %v2108_v13, %v1853_v50  ;;  %v1873_v29 = vpop.permute.xlu2 %1872  ;;  %1974 = vrot.lane.b32.xlu0 %v4065_v4, %s3061_s8  ;;  %v6471_v4 = vld [vmem:[#allocation83_spill] sm:$0xff] }
 0x35b   : > { %v5265_v35 = vsel %vm1320_vm4, %v2131_v53, %v1873_v29  ;;  %v2117_v46 = vsel %vm1238_vm2, %v6471_v4, %v5166_v37  ;;  %v6473_v37 = vld [vmem:[#allocation179_spill] sm:$0xff] }
 0x35c   : > { %v1857_v0 = vpop.permute.xlu0 %1856 }
 0x35f   : > { %1976 = vrot.lane.b32.xlu1 %v4067_v17, %s3061_s8 }
 0x360   : > { %1978 = vrot.lane.b32.xlu2 %v4313_v6, %s3061_s8 }
 0x361   : > { %v1859_v30 = vpop.permute.xlu1 %1858 }
 0x362   : > { %v2149_v16 = vsel %vm1287_vm3, %v4810_v23, %v1859_v30  ;;  %v1879_v60 = vpop.permute.xlu2 %1878  ;;  %1994 = vrot.lane.b32.xlu0 %v6463_v58, %s3062_s9  ;;  %v6472_v23 = vld [vmem:[#allocation132_spill] sm:$0xff] }
 0x363   : > { %v5276_v56 = vsel %vm1320_vm4, %v2149_v16, %v1879_v60  ;;  %v2120_v36 = vsel %vm1238_vm2, %v6472_v23, %v1769_v20  ;;  %v6474_v20 = vshrl.u32 %v4634_v59, 16  ;;  %v2129_v16 = vsel %vm1238_vm2, %v4566_v49, %v1775_v51 }
 0x364   : > { %v1863_v2 = vpop.permute.xlu0 %1862  ;;  %v2139_v23 = vsel %vm1287_vm3, %v4722_v63, %v5200_v9  ;;  %v2147_v49 = vsel %vm1287_vm3, %v4580_v54, %v1857_v0  ;;  %v2133_v63 = vsel %vm1287_vm3, %v4639_v5, %v5192_v52  ;;  %v6476_v5 = vld [vmem:[#allocation82_spill] sm:$0xff] }
 0x365   : > { %v2153_v17 = vsel %vm1287_vm3, %v2117_v46, %v1863_v2  ;;  %v2017_v30 = vrot.slane %v6474_v20, 7  ;;  %v6480_v20 = vld [vmem:[#allocation125_spill] sm:$0xff] }
 0x367   : > { %1996 = vrot.lane.b32.xlu1 %v4155_v38, %s3062_s9  ;;  %v2126_v38 = vsel %vm1238_vm2, %v6473_v37, %v5182_v7  ;;  %v6478_v37 = vld [vmem:[#allocation33_spill] sm:$0xff] }
 0x368   : > { %1998 = vrot.lane.b32.xlu2 %v4163_v47, %s3062_s9 }
 0x369   : > { %v1865_v13 = vpop.permute.xlu1 %1864 }
 0x36a   : > { %v2155_v50 = vsel %vm1287_vm3, %v2120_v36, %v1865_v13  ;;  %v1885_v58 = vpop.permute.xlu2 %1884  ;;  %2000 = vrot.lane.b32.xlu0 %v6399_v43, %s3062_s9 }
 0x36b   : > { %v5292_v53 = vsel %vm1320_vm4, %v2155_v50, %v1885_v58 }
 0x36c   : > { %v1869_v29 = vpop.permute.xlu0 %1868 }
 0x36d   : > { %v2159_v47 = vsel %vm1287_vm3, %v2126_v38, %v1869_v29  ;;  %v6479_v38 = vld [vmem:[#allocation5_spill] sm:$0xff] }
 0x36e   : > { %v1244_v29 = vsel %vm1238_vm2, %v6479_v38, %v6478_v37  ;;  %v6492_v38 = vld [vmem:[#allocation137_spill] sm:$0xff] }
 0x36f   : > { %2042 = vrot.lane.b32.xlu1 %v5019_v18, %s3063_s10  ;;  %v6475_v18 = vshll.u32 %v4634_v59, 16 }
 0x370   : > { %2044 = vrot.lane.b32.xlu2 %v5039_v22, %s3063_s10 }
 0x371   : > { %v1871_v60 = vpop.permute.xlu1 %1870  ;;  %v2018_v2 = vor.u32 %v2017_v30, %v6475_v18 }
 0x372   : > { %v2161_v4 = vsel %vm1287_vm3, %v2129_v16, %v1871_v60  ;;  %v1891_v46 = vpop.permute.xlu2 %1890  ;;  %2046 = vrot.lane.b32.xlu0 %v1928_v42, %s3063_s10  ;;  %v6481_v16 = vld [vmem:[#allocation35_spill] sm:$0xff] }
 0x373   : > { %v5310_v7 = vsel %vm1320_vm4, %v2161_v4, %v1891_v46  ;;  %v6482_v60 = vshrl.u32 %v6481_v16, 16  ;;  %v6483_v46 = vld [vmem:[#allocation40_spill] sm:$0xff] }
 0x374   : > { %v1875_v22 = vpop.permute.xlu0 %1874  ;;  %v1291_v18 = vsel %vm1287_vm3, %v1244_v29, %v6483_v46  ;;  %v2992_v46 = vld [vmem:[%s5925_s3 + $0x28] sm:$0xff] }
 0x375   : > { %v5319_v36 = vsel %vm1320_vm4, %v2139_v23, %v1875_v22  ;;  %v1925_v4 = vrot.slane %v6482_v60, 7  ;;  %v2993_v22 = vld [vmem:[%s5925_s3 + $0x30] sm:$0xff] }
 0x377   : > { %2048 = vrot.lane.b32.xlu1 %v2018_v2, %s3063_s10 }
 0x378   : > { %2066 = vrot.lane.b32.xlu2 %v4313_v6, %s3064_s11  ;;  %v2164_v6 = vsel %vm1320_vm4, %v2133_v63, %v6286_v57  ;;  %v2994_v57 = vld [vmem:[%s5925_s3 + $0x38] sm:$0xff]  ;;  %v6486_v63 = vld [vmem:[#allocation131_spill] sm:$0xff] }
 0x379   : > { %v1877_v51 = vpop.permute.xlu1 %1876  ;;  %v2190_v52 = vsel %vm1353_vm5, %v2164_v6, %v6476_v5  ;;  %2699 = vmatpush.bf16.msra.mxu0 %v2994_v57  ;;  %3003 = vmatpush.bf16.msra.mxu2 %v2994_v57  ;;  %v6490_v57 = vld [vmem:[#allocation119_spill] sm:$0xff] }
 0x37a   : > { %v5327_v42 = vsel %vm1320_vm4, %v2147_v49, %v1877_v51  ;;  %v1939_v13 = vpop.permute.xlu2 %1938  ;;  %2068 = vrot.lane.b32.xlu0 %v4634_v59, %s3064_s11  ;;  %v6485_v49 = vld [vmem:[#allocation85_spill] sm:$0xff] }
 0x37c   : > { %v1881_v9 = vpop.permute.xlu0 %1880 }
 0x37d   : > { %v5336_v50 = vsel %vm1320_vm4, %v5222_v12, %v1881_v9  ;;  %v6477_v12 = vld [vmem:[#allocation13_spill] sm:$0xff]  ;;  %2700 = vmatpush.bf16.msra.mxu0 %v2993_v22  ;;  %3004 = vmatpush.bf16.msra.mxu2 %v2993_v22  ;;  %v6498_v22 = vld [vmem:[#allocation187_spill] sm:$0xff] }
 0x37f   : > { %2088 = vrot.lane.b32.xlu1 %v6399_v43, %s3065_s12  ;;  %v2217_v43 = vsel %vm1386_vm6, %v2190_v52, %v1939_v13 }
 0x380   : > { %2090 = vrot.lane.b32.xlu2 %v4874_v27, %s3065_s12  ;;  %v3002_v27 = vld [vmem:[%s5925_s3 + $0x78] sm:$0xff]  ;;  %v2248_v30 = vsel %vm1419_vm7, %v2217_v43, %v6480_v20  ;;  %v6489_v43 = vshll.u32 %v6481_v16, 16  ;;  %v6493_v20 = vld [vmem:[#allocation186_spill] sm:$0xff] }
 0x381   : > { %v1883_v54 = vpop.permute.xlu1 %1882  ;;  %2728 = vmatpush.bf16.msra.mxu1 %v3002_v27  ;;  %3011 = vmatpush.bf16.msra.mxu3 %v3002_v27  ;;  %v2274_v9 = vsel %vm1452_vm8, %v2248_v30, %v6486_v63  ;;  %v6491_v27 = vld [vmem:[#allocation173_spill] sm:$0xff] }
 0x382   : > { %v5345_v59 = vsel %vm1320_vm4, %v2153_v17, %v1883_v54  ;;  %v5347_v0 = vpop.permute.xlu2 %1968  ;;  %1902 = vrot.lane.b32.xlu0 %v6477_v12, %s3059_s6  ;;  %v6487_v54 = vld [vmem:[#allocation93_spill] sm:$0xff]  ;;  %v6488_v12 = vld [vmem:[#allocation34_spill] sm:$0xff]  ;;  %2701 = vmatpush.bf16.msra.mxu0 %v2992_v46 }
 0x383   : > { %3005 = vmatpush.bf16.msra.mxu2 %v2992_v46 }
 0x384   : > { %v1887_v58 = vpop.permute.xlu0 %1886 }
 0x385   : > { %v5362_v17 = vsel %vm1320_vm4, %v5245_v45, %v1887_v58  ;;  %v6484_v45 = vld [vmem:[#allocation66_spill] sm:$0xff]  ;;  %v1926_v58 = vor.u32 %v1925_v4, %v6489_v43  ;;  %v3000_v4 = vld [vmem:[%s5925_s3 + $0x68] sm:$0xff] }
 0x386   : > { %v1324_v2 = vsel %vm1320_vm4, %v1291_v18, %v6484_v45  ;;  %v6494_v18 = vld [vmem:[#allocation144_spill] sm:$0xff]  ;;  %v2999_v43 = vld [vmem:[%s5925_s3 + $0x60] sm:$0xff] }
 0x387   : > { %1944 = vrot.lane.b32.xlu1 %v4946_v61, %s3060_s7  ;;  %v3001_v61 = vld [vmem:[%s5925_s3 + $0x70] sm:$0xff]  ;;  %v1357_v51 = vsel %vm1353_vm5, %v1324_v2, %v6485_v49 }
 0x388   : > { %1946 = vrot.lane.b32.xlu2 %v4963_v8, %s3060_s7  ;;  %v1390_v5 = vsel %vm1386_vm6, %v1357_v51, %v6487_v54  ;;  %2729 = vmatpush.bf16.msra.mxu1 %v3001_v61  ;;  %v6496_v51 = vld [vmem:[#allocation181_spill] sm:$0xff]  ;;  %v6497_v54 = vld [vmem:[#allocation19_spill] sm:$0xff] }
 0x389   : > { %v1889_v23 = vpop.permute.xlu1 %1888  ;;  %3012 = vmatpush.bf16.msra.mxu3 %v3001_v61 }
 0x38a   : > { %v5388_v13 = vsel %vm1320_vm4, %v2159_v47, %v1889_v23  ;;  %v2029_v6 = vpop.permute.xlu2 %2028  ;;  %1948 = vrot.lane.b32.xlu0 %v6488_v12, %s3060_s7  ;;  %v1423_v47 = vsel %vm1419_vm7, %v1390_v5, %v6490_v57  ;;  %v6495_v23 = vld [vmem:[#allocation169_spill] sm:$0xff]  ;;  %v6499_v57 = vld [vmem:[#allocation199_spill] sm:$0xff] }
 0x38b   : > { %v2301_v52 = vsel %vm1485_vm9, %v2274_v9, %v2029_v6  ;;  %v1456_v29 = vsel %vm1452_vm8, %v1423_v47, %v6492_v38  ;;  %v6500_v38 = vld [vmem:[#allocation28_spill] sm:$0xff] }
 0x38c   : > { %v2331_v37 = vsel %vm1518_vm10, %v2301_v52, %v6491_v27  ;;  %v1901_v60 = vpop.permute.xlu0 %1900  ;;  %v1489_v45 = vsel %vm1485_vm9, %v1456_v29, %v6494_v18  ;;  %2730 = vmatpush.bf16.msra.mxu1 %v3000_v4  ;;  %v2991_v52 = vld [vmem:[%s5925_s3 + $0x20] sm:$0xff] }
 0x38d   : > { %v2357_v30 = vsel %vm1551_vm11, %v2331_v37, %v6493_v20  ;;  %v1522_v49 = vsel %vm1518_vm10, %v1489_v45, %v6495_v23  ;;  %3013 = vmatpush.bf16.msra.mxu3 %v3000_v4  ;;  %v6501_v20 = vld [vmem:[#allocation25_spill] sm:$0xff]  ;;  %2702 = vmatpush.bf16.msra.mxu0 %v2991_v52 }
 0x38e   : > { %v2390_v2 = vshll.u32 %v2357_v30, 16  ;;  %v1555_v63 = vsel %vm1551_vm11, %v1522_v49, %v6496_v51  ;;  %v2388_v9 = vshrl.u32 %v2357_v30, 16  ;;  %v6502_v30 = vld [vmem:[#allocation8_spill] sm:$0xff]  ;;  %v2998_v23 = vld [vmem:[%s5925_s3 + $0x58] sm:$0xff]  ;;  %3006 = vmatpush.bf16.msra.mxu2 %v2991_v52  ;;  %v6503_v51 = vld [vmem:[#allocation87_spill] sm:$0xff] }
 0x38f   : > { %1950 = vrot.lane.b32.xlu1 %v1926_v58, %s3060_s7  ;;  %v1588_v61 = vsel %vm1584_vm12, %v1555_v63, %v6498_v22  ;;  %v6504_v63 = vshrl.u32 %v6503_v51, 16  ;;  %v2997_v22 = vld [vmem:[%s5925_s3 + $0x50] sm:$0xff] }
 0x390   : > { %v2392_v6 = vrot.slane %v2390_v2, 1  ;;  %1970 = vrot.lane.b32.xlu2 %v6497_v54, %s3061_s8  ;;  %v1621_v47 = vsel %vm1617_vm13, %v1588_v61, %v6499_v57  ;;  %2731 = vmatpush.bf16.msra.mxu1 %v2999_v43  ;;  %v2990_v2 = vld [vmem:[%s5925_s3 + $0x18] sm:$0xff]  ;;  %v2989_v54 = vld [vmem:[%s5925_s3 + $0x10] sm:$0xff]  ;;  %v6508_v57 = vshll.u32 %v6503_v51, 16 }
 0x391   : > { %v1937_v5 = vpop.permute.xlu1 %1936  ;;  %v1654_v29 = vsel %vm1650_vm14, %v1621_v47, %v6500_v38  ;;  %3014 = vmatpush.bf16.msra.mxu3 %v2999_v43  ;;  %2703 = vmatpush.bf16.msra.mxu0 %v2990_v2  ;;  %v6506_v61 = vld [vmem:[#allocation4_spill] sm:$0xff] }
 0x392   : > { %v2393_v27 = vor.u32 %v2392_v6, %v2388_v9  ;;  %v5432_v37 = vpop.permute.xlu2 %2058  ;;  %1992 = vrot.lane.b32.xlu0 %v6501_v20, %s3062_s9  ;;  %v1687_v18 = vsel %vm1683_vm15, %v1654_v29, %v6502_v30  ;;  %v2015_v9 = vrot.slane %v6504_v63, 7  ;;  %3007 = vmatpush.bf16.msra.mxu2 %v2990_v2  ;;  %v2988_v29 = vld [vmem:[%s5925_s3 + $0x8] sm:$0xff]  ;;  %v6510_v30 = vld [vmem:[#allocation84_spill] sm:$0xff]  ;;  %v6512_v2 = vld [vmem:[#allocation110_spill] sm:$0xff] }
 0x393   : > { %v1720_v46 = vsel %vm1716_vm0, %v1687_v18, %v5107_v21  ;;  %v2189_v21 = vsel %vm1353_vm5, %v5265_v35, %v1901_v60  ;;  %v6507_v60 = vld [vmem:[#allocation48_spill] sm:$0xff]  ;;  %v2996_v20 = vld [vmem:[%s5925_s3 + $0x48] sm:$0xff] }
 0x394   : > { %v2479_v45 = vrot.slane %v2393_v27, 6  ;;  %v5442_v4 = vpop.permute.xlu0 %1940  ;;  %2732 = vmatpush.bf16.msra.mxu1 %v2998_v23  ;;  %v2215_v43 = vsel %vm1386_vm6, %v2189_v21, %v1937_v5  ;;  %v2016_v47 = vor.u32 %v2015_v9, %v6508_v57  ;;  %v6509_v27 = vld [vmem:[#allocation56_spill] sm:$0xff]  ;;  %v6511_v18 = vld [vmem:[#allocation103_spill] sm:$0xff]  ;;  %v6514_v21 = vld [vmem:[#allocation153_spill] sm:$0xff]  ;;  %v6517_v57 = vshll.u32 %v4981_v55, 16 }
 0x395   : > { %3015 = vmatpush.bf16.msra.mxu3 %v2998_v23  ;;  %2704 = vmatpush.bf16.msra.mxu0 %v2989_v54  ;;  %v6513_v63 = vld [vmem:[#allocation135_spill] sm:$0xff] }
 0x396   : > { %v2498_v49 = vsel %vm2494_vm1, %v1720_v46, %v2479_v45  ;;  %3008 = vmatpush.bf16.msra.mxu2 %v2989_v54  ;;  %v2247_v46 = vsel %vm1419_vm7, %v2215_v43, %v5347_v0  ;;  %v2987_v0 = vld [vmem:[%s5925_s3] sm:$0xff] }
 0x397   : > { %2529 = vst [vmem:[#allocation1 + $0x1] ss:$4 sm:$0xff] %v2498_v49  ;;  %2034 = vrot.lane.b32.xlu1 %v4963_v8, %s3063_s10  ;;  %v6505_v8 = vld [vmem:[#allocation30_spill] sm:$0xff] }
 0x398   : > { %2036 = vrot.lane.b32.xlu2 %v6488_v12, %s3063_s10  ;;  %v1241_v52 = vsel %vm1238_vm2, %v6506_v61, %v6505_v8  ;;  %2733 = vmatpush.bf16.msra.mxu1 %v2997_v22  ;;  %v2995_v8 = vld [vmem:[%s5925_s3 + $0x40] sm:$0xff]  ;;  %v6515_v61 = vld [vmem:[#allocation160_spill] sm:$0xff] }
 0x399   : > { %v1943_v6 = vpop.permute.xlu1 %1942  ;;  %v1289_v12 = vsel %vm1287_vm3, %v1241_v52, %v6507_v60  ;;  %3016 = vmatpush.bf16.msra.mxu3 %v2997_v22  ;;  %2705 = vmatpush.bf16.msra.mxu0 %v2988_v29  ;;  %v6516_v60 = vld [vmem:[#allocation76_spill] sm:$0xff] }
 0x39a   : > { %v5468_v35 = vpop.permute.xlu2 %2082  ;;  %2038 = vrot.lane.b32.xlu0 %v1926_v58, %s3063_s10  ;;  %v1322_v38 = vsel %vm1320_vm4, %v1289_v12, %v6509_v27  ;;  %3009 = vmatpush.bf16.msra.mxu2 %v2988_v29  ;;  %v6518_v27 = vld [vmem:[#allocation65_spill] sm:$0xff] }
 0x39b   : > { %v1355_v5 = vsel %vm1353_vm5, %v1322_v38, %v6510_v30  ;;  %v2165_v38 = vsel %vm1320_vm4, %v5229_v32, %v6518_v27  ;;  %v6519_v30 = vld [vmem:[#allocation165_spill] sm:$0xff]  ;;  %v6522_v32 = vld [vmem:[#allocation192_spill] sm:$0xff] }
 0x39c   : > { %v1991_v58 = vpop.permute.xlu0 %1990  ;;  %v1388_v45 = vsel %vm1386_vm6, %v1355_v5, %v6511_v18  ;;  %2734 = vmatpush.bf16.msra.mxu1 %v2996_v20 }
 0x39d   : > { %v1421_v23 = vsel %vm1419_vm7, %v1388_v45, %v6512_v2  ;;  %v2273_v49 = vsel %vm1452_vm8, %v2247_v46, %v1991_v58  ;;  %3017 = vmatpush.bf16.msra.mxu3 %v2996_v20  ;;  %2706 = vmatpush.bf16.msra.mxu0 %v2987_v0  ;;  %v6521_v58 = vld [vmem:[#allocation185_spill] sm:$0xff]  ;;  %v6523_v2 = vld [vmem:[#allocation95_spill] sm:$0xff] }
 0x39e   : > { %v1454_v9 = vsel %vm1452_vm8, %v1421_v23, %v6513_v63  ;;  %v398_v45 = vld [vmem:[#allocation2 + $0x110] sm:$0x3f]  ;;  %3010 = vmatpush.bf16.msra.mxu2 %v2987_v0 }
 0x39f   : > { %2040 = vrot.lane.b32.xlu1 %v2016_v47, %s3063_s10  ;;  %v1487_v54 = vsel %vm1485_vm9, %v1454_v9, %v6514_v21  ;;  %v1892_v47 = vrot.slane %v6517_v57, 1  ;;  %v6525_v21 = vshrl.u32 %v4981_v55, 16  ;;  %v434_v0 = vpack.c.bf16 %v398_v45, %v398_v45 }
 0x3a0   : > { %2062 = vrot.lane.b32.xlu2 %v6481_v16, %s3064_s11  ;;  %v1520_v52 = vsel %vm1518_vm10, %v1487_v54, %v6515_v61  ;;  %v2166_v16 = vsel %vm1320_vm4, %v5242_v48, %v6516_v60  ;;  %v6520_v48 = vld [vmem:[#allocation180_spill] sm:$0xff]  ;;  %2735 = vmatpush.bf16.msra.mxu1 %v2995_v8  ;;  %v6530_v55 = vshll.u32 %v5013_v31, 16 }
 0x3a1   : > { %v2027_v22 = vpop.permute.xlu1 %2026  ;;  %v1553_v5 = vsel %vm1551_vm11, %v1520_v52, %v6520_v48  ;;  %v2192_v23 = vsel %vm1353_vm5, %v2166_v16, %v6523_v2  ;;  %3018 = vmatpush.bf16.msra.mxu3 %v2995_v8  ;;  %v1893_v54 = vor.u32 %v1892_v47, %v6525_v21  ;;  %v6528_v8 = vld [vmem:[#allocation196_spill] sm:$0xff]  ;;  %v6531_v47 = vld [vmem:[#allocation78_spill] sm:$0xff]  ;;  %v6533_v48 = vld [vmem:[#allocation57_spill] sm:$0xff] }
 0x3a2   : > { %v2299_v12 = vsel %vm1485_vm9, %v2273_v49, %v2027_v22  ;;  %v1909_v43 = vpop.permute.xlu2 %1908  ;;  %2064 = vrot.lane.b32.xlu0 %v6503_v51, %s3064_s11  ;;  %v1586_v46 = vsel %vm1584_vm12, %v1553_v5, %v6522_v32  ;;  %v6524_v51 = vld [vmem:[#allocation94_spill] sm:$0xff]  ;;  %v2221_v9 = vsel %vm1386_vm6, %v2192_v23, %v1943_v6  ;;  %v6526_v22 = vshll.u32 %v4995_v62, 16 }
 0x3a3   : > { %v2330_v29 = vsel %vm1518_vm10, %v2299_v12, %v6519_v30  ;;  %v5521_v20 = vsel %vm1353_vm5, %v5336_v50, %v1909_v43  ;;  %v2191_v63 = vsel %vm1353_vm5, %v2165_v38, %v6524_v51  ;;  %v6527_v12 = vld [vmem:[#allocation51_spill] sm:$0xff]  ;;  %v1619_v43 = vsel %vm1617_vm13, %v1586_v46, %v6528_v8  ;;  %v6529_v6 = vld [vmem:[#allocation106_spill] sm:$0xff] }
 0x3a4   : > { %v2356_v18 = vsel %vm1551_vm11, %v2330_v29, %v6521_v58  ;;  %v2031_v49 = vpop.permute.xlu0 %2030  ;;  %v1894_v61 = vrot.slane %v6526_v22, 1  ;;  %v2219_v52 = vsel %vm1386_vm6, %v2191_v63, %v5442_v4  ;;  %v1896_v57 = vrot.slane %v6530_v55, 1  ;;  %v6532_v38 = vld [vmem:[#allocation127_spill] sm:$0xff]  ;;  %v6534_v58 = vld [vmem:[#allocation118_spill] sm:$0xff]  ;;  %v6537_v63 = vld [vmem:[#allocation32_spill] sm:$0xff] }
 0x3a5   : > { %v2384_v50 = vshll.u32 %v2356_v18, 16  ;;  %v2382_v60 = vshrl.u32 %v2356_v18, 16  ;;  %v1652_v27 = vsel %vm1650_vm14, %v1619_v43, %v6531_v47  ;;  %v2250_v4 = vsel %vm1419_vm7, %v2221_v9, %v6532_v38  ;;  %v6538_v9 = vld [vmem:[#allocation6_spill] sm:$0xff]  ;;  %v6539_v22 = vld [vmem:[#allocation17_spill] sm:$0xff] }
 0x3a6   : > { %v1685_v5 = vsel %vm1683_vm15, %v1652_v27, %v6533_v48  ;;  %v2249_v18 = vsel %vm1419_vm7, %v2219_v52, %v6534_v58  ;;  %v6535_v46 = vshrl.u32 %v4995_v62, 16  ;;  %v6536_v23 = vshll.u32 %v5042_v25, 16  ;;  %v6544_v27 = vld [vmem:[#allocation67_spill] sm:$0xff] }
 0x3a7   : > { %v2386_v16 = vrot.slane %v2384_v50, 1  ;;  %2084 = vrot.lane.b32.xlu1 %v6527_v12, %s3065_s12  ;;  %v1921_v51 = vunpack.c.l.b16 %v434_v0  ;;  %v1247_v21 = vsel %vm1238_vm2, %v6538_v9, %v6537_v63  ;;  %v1718_v52 = vsel %vm1716_vm0, %v1685_v5, %v6539_v22  ;;  %v6543_v0 = vld [vmem:[#allocation145_spill] sm:$0xff] }
 0x3a8   : > { %2086 = vrot.lane.b32.xlu2 %v6529_v6, %s3065_s12  ;;  %v5563_v2 = vor.u32 %v1894_v61, %v6535_v46  ;;  %v1898_v50 = vrot.slane %v6536_v23, 1  ;;  %v6542_v61 = vld [vmem:[#allocation50_spill] sm:$0xff]  ;;  %v2275_v6 = vsel %vm1452_vm8, %v2249_v18, %v6543_v0  ;;  %v6548_v23 = vld [vmem:[#allocation120_spill] sm:$0xff] }
 0x3a9   : > { %v2387_v30 = vor.u32 %v2386_v16, %v2382_v60  ;;  %v2033_v29 = vpop.permute.xlu1 %2032  ;;  %v6540_v60 = vld [vmem:[#allocation146_spill] sm:$0xff]  ;;  %v1293_v8 = vsel %vm1287_vm3, %v1247_v21, %v6542_v61  ;;  %v5598_v18 = vpack.c.b16 %v1921_v51, %v1921_v51 }
 0x3aa   : > { %v5558_v45 = vpop.permute.xlu2 %1954  ;;  %1912 = vrot.lane.b32.xlu0 %v1893_v54, %s3059_s6  ;;  %v2276_v16 = vsel %vm1452_vm8, %v2250_v4, %v6540_v60  ;;  %v6541_v54 = vshrl.u32 %v5013_v31, 16  ;;  %v1326_v38 = vsel %vm1320_vm4, %v1293_v8, %v6544_v27  ;;  %v2303_v4 = vsel %vm1485_vm9, %v2275_v6, %v2031_v49  ;;  %v6549_v21 = vld [vmem:[#allocation126_spill] sm:$0xff] }
 0x3ab   : > { %v2478_v32 = vrot.slane %v2387_v30, 6  ;;  %v2305_v55 = vsel %vm1485_vm9, %v2276_v16, %v2033_v29  ;;  %v6545_v30 = vld [vmem:[#allocation75_spill] sm:$0xff]  ;;  %v6546_v29 = vshrl.u32 %v5042_v25, 16  ;;  %v6550_v16 = vld [vmem:[#allocation156_spill] sm:$0xff]  ;;  %v1930_v8 = vshrl.u32 %v5598_v18, 16  ;;  %v6552_v6 = vld [vmem:[#allocation174_spill] sm:$0xff] }
 0x3ac   : > { %v5576_v12 = vor.u32 %v1896_v57, %v6541_v54  ;;  %v2061_v47 = vpop.permute.xlu0 %2060  ;;  %v1359_v48 = vsel %vm1353_vm5, %v1326_v38, %v6545_v30 }
 0x3ad   : > { %v2496_v43 = vsel %vm2494_vm1, %v1718_v52, %v2478_v32  ;;  %v2335_v57 = vsel %vm1518_vm10, %v2305_v55, %v2061_v47  ;;  %v5596_v58 = vor.u32 %v1898_v50, %v6546_v29  ;;  %v6547_v32 = vld [vmem:[#allocation105_spill] sm:$0xff] }
 0x3ae   : > { %2527 = vst [vmem:[#allocation1] ss:$4 sm:$0xff] %v2496_v43  ;;  %v2361_v5 = vsel %vm1551_vm11, %v2335_v57, %v5468_v35  ;;  %v1392_v49 = vsel %vm1386_vm6, %v1359_v48, %v6547_v32  ;;  %v2333_v35 = vsel %vm1518_vm10, %v2303_v4, %v5432_v37  ;;  %v6551_v43 = vld [vmem:[#allocation170_spill] sm:$0xff]  ;;  %v6553_v4 = vld [vmem:[#allocation193_spill] sm:$0xff]  ;;  %v6554_v48 = vld [vmem:[#allocation200_spill] sm:$0xff]  ;;  %v1932_v32 = vrot.slane %v1930_v8, 7 }
 0x3af   : > { %1914 = vrot.lane.b32.xlu1 %v5563_v2, %s3059_s6  ;;  %v2402_v46 = vshll.u32 %v2361_v5, 16  ;;  %v1425_v63 = vsel %vm1419_vm7, %v1392_v49, %v6548_v23  ;;  %v2400_v22 = vshrl.u32 %v2361_v5, 16  ;;  %v1933_v49 = vshll.u32 %v5598_v18, 16 }
 0x3b0   : > { %1916 = vrot.lane.b32.xlu2 %v5576_v12, %s3059_s6  ;;  %v1458_v50 = vsel %vm1452_vm8, %v1425_v63, %v6549_v21 }
 0x3b1   : > { %v2081_v9 = vpop.permute.xlu1 %2080  ;;  %v2404_v51 = vrot.slane %v2402_v46, 1  ;;  %v1491_v54 = vsel %vm1485_vm9, %v1458_v50, %v6550_v16  ;;  %v6555_v46 = vld [vmem:[#allocation54_spill] sm:$0xff] }
 0x3b2   : > { %v2359_v52 = vsel %vm1551_vm11, %v2333_v35, %v2081_v9  ;;  %v5611_v60 = vpop.permute.xlu2 %1972  ;;  %1918 = vrot.lane.b32.xlu0 %v5596_v58, %s3059_s6  ;;  %v1524_v37 = vsel %vm1518_vm10, %v1491_v54, %v6551_v43  ;;  %v6556_v9 = vld [vmem:[#allocation74_spill] sm:$0xff] }
 0x3b3   : > { %v2396_v61 = vshll.u32 %v2359_v52, 16  ;;  %v2405_v0 = vor.u32 %v2404_v51, %v2400_v22  ;;  %v1557_v55 = vsel %vm1551_vm11, %v1524_v37, %v6552_v6  ;;  %v2394_v47 = vshrl.u32 %v2359_v52, 16  ;;  %v399_v43 = vld [vmem:[#allocation2 + $0x118] sm:$0x3f] }
 0x3b4   : > { %v5622_v38 = vpop.permute.xlu0 %1904  ;;  %v1590_v57 = vsel %vm1584_vm12, %v1557_v55, %v6553_v4  ;;  %v1988_v55 = vrot.slane %v1933_v49, 1 }
 0x3b5   : > { %v2398_v27 = vrot.slane %v2396_v61, 1  ;;  %v2481_v30 = vrot.slane %v2405_v0, 6  ;;  %v1623_v5 = vsel %vm1617_vm13, %v1590_v57, %v6554_v48  ;;  %v435_v0 = vpack.c.bf16 %v399_v43, %v399_v43 }
 0x3b6   : > { %v1656_v23 = vsel %vm1650_vm14, %v1623_v5, %v6555_v46  ;;  %v5666_v4 = vor.u32 %v1988_v55, %v1930_v8  ;;  %v6559_v55 = vld [vmem:[#allocation178_spill] sm:$0xff] }
 0x3b7   : > { %v2399_v29 = vor.u32 %v2398_v27, %v2394_v47  ;;  %1960 = vrot.lane.b32.xlu1 %v5069_v28, %s3060_s7  ;;  %v2502_v63 = vsel %vm2494_vm1, %v5059_v11, %v2481_v30  ;;  %v1689_v35 = vsel %vm1683_vm15, %v1656_v23, %v6556_v9  ;;  %v1935_v11 = vor.u32 %v1933_v49, %v1932_v32 }
 0x3b8   : > { %1962 = vrot.lane.b32.xlu2 %v5076_v41, %s3060_s7  ;;  %2533 = vst [vmem:[#allocation1 + $0x3] ss:$4 sm:$0xff] %v2502_v63  ;;  %v1722_v28 = vsel %vm1716_vm0, %v1689_v35, %v5113_v3  ;;  %v2011_v47 = vunpack.c.l.b16 %v435_v0  ;;  %v2199_v35 = vsel %vm1353_vm5, %v5327_v42, %v5622_v38 }
 0x3b9   : > { %v2480_v21 = vrot.slane %v2399_v29, 6  ;;  %v1907_v50 = vpop.permute.xlu1 %1906 }
 0x3ba   : > { %v5641_v22 = vpop.permute.xlu2 %1978  ;;  %1964 = vrot.lane.b32.xlu0 %v5092_v33, %s3060_s7  ;;  %v5668_v57 = vpack.c.b16 %v2011_v47, %v2011_v47  ;;  %v2201_v5 = vsel %vm1353_vm5, %v5276_v56, %v1907_v50  ;;  %v6558_v50 = vld [vmem:[#allocation191_spill] sm:$0xff] }
 0x3bb   : > { %v2500_v51 = vsel %vm2494_vm1, %v1722_v28, %v2480_v21  ;;  %v2233_v49 = vsel %vm1386_vm6, %v2201_v5, %v5558_v45  ;;  %v6557_v21 = vld [vmem:[#allocation172_spill] sm:$0xff] }
 0x3bc   : > { %2531 = vst [vmem:[#allocation1 + $0x2] ss:$4 sm:$0xff] %v2500_v51  ;;  %v5646_v52 = vpop.permute.xlu0 %1910  ;;  %v2023_v32 = vshll.u32 %v5668_v57, 16 }
 0x3bf   : > { %1966 = vrot.lane.b32.xlu1 %v1935_v11, %s3060_s7 }
 0x3c0   : > { %1980 = vrot.lane.b32.xlu2 %v4995_v62, %s3061_s8 }
 0x3c1   : > { %v1953_v16 = vpop.permute.xlu1 %1952 }
 0x3c2   : > { %v5651_v54 = vpop.permute.xlu2 %1998  ;;  %1982 = vrot.lane.b32.xlu0 %v5013_v31, %s3061_s8 }
 0x3c3   : > { %v2542_v3 = vld.sshfl [vmem:[#allocation1] sm:$0xff pattern:$0x73625140]  ;;  %v2543_v61 = vld.sshfl [vmem:[#allocation1 + $0x8] sm:$0xff pattern:$0x73625140] }
 0x3c4   : > { %2707 = vmatmul.bf16.vlgmr.msra.gmra.mxu0 %v2542_v3  ;;  %2979 = vmatmul.msk.bf16.vlgmr.msra.gmra.mxu1 %vm1584_vm12, %v2543_v61  ;;  %v5656_v37 = vpop.permute.xlu0 %1956 }
 0x3c7   : > { %1984 = vrot.lane.b32.xlu1 %v5042_v25, %s3061_s8 }
 0x3c8   : > { %1986 = vrot.lane.b32.xlu2 %v5598_v18, %s3061_s8  ;;  %s5831_s8 = scalar_lea.vmem %s5926_s4, %s2985_s20  ;;  %s2914_s20 = sshll.u32 %s6583_s19, 1 }
 0x3c9   : > { %v1959_v62 = vpop.permute.xlu1 %1958 }
 0x3ca   : > { %v2045_v6 = vpop.permute.xlu2 %2044  ;;  %2002 = vrot.lane.b32.xlu0 %v5563_v2, %s3062_s9  ;;  %v2020_v2 = vshrl.u32 %v5668_v57, 16 }
 0x3cc   : > { %v1975_v27 = vpop.permute.xlu0 %1974  ;;  %v2022_v8 = vrot.slane %v2020_v2, 7 }
 0x3cd   : > { %v2259_v46 = vsel %vm1419_vm7, %v2233_v49, %v1975_v27 }
 0x3cf   : > { %2004 = vrot.lane.b32.xlu1 %v5576_v12, %s3062_s9 }
 0x3d0   : > { %2006 = vrot.lane.b32.xlu2 %v5596_v58, %s3062_s9 }
 0x3d1   : > { %v1977_v30 = vpop.permute.xlu1 %1976 }
 0x3d2   : > { %v5672_v48 = vpop.permute.xlu2 %2066  ;;  %2008 = vrot.lane.b32.xlu0 %v5666_v4, %s3062_s9 }
 0x3d4   : > { %v1995_v29 = vpop.permute.xlu0 %1994 }
 0x3d7   : > { %2050 = vrot.lane.b32.xlu1 %v5076_v41, %s3063_s10  ;;  %v2025_v41 = vor.u32 %v2023_v32, %v2022_v8  ;;  %v6561_v8 = vld [vmem:[#allocation70_spill] sm:$0xff] }
 0x3d8   : > { %2052 = vrot.lane.b32.xlu2 %v5092_v33, %s3063_s10  ;;  %v2231_v33 = vsel %vm1386_vm6, %v2199_v35, %v1953_v16 }
 0x3d9   : > { %v1997_v23 = vpop.permute.xlu1 %1996 }
 0x3da   : > { %v2285_v56 = vsel %vm1452_vm8, %v2259_v46, %v1997_v23  ;;  %v2091_v63 = vpop.permute.xlu2 %2090  ;;  %2054 = vrot.lane.b32.xlu0 %v1935_v11, %s3063_s10  ;;  %v2257_v11 = vsel %vm1419_vm7, %v2231_v33, %v5611_v60  ;;  %v6560_v60 = vld [vmem:[#allocation184_spill] sm:$0xff]  ;;  %v2205_v23 = vsel %vm1353_vm5, %v5345_v59, %v5646_v52  ;;  %v6563_v33 = vld [vmem:[#allocation98_spill] sm:$0xff] }
 0x3db   : > { %v2317_v9 = vsel %vm1485_vm9, %v2285_v56, %v2045_v6  ;;  %v2283_v42 = vsel %vm1452_vm8, %v2257_v11, %v1995_v29 }
 0x3dc   : > { %v2343_v45 = vsel %vm1518_vm10, %v2317_v9, %v6557_v21  ;;  %v2001_v51 = vpop.permute.xlu0 %2000  ;;  %v6562_v9 = vld [vmem:[#allocation68_spill] sm:$0xff] }
 0x3dd   : > { %v2369_v28 = vsel %vm1551_vm11, %v2343_v45, %v6558_v50  ;;  %v2078_v50 = vrot.slane %v2023_v32, 1 }
 0x3de   : > { %v2438_v3 = vshll.u32 %v2369_v28, 16  ;;  %v2436_v61 = vshrl.u32 %v2369_v28, 16 }
 0x3df   : > { %2056 = vrot.lane.b32.xlu1 %v2025_v41, %s3063_s10 }
 0x3e0   : > { %v2440_v43 = vrot.slane %v2438_v3, 1  ;;  %2070 = vrot.lane.b32.xlu2 %v5013_v31, %s3064_s11  ;;  %v2141_v31 = vsel %vm1287_vm3, %v6561_v8, %v5251_v14  ;;  %v2237_v14 = vsel %vm1386_vm6, %v2205_v23, %v1959_v62  ;;  %vm2815_vm3 = vcmask 1040384  }
 0x3e1   : > { %v2043_v38 = vpop.permute.xlu1 %2042  ;;  %v2169_v41 = vsel %vm1320_vm4, %v2141_v31, %v6562_v9 }
 0x3e2   : > { %v2441_v0 = vor.u32 %v2440_v43, %v2436_v61  ;;  %v2315_v16 = vsel %vm1485_vm9, %v2283_v42, %v2043_v38  ;;  %v1947_v6 = vpop.permute.xlu2 %1946  ;;  %2072 = vrot.lane.b32.xlu0 %v5042_v25, %s3064_s11  ;;  %v2195_v62 = vsel %vm1353_vm5, %v2169_v41, %v6563_v33 }
 0x3e3   : > { %v2342_v47 = vsel %vm1518_vm10, %v2315_v16, %v6559_v55 }
 0x3e4   : > { %v2487_v27 = vrot.slane %v2441_v0, 6  ;;  %v2368_v5 = vsel %vm1551_vm11, %v2342_v47, %v6560_v60  ;;  %v2047_v49 = vpop.permute.xlu0 %2046  ;;  %v6566_v47 = vld [vmem:[#allocation176_spill] sm:$0xff] }
 0x3e5   : > { %v2432_v29 = vshll.u32 %v2368_v5, 16  ;;  %v2430_v56 = vshrl.u32 %v2368_v5, 16 }
 0x3e6   : > { %v2514_v46 = vsel %vm2494_vm1, %v5103_v40, %v2487_v27  ;;  %v2235_v40 = vsel %vm1386_vm6, %v5521_v20, %v5656_v37  ;;  %v2225_v20 = vsel %vm1386_vm6, %v2195_v62, %v1947_v6  ;;  %v6565_v6 = vld [vmem:[#allocation148_spill] sm:$0xff] }
 0x3e7   : > { %2547 = vst [vmem:[#allocation1 + $0x1] ss:$4 sm:$0xff] %v2514_v46  ;;  %v2434_v25 = vrot.slane %v2432_v29, 1  ;;  %2074 = vrot.lane.b32.xlu1 %v5598_v18, %s3064_s11  ;;  %v2261_v52 = vsel %vm1419_vm7, %v2235_v40, %v1977_v30  ;;  %v2263_v18 = vsel %vm1419_vm7, %v2237_v14, %v5641_v22 }
 0x3e8   : > { %2076 = vrot.lane.b32.xlu2 %v5668_v57, %s3064_s11  ;;  %v2289_v28 = vsel %vm1452_vm8, %v2263_v18, %v2001_v51  ;;  %v2287_v30 = vsel %vm1452_vm8, %v2261_v52, %v5651_v54  ;;  %s235_s11 = scalar_lea.vmem %s5927_s5, %s2914_s20 }
 0x3e9   : > { %v2435_v35 = vor.u32 %v2434_v25, %v2430_v56  ;;  %v2049_v59 = vpop.permute.xlu1 %2048  ;;  %v2319_v11 = vsel %vm1485_vm9, %v2287_v30, %v2047_v49 }
 0x3ea   : > { %v5732_v21 = vpop.permute.xlu2 %1970  ;;  %2092 = vrot.lane.b32.xlu0 %v5576_v12, %s3065_s12  ;;  %v2321_v22 = vsel %vm1485_vm9, %v2289_v28, %v2049_v59  ;;  %v6564_v12 = vld [vmem:[#allocation121_spill] sm:$0xff]  ;;  %v2345_v42 = vsel %vm1518_vm10, %v2319_v11, %v5672_v48  ;;  %v6567_v48 = vld [vmem:[#allocation182_spill] sm:$0xff] }
 0x3eb   : > { %v2486_v45 = vrot.slane %v2435_v35, 6  ;;  %v2253_v32 = vsel %vm1419_vm7, %v2225_v20, %v6564_v12 }
 0x3ec   : > { %v2069_v3 = vpop.permute.xlu0 %2068 }
 0x3ed   : > { %v2512_v37 = vsel %vm2494_vm1, %v5147_v15, %v2486_v45  ;;  %v2347_v61 = vsel %vm1518_vm10, %v2321_v22, %v2069_v3  ;;  %v2079_v15 = vor.u32 %v2078_v50, %v2020_v2  ;;  %v6569_v3 = vld [vmem:[#allocation80_spill] sm:$0xff] }
 0x3ee   : > { %2546 = vst [vmem:[#allocation1] ss:$4 sm:$0xff] %v2512_v37  ;;  %v2373_v51 = vsel %vm1551_vm11, %v2347_v61, %v2091_v63  ;;  %v6568_v37 = vld [vmem:[#allocation81_spill] sm:$0xff]  ;;  %v2170_v11 = vsel %vm1320_vm4, %v5262_v26, %v6569_v3  ;;  %v6570_v61 = vld [vmem:[#allocation175_spill] sm:$0xff] }
 0x3ef   : > { %2094 = vrot.lane.b32.xlu1 %v5596_v58, %s3065_s12  ;;  %v2450_v54 = vshll.u32 %v2373_v51, 16  ;;  %v2448_v38 = vshrl.u32 %v2373_v51, 16  ;;  %v2279_v58 = vsel %vm1452_vm8, %v2253_v32, %v6565_v6  ;;  %v6571_v32 = vld [vmem:[#allocation188_spill] sm:$0xff]  ;;  %v6572_v51 = vld [vmem:[#allocation90_spill] sm:$0xff] }
 0x3f0   : > { %2096 = vrot.lane.b32.xlu2 %v5666_v4, %s3065_s12  ;;  %v6574_v6 = vld [vmem:[#allocation130_spill] sm:$0xff] }
 0x3f1   : > { %v2089_v43 = vpop.permute.xlu1 %2088  ;;  %v2452_v0 = vrot.slane %v2450_v54, 1 }
 0x3f2   : > { %v2371_v16 = vsel %vm1551_vm11, %v2345_v42, %v2089_v43  ;;  %v2037_v55 = vpop.permute.xlu2 %2036  ;;  %2098 = vrot.lane.b32.xlu0 %v2079_v15, %s3065_s12 }
 0x3f3   : > { %v2444_v63 = vshll.u32 %v2371_v16, 16  ;;  %v2309_v57 = vsel %vm1485_vm9, %v2279_v58, %v2037_v55  ;;  %v2453_v2 = vor.u32 %v2452_v0, %v2448_v38  ;;  %v2442_v27 = vshrl.u32 %v2371_v16, 16 }
 0x3f4   : > { %v2337_v4 = vsel %vm1518_vm10, %v2309_v57, %v6566_v47  ;;  %v1903_v8 = vpop.permute.xlu0 %1902  ;;  %v6575_v57 = vld [vmem:[#allocation129_spill] sm:$0xff] }
 0x3f5   : > { %v2446_v60 = vrot.slane %v2444_v63, 1  ;;  %v2363_v5 = vsel %vm1551_vm11, %v2337_v4, %v6567_v48  ;;  %v2489_v31 = vrot.slane %v2453_v2, 6 }
 0x3f6   : > { %v2414_v29 = vshll.u32 %v2363_v5, 16  ;;  %v2412_v23 = vshrl.u32 %v2363_v5, 16  ;;  %v6577_v5 = vld [vmem:[#allocation149_spill] sm:$0xff] }
 0x3f7   : > { %v2447_v49 = vor.u32 %v2446_v60, %v2442_v27  ;;  %v2518_v46 = vsel %vm2494_vm1, %v5164_v1, %v2489_v31  ;;  %v2194_v1 = vsel %vm1353_vm5, %v5319_v36, %v1903_v8  ;;  %v2171_v36 = vsel %vm1320_vm4, %v5211_v10, %v6568_v37  ;;  %v6573_v10 = vld [vmem:[#allocation99_spill] sm:$0xff]  ;;  %v6576_v27 = vld [vmem:[#allocation141_spill] sm:$0xff] }
 0x3f8   : > { %v2416_v56 = vrot.slane %v2414_v29, 1  ;;  %2549 = vst [vmem:[#allocation1 + $0x3] ss:$4 sm:$0xff] %v2518_v46  ;;  %v2197_v15 = vsel %vm1353_vm5, %v2171_v36, %v6572_v51  ;;  %v2196_v42 = vsel %vm1353_vm5, %v2170_v11, %v6573_v10 }
 0x3f9   : > { %v2488_v25 = vrot.slane %v2447_v49, 6  ;;  %v1945_v9 = vpop.permute.xlu1 %1944 }
 0x3fa   : > { %v2417_v41 = vor.u32 %v2416_v56, %v2412_v23  ;;  %v2063_v14 = vpop.permute.xlu2 %2062  ;;  %v2223_v33 = vsel %vm1386_vm6, %v2194_v1, %v1945_v9 }
 0x3fb   : > { %v2516_v40 = vsel %vm2494_vm1, %v5155_v19, %v2488_v25  ;;  %v2252_v28 = vsel %vm1419_vm7, %v2223_v33, %v5732_v21 }
 0x3fc   : > { %2548 = vst [vmem:[#allocation1 + $0x2] ss:$4 sm:$0xff] %v2516_v40  ;;  %v2483_v35 = vrot.slane %v2417_v41, 6  ;;  %v1949_v59 = vpop.permute.xlu0 %1948 }
 0x3fd   : > { %v2227_v0 = vsel %vm1386_vm6, %v2196_v42, %v1949_v59 }
 0x3fe   : > { %v2506_v52 = vsel %vm2494_vm1, %v5130_v24, %v2483_v35  ;;  %v2254_v2 = vsel %vm1419_vm7, %v2227_v0, %v6575_v57 }
 0x3ff   : > { %2537 = vst [vmem:[#allocation1 + $0x21] ss:$4 sm:$0xff] %v2506_v52  ;;  %v2280_v8 = vsel %vm1452_vm8, %v2254_v2, %v6577_v5 }
 0x401   : > { %v1951_v18 = vpop.permute.xlu1 %1950 }
 0x402   : > { %v2087_v45 = vpop.permute.xlu2 %2086  ;;  %v2229_v38 = vsel %vm1386_vm6, %v2197_v15, %v1951_v18 }
 0x403   : > { %v2554_v62 = vld.sshfl [vmem:[#allocation1] sm:$0xff pattern:$0x73625140]  ;;  %v2555_v50 = vld.sshfl [vmem:[#allocation1 + $0x8] sm:$0xff pattern:$0x73625140]  ;;  %v2255_v58 = vsel %vm1419_vm7, %v2229_v38, %v6574_v6 }
 0x404   : > { %2717 = vmatmul.bf16.vlgmr.msra.gmra.mxu2 %v2554_v62  ;;  %2981 = vmatmul.msk.bf16.vlgmr.msra.gmra.mxu3 %vm1584_vm12, %v2555_v50  ;;  %v1993_v19 = vpop.permute.xlu0 %1992  ;;  %v2281_v60 = vsel %vm1452_vm8, %v2255_v58, %v6576_v27 }
 0x405   : > { %v2278_v20 = vsel %vm1452_vm8, %v2252_v28, %v1993_v19 }
 0x409   : > { %v2035_v24 = vpop.permute.xlu1 %2034 }
 0x40a   : > { %v2307_v30 = vsel %vm1485_vm9, %v2278_v20, %v2035_v24  ;;  %v5786_v22 = vpop.permute.xlu2 %1916 }
 0x40b   : > { %v2336_v12 = vsel %vm1518_vm10, %v2307_v30, %v6570_v61  ;;  %v2211_v5 = vsel %vm1353_vm5, %v5388_v13, %v5786_v22 }
 0x40c   : > { %v2362_v21 = vsel %vm1551_vm11, %v2336_v12, %v6571_v32  ;;  %v2039_v43 = vpop.permute.xlu0 %2038 }
 0x40d   : > { %v2408_v54 = vshll.u32 %v2362_v21, 16  ;;  %v2406_v16 = vshrl.u32 %v2362_v21, 16  ;;  %v2311_v49 = vsel %vm1485_vm9, %v2280_v8, %v2039_v43 }
 0x40e   : > { %v2339_v9 = vsel %vm1518_vm10, %v2311_v49, %v2063_v14 }
 0x40f   : > { %v2410_v26 = vrot.slane %v2408_v54, 1 }
 0x411   : > { %v2411_v55 = vor.u32 %v2410_v26, %v2406_v16  ;;  %v2041_v63 = vpop.permute.xlu1 %2040 }
 0x412   : > { %v5805_v47 = vpop.permute.xlu2 %1962  ;;  %v2313_v31 = vsel %vm1485_vm9, %v2281_v60, %v2041_v63 }
 0x413   : > { %v2482_v4 = vrot.slane %v2411_v55, 6 }
 0x414   : > { %v2065_v29 = vpop.permute.xlu0 %2064 }
 0x415   : > { %v2504_v48 = vsel %vm2494_vm1, %v5122_v44, %v2482_v4  ;;  %v2341_v46 = vsel %vm1518_vm10, %v2313_v31, %v2065_v29 }
 0x416   : > { %2535 = vst [vmem:[#allocation1 + $0x20] ss:$4 sm:$0xff] %v2504_v48  ;;  %v2367_v23 = vsel %vm1551_vm11, %v2341_v46, %v2087_v45 }
 0x417   : > { %v2426_v56 = vshll.u32 %v2367_v23, 16  ;;  %v2424_v41 = vshrl.u32 %v2367_v23, 16 }
 0x419   : > { %v2085_v25 = vpop.permute.xlu1 %2084  ;;  %v2428_v40 = vrot.slane %v2426_v56, 1 }
 0x41a   : > { %v2365_v44 = vsel %vm1551_vm11, %v2339_v9, %v2085_v25  ;;  %v1981_v52 = vpop.permute.xlu2 %1980 }
 0x41b   : > { %v2420_v35 = vshll.u32 %v2365_v44, 16  ;;  %v2429_v59 = vor.u32 %v2428_v40, %v2424_v41  ;;  %v2418_v1 = vshrl.u32 %v2365_v44, 16 }
 0x41c   : > { %v1913_v33 = vpop.permute.xlu0 %1912 }
 0x41d   : > { %v2422_v18 = vrot.slane %v2420_v35, 1  ;;  %v2485_v62 = vrot.slane %v2429_v59, 6  ;;  %v2207_v8 = vsel %vm1353_vm5, %v5292_v53, %v1913_v33 }
 0x41f   : > { %v2423_v50 = vor.u32 %v2422_v18, %v2418_v1  ;;  %v2510_v19 = vsel %vm2494_vm1, %v5139_v39, %v2485_v62 }
 0x420   : > { %2541 = vst [vmem:[#allocation1 + $0x23] ss:$4 sm:$0xff] %v2510_v19 }
 0x421   : > { %v2484_v45 = vrot.slane %v2423_v50, 6  ;;  %v1915_v28 = vpop.permute.xlu1 %1914 }
 0x422   : > { %v5823_v24 = vpop.permute.xlu2 %1986  ;;  %v2209_v23 = vsel %vm1353_vm5, %v5362_v17, %v1915_v28 }
 0x423   : > { %v2508_v14 = vsel %vm2494_vm1, %v5086_v34, %v2484_v45  ;;  %v2241_v44 = vsel %vm1386_vm6, %v2209_v23, %v5805_v47 }
 0x424   : > { %2539 = vst [vmem:[#allocation1 + $0x22] ss:$4 sm:$0xff] %v2508_v14  ;;  %v1919_v20 = vpop.permute.xlu0 %1918 }
 0x425   : > { %v2213_v17 = vsel %vm1353_vm5, %v5310_v7, %v1919_v20 }
 0x429   : > { %v1961_v37 = vpop.permute.xlu1 %1960 }
 0x42a   : > { %v2007_v11 = vpop.permute.xlu2 %2006  ;;  %v2239_v29 = vsel %vm1386_vm6, %v2207_v8, %v1961_v37 }
 0x42b   : > { %v2544_v36 = vld.sshfl [vmem:[#allocation1 + $0x20] sm:$0xff pattern:$0x73625140]  ;;  %v2545_v30 = vld.sshfl [vmem:[#allocation1 + $0x28] sm:$0xff pattern:$0x73625140]  ;;  %v2265_v56 = vsel %vm1419_vm7, %v2239_v29, %v1981_v52 }
 0x42c   : > { %2712 = vmatmul.bf16.gmra.mxu0 %v2544_v36  ;;  %2980 = vmatmul.msk.bf16.gmra.mxu1 %vm1584_vm12, %v2545_v30  ;;  %v1965_v3 = vpop.permute.xlu0 %1964 }
 0x42d   : > { %v2243_v31 = vsel %vm1386_vm6, %v2211_v5, %v1965_v3 }
 0x431   : > { %v1967_v39 = vpop.permute.xlu1 %1966 }
 0x432   : > { %v2053_v32 = vpop.permute.xlu2 %2052  ;;  %v2245_v1 = vsel %vm1386_vm6, %v2213_v17, %v1967_v39 }
 0x433   : > { %v2271_v28 = vsel %vm1419_vm7, %v2245_v1, %v5823_v24 }
 0x434   : > { %v1983_v61 = vpop.permute.xlu0 %1982 }
 0x435   : > { %v2267_v59 = vsel %vm1419_vm7, %v2241_v44, %v1983_v61 }
 0x439   : > { %v1985_v12 = vpop.permute.xlu1 %1984 }
 0x43a   : > { %v2071_v43 = vpop.permute.xlu2 %2070  ;;  %v2269_v49 = vsel %vm1419_vm7, %v2243_v31, %v1985_v12 }
 0x43b   : > { %v2295_v25 = vsel %vm1452_vm8, %v2269_v49, %v2007_v11 }
 0x43c   : > { %v2003_v21 = vpop.permute.xlu0 %2002 }
 0x43d   : > { %v2291_v13 = vsel %vm1452_vm8, %v2265_v56, %v2003_v21 }
 0x441   : > { %v2005_v51 = vpop.permute.xlu1 %2004  ;;  %v2708_v34 = vpop.f32.mrf.mxu0 }
 0x442   : > { %v2737_v15 = vpop.f32.mrf.mxu1  ;;  %v2077_v2 = vpop.permute.xlu2 %2076  ;;  %v2293_v18 = vsel %vm1452_vm8, %v2267_v59, %v2005_v51  ;;  %v6578_v51 = vld [vmem:[#allocation113_spill] sm:$0xff] }
 0x443   : > { %v2738_v54 = vadd.f32 %v2737_v15, %v2708_v34  ;;  %v2325_v7 = vsel %vm1485_vm9, %v2293_v18, %v2053_v32 }
 0x444   : > { %v2009_v10 = vpop.permute.xlu0 %2008 }
 0x445   : > { %2757 = vst.msk [vmem:[%s5831_s8] sm:$0xff] %vm1238_vm2, %v2738_v54  ;;  %v2786_v16 = vmul.f32 %v2738_v54, %v2738_v54  ;;  %v2765_v6 = vsel %vm1238_vm2, %v2738_v54, 0.0  ;;  %v2297_v20 = vsel %vm1452_vm8, %v2271_v28, %v2009_v10 }
 0x447   : > { %v2794_v4 = vsel %vm1238_vm2, %v2786_v16, 0.0 }
 0x449   : > { %v2051_v42 = vpop.permute.xlu1 %2050  ;;  %v2710_v38 = vpop.f32.mrf.mxu0 }
 0x44a   : > { %v2739_v0 = vpop.f32.mrf.mxu1  ;;  %v2097_v9 = vpop.permute.xlu2 %2096  ;;  %v2323_v41 = vsel %vm1485_vm9, %v2291_v13, %v2051_v42  ;;  %v6579_v42 = vld [vmem:[#allocation60_spill] sm:$0xff] }
 0x44b   : > { %v2740_v26 = vadd.f32 %v2739_v0, %v2710_v38  ;;  %v2349_v33 = vsel %vm1518_vm10, %v2323_v41, %v2071_v43 }
 0x44c   : > { %v2055_v63 = vpop.permute.xlu0 %2054 }
 0x44d   : > { %2758 = vst.msk [vmem:[%s5831_s8 + $0x8] sm:$0xff] %vm1238_vm2, %v2740_v26  ;;  %v2766_v58 = vsel %vm1238_vm2, %v2740_v26, 0.0  ;;  %v2787_v55 = vmul.f32 %v2740_v26, %v2740_v26  ;;  %v2327_v22 = vsel %vm1485_vm9, %v2295_v25, %v2055_v63 }
 0x44e   : > { %v5839_v57 = vadd.f32 %v2766_v58, %v2765_v6 }
 0x44f   : > { %v2795_v27 = vsel %vm1238_vm2, %v2787_v55, 0.0  ;;  %v6580_v55 = vld [vmem:[#allocation86_spill] sm:$0xff] }
 0x450   : > { %v5843_v60 = vadd.f32 %v2795_v27, %v2794_v4  ;;  %v6581_v27 = vld [vmem:[#allocation77_spill] sm:$0xff] }
 0x451   : > { %v2057_v48 = vpop.permute.xlu1 %2056 }
 0x452   : > { %v2329_v11 = vsel %vm1485_vm9, %v2297_v20, %v2057_v48 }
 0x453   : > { %v2355_v32 = vsel %vm1518_vm10, %v2329_v11, %v2077_v2 }
 0x454   : > { %v2073_v46 = vpop.permute.xlu0 %2072 }
 0x455   : > { %v2351_v37 = vsel %vm1518_vm10, %v2325_v7, %v2073_v46 }
 0x459   : > { %v2075_v53 = vpop.permute.xlu1 %2074 }
 0x45a   : > { %v2353_v40 = vsel %vm1518_vm10, %v2327_v22, %v2075_v53 }
 0x45b   : > { %v2379_v35 = vsel %vm1551_vm11, %v2353_v40, %v2097_v9 }
 0x45c   : > { %v2468_v52 = vshll.u32 %v2379_v35, 16  ;;  %v2093_v62 = vpop.permute.xlu0 %2092  ;;  %v2466_v50 = vshrl.u32 %v2379_v35, 16 }
 0x45d   : > { %v2375_v45 = vsel %vm1551_vm11, %v2349_v33, %v2093_v62 }
 0x45e   : > { %v2470_v19 = vrot.slane %v2468_v52, 1  ;;  %v2456_v47 = vshll.u32 %v2375_v45, 16  ;;  %v2454_v36 = vshrl.u32 %v2375_v45, 16 }
 0x460   : > { %v2471_v14 = vor.u32 %v2470_v19, %v2466_v50  ;;  %v2458_v30 = vrot.slane %v2456_v47, 1 }
 0x461   : > { %v2095_v3 = vpop.permute.xlu1 %2094 }
 0x462   : > { %v2492_v39 = vrot.slane %v2471_v14, 6  ;;  %v2377_v61 = vsel %vm1551_vm11, %v2351_v37, %v2095_v3  ;;  %v2459_v12 = vor.u32 %v2458_v30, %v2454_v36 }
 0x463   : > { %v2462_v21 = vshll.u32 %v2377_v61, 16  ;;  %v2460_v15 = vshrl.u32 %v2377_v61, 16 }
 0x464   : > { %v2524_v24 = vsel %vm2494_vm1, %v6578_v51, %v2492_v39  ;;  %v2490_v34 = vrot.slane %v2459_v12, 6  ;;  %v2099_v43 = vpop.permute.xlu0 %2098 }
 0x465   : > { %2552 = vst [vmem:[#allocation1 + $0x22] ss:$4 sm:$0xff] %v2524_v24  ;;  %v2464_v54 = vrot.slane %v2462_v21, 1  ;;  %v2381_v10 = vsel %vm1551_vm11, %v2355_v32, %v2099_v43 }
 0x466   : > { %v2520_v38 = vsel %vm2494_vm1, %v6579_v42, %v2490_v34  ;;  %v2474_v16 = vshll.u32 %v2381_v10, 16  ;;  %v2472_v6 = vshrl.u32 %v2381_v10, 16 }
 0x467   : > { %v2465_v0 = vor.u32 %v2464_v54, %v2460_v15  ;;  %2550 = vst [vmem:[#allocation1 + $0x20] ss:$4 sm:$0xff] %v2520_v38 }
 0x468   : > { %v2476_v58 = vrot.slane %v2474_v16, 1 }
 0x469   : > { %v2491_v26 = vrot.slane %v2465_v0, 6 }
 0x46a   : > { %v2477_v2 = vor.u32 %v2476_v58, %v2472_v6 }
 0x46b   : > { %v2522_v63 = vsel %vm2494_vm1, %v6580_v55, %v2491_v26 }
 0x46c   : > { %2551 = vst [vmem:[#allocation1 + $0x21] ss:$4 sm:$0xff] %v2522_v63  ;;  %v2493_v4 = vrot.slane %v2477_v2, 6 }
 0x46e   : > { %v2526_v48 = vsel %vm2494_vm1, %v6581_v27, %v2493_v4 }
 0x46f   : > { %2553 = vst [vmem:[#allocation1 + $0x23] ss:$4 sm:$0xff] %v2526_v48 }
 0x476   : > { %v2556_v5 = vld.sshfl [vmem:[#allocation1 + $0x20] sm:$0xff pattern:$0x73625140]  ;;  %v2557_v8 = vld.sshfl [vmem:[#allocation1 + $0x28] sm:$0xff pattern:$0x73625140] }
 0x477   : > { %2722 = vmatmul.bf16.gmra.mxu2 %v2556_v5  ;;  %2982 = vmatmul.msk.bf16.gmra.mxu3 %vm1584_vm12, %v2557_v8 }
 0x487   : > { %v2718_v31 = vpop.f32.mrf.mxu2  ;;  %v2747_v29 = vpop.f32.mrf.mxu3 }
 0x488   : > { %v2748_v49 = vadd.f32 %v2747_v29, %v2718_v31 }
 0x48a   : > { %2761 = vst.msk [vmem:[%s5831_s8 + $0x20] sm:$0xff] %vm1238_vm2, %v2748_v49  ;;  %v2790_v52 = vmul.f32 %v2748_v49, %v2748_v49  ;;  %v2772_v62 = vsel %vm1238_vm2, %v2748_v49, 0.0 }
 0x48f   : > { %v2720_v46 = vpop.f32.mrf.mxu2  ;;  %v2749_v23 = vpop.f32.mrf.mxu3 }
 0x490   : > { %v2750_v56 = vadd.f32 %v2749_v23, %v2720_v46 }
 0x492   : > { %2762 = vst.msk [vmem:[%s5831_s8 + $0x28] sm:$0xff] %vm1238_vm2, %v2750_v56  ;;  %v2791_v50 = vmul.f32 %v2750_v56, %v2750_v56  ;;  %v2774_v47 = vsel %vm1238_vm2, %v2750_v56, 0.0 }
 0x494   : > { %v2803_v14 = vsel %vm1238_vm2, %v2791_v50, 0.0 }
 0x4a9   : > { %v2713_v25 = vpop.f32.mrf.mxu0  ;;  %v2742_v9 = vpop.f32.mrf.mxu1 }
 0x4aa   : > { %v2743_v13 = vadd.f32 %v2742_v9, %v2713_v25 }
 0x4ac   : > { %2759 = vst.msk [vmem:[%s5831_s8 + $0x10] sm:$0xff] %vm1238_vm2, %v2743_v13  ;;  %v2768_v22 = vsel %vm1238_vm2, %v2743_v13, 0.0  ;;  %v2788_v53 = vmul.f32 %v2743_v13, %v2743_v13 }
 0x4ad   : > { %v2769_v41 = vadd.f32 %v2768_v22, %v5839_v57 }
 0x4ae   : > { %v2797_v40 = vsel %vm1238_vm2, %v2788_v53, 0.0 }
 0x4af   : > { %v2798_v44 = vadd.f32 %v2797_v40, %v5843_v60  ;;  %v2801_v60 = vsel %vm1238_vm2, %v2790_v52, 0.0 }
 0x4b1   : > { %v2715_v35 = vpop.f32.mrf.mxu0  ;;  %v2744_v17 = vpop.f32.mrf.mxu1 }
 0x4b2   : > { %v2745_v59 = vadd.f32 %v2744_v17, %v2715_v35 }
 0x4b4   : > { %2760 = vst.msk [vmem:[%s5831_s8 + $0x18] sm:$0xff] %vm1238_vm2, %v2745_v59  ;;  %v2770_v1 = vsel %vm1238_vm2, %v2745_v59, 0.0  ;;  %v2789_v18 = vmul.f32 %v2745_v59, %v2745_v59 }
 0x4b5   : > { %v2771_v33 = vadd.f32 %v2770_v1, %v2769_v41 }
 0x4b6   : > { %v2799_v57 = vsel %vm1238_vm2, %v2789_v18, 0.0 }
 0x4b7   : > { %v2773_v19 = vadd.f32 %v2772_v62, %v2771_v33  ;;  %v2800_v45 = vadd.f32 %v2799_v57, %v2798_v44 }
 0x4b9   : > { %v2802_v28 = vadd.f32 %v2801_v60, %v2800_v45  ;;  %v2775_v7 = vadd.f32 %v2774_v47, %v2773_v19 }
 0x4bb   : > { %v2804_v20 = vadd.f32 %v2803_v14, %v2802_v28 }
 0x4fa   : > { %v2723_v37 = vpop.f32.mrf.mxu2  ;;  %v2752_v36 = vpop.f32.mrf.mxu3 }
 0x4fb   : > { %v2753_v30 = vadd.f32 %v2752_v36, %v2723_v37 }
 0x4fd   : > { %2763 = vst.msk [vmem:[%s5831_s8 + $0x30] sm:$0xff] %vm1238_vm2, %v2753_v30  ;;  %v2792_v3 = vmul.f32 %v2753_v30, %v2753_v30  ;;  %v2776_v11 = vsel %vm1238_vm2, %v2753_v30, 0.0 }
 0x4fe   : > { %v2777_v51 = vadd.f32 %v2776_v11, %v2775_v7 }
 0x4ff   : > { %v2805_v12 = vsel %vm1238_vm2, %v2792_v3, 0.0 }
 0x500   : > { %v2806_v34 = vadd.f32 %v2805_v12, %v2804_v20 }
 0x502   : > { %v2725_v39 = vpop.f32.mrf.mxu2  ;;  %v2754_v61 = vpop.f32.mrf.mxu3 }
 0x503   : > { %v2755_v21 = vadd.f32 %v2754_v61, %v2725_v39 }
 0x505   : > { %2764 = vst.msk [vmem:[%s5831_s8 + $0x38] sm:$0xff] %vm1238_vm2, %v2755_v21  ;;  %v2778_v24 = vsel %vm1238_vm2, %v2755_v21, 0.0  ;;  %v2793_v32 = vmul.f32 %v2755_v21, %v2755_v21 }
 0x506   : > { %v2779_v15 = vadd.f32 %v2778_v24, %v2777_v51 }
 0x507   : > { %v2807_v54 = vsel %vm1238_vm2, %v2793_v32, 0.0  ;;  %vm2817_vm2 = vcmask 58368  }
 0x508   : > { %v2780_v43 = vrot.slane %v2779_v15, 4  ;;  %v2808_v10 = vadd.f32 %v2807_v54, %v2806_v34 }
 0x50a   : > { %v2781_v42 = vadd.f32 %v2780_v43, %v2779_v15  ;;  %v2809_v38 = vrot.slane %v2808_v10, 4 }
 0x50c   : > { %v2782_v0 = vrot.slane %v2781_v42, 2  ;;  %v2810_v16 = vadd.f32 %v2809_v38, %v2808_v10 }
 0x50e   : > { %v2783_v26 = vadd.f32 %v2782_v0, %v2781_v42  ;;  %v2811_v6 = vrot.slane %v2810_v16, 2 }
 0x510   : > { %v2784_v58 = vrot.slane %v2783_v26, 1  ;;  %v2812_v55 = vadd.f32 %v2811_v6, %v2810_v16 }
 0x512   : > { %v2813_v63 = vrot.slane %v2812_v55, 1  ;;  %v2785_v2 = vadd.f32 %v2784_v58, %v2783_v26 }
 0x514   : > { %v2814_v4 = vadd.f32 %v2813_v63, %v2812_v55 }
 0x516   : > { %v2816_v27 = vsel %vm2815_vm3, %v2785_v2, %v2814_v4 }
 0x517   : > { %2818 = vst.msk [vmem:[%s235_s11] sm:$0x3] %vm2817_vm2, %v2816_v27 }
 0x518 PF: > { %s16_s18 = sadd.s32 1, %s3053_s18  }
 0x519   : > { %p13_p4 = scmp.ge.s32.totalorder %s16_s18, 4  }
 0x51b   :  { %15 = sbr.rel (!%p13_p4) target bundleno = 1 (0x1), region = 86 }

// kernel: down_forward.3
= control target key start
LH: loop header
LB: loop body
LE: loop exit
PB: predicated region body
PF: predicated region fallthrough
CT: control target
= control target key end

     0   :  { %s3586_s12 = smov 0   ;;  %s6544_s0 = inlined_call_operand.vmem [shape: f32[2,8,8,8,4], index: 0, kind: input, shape index: {}]   ;;  %s6545_s1 = inlined_call_operand.vmem [shape: bf16[128,8], index: 1, kind: input, shape index: {}]   ;;  %s6546_s2 = inlined_call_operand.vmem [shape: f32[2,64,8], index: 2, kind: output, shape index: {0}]   ;;  %s6547_s3 = inlined_call_operand.vmem [shape: f32[2,2,8], index: 3, kind: output, shape index: {1}]  }
   0x1 LB: > { %s3370_s13 = sadd.s32 4294967295, %s3547_s12   ;;  %p3374_p0 = scmp.ge.s32.totalorder %s3547_s12, 1  ;;  %s3547_s12 = sphi %s3586_s12, %s14_s12  }
   0x2   : > { %p140_p1 = scmp.lt.s32.totalorder %s3547_s12, 3 }
   0x4   : > { %p141_p2 = pnand %p3374_p0, %p140_p1 }
   0x6   : > { %144 = sbr.rel (%p141_p2) target bundleno = 1438 (0x59e), region = 28 }
   0xb   : > { %vm663_vm0 = vcmask 29696   ;;  %v3549_v0 = vmov 0.0   ;;  %p168_p3 = scmp.lt.s32.totalorder %s3370_s13, 1  ;;  %vm828_vm1 = vcmask 1041409   ;;  %vm830_vm2 = vcmask 1042434   ;;  %s3550_s18 = smov 8  }
   0xc   : > { %665 = vst.msk [vmem:[#allocation2 + $0x8] sm:$0x3f] %vm663_vm0, %v3549_v0  ;;  %vm832_vm3 = vcmask 1043459   ;;  %s3551_s19 = smov 4   ;;  %vm896_vm4 = vcmask 27648   ;;  %s3552_s20 = smov 12  }
   0xd   : > { %664 = vst.msk [vmem:[#allocation2] sm:$0x3f] %vm663_vm0, %v3549_v0  ;;  %s7330_s13 = smov (!%p168_p3, %s3370_s13), 1  ;;  %s3553_s21 = smov 16   ;;  %vm1787_vm5 = vcmask 31744   ;;  %vm1836_vm6 = vcmask 64512  }
   0xe   : > { %666 = vst.msk [vmem:[#allocation2 + $0x10] sm:$0x3f] %vm663_vm0, %v3549_v0  ;;  %s3482_s14 = sshll.u32 %s7330_s13, 9  ;;  %s3554_s22 = smov 20   ;;  %vm1869_vm7 = vcmask 97280   ;;  %vm1902_vm8 = vcmask 130048  }
   0xf   : > { %667 = vst.msk [vmem:[#allocation2 + $0x18] sm:$0x3f] %vm663_vm0, %v3549_v0  ;;  %s3612_s17 = scalar_lea.vmem %s6544_s0, %s3482_s14  ;;  %s3555_s23 = smov 24   ;;  %vm1935_vm9 = vcmask 162816   ;;  %vm6687_vm10 = vcmask 195584   ;;  %vm2001_vm11 = vcmask 228352  }
  0x10   : > { %668 = vst.msk [vmem:[#allocation2 + $0x20] sm:$0x3f] %vm663_vm0, %v3549_v0  ;;  %v187_v1 = vld [vmem:[%s3612_s17 + $0x20] sm:$0xff]  ;;  %v188_v2 = vld [vmem:[%s3612_s17 + $0x28] sm:$0xff]  ;;  %v3679_v37 = vld [vmem:[%s3612_s17 + $0x10] sm:$0xff]  ;;  %s3556_s24 = smov 28  }
  0x11   : > { %669 = vst.msk [vmem:[#allocation2 + $0x28] sm:$0x3f] %vm663_vm0, %v3549_v0  ;;  %v195_v3 = vld [vmem:[%s3612_s17 + $0x60] sm:$0xff]  ;;  %v196_v5 = vld [vmem:[%s3612_s17 + $0x68] sm:$0xff]  ;;  %v3682_v38 = vld [vmem:[%s3612_s17 + $0x50] sm:$0xff]  ;;  %s3557_s25 = smov 32  }
  0x12   : > { %670 = vst.msk [vmem:[#allocation2 + $0x30] sm:$0x3f] %vm663_vm0, %v3549_v0  ;;  %v251_v6 = vmax.f32 %v187_v1, %v195_v3  ;;  %v3623_v7 = vld [vmem:[%s3612_s17] sm:$0xff]  ;;  %v252_v10 = vmax.f32 %v188_v2, %v196_v5  ;;  %v3630_v11 = vld [vmem:[%s3612_s17 + $0x8] sm:$0xff]  ;;  %v249_v54 = vmax.f32 %v3679_v37, %v3682_v38  ;;  %s3558_s26 = smov 36   ;;  %s3559_s27 = smov 40  }
  0x13   : > { %v914_v4 = vld [vmem:[#allocation2 + $0x8] sm:$0x3f]  ;;  %671 = vst.msk [vmem:[#allocation2 + $0x38] sm:$0x3f] %vm663_vm0, %v3549_v0  ;;  %v3633_v12 = vld [vmem:[%s3612_s17 + $0x40] sm:$0xff]  ;;  %v3640_v15 = vld [vmem:[%s3612_s17 + $0x48] sm:$0xff] }
  0x14   : > { %v3625_v8 = vpack.c.bf16 %v914_v4, %v914_v4  ;;  %672 = vst.msk [vmem:[#allocation2 + $0x40] sm:$0x3f] %vm663_vm0, %v3549_v0  ;;  %v913_v9 = vld [vmem:[#allocation2] sm:$0x3f]  ;;  %v3647_v19 = vmax.f32 %v251_v6, %v252_v10  ;;  %v247_v22 = vmax.f32 %v3623_v7, %v3633_v12  ;;  %v248_v23 = vmax.f32 %v3630_v11, %v3640_v15  ;;  %s3560_s28 = smov 44   ;;  %s3561_s29 = smov 48  }
  0x15   : > { %673 = vst.msk [vmem:[#allocation2 + $0x48] sm:$0x3f] %vm663_vm0, %v3549_v0  ;;  %v3637_v13 = vpack.c.bf16 %v913_v9, %v913_v9  ;;  %v915_v14 = vld [vmem:[#allocation2 + $0x10] sm:$0x3f]  ;;  %s3562_s30 = smov 52   ;;  %s3563_s4 = smov 56  }
  0x16   : > { %6688 = vst [vmem:[#allocation3_spill] sm:$0xff] %v3625_v8  ;;  %v1002_v16 = vunpack.c.l.b16 %v3625_v8  ;;  %v3645_v17 = vpack.c.bf16 %v915_v14, %v915_v14  ;;  %v916_v18 = vld [vmem:[#allocation2 + $0x18] sm:$0x3f]  ;;  %v317_v26 = vrot.slane %v3647_v19, 2  ;;  %v318_v27 = vrot.slane %v3647_v19, 4  ;;  %v186_v14 = vld [vmem:[%s3612_s17 + $0x18] sm:$0xff] }
  0x17   : > { %6689 = vst [vmem:[#allocation4_spill] sm:$0xff] %v3637_v13  ;;  %v1001_v20 = vunpack.c.l.b16 %v3637_v13  ;;  %v3652_v21 = vpack.c.bf16 %v916_v18, %v916_v18  ;;  %v319_v31 = vrot.slane %v3647_v19, 6  ;;  %v3388_v32 = vrot.slane %v3647_v19, 9  ;;  %s3564_s5 = smov 60   ;;  %s3565_s6 = smov 64  }
  0x18   : > { %674 = vst.msk [vmem:[#allocation2 + $0x50] sm:$0x3f] %vm663_vm0, %v3549_v0  ;;  %v3658_v24 = vpack.c.b16 %v1002_v16, %v1002_v16  ;;  %v1003_v25 = vunpack.c.l.b16 %v3645_v17  ;;  %v3389_v49 = vrot.slane %v317_v26, 9  ;;  %v3390_v50 = vrot.slane %v318_v27, 9  ;;  %v194_v16 = vld [vmem:[%s3612_s17 + $0x58] sm:$0xff] }
  0x19   : > { %6690 = vst [vmem:[#allocation5_spill] sm:$0xff] %v3645_v17  ;;  %v1017_v28 = vpack.c.b16 %v1001_v20, %v1001_v20  ;;  %v919_v29 = vld [vmem:[#allocation2 + $0x30] sm:$0x3f]  ;;  %v1004_v30 = vunpack.c.l.b16 %v3652_v21  ;;  %v3391_v58 = vrot.slane %v319_v31, 9  ;;  %v607_v59 = vmax.f32 %v3647_v19, %v3388_v32 }
  0x1a   : > { %675 = vst.msk [vmem:[#allocation2 + $0x58] sm:$0x3f] %vm663_vm0, %v3549_v0  ;;  %v6565_v33 = vrot.slane %v3658_v24, 1  ;;  %v3673_v34 = vpack.c.bf16 %v919_v29, %v919_v29  ;;  %v3675_v35 = vpack.c.b16 %v1003_v25, %v1003_v25  ;;  %v1041_v36 = vshrl.u32 %v3658_v24, 16 }
  0x1b   : > { %6691 = vst [vmem:[#allocation6_spill] sm:$0xff] %v3652_v21  ;;  %v1177_v39 = vrot.slane %v1017_v28, 1  ;;  %v1034_v40 = vshrl.u32 %v1017_v28, 16  ;;  %v1036_v41 = vshll.u32 %v1017_v28, 16  ;;  %v1043_v42 = vshll.u32 %v3658_v24, 16 }
  0x1c   : > { %676 = vst.msk [vmem:[#allocation2 + $0x60] sm:$0x3f] %vm663_vm0, %v3549_v0  ;;  %1195 = vrot.lane.b32.xlu2 %v6565_v33, %s3550_s18  ;;  %v1005_v43 = vunpack.c.l.b16 %v3673_v34  ;;  %v1048_v44 = vshrl.u32 %v3675_v35, 16  ;;  %v1050_v45 = vshll.u32 %v3675_v35, 16  ;;  %v3695_v46 = vpack.c.b16 %v1004_v30, %v1004_v30 }
  0x1d   : > { %677 = vst.msk [vmem:[#allocation2 + $0x68] sm:$0x3f] %vm663_vm0, %v3549_v0  ;;  %1193 = vrot.lane.b32.xlu1 %v1177_v39, %s3550_s18  ;;  %v1038_v47 = vrot.slane %v1036_v41, 1  ;;  %v1045_v48 = vrot.slane %v1043_v42, 1  ;;  %v608_v2 = vmax.f32 %v317_v26, %v3389_v49  ;;  %v609_v3 = vmax.f32 %v318_v27, %v3390_v50 }
  0x1e   : > { %678 = vst.msk [vmem:[#allocation2 + $0x70] sm:$0x3f] %vm663_vm0, %v3549_v0  ;;  %v3702_v51 = vpack.c.b16 %v1005_v43, %v1005_v43  ;;  %v1052_v52 = vrot.slane %v1050_v45, 1  ;;  %v1057_v53 = vshll.u32 %v3695_v46, 16  ;;  %v1055_v1 = vshrl.u32 %v3695_v46, 16 }
  0x1f   : > { %6692 = vst [vmem:[#allocation7_spill] sm:$0xff] %v3673_v34  ;;  %v1039_v55 = vor.u32 %v1038_v47, %v1034_v40  ;;  %v3709_v56 = vor.u32 %v1045_v48, %v1041_v36  ;;  %v610_v4 = vmax.f32 %v319_v31, %v3391_v58  ;;  %v772_v9 = vperm.slane %v607_v59, 0  ;;  %v201_v47 = vld [vmem:[%s3612_s17 + $0x90] sm:$0xff]  ;;  %v202_v59 = vld [vmem:[%s3612_s17 + $0x98] sm:$0xff] }
  0x20   : > { %679 = vst.msk [vmem:[#allocation2 + $0x78] sm:$0x3f] %vm663_vm0, %v3549_v0  ;;  %v1062_v60 = vshrl.u32 %v3702_v51, 16  ;;  %v1064_v61 = vshll.u32 %v3702_v51, 16  ;;  %v3716_v62 = vor.u32 %v1052_v52, %v1048_v44  ;;  %v279_v10 = vmax.f32 %v247_v22, %v248_v23  ;;  %v209_v48 = vld [vmem:[%s3612_s17 + $0xd0] sm:$0xff] }
  0x21   : > { %680 = vst.msk [vmem:[#allocation2 + $0x80] sm:$0x3f] %vm663_vm0, %v3549_v0  ;;  %1145 = vrot.lane.b32.xlu0 %v1039_v55, %s3551_s19  ;;  %v1059_v18 = vrot.slane %v1057_v53, 1  ;;  %v773_v19 = vperm.slane %v608_v2, 0  ;;  %v774_v20 = vperm.slane %v609_v3, 0  ;;  %v775_v25 = vperm.slane %v610_v4, 0 }
  0x22   : > { %681 = vst.msk [vmem:[#allocation2 + $0x88] sm:$0x3f] %vm663_vm0, %v3549_v0  ;;  %v1066_v5 = vrot.slane %v1064_v61, 1  ;;  %v311_v11 = vrot.slane %v279_v10, 2  ;;  %v312_v15 = vrot.slane %v279_v10, 4  ;;  %v313_v22 = vrot.slane %v279_v10, 6 }
  0x23   : > { %682 = vst.msk [vmem:[#allocation2 + $0x90] sm:$0x3f] %vm663_vm0, %v3549_v0  ;;  %v925_v57 = vld [vmem:[#allocation2 + $0x60] sm:$0x3f]  ;;  %v837_v12 = vsel %vm828_vm1, %v773_v19, %v772_v9  ;;  %v3380_v23 = vrot.slane %v279_v10, 9  ;;  %v250_v28 = vmax.f32 %v186_v14, %v194_v16  ;;  %v3759_v36 = vor.u32 %v1059_v18, %v1055_v1  ;;  %v203_v14 = vld [vmem:[%s3612_s17 + $0xa0] sm:$0xff] }
  0x24   : > { %683 = vst.msk [vmem:[#allocation2 + $0x98] sm:$0x3f] %vm663_vm0, %v3549_v0  ;;  %v3718_v63 = vpack.c.bf16 %v925_v57, %v925_v57  ;;  %v3739_v26 = vor.u32 %v1066_v5, %v1062_v60  ;;  %v838_v32 = vsel %vm830_vm2, %v774_v20, %v837_v12  ;;  %v3381_v39 = vrot.slane %v311_v11, 9  ;;  %v210_v60 = vld [vmem:[%s3612_s17 + $0xd8] sm:$0xff]  ;;  %v211_v16 = vld [vmem:[%s3612_s17 + $0xe0] sm:$0xff] }
  0x25   : > { %684 = vst.msk [vmem:[#allocation2 + $0xa0] sm:$0x3f] %vm663_vm0, %v3549_v0  ;;  %1149 = vrot.lane.b32.xlu1 %v3716_v62, %s3551_s19  ;;  %v3382_v40 = vrot.slane %v312_v15, 9  ;;  %v3383_v41 = vrot.slane %v313_v22, 9  ;;  %v839_v44 = vsel %vm832_vm3, %v775_v25, %v838_v32  ;;  %v599_v45 = vmax.f32 %v279_v10, %v3380_v23  ;;  %v204_v25 = vld [vmem:[%s3612_s17 + $0xa8] sm:$0xff] }
  0x26   : > { %6693 = vst [vmem:[#allocation8_spill] sm:$0xff] %v3718_v63  ;;  %v1009_v6 = vunpack.c.l.b16 %v3718_v63  ;;  %1153 = vrot.lane.b32.xlu2 %v3739_v26, %s3551_s19  ;;  %v600_v49 = vmax.f32 %v311_v11, %v3381_v39  ;;  %v280_v58 = vmax.f32 %v249_v54, %v250_v28  ;;  %v257_v3 = vmax.f32 %v201_v47, %v209_v48  ;;  %v212_v11 = vld [vmem:[%s3612_s17 + $0xe8] sm:$0xff] }
  0x27   : > { %685 = vst.msk [vmem:[#allocation2 + $0xa8] sm:$0x3f] %vm663_vm0, %v3549_v0  ;;  %v601_v50 = vmax.f32 %v312_v15, %v3382_v40  ;;  %v602_v52 = vmax.f32 %v313_v22, %v3383_v41  ;;  %v764_v57 = vperm.slane %v599_v45, 0  ;;  %v258_v10 = vmax.f32 %v202_v59, %v210_v60 }
  0x28   : > { %686 = vst.msk [vmem:[#allocation2 + $0xb0] sm:$0x3f] %vm663_vm0, %v3549_v0  ;;  %v3741_v27 = vpack.c.b16 %v1009_v6, %v1009_v6  ;;  %v765_v61 = vperm.slane %v600_v49, 0  ;;  %v314_v37 = vrot.slane %v280_v58, 2  ;;  %v315_v38 = vrot.slane %v280_v58, 4 }
  0x29   : > { %687 = vst.msk [vmem:[#allocation2 + $0xb8] sm:$0x3f] %vm663_vm0, %v3549_v0  ;;  %1147 = vrot.lane.b32.xlu0 %v3709_v56, %s3551_s19  ;;  %v766_v1 = vperm.slane %v601_v50, 0  ;;  %v767_v2 = vperm.slane %v602_v52, 0  ;;  %v316_v6 = vrot.slane %v280_v58, 6  ;;  %v3384_v9 = vrot.slane %v280_v58, 9 }
  0x2a   : > { %688 = vst.msk [vmem:[#allocation2 + $0xc0] sm:$0x3f] %vm663_vm0, %v3549_v0  ;;  %v931_v7 = vld [vmem:[#allocation2 + $0x90] sm:$0x3f]  ;;  %v6563_v29 = vshrl.u32 %v3741_v27, 16  ;;  %v6553_v30 = vshll.u32 %v3741_v27, 16  ;;  %v829_v54 = vsel %vm828_vm1, %v765_v61, %v764_v57  ;;  %v284_v32 = vmax.f32 %v257_v3, %v258_v10 }
  0x2b   : > { %689 = vst.msk [vmem:[#allocation2 + $0xc8] sm:$0x3f] %vm663_vm0, %v3549_v0  ;;  %v3754_v31 = vpack.c.bf16 %v931_v7, %v931_v7  ;;  %v831_v19 = vsel %vm830_vm2, %v766_v1, %v829_v54  ;;  %v3385_v20 = vrot.slane %v314_v37, 9  ;;  %v3386_v7 = vrot.slane %v315_v38, 9  ;;  %v199_v57 = vld [vmem:[%s3612_s17 + $0x80] sm:$0xff]  ;;  %v200_v1 = vld [vmem:[%s3612_s17 + $0x88] sm:$0xff] }
  0x2c   : > { %690 = vst.msk [vmem:[#allocation2 + $0xd0] sm:$0x3f] %vm663_vm0, %v3549_v0  ;;  %v1094_v42 = vrot.slane %v6553_v30, 1  ;;  %v833_v15 = vsel %vm832_vm3, %v767_v2, %v831_v19  ;;  %v3387_v12 = vrot.slane %v316_v6, 9  ;;  %v603_v22 = vmax.f32 %v280_v58, %v3384_v9  ;;  %v207_v2 = vld [vmem:[%s3612_s17 + $0xc0] sm:$0xff]  ;;  %v208_v3 = vld [vmem:[%s3612_s17 + $0xc8] sm:$0xff] }
  0x2d   : > { %6694 = vst [vmem:[#allocation9_spill] sm:$0xff] %v3754_v31  ;;  %v1013_v43 = vunpack.c.l.b16 %v3754_v31  ;;  %1151 = vrot.lane.b32.xlu1 %v3759_v36, %s3551_s19  ;;  %v604_v28 = vmax.f32 %v314_v37, %v3385_v20  ;;  %v259_v39 = vmax.f32 %v203_v14, %v211_v16  ;;  %v605_v40 = vmax.f32 %v315_v38, %v3386_v7 }
  0x2e   : > { %691 = vst.msk [vmem:[#allocation2 + $0xd8] sm:$0x3f] %vm663_vm0, %v3549_v0  ;;  %v3777_v53 = vor.u32 %v1094_v42, %v6563_v29  ;;  %v606_v41 = vmax.f32 %v316_v6, %v3387_v12  ;;  %v260_v42 = vmax.f32 %v204_v25, %v212_v11  ;;  %v326_v45 = vrot.slane %v284_v32, 2 }
  0x2f   : > { %692 = vst.msk [vmem:[#allocation2 + $0xe0] sm:$0x3f] %vm663_vm0, %v3549_v0  ;;  %v3779_v55 = vpack.c.b16 %v1013_v43, %v1013_v43  ;;  %v769_v43 = vperm.slane %v604_v28, 0  ;;  %v327_v47 = vrot.slane %v284_v32, 4  ;;  %v770_v48 = vperm.slane %v605_v40, 0 }
  0x30   : > { %693 = vst.msk [vmem:[#allocation2 + $0xe8] sm:$0x3f] %vm663_vm0, %v3549_v0  ;;  %1161 = vrot.lane.b32.xlu2 %v3777_v53, %s3551_s19  ;;  %v771_v49 = vperm.slane %v606_v41, 0  ;;  %v3400_v50 = vrot.slane %v284_v32, 9  ;;  %v285_v52 = vmax.f32 %v259_v39, %v260_v42  ;;  %v3401_v59 = vrot.slane %v326_v45, 9 }
  0x31   : > { %694 = vst.msk [vmem:[#allocation2 + $0xf0] sm:$0x3f] %vm663_vm0, %v3549_v0  ;;  %v6551_v4 = vshrl.u32 %v3779_v55, 16  ;;  %v6550_v5 = vshll.u32 %v3779_v55, 16  ;;  %v3402_v60 = vrot.slane %v327_v47, 9  ;;  %v255_v25 = vmax.f32 %v199_v57, %v207_v2 }
  0x32   : > { %695 = vst.msk [vmem:[#allocation2 + $0xf8] sm:$0x3f] %vm663_vm0, %v3549_v0  ;;  %v619_v38 = vmax.f32 %v284_v32, %v3400_v50  ;;  %v329_v54 = vrot.slane %v285_v52, 2  ;;  %v330_v6 = vrot.slane %v285_v52, 4  ;;  %v620_v10 = vmax.f32 %v326_v45, %v3401_v59 }
  0x33   : > { %696 = vst.msk [vmem:[#allocation2 + $0x100] sm:$0x3f] %vm663_vm0, %v3549_v0  ;;  %v1122_v18 = vrot.slane %v6550_v5, 1  ;;  %v621_v14 = vmax.f32 %v327_v47, %v3402_v60  ;;  %v331_v20 = vrot.slane %v285_v52, 6  ;;  %v256_v11 = vmax.f32 %v200_v1, %v208_v3 }
  0x34   : > { %697 = vst.msk [vmem:[#allocation2 + $0x108] sm:$0x3f] %vm663_vm0, %v3549_v0  ;;  %v784_v19 = vperm.slane %v619_v38, 0  ;;  %v785_v12 = vperm.slane %v620_v10, 0  ;;  %v3404_v39 = vrot.slane %v285_v52, 9  ;;  %v3405_v40 = vrot.slane %v329_v54, 9 }
  0x35   : > { %698 = vst.msk [vmem:[#allocation2 + $0x110] sm:$0x3f] %vm663_vm0, %v3549_v0  ;;  %v3813_v23 = vor.u32 %v1122_v18, %v6551_v4  ;;  %v3406_v41 = vrot.slane %v330_v6, 9  ;;  %v283_v45 = vmax.f32 %v255_v25, %v256_v11  ;;  %v215_v25 = vld [vmem:[%s3612_s17 + $0x100] sm:$0xff]  ;;  %vm2034_vm12 = vcmask 261120  }
  0x36   : > { %699 = vst.msk [vmem:[#allocation2 + $0x118] sm:$0x3f] %vm663_vm0, %v3549_v0  ;;  %v768_v0 = vperm.slane %v603_v22, 0  ;;  %v786_v22 = vperm.slane %v621_v14, 0  ;;  %v846_v42 = vsel %vm828_vm1, %v785_v12, %v784_v19  ;;  %v223_v11 = vld [vmem:[%s3612_s17 + $0x140] sm:$0xff]  ;;  %vm6684_vm13 = vcmask 293888  }
  0x37   : > { %899 = vst.msk [vmem:[#allocation2 + $0x49] sm:$0xf] %vm896_vm4, %v839_v44  ;;  %1169 = vrot.lane.b32.xlu0 %v3813_v23, %s3551_s19  ;;  %v328_v44 = vrot.slane %v284_v32, 6  ;;  %v323_v2 = vrot.slane %v283_v45, 2  ;;  %v324_v19 = vrot.slane %v283_v45, 4  ;;  %vm2100_vm14 = vcmask 326656  }
  0x38   : > { %897 = vst.msk [vmem:[#allocation2 + $0x39] sm:$0xf] %vm896_vm4, %v833_v15  ;;  %v834_v58 = vsel %vm828_vm1, %v769_v43, %v768_v0  ;;  %v3407_v43 = vrot.slane %v331_v20, 9  ;;  %vm2133_vm15 = vcmask 359424   ;;  %vm2166_vm0 = vcmask 392192  }
  0x39   : > { %v3403_v61 = vrot.slane %v328_v44, 9  ;;  %v835_v37 = vsel %vm830_vm2, %v770_v48, %v834_v58  ;;  %v623_v48 = vmax.f32 %v285_v52, %v3404_v39  ;;  %v625_v58 = vmax.f32 %v330_v6, %v3406_v41  ;;  %v216_v39 = vld [vmem:[%s3612_s17 + $0x108] sm:$0xff] }
  0x3a   : > { %v836_v9 = vsel %vm832_vm3, %v771_v49, %v835_v37  ;;  %v624_v49 = vmax.f32 %v329_v54, %v3405_v40  ;;  %v626_v59 = vmax.f32 %v331_v20, %v3407_v43  ;;  %v325_v20 = vrot.slane %v283_v45, 6  ;;  %v224_v40 = vld [vmem:[%s3612_s17 + $0x148] sm:$0xff] }
  0x3b   : > { %v622_v16 = vmax.f32 %v328_v44, %v3403_v61  ;;  %898 = vst.msk [vmem:[#allocation2 + $0x41] sm:$0xf] %vm896_vm4, %v836_v9  ;;  %v847_v44 = vsel %vm830_vm2, %v786_v22, %v846_v42  ;;  %v788_v61 = vperm.slane %v623_v48, 0  ;;  %v790_v38 = vperm.slane %v625_v58, 0  ;;  %v218_v58 = vld [vmem:[%s3612_s17 + $0x118] sm:$0xff] }
  0x3c   : > { %v789_v1 = vperm.slane %v624_v49, 0  ;;  %v791_v54 = vperm.slane %v626_v59, 0  ;;  %v3398_v42 = vrot.slane %v324_v19, 9  ;;  %v3399_v43 = vrot.slane %v325_v20, 9 }
  0x3d   : > { %v787_v28 = vperm.slane %v622_v16, 0  ;;  %v263_v49 = vmax.f32 %v215_v25, %v223_v11 }
  0x3e   : > { %v922_v18 = vld [vmem:[#allocation2 + $0x48] sm:$0x3f]  ;;  %v849_v14 = vsel %vm828_vm1, %v789_v1, %v788_v61  ;;  %v617_v1 = vmax.f32 %v324_v19, %v3398_v42 }
  0x3f   : > { %v3827_v15 = vpack.c.bf16 %v922_v18, %v922_v18  ;;  %v920_v7 = vld [vmem:[#allocation2 + $0x38] sm:$0x3f]  ;;  %v848_v57 = vsel %vm832_vm3, %v787_v28, %v847_v44  ;;  %v850_v18 = vsel %vm830_vm2, %v790_v38, %v849_v14  ;;  %v3396_v28 = vrot.slane %v283_v45, 9  ;;  %v226_v38 = vld [vmem:[%s3612_s17 + $0x158] sm:$0xff] }
  0x40   : > { %v3829_v32 = vpack.c.bf16 %v920_v7, %v920_v7  ;;  %902 = vst.msk [vmem:[#allocation2 + $0x71] sm:$0xf] %vm896_vm4, %v848_v57  ;;  %v851_v22 = vsel %vm832_vm3, %v791_v54, %v850_v18  ;;  %v217_v57 = vld [vmem:[%s3612_s17 + $0x110] sm:$0xff]  ;;  %v266_v11 = vmax.f32 %v218_v58, %v226_v38  ;;  %v219_v58 = vld [vmem:[%s3612_s17 + $0x120] sm:$0xff] }
  0x41   : > { %6695 = vst [vmem:[#allocation10_spill] sm:$0xff] %v3827_v15  ;;  %v1008_v0 = vunpack.c.l.b16 %v3827_v15  ;;  %v615_v48 = vmax.f32 %v283_v45, %v3396_v28  ;;  %v221_v15 = vld [vmem:[%s3612_s17 + $0x130] sm:$0xff] }
  0x42   : > { %6696 = vst [vmem:[#allocation11_spill] sm:$0xff] %v3829_v32  ;;  %v1006_v47 = vunpack.c.l.b16 %v3829_v32  ;;  %v921_v37 = vld [vmem:[#allocation2 + $0x40] sm:$0x3f] }
  0x43   : > { %v3835_v50 = vpack.c.b16 %v1008_v0, %v1008_v0  ;;  %v3845_v10 = vpack.c.bf16 %v921_v37, %v921_v37  ;;  %903 = vst.msk [vmem:[#allocation2 + $0x79] sm:$0xf] %vm896_vm4, %v851_v22  ;;  %v3397_v0 = vrot.slane %v323_v2, 9  ;;  %v225_v37 = vld [vmem:[%s3612_s17 + $0x150] sm:$0xff] }
  0x44   : > { %v3838_v60 = vpack.c.b16 %v1006_v47, %v1006_v47 }
  0x45   : > { %v1083_v3 = vshrl.u32 %v3835_v50, 16  ;;  %v1085_v52 = vshll.u32 %v3835_v50, 16  ;;  %6697 = vst [vmem:[#allocation12_spill] sm:$0xff] %v3845_v10  ;;  %v1007_v12 = vunpack.c.l.b16 %v3845_v10  ;;  %v616_v61 = vmax.f32 %v323_v2, %v3397_v0 }
  0x46   : > { %v1069_v6 = vshrl.u32 %v3838_v60, 16  ;;  %v1071_v9 = vshll.u32 %v3838_v60, 16  ;;  %v4024_v31 = vrot.slane %v3838_v60, 1 }
  0x47   : > { %v1087_v16 = vrot.slane %v1085_v52, 1  ;;  %v3860_v44 = vpack.c.b16 %v1007_v12, %v1007_v12  ;;  %v927_v59 = vld [vmem:[#allocation2 + $0x70] sm:$0x3f]  ;;  %v264_v52 = vmax.f32 %v216_v39, %v224_v40  ;;  %v781_v14 = vperm.slane %v616_v61, 0  ;;  %v227_v61 = vld [vmem:[%s3612_s17 + $0x160] sm:$0xff] }
  0x48   : > { %v1073_v7 = vrot.slane %v1071_v9, 1  ;;  %v780_v9 = vperm.slane %v615_v48, 0 }
  0x49   : > { %v3855_v41 = vor.u32 %v1087_v16, %v1083_v3  ;;  %v618_v3 = vmax.f32 %v325_v20, %v3399_v43  ;;  %v1076_v54 = vshrl.u32 %v3860_v44, 16  ;;  %v1078_v45 = vshll.u32 %v3860_v44, 16 }
  0x4a   : > { %v3858_v47 = vor.u32 %v1073_v7, %v1069_v6  ;;  %v3872_v6 = vpack.c.bf16 %v927_v59, %v927_v59  ;;  %v782_v16 = vperm.slane %v617_v1, 0  ;;  %v287_v25 = vmax.f32 %v263_v49, %v264_v52  ;;  %v928_v0 = vld [vmem:[#allocation2 + $0x78] sm:$0x3f] }
  0x4b   : > { %1159 = vrot.lane.b32.xlu1 %v3855_v41, %s3551_s19  ;;  %v783_v18 = vperm.slane %v618_v3, 0  ;;  %v1080_v2 = vrot.slane %v1078_v45, 1  ;;  %v265_v20 = vmax.f32 %v217_v57, %v225_v37  ;;  %v843_v7 = vsel %vm828_vm1, %v781_v14, %v780_v9 }
  0x4c   : > { %1155 = vrot.lane.b32.xlu2 %v3858_v47, %s3551_s19  ;;  %6698 = vst [vmem:[#allocation13_spill] sm:$0xff] %v3872_v6  ;;  %v1011_v19 = vunpack.c.l.b16 %v3872_v6  ;;  %v335_v12 = vrot.slane %v287_v25, 2  ;;  %v336_v22 = vrot.slane %v287_v25, 4  ;;  %v337_v28 = vrot.slane %v287_v25, 6  ;;  %v229_v6 = vld [vmem:[%s3612_s17 + $0x170] sm:$0xff] }
  0x4d   : > { %v3876_v39 = vor.u32 %v1080_v2, %v1076_v54  ;;  %v844_v42 = vsel %vm830_vm2, %v782_v16, %v843_v7  ;;  %v3412_v43 = vrot.slane %v287_v25, 9  ;;  %v3881_v48 = vpack.c.bf16 %v928_v0, %v928_v0 }
  0x4e   : > { %v3878_v40 = vpack.c.b16 %v1011_v19, %v1011_v19  ;;  %v845_v49 = vsel %vm832_vm3, %v783_v18, %v844_v42  ;;  %v3413_v57 = vrot.slane %v335_v12, 9  ;;  %v3414_v59 = vrot.slane %v336_v22, 9 }
  0x4f   : > { %6699 = vst [vmem:[#allocation14_spill] sm:$0xff] %v3881_v48  ;;  %1157 = vrot.lane.b32.xlu0 %v3876_v39, %s3551_s19  ;;  %v3415_v52 = vrot.slane %v337_v28, 9  ;;  %v631_v37 = vmax.f32 %v287_v25, %v3412_v43  ;;  %v1012_v38 = vunpack.c.l.b16 %v3881_v48  ;;  %v288_v9 = vmax.f32 %v265_v20, %v266_v11  ;;  %v228_v20 = vld [vmem:[%s3612_s17 + $0x168] sm:$0xff] }
  0x50   : > { %v6549_v1 = vshrl.u32 %v3878_v40, 16  ;;  %v6548_v3 = vshll.u32 %v3878_v40, 16  ;;  %901 = vst.msk [vmem:[#allocation2 + $0x69] sm:$0xf] %vm896_vm4, %v845_v49  ;;  %v632_v54 = vmax.f32 %v335_v12, %v3413_v57  ;;  %v633_v45 = vmax.f32 %v336_v22, %v3414_v59  ;;  %v220_v22 = vld [vmem:[%s3612_s17 + $0x128] sm:$0xff] }
  0x51   : > { %v634_v16 = vmax.f32 %v337_v28, %v3415_v52  ;;  %v796_v18 = vperm.slane %v631_v37, 0  ;;  %v267_v2 = vmax.f32 %v219_v58, %v227_v61  ;;  %v3894_v19 = vpack.c.b16 %v1012_v38, %v1012_v38 }
  0x52   : > { %v1108_v14 = vrot.slane %v6548_v3, 1  ;;  %v797_v7 = vperm.slane %v632_v54, 0  ;;  %v798_v0 = vperm.slane %v633_v45, 0  ;;  %v338_v42 = vrot.slane %v288_v9, 2 }
  0x53   : > { %v799_v43 = vperm.slane %v634_v16, 0  ;;  %v339_v12 = vrot.slane %v288_v9, 4  ;;  %v340_v49 = vrot.slane %v288_v9, 6  ;;  %v6561_v11 = vshrl.u32 %v3894_v19, 16 }
  0x54   : > { %v3898_v25 = vor.u32 %v1108_v14, %v6549_v1  ;;  %v6552_v28 = vshll.u32 %v3894_v19, 16  ;;  %v855_v57 = vsel %vm828_vm1, %v797_v7, %v796_v18  ;;  %v3416_v59 = vrot.slane %v288_v9, 9 }
  0x55   : > { %v856_v58 = vsel %vm830_vm2, %v798_v0, %v855_v57  ;;  %v3417_v61 = vrot.slane %v338_v42, 9  ;;  %v3418_v52 = vrot.slane %v339_v12, 9  ;;  %v3419_v37 = vrot.slane %v340_v49, 9 }
  0x56   : > { %1165 = vrot.lane.b32.xlu1 %v3898_v25, %s3551_s19  ;;  %v1115_v38 = vrot.slane %v6552_v28, 1  ;;  %v857_v45 = vsel %vm832_vm3, %v799_v43, %v856_v58  ;;  %v635_v14 = vmax.f32 %v288_v9, %v3416_v59  ;;  %v268_v16 = vmax.f32 %v220_v22, %v228_v20 }
  0x57   : > { %v926_v54 = vld [vmem:[#allocation2 + $0x68] sm:$0x3f]  ;;  %905 = vst.msk [vmem:[#allocation2 + $0x99] sm:$0xf] %vm896_vm4, %v857_v45  ;;  %v636_v18 = vmax.f32 %v338_v42, %v3417_v61  ;;  %v637_v7 = vmax.f32 %v339_v12, %v3418_v52  ;;  %v638_v1 = vmax.f32 %v340_v49, %v3419_v37 }
  0x58   : > { %v3911_v3 = vpack.c.bf16 %v926_v54, %v926_v54  ;;  %v3916_v0 = vor.u32 %v1115_v38, %v6561_v11  ;;  %v800_v57 = vperm.slane %v635_v14, 0  ;;  %v289_v5 = vmax.f32 %v267_v2, %v268_v16  ;;  %v206_v11 = vld [vmem:[%s3612_s17 + $0xb8] sm:$0xff] }
  0x59   : > { %v801_v28 = vperm.slane %v636_v18, 0  ;;  %v802_v30 = vperm.slane %v637_v7, 0  ;;  %v803_v43 = vperm.slane %v638_v1, 0 }
  0x5a   : > { %6700 = vst [vmem:[#allocation15_spill] sm:$0xff] %v3911_v3  ;;  %v1010_v4 = vunpack.c.l.b16 %v3911_v3  ;;  %1167 = vrot.lane.b32.xlu2 %v3916_v0, %s3551_s19  ;;  %v341_v9 = vrot.slane %v289_v5, 2  ;;  %v342_v22 = vrot.slane %v289_v5, 4  ;;  %v343_v20 = vrot.slane %v289_v5, 6 }
  0x5b   : > { %v3420_v42 = vrot.slane %v289_v5, 9  ;;  %v858_v49 = vsel %vm828_vm1, %v801_v28, %v800_v57 }
  0x5c   : > { %v3921_v12 = vpack.c.b16 %v1010_v4, %v1010_v4  ;;  %v859_v59 = vsel %vm830_vm2, %v802_v30, %v858_v49  ;;  %v3421_v58 = vrot.slane %v341_v9, 9  ;;  %v3422_v2 = vrot.slane %v342_v22, 9 }
  0x5d   : > { %v3423_v61 = vrot.slane %v343_v20, 9  ;;  %v860_v37 = vsel %vm832_vm3, %v803_v43, %v859_v59  ;;  %v639_v38 = vmax.f32 %v289_v5, %v3420_v42 }
  0x5e   : > { %v6562_v52 = vshrl.u32 %v3921_v12, 16  ;;  %v6560_v1 = vshll.u32 %v3921_v12, 16  ;;  %v932_v54 = vld [vmem:[#allocation2 + $0x98] sm:$0x3f]  ;;  %906 = vst.msk [vmem:[#allocation2 + $0xa1] sm:$0xf] %vm896_vm4, %v860_v37  ;;  %v640_v45 = vmax.f32 %v341_v9, %v3421_v58  ;;  %v641_v4 = vmax.f32 %v342_v22, %v3422_v2 }
  0x5f   : > { %v642_v14 = vmax.f32 %v343_v20, %v3423_v61  ;;  %v3931_v30 = vpack.c.bf16 %v932_v54, %v932_v54  ;;  %v804_v16 = vperm.slane %v639_v38, 0 }
  0x60   : > { %v1101_v28 = vrot.slane %v6560_v1, 1  ;;  %v805_v18 = vperm.slane %v640_v45, 0  ;;  %v806_v7 = vperm.slane %v641_v4, 0  ;;  %v205_v1 = vld [vmem:[%s3612_s17 + $0xb0] sm:$0xff] }
  0x61   : > { %6701 = vst [vmem:[#allocation16_spill] sm:$0xff] %v3931_v30  ;;  %v807_v57 = vperm.slane %v642_v14, 0  ;;  %v1014_v5 = vunpack.c.l.b16 %v3931_v30 }
  0x62   : > { %v3935_v49 = vor.u32 %v1101_v28, %v6562_v52  ;;  %v861_v43 = vsel %vm828_vm1, %v805_v18, %v804_v16  ;;  %v213_v52 = vld [vmem:[%s3612_s17 + $0xf0] sm:$0xff] }
  0x63   : > { %v3941_v9 = vpack.c.b16 %v1014_v5, %v1014_v5  ;;  %v862_v22 = vsel %vm830_vm2, %v806_v7, %v861_v43  ;;  %v3969_v7 = vrot.slane %v3695_v46, 1 }
  0x64   : > { %1163 = vrot.lane.b32.xlu0 %v3935_v49, %s3551_s19  ;;  %v863_v20 = vsel %vm832_vm3, %v807_v57, %v862_v22 }
  0x65   : > { %v6555_v42 = vshrl.u32 %v3941_v9, 16  ;;  %v6554_v59 = vshll.u32 %v3941_v9, 16  ;;  %v933_v58 = vld [vmem:[#allocation2 + $0xa0] sm:$0x3f]  ;;  %907 = vst.msk [vmem:[#allocation2 + $0xa9] sm:$0xf] %vm896_vm4, %v863_v20 }
  0x66   : > { %v3948_v2 = vpack.c.bf16 %v933_v58, %v933_v58  ;;  %v6564_v58 = vrot.slane %v3702_v51, 1 }
  0x67   : > { %v1129_v61 = vrot.slane %v6554_v59, 1 }
  0x68   : > { %6702 = vst [vmem:[#allocation17_spill] sm:$0xff] %v3948_v2  ;;  %v1015_v37 = vunpack.c.l.b16 %v3948_v2 }
  0x69   : > { %v3955_v38 = vor.u32 %v1129_v61, %v6555_v42  ;;  %v4005_v42 = vrot.slane %v3675_v35, 1 }
  0x6a   : > { %v3957_v54 = vpack.c.b16 %v1015_v37, %v1015_v37  ;;  %v3991_v37 = vrot.slane %v3860_v44, 1 }
  0x6b   : > { %1171 = vrot.lane.b32.xlu1 %v3955_v38, %s3551_s19 }
  0x6c   : > { %v6559_v45 = vshrl.u32 %v3957_v54, 16  ;;  %v6558_v4 = vshll.u32 %v3957_v54, 16  ;;  %v934_v14 = vld [vmem:[#allocation2 + $0xa8] sm:$0x3f] }
  0x6d   : > { %v3963_v28 = vpack.c.bf16 %v934_v14, %v934_v14  ;;  %v189_v14 = vld [vmem:[%s3612_s17 + $0x30] sm:$0xff] }
  0x6e   : > { %v1136_v16 = vrot.slane %v6558_v4, 1  ;;  %v4011_v4 = vrot.slane %v3921_v12, 1 }
  0x6f   : > { %6703 = vst [vmem:[#allocation18_spill] sm:$0xff] %v3963_v28  ;;  %v1016_v18 = vunpack.c.l.b16 %v3963_v28  ;;  %v6583_v28 = vrot.slane %v3741_v27, 1 }
  0x70   : > { %v3973_v57 = vor.u32 %v1136_v16, %v6559_v45  ;;  %v190_v16 = vld [vmem:[%s3612_s17 + $0x38] sm:$0xff]  ;;  %6704 = vst [vmem:[#allocation19_spill] sm:$0xff] %v4011_v4 }
  0x71   : > { %v3975_v5 = vpack.c.b16 %v1016_v18, %v1016_v18  ;;  %v197_v18 = vld [vmem:[%s3612_s17 + $0x70] sm:$0xff] }
  0x72   : > { %1173 = vrot.lane.b32.xlu2 %v3973_v57, %s3551_s19  ;;  %v253_v59 = vmax.f32 %v189_v14, %v197_v18  ;;  %v214_v14 = vld [vmem:[%s3612_s17 + $0xf8] sm:$0xff]  ;;  %v261_v18 = vmax.f32 %v205_v1, %v213_v52  ;;  %v4027_v52 = vrot.slane %v3878_v40, 1  ;;  %v6582_v1 = vrot.slane %v3779_v55, 1 }
  0x73   : > { %v6557_v43 = vshrl.u32 %v3975_v5, 16  ;;  %v6556_v22 = vshll.u32 %v3975_v5, 16  ;;  %1199 = vrot.lane.b32.xlu1 %v3969_v7, %s3550_s18  ;;  %v262_v33 = vmax.f32 %v206_v11, %v214_v14 }
  0x75   : > { %v1143_v20 = vrot.slane %v6556_v22, 1  ;;  %v286_v63 = vmax.f32 %v261_v18, %v262_v33 }
  0x77   : > { %v3988_v61 = vor.u32 %v1143_v20, %v6557_v43  ;;  %v198_v20 = vld [vmem:[%s3612_s17 + $0x78] sm:$0xff]  ;;  %v4008_v43 = vrot.slane %v3835_v50, 1  ;;  %v332_v21 = vrot.slane %v286_v63, 2  ;;  %v333_v13 = vrot.slane %v286_v63, 4 }
  0x78   : > { %v254_v22 = vmax.f32 %v190_v16, %v198_v20  ;;  %v334_v48 = vrot.slane %v286_v63, 6 }
  0x79   : > { %1175 = vrot.lane.b32.xlu0 %v3988_v61, %s3551_s19  ;;  %v3409_v18 = vrot.slane %v332_v21, 9 }
  0x7a   : > { %1201 = vrot.lane.b32.xlu2 %v6564_v58, %s3550_s18  ;;  %v282_v45 = vmax.f32 %v253_v59, %v254_v22 }
  0x7b   : > { %1205 = vrot.lane.b32.xlu1 %v3991_v37, %s3550_s18 }
  0x7c   : > { %v320_v29 = vrot.slane %v282_v45, 2  ;;  %v321_v58 = vrot.slane %v282_v45, 4  ;;  %v322_v16 = vrot.slane %v282_v45, 6  ;;  %v3392_v20 = vrot.slane %v282_v45, 9 }
  0x7e   : > { %v3393_v59 = vrot.slane %v320_v29, 9  ;;  %v3394_v22 = vrot.slane %v321_v58, 9  ;;  %v3395_v30 = vrot.slane %v322_v16, 9  ;;  %v611_v3 = vmax.f32 %v282_v45, %v3392_v20 }
  0x7f   : > { %v3408_v45 = vrot.slane %v286_v63, 9  ;;  %v3410_v20 = vrot.slane %v333_v13, 9 }
  0x80   : > { %v612_v32 = vmax.f32 %v320_v29, %v3393_v59  ;;  %v613_v11 = vmax.f32 %v321_v58, %v3394_v22  ;;  %v614_v14 = vmax.f32 %v322_v16, %v3395_v30  ;;  %v776_v17 = vperm.slane %v611_v3, 0  ;;  %v222_v58 = vld [vmem:[%s3612_s17 + $0x138] sm:$0xff] }
  0x81   : > { %1197 = vrot.lane.b32.xlu0 %v4005_v42, %s3550_s18  ;;  %v3411_v30 = vrot.slane %v334_v48, 9  ;;  %v627_v3 = vmax.f32 %v286_v63, %v3408_v45  ;;  %v230_v16 = vld [vmem:[%s3612_s17 + $0x178] sm:$0xff]  ;;  %v628_v59 = vmax.f32 %v332_v21, %v3409_v18  ;;  %v629_v22 = vmax.f32 %v333_v13, %v3410_v20 }
  0x82   : > { %1207 = vrot.lane.b32.xlu2 %v4008_v43, %s3550_s18  ;;  %v777_v34 = vperm.slane %v612_v32, 0  ;;  %v778_v8 = vperm.slane %v613_v11, 0  ;;  %v779_v33 = vperm.slane %v614_v14, 0  ;;  %v269_v11 = vmax.f32 %v221_v15, %v229_v6 }
  0x83   : > { %1211 = vrot.lane.b32.xlu1 %v4011_v4, %s3550_s18  ;;  %v630_v2 = vmax.f32 %v334_v48, %v3411_v30  ;;  %v794_v63 = vperm.slane %v629_v22, 0  ;;  %v270_v45 = vmax.f32 %v222_v58, %v230_v16  ;;  %v4051_v15 = vrot.slane %v3975_v5, 1 }
  0x84   : > { %v840_v29 = vsel %vm828_vm1, %v777_v34, %v776_v17  ;;  %v792_v17 = vperm.slane %v627_v3, 0  ;;  %v793_v34 = vperm.slane %v628_v59, 0  ;;  %v4064_v22 = vrot.slane %v3894_v19, 1 }
  0x85   : > { %v841_v32 = vsel %vm830_vm2, %v778_v8, %v840_v29  ;;  %v795_v10 = vperm.slane %v630_v2, 0  ;;  %v4047_v8 = vrot.slane %v3941_v9, 1  ;;  %v290_v21 = vmax.f32 %v269_v11, %v270_v45  ;;  %6705 = vst [vmem:[#allocation20_spill] sm:$0xff] %v4051_v15 }
  0x86   : > { %v842_v14 = vsel %vm832_vm3, %v779_v33, %v841_v32  ;;  %v852_v13 = vsel %vm828_vm1, %v793_v34, %v792_v17 }
  0x87   : > { %900 = vst.msk [vmem:[#allocation2 + $0x51] sm:$0xf] %vm896_vm4, %v842_v14  ;;  %v853_v6 = vsel %vm830_vm2, %v794_v63, %v852_v13  ;;  %v344_v33 = vrot.slane %v290_v21, 2  ;;  %v345_v18 = vrot.slane %v290_v21, 4  ;;  %v346_v20 = vrot.slane %v290_v21, 6 }
  0x88   : > { %v854_v48 = vsel %vm832_vm3, %v795_v10, %v853_v6  ;;  %v3424_v2 = vrot.slane %v290_v21, 9  ;;  %v917_v10 = vld [vmem:[#allocation2 + $0x20] sm:$0x3f]  ;;  %v4072_v6 = vpop.permute.xlu2 %1195 }
  0x89   : > { %1203 = vrot.lane.b32.xlu0 %v4024_v31, %s3550_s18  ;;  %904 = vst.msk [vmem:[#allocation2 + $0x81] sm:$0xf] %vm896_vm4, %v854_v48  ;;  %v3425_v29 = vrot.slane %v344_v33, 9  ;;  %v3426_v30 = vrot.slane %v345_v18, 9  ;;  %v3427_v3 = vrot.slane %v346_v20, 9  ;;  %v953_v14 = vpack.c.bf16 %v917_v10, %v917_v10 }
  0x8a   : > { %1213 = vrot.lane.b32.xlu2 %v4027_v52, %s3550_s18  ;;  %v643_v58 = vmax.f32 %v290_v21, %v3424_v2  ;;  %6706 = vst [vmem:[#allocation21_spill] sm:$0xff] %v4072_v6 }
  0x8b   : > { %1217 = vrot.lane.b32.xlu1 %v6582_v1, %s3550_s18  ;;  %v644_v16 = vmax.f32 %v344_v33, %v3425_v29  ;;  %v645_v32 = vmax.f32 %v345_v18, %v3426_v30  ;;  %v646_v59 = vmax.f32 %v346_v20, %v3427_v3  ;;  %v1229_v21 = vunpack.c.l.b16 %v953_v14 }
  0x8c   : > { %v808_v11 = vperm.slane %v643_v58, 0  ;;  %v4079_v33 = vrot.slane %v3957_v54, 1 }
  0x8d   : > { %v809_v17 = vperm.slane %v644_v16, 0  ;;  %v810_v34 = vperm.slane %v645_v32, 0  ;;  %v811_v63 = vperm.slane %v646_v59, 0  ;;  %v4081_v18 = vpack.c.b16 %v1229_v21, %v1229_v21 }
  0x8e   : > { %6707 = vst [vmem:[#allocation22_spill] sm:$0xff] %v4079_v33  ;;  %v923_v30 = vld [vmem:[#allocation2 + $0x50] sm:$0x3f] }
  0x8f   : > { %v864_v45 = vsel %vm828_vm1, %v809_v17, %v808_v11  ;;  %v4100_v10 = vpop.permute.xlu1 %1193  ;;  %v4102_v58 = vpack.c.bf16 %v923_v30, %v923_v30 }
  0x90   : > { %v865_v13 = vsel %vm830_vm2, %v810_v34, %v864_v45  ;;  %v4089_v20 = vpop.permute.xlu2 %1153  ;;  %v929_v2 = vld [vmem:[#allocation2 + $0x80] sm:$0x3f]  ;;  %6710 = vst [vmem:[#allocation25_spill] sm:$0xff] %v4100_v10 }
  0x91   : > { %1209 = vrot.lane.b32.xlu0 %v6583_v28, %s3550_s18  ;;  %v866_v48 = vsel %vm832_vm3, %v811_v63, %v865_v13  ;;  %6708 = vst [vmem:[#allocation23_spill] sm:$0xff] %v4089_v20  ;;  %v4091_v29 = vpack.c.bf16 %v929_v2, %v929_v2  ;;  %v1230_v59 = vunpack.c.l.b16 %v4102_v58 }
  0x92   : > { %1219 = vrot.lane.b32.xlu2 %v4047_v8, %s3550_s18  ;;  %908 = vst.msk [vmem:[#allocation2 + $0xb1] sm:$0xf] %vm896_vm4, %v866_v48 }
  0x93   : > { %1223 = vrot.lane.b32.xlu1 %v4051_v15, %s3550_s18  ;;  %6709 = vst [vmem:[#allocation24_spill] sm:$0xff] %v4091_v29  ;;  %v1231_v3 = vunpack.c.l.b16 %v4091_v29  ;;  %v4115_v14 = vpack.c.b16 %v1230_v59, %v1230_v59  ;;  %v4125_v45 = vpop.permute.xlu0 %1145 }
  0x94   : > { %6711 = vst [vmem:[#allocation26_spill] sm:$0xff] %v4102_v58 }
  0x95   : > { %v4106_v32 = vpack.c.b16 %v1231_v3, %v1231_v3  ;;  %6714 = vst [vmem:[#allocation29_spill] sm:$0xff] %v4115_v14  ;;  %v1279_v3 = vshll.u32 %v4115_v14, 16 }
  0x96   : > { %6718 = vst [vmem:[#allocation33_spill] sm:$0xff] %v4125_v45 }
  0x97   : > { %6713 = vst [vmem:[#allocation28_spill] sm:$0xff] %v4106_v32  ;;  %v4117_v17 = vpop.permute.xlu1 %1149 }
  0x98   : > { %v4104_v16 = vpop.permute.xlu2 %1161  ;;  %6715 = vst [vmem:[#allocation30_spill] sm:$0xff] %v4117_v17  ;;  %v1270_v17 = vshrl.u32 %v4081_v18, 16 }
  0x99   : > { %1215 = vrot.lane.b32.xlu0 %v4064_v22, %s3550_s18  ;;  %6712 = vst [vmem:[#allocation27_spill] sm:$0xff] %v4104_v16  ;;  %v935_v11 = vld [vmem:[#allocation2 + $0xb0] sm:$0x3f]  ;;  %v1272_v16 = vshll.u32 %v4081_v18, 16 }
  0x9a   : > { %1237 = vrot.lane.b32.xlu2 %v3658_v24, %s3552_s20  ;;  %v4119_v34 = vpack.c.bf16 %v935_v11, %v935_v11  ;;  %v1277_v11 = vshrl.u32 %v4115_v14, 16 }
  0x9b   : > { %1241 = vrot.lane.b32.xlu1 %v3695_v46, %s3552_s20  ;;  %v4142_v30 = vpop.permute.xlu0 %1147  ;;  %v1274_v10 = vrot.slane %v1272_v16, 1 }
  0x9c   : > { %6716 = vst [vmem:[#allocation31_spill] sm:$0xff] %v4119_v34  ;;  %v1232_v13 = vunpack.c.l.b16 %v4119_v34  ;;  %v232_v34 = vld [vmem:[%s3612_s17 + $0x188] sm:$0xff] }
  0x9d   : > { %6722 = vst [vmem:[#allocation37_spill] sm:$0xff] %v4142_v30  ;;  %v4296_v30 = vrot.slane %v4106_v32, 1 }
  0x9e   : > { %v4132_v21 = vpack.c.b16 %v1232_v13, %v1232_v13  ;;  %v1281_v13 = vrot.slane %v1279_v3, 1 }
  0x9f   : > { %v4134_v48 = vpop.permute.xlu1 %1151  ;;  %6756 = vst [vmem:[#allocation70_spill] sm:$0xff] %v4296_v30 }
  0xa0   : > { %6719 = vst [vmem:[#allocation34_spill] sm:$0xff] %v4132_v21  ;;  %v6588_v20 = vshrl.u32 %v4132_v21, 16 }
  0xa1   : > { %1221 = vrot.lane.b32.xlu0 %v4079_v33, %s3550_s18  ;;  %6720 = vst [vmem:[#allocation35_spill] sm:$0xff] %v4134_v48 }
  0xa2   : > { %1243 = vrot.lane.b32.xlu2 %v4081_v18, %s3552_s20 }
  0xa3   : > { %1247 = vrot.lane.b32.xlu1 %v3860_v44, %s3552_s20 }
  0xa6   : > { %v4121_v63 = vpop.permute.xlu2 %1155 }
  0xa7   : > { %6717 = vst [vmem:[#allocation32_spill] sm:$0xff] %v4121_v63  ;;  %v4161_v63 = vor.u32 %v1281_v13, %v1277_v11  ;;  %v6584_v11 = vshll.u32 %v4106_v32, 16 }
  0xa9   : > { %1239 = vrot.lane.b32.xlu0 %v3675_v35, %s3552_s20  ;;  %v4158_v28 = vpop.permute.xlu0 %1169  ;;  %6726 = vst [vmem:[#allocation41_spill] sm:$0xff] %v4161_v63  ;;  %v1288_v16 = vrot.slane %v6584_v11, 1 }
  0xaa   : > { %1249 = vrot.lane.b32.xlu2 %v3835_v50, %s3552_s20  ;;  %6725 = vst [vmem:[#allocation40_spill] sm:$0xff] %v4158_v28  ;;  %v4174_v28 = vor.u32 %v1274_v10, %v1270_v17 }
  0xab   : > { %1253 = vrot.lane.b32.xlu1 %v3921_v12, %s3552_s20 }
  0xb1   : > { %1245 = vrot.lane.b32.xlu0 %v3838_v60, %s3552_s20 }
  0xb2   : > { %1255 = vrot.lane.b32.xlu2 %v3878_v40, %s3552_s20 }
  0xb3   : > { %1259 = vrot.lane.b32.xlu1 %v4106_v32, %s3552_s20 }
  0xb4   : > { %v4140_v2 = vpop.permute.xlu2 %1167 }
  0xb5   : > { %6721 = vst [vmem:[#allocation36_spill] sm:$0xff] %v4140_v2 }
  0xb9   : > { %1251 = vrot.lane.b32.xlu0 %v4115_v14, %s3552_s20 }
  0xba   : > { %1261 = vrot.lane.b32.xlu2 %v3941_v9, %s3552_s20 }
  0xbb   : > { %1265 = vrot.lane.b32.xlu1 %v3975_v5, %s3552_s20 }
  0xbd   : > { %v4149_v59 = vpop.permute.xlu1 %1159 }
  0xbe   : > { %6723 = vst [vmem:[#allocation38_spill] sm:$0xff] %v4149_v59 }
  0xc1   : > { %1257 = vrot.lane.b32.xlu0 %v3894_v19, %s3552_s20  ;;  %v4177_v13 = vpop.permute.xlu0 %1157 }
  0xc2   : > { %1267 = vrot.lane.b32.xlu2 %v4132_v21, %s3552_s20  ;;  %6729 = vst [vmem:[#allocation44_spill] sm:$0xff] %v4177_v13 }
  0xc3   : > { %1299 = vrot.lane.b32.xlu1 %v3716_v62, %s3553_s21 }
  0xc8   : > { %v4170_v3 = vpop.permute.xlu1 %1165 }
  0xc9   : > { %1263 = vrot.lane.b32.xlu0 %v3957_v54, %s3552_s20  ;;  %6727 = vst [vmem:[#allocation42_spill] sm:$0xff] %v4170_v3 }
  0xca   : > { %1301 = vrot.lane.b32.xlu2 %v3759_v36, %s3553_s21 }
  0xcb   : > { %1305 = vrot.lane.b32.xlu1 %v3858_v47, %s3553_s21 }
  0xcc   : > { %v4156_v1 = vpop.permute.xlu2 %1173 }
  0xcd   : > { %6724 = vst [vmem:[#allocation39_spill] sm:$0xff] %v4156_v1 }
  0xd1   : > { %1297 = vrot.lane.b32.xlu0 %v3709_v56, %s3553_s21  ;;  %v6585_v56 = vshrl.u32 %v4106_v32, 16 }
  0xd2   : > { %1307 = vrot.lane.b32.xlu2 %v3876_v39, %s3553_s21 }
  0xd3   : > { %1311 = vrot.lane.b32.xlu1 %v4161_v63, %s3553_s21  ;;  %v4194_v45 = vor.u32 %v1288_v16, %v6585_v56  ;;  %v6737_v56 = vrot.slane %v3658_v24, 1 }
  0xd4   : > { %v4172_v48 = vpop.permute.xlu2 %1201 }
  0xd5   : > { %6728 = vst [vmem:[#allocation43_spill] sm:$0xff] %v4172_v48 }
  0xd6   : > { %6732 = vst [vmem:[#allocation47_spill] sm:$0xff] %v4194_v45  ;;  %v4198_v48 = vpop.permute.xlu0 %1163 }
  0xd7   : > { %6733 = vst [vmem:[#allocation48_spill] sm:$0xff] %v4198_v48 }
  0xd9   : > { %1303 = vrot.lane.b32.xlu0 %v4174_v28, %s3553_s21 }
  0xda   : > { %1313 = vrot.lane.b32.xlu2 %v3935_v49, %s3553_s21 }
  0xdb   : > { %1317 = vrot.lane.b32.xlu1 %v3916_v0, %s3553_s21 }
  0xdc   : > { %v4188_v10 = vpop.permute.xlu2 %1207 }
  0xdd   : > { %6730 = vst [vmem:[#allocation45_spill] sm:$0xff] %v4188_v10  ;;  %v4190_v17 = vpop.permute.xlu1 %1171 }
  0xde   : > { %6731 = vst [vmem:[#allocation46_spill] sm:$0xff] %v4190_v17 }
  0xe1   : > { %1309 = vrot.lane.b32.xlu0 %v3855_v41, %s3553_s21 }
  0xe2   : > { %1319 = vrot.lane.b32.xlu2 %v4194_v45, %s3553_s21 }
  0xe3   : > { %1323 = vrot.lane.b32.xlu1 %v3973_v57, %s3553_s21 }
  0xe4   : > { %v4204_v11 = vpop.permute.xlu2 %1213 }
  0xe5   : > { %6734 = vst [vmem:[#allocation49_spill] sm:$0xff] %v4204_v11  ;;  %v4206_v10 = vpop.permute.xlu1 %1199  ;;  %v6586_v11 = vshll.u32 %v4132_v21, 16 }
  0xe6   : > { %6735 = vst [vmem:[#allocation50_spill] sm:$0xff] %v4206_v10  ;;  %v6587_v10 = vrot.slane %v4081_v18, 1 }
  0xe7   : > { %v1295_v6 = vrot.slane %v6586_v11, 1 }
  0xe9   : > { %1315 = vrot.lane.b32.xlu0 %v3898_v25, %s3553_s21 }
  0xea   : > { %1325 = vrot.lane.b32.xlu2 %v3988_v61, %s3553_s21 }
  0xeb   : > { %v4212_v16 = vpop.permute.xlu0 %1175  ;;  %1333 = vrot.lane.b32.xlu1 %v6737_v56, %s3554_s22 }
  0xec   : > { %6736 = vst [vmem:[#allocation51_spill] sm:$0xff] %v4212_v16  ;;  %v4217_v17 = vpop.permute.xlu2 %1219 }
  0xed   : > { %6738 = vst [vmem:[#allocation52_spill] sm:$0xff] %v4217_v17  ;;  %v4219_v48 = vpop.permute.xlu1 %1205  ;;  %v4239_v17 = vor.u32 %v1295_v6, %v6588_v20  ;;  %v4256_v6 = vrot.slane %v4115_v14, 1 }
  0xee   : > { %6739 = vst [vmem:[#allocation53_spill] sm:$0xff] %v4219_v48 }
  0xef   : > { %6742 = vst [vmem:[#allocation56_spill] sm:$0xff] %v4239_v17 }
  0xf0   : > { %6747 = vst [vmem:[#allocation61_spill] sm:$0xff] %v4256_v6 }
  0xf1   : > { %1321 = vrot.lane.b32.xlu0 %v3955_v38, %s3553_s21 }
  0xf2   : > { %1335 = vrot.lane.b32.xlu2 %v4005_v42, %s3554_s22 }
  0xf3   : > { %v4230_v24 = vpop.permute.xlu0 %1197  ;;  %1339 = vrot.lane.b32.xlu1 %v6587_v10, %s3554_s22 }
  0xf4   : > { %6740 = vst [vmem:[#allocation54_spill] sm:$0xff] %v4230_v24  ;;  %v4235_v56 = vpop.permute.xlu2 %1237 }
  0xf5   : > { %6741 = vst [vmem:[#allocation55_spill] sm:$0xff] %v4235_v56  ;;  %v4241_v48 = vpop.permute.xlu1 %1211  ;;  %v4283_v56 = vrot.slane %v4132_v21, 1 }
  0xf6   : > { %6743 = vst [vmem:[#allocation57_spill] sm:$0xff] %v4241_v48 }
  0xf9   : > { %1327 = vrot.lane.b32.xlu0 %v4239_v17, %s3553_s21 }
  0xfa   : > { %1341 = vrot.lane.b32.xlu2 %v4024_v31, %s3554_s22 }
  0xfb   : > { %v4247_v11 = vpop.permute.xlu0 %1203  ;;  %1345 = vrot.lane.b32.xlu1 %v4008_v43, %s3554_s22 }
  0xfc   : > { %6744 = vst [vmem:[#allocation58_spill] sm:$0xff] %v4247_v11  ;;  %v4251_v10 = vpop.permute.xlu2 %1243 }
  0xfd   : > { %6745 = vst [vmem:[#allocation59_spill] sm:$0xff] %v4251_v10  ;;  %v4253_v24 = vpop.permute.xlu1 %1217 }
  0xfe   : > { %6746 = vst [vmem:[#allocation60_spill] sm:$0xff] %v4253_v24 }
 0x101   : > { %1337 = vrot.lane.b32.xlu0 %v3969_v7, %s3554_s22 }
 0x102   : > { %1347 = vrot.lane.b32.xlu2 %v4256_v6, %s3554_s22 }
 0x103   : > { %v4262_v20 = vpop.permute.xlu0 %1209  ;;  %1351 = vrot.lane.b32.xlu1 %v4027_v52, %s3554_s22 }
 0x104   : > { %6748 = vst [vmem:[#allocation62_spill] sm:$0xff] %v4262_v20  ;;  %v4266_v48 = vpop.permute.xlu2 %1249 }
 0x105   : > { %6749 = vst [vmem:[#allocation63_spill] sm:$0xff] %v4266_v48  ;;  %v4268_v11 = vpop.permute.xlu1 %1223 }
 0x106   : > { %6750 = vst [vmem:[#allocation64_spill] sm:$0xff] %v4268_v11 }
 0x109   : > { %1343 = vrot.lane.b32.xlu0 %v3991_v37, %s3554_s22 }
 0x10a   : > { %1353 = vrot.lane.b32.xlu2 %v4064_v22, %s3554_s22 }
 0x10b   : > { %v4274_v24 = vpop.permute.xlu0 %1215  ;;  %1357 = vrot.lane.b32.xlu1 %v4047_v8, %s3554_s22 }
 0x10c   : > { %6751 = vst [vmem:[#allocation65_spill] sm:$0xff] %v4274_v24  ;;  %v4278_v10 = vpop.permute.xlu2 %1255  ;;  %v918_v24 = vld [vmem:[#allocation2 + $0x28] sm:$0x3f] }
 0x10d   : > { %6752 = vst [vmem:[#allocation66_spill] sm:$0xff] %v4278_v10  ;;  %v4280_v20 = vpop.permute.xlu1 %1241  ;;  %v954_v2 = vpack.c.bf16 %v918_v24, %v918_v24 }
 0x10e   : > { %6753 = vst [vmem:[#allocation67_spill] sm:$0xff] %v4280_v20 }
 0x111   : > { %1349 = vrot.lane.b32.xlu0 %v4011_v4, %s3554_s22 }
 0x112   : > { %1359 = vrot.lane.b32.xlu2 %v4079_v33, %s3554_s22 }
 0x113   : > { %v4289_v11 = vpop.permute.xlu0 %1221  ;;  %1363 = vrot.lane.b32.xlu1 %v4283_v56, %s3554_s22 }
 0x114   : > { %6754 = vst [vmem:[#allocation68_spill] sm:$0xff] %v4289_v11  ;;  %v4293_v48 = vpop.permute.xlu2 %1261  ;;  %v1369_v11 = vunpack.c.l.b16 %v954_v2  ;;  %v930_v2 = vld [vmem:[#allocation2 + $0x88] sm:$0x3f] }
 0x115   : > { %6755 = vst [vmem:[#allocation69_spill] sm:$0xff] %v4293_v48  ;;  %v4298_v20 = vpop.permute.xlu1 %1247 }
 0x116   : > { %6757 = vst [vmem:[#allocation71_spill] sm:$0xff] %v4298_v20  ;;  %v4312_v3 = vpack.c.b16 %v1369_v11, %v1369_v11  ;;  %v924_v11 = vld [vmem:[#allocation2 + $0x58] sm:$0x3f] }
 0x119   : > { %1355 = vrot.lane.b32.xlu0 %v4296_v30, %s3554_s22 }
 0x11a   : > { %1377 = vrot.lane.b32.xlu2 %v3675_v35, %s3555_s23 }
 0x11b   : > { %v4304_v59 = vpop.permute.xlu0 %1239  ;;  %1381 = vrot.lane.b32.xlu1 %v4081_v18, %s3555_s23 }
 0x11c   : > { %6758 = vst [vmem:[#allocation72_spill] sm:$0xff] %v4304_v59  ;;  %v4308_v48 = vpop.permute.xlu2 %1267 }
 0x11d   : > { %6759 = vst [vmem:[#allocation73_spill] sm:$0xff] %v4308_v48  ;;  %v4310_v10 = vpop.permute.xlu1 %1253  ;;  %v4326_v48 = vpack.c.bf16 %v930_v2, %v930_v2  ;;  %v4341_v2 = vpack.c.bf16 %v924_v11, %v924_v11 }
 0x11e   : > { %6760 = vst [vmem:[#allocation74_spill] sm:$0xff] %v4310_v10 }
 0x11f   : > { %6764 = vst [vmem:[#allocation78_spill] sm:$0xff] %v4326_v48 }
 0x120   : > { %6768 = vst [vmem:[#allocation82_spill] sm:$0xff] %v4341_v2 }
 0x121   : > { %1361 = vrot.lane.b32.xlu0 %v4051_v15, %s3554_s22 }
 0x122   : > { %1383 = vrot.lane.b32.xlu2 %v4312_v3, %s3555_s23 }
 0x123   : > { %v4318_v24 = vpop.permute.xlu0 %1245  ;;  %1387 = vrot.lane.b32.xlu1 %v3835_v50, %s3555_s23 }
 0x124   : > { %6761 = vst [vmem:[#allocation75_spill] sm:$0xff] %v4318_v24  ;;  %v4322_v35 = vpop.permute.xlu2 %1301  ;;  %v1371_v24 = vunpack.c.l.b16 %v4326_v48  ;;  %v239_v48 = vld [vmem:[%s3612_s17 + $0x1c0] sm:$0xff] }
 0x125   : > { %6762 = vst [vmem:[#allocation76_spill] sm:$0xff] %v4322_v35  ;;  %v4324_v20 = vpop.permute.xlu1 %1259 }
 0x126   : > { %6763 = vst [vmem:[#allocation77_spill] sm:$0xff] %v4324_v20  ;;  %v4343_v20 = vpack.c.b16 %v1371_v24, %v1371_v24 }
 0x128   : > { %v1471_v4 = vrot.slane %v4343_v20, 1 }
 0x129   : > { %1379 = vrot.lane.b32.xlu0 %v3695_v46, %s3555_s23  ;;  %v1370_v46 = vunpack.c.l.b16 %v4341_v2  ;;  %v231_v2 = vld [vmem:[%s3612_s17 + $0x180] sm:$0xff] }
 0x12a   : > { %1389 = vrot.lane.b32.xlu2 %v4115_v14, %s3555_s23 }
 0x12b   : > { %v4332_v59 = vpop.permute.xlu0 %1251  ;;  %1393 = vrot.lane.b32.xlu1 %v3878_v40, %s3555_s23  ;;  %v4356_v11 = vpack.c.b16 %v1370_v46, %v1370_v46 }
 0x12c   : > { %6765 = vst [vmem:[#allocation79_spill] sm:$0xff] %v4332_v59  ;;  %v4337_v35 = vpop.permute.xlu2 %1307 }
 0x12d   : > { %6766 = vst [vmem:[#allocation80_spill] sm:$0xff] %v4337_v35  ;;  %v4339_v10 = vpop.permute.xlu1 %1265  ;;  %v936_v35 = vld [vmem:[#allocation2 + $0xb8] sm:$0x3f] }
 0x12e   : > { %6767 = vst [vmem:[#allocation81_spill] sm:$0xff] %v4339_v10  ;;  %v4360_v10 = vpack.c.bf16 %v936_v35, %v936_v35 }
 0x12f   : > { %6771 = vst [vmem:[#allocation85_spill] sm:$0xff] %v4356_v11 }
 0x130   : > { %6773 = vst [vmem:[#allocation87_spill] sm:$0xff] %v4360_v10 }
 0x131   : > { %1385 = vrot.lane.b32.xlu0 %v3860_v44, %s3555_s23 }
 0x132   : > { %1395 = vrot.lane.b32.xlu2 %v3894_v19, %s3555_s23 }
 0x133   : > { %v4350_v59 = vpop.permute.xlu0 %1257  ;;  %1399 = vrot.lane.b32.xlu1 %v4343_v20, %s3555_s23 }
 0x134   : > { %6769 = vst [vmem:[#allocation83_spill] sm:$0xff] %v4350_v59  ;;  %v4354_v1 = vpop.permute.xlu2 %1313  ;;  %v1372_v59 = vunpack.c.l.b16 %v4360_v10 }
 0x135   : > { %6770 = vst [vmem:[#allocation84_spill] sm:$0xff] %v4354_v1  ;;  %v4358_v24 = vpop.permute.xlu1 %1299 }
 0x136   : > { %6772 = vst [vmem:[#allocation86_spill] sm:$0xff] %v4358_v24  ;;  %v4375_v24 = vpack.c.b16 %v1372_v59, %v1372_v59 }
 0x138   : > { %6777 = vst [vmem:[#allocation91_spill] sm:$0xff] %v4375_v24 }
 0x139   : > { %1391 = vrot.lane.b32.xlu0 %v4356_v11, %s3555_s23 }
 0x13a   : > { %1401 = vrot.lane.b32.xlu2 %v3957_v54, %s3555_s23 }
 0x13b   : > { %v4367_v16 = vpop.permute.xlu0 %1263  ;;  %1405 = vrot.lane.b32.xlu1 %v4132_v21, %s3555_s23 }
 0x13c   : > { %6774 = vst [vmem:[#allocation88_spill] sm:$0xff] %v4367_v16  ;;  %v4371_v1 = vpop.permute.xlu2 %1319 }
 0x13d   : > { %6775 = vst [vmem:[#allocation89_spill] sm:$0xff] %v4371_v1  ;;  %v4373_v46 = vpop.permute.xlu1 %1305  ;;  %v1419_v1 = vshll.u32 %v4356_v11, 16 }
 0x13e   : > { %6776 = vst [vmem:[#allocation90_spill] sm:$0xff] %v4373_v46 }
 0x141   : > { %1397 = vrot.lane.b32.xlu0 %v4106_v32, %s3555_s23 }
 0x142   : > { %1407 = vrot.lane.b32.xlu2 %v4375_v24, %s3555_s23 }
 0x143   : > { %v4381_v35 = vpop.permute.xlu0 %1297  ;;  %1439 = vrot.lane.b32.xlu1 %v3759_v36, %s3556_s24  ;;  %v1421_v36 = vrot.slane %v1419_v1, 1 }
 0x144   : > { %6778 = vst [vmem:[#allocation92_spill] sm:$0xff] %v4381_v35  ;;  %v4385_v16 = vpop.permute.xlu2 %1325  ;;  %v1417_v35 = vshrl.u32 %v4356_v11, 16 }
 0x145   : > { %6779 = vst [vmem:[#allocation93_spill] sm:$0xff] %v4385_v16  ;;  %v4387_v10 = vpop.permute.xlu1 %1311 }
 0x146   : > { %6780 = vst [vmem:[#allocation94_spill] sm:$0xff] %v4387_v10  ;;  %v1412_v10 = vshll.u32 %v4312_v3, 16  ;;  %v4404_v58 = vor.u32 %v1421_v36, %v1417_v35  ;;  %v6600_v35 = vshll.u32 %v4343_v20, 16 }
 0x148   : > { %6784 = vst [vmem:[#allocation98_spill] sm:$0xff] %v4404_v58 }
 0x149   : > { %1403 = vrot.lane.b32.xlu0 %v3975_v5, %s3555_s23 }
 0x14a   : > { %1441 = vrot.lane.b32.xlu2 %v4174_v28, %s3556_s24  ;;  %v1410_v28 = vshrl.u32 %v4312_v3, 16 }
 0x14b   : > { %v4394_v59 = vpop.permute.xlu0 %1303  ;;  %1445 = vrot.lane.b32.xlu1 %v3876_v39, %s3556_s24 }
 0x14c   : > { %6781 = vst [vmem:[#allocation95_spill] sm:$0xff] %v4394_v59  ;;  %v4399_v46 = vpop.permute.xlu2 %1335  ;;  %v1414_v59 = vrot.slane %v1412_v10, 1  ;;  %v1428_v10 = vrot.slane %v6600_v35, 1 }
 0x14d   : > { %6782 = vst [vmem:[#allocation96_spill] sm:$0xff] %v4399_v46  ;;  %v4401_v16 = vpop.permute.xlu1 %1317 }
 0x14e   : > { %6783 = vst [vmem:[#allocation97_spill] sm:$0xff] %v4401_v16  ;;  %v1415_v46 = vor.u32 %v1414_v59, %v1410_v28 }
 0x151   : > { %1437 = vrot.lane.b32.xlu0 %v3716_v62, %s3556_s24  ;;  %v6601_v62 = vshrl.u32 %v4343_v20, 16 }
 0x152   : > { %1447 = vrot.lane.b32.xlu2 %v3855_v41, %s3556_s24 }
 0x153   : > { %v4411_v13 = vpop.permute.xlu0 %1309  ;;  %1451 = vrot.lane.b32.xlu1 %v4404_v58, %s3556_s24 }
 0x154   : > { %6785 = vst [vmem:[#allocation99_spill] sm:$0xff] %v4411_v13  ;;  %v4415_v1 = vpop.permute.xlu2 %1341 }
 0x155   : > { %6786 = vst [vmem:[#allocation100_spill] sm:$0xff] %v4415_v1  ;;  %v4417_v16 = vpop.permute.xlu1 %1323  ;;  %v6603_v1 = vshrl.u32 %v4375_v24, 16 }
 0x156   : > { %6787 = vst [vmem:[#allocation101_spill] sm:$0xff] %v4417_v16  ;;  %v243_v16 = vld [vmem:[%s3612_s17 + $0x1e0] sm:$0xff] }
 0x159   : > { %1443 = vrot.lane.b32.xlu0 %v1415_v46, %s3556_s24  ;;  %v4436_v46 = vor.u32 %v1428_v10, %v6601_v62 }
 0x15a   : > { %1453 = vrot.lane.b32.xlu2 %v3898_v25, %s3556_s24 }
 0x15b   : > { %v4426_v36 = vpop.permute.xlu0 %1315  ;;  %1457 = vrot.lane.b32.xlu1 %v4194_v45, %s3556_s24  ;;  %6791 = vst [vmem:[#allocation105_spill] sm:$0xff] %v4436_v46 }
 0x15c   : > { %6788 = vst [vmem:[#allocation102_spill] sm:$0xff] %v4426_v36  ;;  %v4430_v59 = vpop.permute.xlu2 %1347 }
 0x15d   : > { %6789 = vst [vmem:[#allocation103_spill] sm:$0xff] %v4430_v59  ;;  %v4432_v28 = vpop.permute.xlu1 %1333 }
 0x15e   : > { %6790 = vst [vmem:[#allocation104_spill] sm:$0xff] %v4432_v28 }
 0x161   : > { %1449 = vrot.lane.b32.xlu0 %v4161_v63, %s3556_s24 }
 0x162   : > { %1459 = vrot.lane.b32.xlu2 %v4436_v46, %s3556_s24  ;;  %v240_v46 = vld [vmem:[%s3612_s17 + $0x1c8] sm:$0xff] }
 0x163   : > { %v4442_v35 = vpop.permute.xlu0 %1321  ;;  %1463 = vrot.lane.b32.xlu1 %v3988_v61, %s3556_s24 }
 0x164   : > { %6792 = vst [vmem:[#allocation106_spill] sm:$0xff] %v4442_v35  ;;  %v4446_v13 = vpop.permute.xlu2 %1353 }
 0x165   : > { %6793 = vst [vmem:[#allocation107_spill] sm:$0xff] %v4446_v13  ;;  %v4448_v59 = vpop.permute.xlu1 %1339  ;;  %v6602_v13 = vshll.u32 %v4375_v24, 16 }
 0x166   : > { %6794 = vst [vmem:[#allocation108_spill] sm:$0xff] %v4448_v59  ;;  %v1469_v59 = vrot.slane %v4312_v3, 1 }
 0x169   : > { %1455 = vrot.lane.b32.xlu0 %v3916_v0, %s3556_s24 }
 0x16a   : > { %1465 = vrot.lane.b32.xlu2 %v4239_v17, %s3556_s24 }
 0x16b   : > { %v4454_v10 = vpop.permute.xlu0 %1327  ;;  %1473 = vrot.lane.b32.xlu1 %v4005_v42, %s3557_s25 }
 0x16c   : > { %6795 = vst [vmem:[#allocation109_spill] sm:$0xff] %v4454_v10  ;;  %v4458_v62 = vpop.permute.xlu2 %1359  ;;  %v1435_v10 = vrot.slane %v6602_v13, 1  ;;  %v1470_v13 = vrot.slane %v4356_v11, 1 }
 0x16d   : > { %6796 = vst [vmem:[#allocation110_spill] sm:$0xff] %v4458_v62  ;;  %v4460_v28 = vpop.permute.xlu1 %1345 }
 0x16e   : > { %6797 = vst [vmem:[#allocation111_spill] sm:$0xff] %v4460_v28  ;;  %v4478_v3 = vor.u32 %v1435_v10, %v6603_v1  ;;  %v6805_v1 = vrot.slane %v4081_v18, 1  ;;  %v242_v18 = vld [vmem:[%s3612_s17 + $0x1d8] sm:$0xff] }
 0x170   : > { %6800 = vst [vmem:[#allocation114_spill] sm:$0xff] %v4478_v3 }
 0x171   : > { %1461 = vrot.lane.b32.xlu0 %v3973_v57, %s3556_s24 }
 0x172   : > { %1475 = vrot.lane.b32.xlu2 %v3969_v7, %s3557_s25 }
 0x173   : > { %v4471_v42 = vpop.permute.xlu0 %1337  ;;  %1479 = vrot.lane.b32.xlu1 %v1469_v59, %s3557_s25 }
 0x174   : > { %6798 = vst [vmem:[#allocation112_spill] sm:$0xff] %v4471_v42  ;;  %v4474_v62 = vpop.permute.xlu2 %1377 }
 0x175   : > { %6799 = vst [vmem:[#allocation113_spill] sm:$0xff] %v4474_v62  ;;  %v4480_v28 = vpop.permute.xlu1 %1351  ;;  %v241_v62 = vld [vmem:[%s3612_s17 + $0x1d0] sm:$0xff] }
 0x176   : > { %6801 = vst [vmem:[#allocation115_spill] sm:$0xff] %v4480_v28 }
 0x179   : > { %1467 = vrot.lane.b32.xlu0 %v4478_v3, %s3556_s24 }
 0x17a   : > { %1481 = vrot.lane.b32.xlu2 %v3991_v37, %s3557_s25 }
 0x17b   : > { %v4486_v7 = vpop.permute.xlu0 %1343  ;;  %1485 = vrot.lane.b32.xlu1 %v4256_v6, %s3557_s25 }
 0x17c   : > { %6802 = vst [vmem:[#allocation116_spill] sm:$0xff] %v4486_v7  ;;  %v4490_v59 = vpop.permute.xlu2 %1383 }
 0x17d   : > { %6803 = vst [vmem:[#allocation117_spill] sm:$0xff] %v4490_v59  ;;  %v4492_v10 = vpop.permute.xlu1 %1357  ;;  %v234_v59 = vld [vmem:[%s3612_s17 + $0x198] sm:$0xff] }
 0x17e   : > { %6804 = vst [vmem:[#allocation118_spill] sm:$0xff] %v4492_v10  ;;  %v233_v10 = vld [vmem:[%s3612_s17 + $0x190] sm:$0xff] }
 0x181   : > { %1477 = vrot.lane.b32.xlu0 %v6805_v1, %s3557_s25  ;;  %v235_v1 = vld [vmem:[%s3612_s17 + $0x1a0] sm:$0xff] }
 0x182   : > { %1487 = vrot.lane.b32.xlu2 %v1470_v13, %s3557_s25  ;;  %v273_v13 = vmax.f32 %v233_v10, %v241_v62  ;;  %v275_v36 = vmax.f32 %v235_v1, %v243_v16 }
 0x183   : > { %v4499_v28 = vpop.permute.xlu0 %1349  ;;  %1491 = vrot.lane.b32.xlu1 %v4064_v22, %s3557_s25 }
 0x184   : > { %6806 = vst [vmem:[#allocation119_spill] sm:$0xff] %v4499_v28  ;;  %v4503_v7 = vpop.permute.xlu2 %1389  ;;  %v236_v28 = vld [vmem:[%s3612_s17 + $0x1a8] sm:$0xff] }
 0x185   : > { %6807 = vst [vmem:[#allocation120_spill] sm:$0xff] %v4503_v7  ;;  %v4505_v42 = vpop.permute.xlu1 %1363  ;;  %v274_v7 = vmax.f32 %v234_v59, %v242_v18  ;;  %v1472_v59 = vrot.slane %v4375_v24, 1 }
 0x186   : > { %6808 = vst [vmem:[#allocation121_spill] sm:$0xff] %v4505_v42  ;;  %v244_v42 = vld [vmem:[%s3612_s17 + $0x1e8] sm:$0xff] }
 0x187   : > { %v276_v29 = vmax.f32 %v236_v28, %v244_v42  ;;  %v292_v10 = vmax.f32 %v273_v13, %v274_v7 }
 0x189   : > { %1483 = vrot.lane.b32.xlu0 %v4008_v43, %s3557_s25  ;;  %v293_v18 = vmax.f32 %v275_v36, %v276_v29  ;;  %v350_v58 = vrot.slane %v292_v10, 2  ;;  %v351_v11 = vrot.slane %v292_v10, 4  ;;  %v352_v6 = vrot.slane %v292_v10, 6 }
 0x18a   : > { %1493 = vrot.lane.b32.xlu2 %v4296_v30, %s3557_s25  ;;  %v272_v30 = vmax.f32 %v232_v34, %v240_v46  ;;  %v3432_v17 = vrot.slane %v292_v10, 9 }
 0x18b   : > { %v4519_v35 = vpop.permute.xlu0 %1355  ;;  %1497 = vrot.lane.b32.xlu1 %v4079_v33, %s3557_s25  ;;  %v353_v16 = vrot.slane %v293_v18, 2  ;;  %v354_v28 = vrot.slane %v293_v18, 4  ;;  %v3433_v42 = vrot.slane %v350_v58, 9  ;;  %v3434_v1 = vrot.slane %v351_v11, 9 }
 0x18c   : > { %6809 = vst [vmem:[#allocation122_spill] sm:$0xff] %v4519_v35  ;;  %v4526_v62 = vpop.permute.xlu2 %1395  ;;  %v271_v35 = vmax.f32 %v231_v2, %v239_v48  ;;  %v355_v63 = vrot.slane %v293_v18, 6  ;;  %v3436_v45 = vrot.slane %v293_v18, 9  ;;  %v3435_v7 = vrot.slane %v352_v6, 9 }
 0x18d   : > { %6810 = vst [vmem:[#allocation123_spill] sm:$0xff] %v4526_v62  ;;  %v4529_v3 = vpop.permute.xlu1 %1381  ;;  %v651_v13 = vmax.f32 %v292_v10, %v3432_v17  ;;  %v3438_v62 = vrot.slane %v354_v28, 9  ;;  %v652_v29 = vmax.f32 %v350_v58, %v3433_v42  ;;  %v653_v34 = vmax.f32 %v351_v11, %v3434_v1 }
 0x18e   : > { %6811 = vst [vmem:[#allocation124_spill] sm:$0xff] %v4529_v3  ;;  %v3437_v3 = vrot.slane %v353_v16, 9  ;;  %v3439_v48 = vrot.slane %v355_v63, 9  ;;  %v655_v2 = vmax.f32 %v293_v18, %v3436_v45  ;;  %v654_v46 = vmax.f32 %v352_v6, %v3435_v7 }
 0x18f   : > { %v816_v24 = vperm.slane %v651_v13, 0  ;;  %v657_v21 = vmax.f32 %v354_v28, %v3438_v62  ;;  %v817_v17 = vperm.slane %v652_v29, 0  ;;  %v818_v10 = vperm.slane %v653_v34, 0 }
 0x190   : > { %v656_v32 = vmax.f32 %v353_v16, %v3437_v3  ;;  %v658_v33 = vmax.f32 %v355_v63, %v3439_v48  ;;  %v819_v58 = vperm.slane %v654_v46, 0  ;;  %v820_v11 = vperm.slane %v655_v2, 0 }
 0x191   : > { %1489 = vrot.lane.b32.xlu0 %v4027_v52, %s3557_s25  ;;  %v870_v18 = vsel %vm828_vm1, %v817_v17, %v816_v24  ;;  %v822_v42 = vperm.slane %v657_v21, 0  ;;  %v291_v62 = vmax.f32 %v271_v35, %v272_v30 }
 0x192   : > { %1499 = vrot.lane.b32.xlu2 %v4051_v15, %s3557_s25  ;;  %v821_v45 = vperm.slane %v656_v32, 0  ;;  %v871_v6 = vsel %vm830_vm2, %v818_v10, %v870_v18 }
 0x193   : > { %v4536_v36 = vpop.permute.xlu0 %1361  ;;  %1503 = vrot.lane.b32.xlu1 %v1472_v59, %s3557_s25  ;;  %v823_v59 = vperm.slane %v658_v33, 0  ;;  %v872_v16 = vsel %vm832_vm3, %v819_v58, %v871_v6  ;;  %v347_v32 = vrot.slane %v291_v62, 2  ;;  %v348_v1 = vrot.slane %v291_v62, 4 }
 0x194   : > { %6812 = vst [vmem:[#allocation125_spill] sm:$0xff] %v4536_v36  ;;  %v4539_v14 = vpop.permute.xlu2 %1401  ;;  %v873_v3 = vsel %vm828_vm1, %v821_v45, %v820_v11  ;;  %v349_v24 = vrot.slane %v291_v62, 6  ;;  %v3428_v33 = vrot.slane %v291_v62, 9 }
 0x195   : > { %6813 = vst [vmem:[#allocation126_spill] sm:$0xff] %v4539_v14  ;;  %v4542_v15 = vpop.permute.xlu1 %1387  ;;  %v874_v63 = vsel %vm830_vm2, %v822_v42, %v873_v3  ;;  %v3430_v30 = vrot.slane %v348_v1, 9 }
 0x196   : > { %6814 = vst [vmem:[#allocation127_spill] sm:$0xff] %v4542_v15  ;;  %v875_v28 = vsel %vm832_vm3, %v823_v59, %v874_v63  ;;  %v3431_v35 = vrot.slane %v349_v24, 9  ;;  %v647_v13 = vmax.f32 %v291_v62, %v3428_v33  ;;  %v937_v62 = vld [vmem:[#allocation2 + $0xc0] sm:$0x3f] }
 0x197   : > { %910 = vst.msk [vmem:[#allocation2 + $0xd1] sm:$0xf] %vm896_vm4, %v872_v16  ;;  %v649_v48 = vmax.f32 %v348_v1, %v3430_v30 }
 0x198   : > { %911 = vst.msk [vmem:[#allocation2 + $0xd9] sm:$0xf] %vm896_vm4, %v875_v28  ;;  %v650_v2 = vmax.f32 %v349_v24, %v3431_v35  ;;  %v812_v46 = vperm.slane %v647_v13, 0 }
 0x199   : > { %1495 = vrot.lane.b32.xlu0 %v1471_v4, %s3557_s25  ;;  %v3429_v4 = vrot.slane %v347_v32, 9  ;;  %v814_v10 = vperm.slane %v649_v48, 0 }
 0x19a   : > { %1517 = vrot.lane.b32.xlu2 %v3702_v51, %s3558_s26  ;;  %v815_v58 = vperm.slane %v650_v2, 0 }
 0x19b   : > { %v4555_v21 = vpop.permute.xlu0 %1379  ;;  %1521 = vrot.lane.b32.xlu1 %v3860_v44, %s3558_s26  ;;  %v648_v34 = vmax.f32 %v347_v32, %v3429_v4  ;;  %v973_v32 = vpack.c.bf16 %v937_v62, %v937_v62 }
 0x19c   : > { %6815 = vst [vmem:[#allocation128_spill] sm:$0xff] %v4555_v21  ;;  %v4559_v7 = vpop.permute.xlu2 %1407 }
 0x19d   : > { %6816 = vst [vmem:[#allocation129_spill] sm:$0xff] %v4559_v7  ;;  %v4561_v29 = vpop.permute.xlu1 %1393  ;;  %v813_v17 = vperm.slane %v648_v34, 0  ;;  %v1509_v24 = vunpack.c.l.b16 %v973_v32 }
 0x19e   : > { %v939_v63 = vld [vmem:[#allocation2 + $0xd0] sm:$0x3f] }
 0x19f   : > { %v867_v11 = vsel %vm828_vm1, %v813_v17, %v812_v46  ;;  %v4591_v1 = vpack.c.bf16 %v939_v63, %v939_v63  ;;  %v940_v30 = vld [vmem:[#allocation2 + $0xd8] sm:$0x3f]  ;;  %v4606_v34 = vpack.c.b16 %v1509_v24, %v1509_v24 }
 0x1a0   : > { %v868_v45 = vsel %vm830_vm2, %v814_v10, %v867_v11  ;;  %v4608_v48 = vpack.c.bf16 %v940_v30, %v940_v30 }
 0x1a1   : > { %1501 = vrot.lane.b32.xlu0 %v4283_v56, %s3557_s25  ;;  %v869_v42 = vsel %vm832_vm3, %v815_v58, %v868_v45  ;;  %v1511_v4 = vunpack.c.l.b16 %v4591_v1 }
 0x1a2   : > { %1523 = vrot.lane.b32.xlu2 %v3835_v50, %s3558_s26  ;;  %909 = vst.msk [vmem:[#allocation2 + $0xc9] sm:$0xf] %vm896_vm4, %v869_v42  ;;  %v1512_v46 = vunpack.c.l.b16 %v4608_v48 }
 0x1a3   : > { %v4569_v18 = vpop.permute.xlu0 %1385  ;;  %1527 = vrot.lane.b32.xlu1 %v3921_v12, %s3558_s26  ;;  %v4610_v2 = vpack.c.b16 %v1511_v4, %v1511_v4 }
 0x1a4   : > { %6817 = vst [vmem:[#allocation130_spill] sm:$0xff] %v4569_v18  ;;  %v4574_v59 = vpop.permute.xlu2 %1441  ;;  %v4625_v42 = vpack.c.b16 %v1512_v46, %v1512_v46 }
 0x1a5   : > { %6818 = vst [vmem:[#allocation131_spill] sm:$0xff] %v4574_v59  ;;  %v4577_v6 = vpop.permute.xlu1 %1399  ;;  %v6642_v59 = vshll.u32 %v4610_v2, 16 }
 0x1a6   : > { %6819 = vst [vmem:[#allocation132_spill] sm:$0xff] %v4577_v6 }
 0x1a9   : > { %1519 = vrot.lane.b32.xlu0 %v3838_v60, %s3558_s26  ;;  %v938_v17 = vld [vmem:[#allocation2 + $0xc8] sm:$0x3f] }
 0x1aa   : > { %1529 = vrot.lane.b32.xlu2 %v3878_v40, %s3558_s26  ;;  %v974_v45 = vpack.c.bf16 %v938_v17, %v938_v17 }
 0x1ab   : > { %v4583_v3 = vpop.permute.xlu0 %1391  ;;  %1533 = vrot.lane.b32.xlu1 %v3779_v55, %s3558_s26 }
 0x1ac   : > { %6820 = vst [vmem:[#allocation133_spill] sm:$0xff] %v4583_v3  ;;  %v4587_v16 = vpop.permute.xlu2 %1447  ;;  %v1510_v62 = vunpack.c.l.b16 %v974_v45 }
 0x1ad   : > { %6821 = vst [vmem:[#allocation134_spill] sm:$0xff] %v4587_v16  ;;  %v4589_v28 = vpop.permute.xlu1 %1405 }
 0x1ae   : > { %6822 = vst [vmem:[#allocation135_spill] sm:$0xff] %v4589_v28  ;;  %v4637_v24 = vpack.c.b16 %v1510_v62, %v1510_v62 }
 0x1b0   : > { %v6640_v36 = vshll.u32 %v4637_v24, 16 }
 0x1b1   : > { %1525 = vrot.lane.b32.xlu0 %v3741_v27, %s3558_s26 }
 0x1b2   : > { %1535 = vrot.lane.b32.xlu2 %v3941_v9, %s3558_s26  ;;  %v1561_v6 = vrot.slane %v6640_v36, 1  ;;  %v1568_v36 = vrot.slane %v6642_v59, 1  ;;  %v6645_v59 = vshrl.u32 %v4606_v34, 16 }
 0x1b3   : > { %v4597_v33 = vpop.permute.xlu0 %1397  ;;  %1539 = vrot.lane.b32.xlu1 %v3975_v5, %s3558_s26 }
 0x1b4   : > { %6823 = vst [vmem:[#allocation136_spill] sm:$0xff] %v4597_v33  ;;  %v4602_v35 = vpop.permute.xlu2 %1453 }
 0x1b5   : > { %6824 = vst [vmem:[#allocation137_spill] sm:$0xff] %v4602_v35  ;;  %v4604_v13 = vpop.permute.xlu1 %1439 }
 0x1b6   : > { %6825 = vst [vmem:[#allocation138_spill] sm:$0xff] %v4604_v13 }
 0x1b9   : > { %1531 = vrot.lane.b32.xlu0 %v3894_v19, %s3558_s26 }
 0x1ba   : > { %1541 = vrot.lane.b32.xlu2 %v4606_v34, %s3558_s26 }
 0x1bb   : > { %v4617_v10 = vpop.permute.xlu0 %1403  ;;  %1545 = vrot.lane.b32.xlu1 %v4610_v2, %s3558_s26 }
 0x1bc   : > { %6826 = vst [vmem:[#allocation139_spill] sm:$0xff] %v4617_v10  ;;  %v4621_v58 = vpop.permute.xlu2 %1459 }
 0x1bd   : > { %6827 = vst [vmem:[#allocation140_spill] sm:$0xff] %v4621_v58  ;;  %v4623_v11 = vpop.permute.xlu1 %1445  ;;  %v6641_v58 = vshrl.u32 %v4637_v24, 16 }
 0x1be   : > { %6828 = vst [vmem:[#allocation141_spill] sm:$0xff] %v4623_v11  ;;  %v246_v11 = vld [vmem:[%s3612_s17 + $0x1f8] sm:$0xff] }
 0x1c1   : > { %1537 = vrot.lane.b32.xlu0 %v3957_v54, %s3558_s26 }
 0x1c2   : > { %1547 = vrot.lane.b32.xlu2 %v4625_v42, %s3558_s26 }
 0x1c3   : > { %v4631_v63 = vpop.permute.xlu0 %1437  ;;  %1579 = vrot.lane.b32.xlu1 %v3858_v47, %s3559_s27 }
 0x1c4   : > { %6829 = vst [vmem:[#allocation142_spill] sm:$0xff] %v4631_v63  ;;  %v4635_v32 = vpop.permute.xlu2 %1465 }
 0x1c5   : > { %6830 = vst [vmem:[#allocation143_spill] sm:$0xff] %v4635_v32  ;;  %v4639_v4 = vpop.permute.xlu1 %1451  ;;  %v6658_v32 = vrot.slane %v4625_v42, 1 }
 0x1c6   : > { %6831 = vst [vmem:[#allocation144_spill] sm:$0xff] %v4639_v4 }
 0x1c9   : > { %1543 = vrot.lane.b32.xlu0 %v4637_v24, %s3558_s26 }
 0x1ca   : > { %1581 = vrot.lane.b32.xlu2 %v3876_v39, %s3559_s27 }
 0x1cb   : > { %v4645_v30 = vpop.permute.xlu0 %1443  ;;  %1585 = vrot.lane.b32.xlu1 %v3777_v53, %s3559_s27 }
 0x1cc   : > { %6832 = vst [vmem:[#allocation145_spill] sm:$0xff] %v4645_v30  ;;  %v4649_v46 = vpop.permute.xlu2 %1475  ;;  %v6643_v30 = vshrl.u32 %v4610_v2, 16 }
 0x1cd   : > { %6833 = vst [vmem:[#allocation146_spill] sm:$0xff] %v4649_v46  ;;  %v4651_v17 = vpop.permute.xlu1 %1457  ;;  %v6859_v46 = vld [vmem:[#allocation22_spill] sm:$0xff] }
 0x1ce   : > { %6834 = vst [vmem:[#allocation147_spill] sm:$0xff] %v4651_v17  ;;  %v4704_v4 = vor.u32 %v1568_v36, %v6643_v30 }
 0x1d1   : > { %1577 = vrot.lane.b32.xlu0 %v3739_v26, %s3559_s27 }
 0x1d2   : > { %1587 = vrot.lane.b32.xlu2 %v3935_v49, %s3559_s27 }
 0x1d3   : > { %v4657_v45 = vpop.permute.xlu0 %1449  ;;  %1591 = vrot.lane.b32.xlu1 %v3916_v0, %s3559_s27 }
 0x1d4   : > { %6835 = vst [vmem:[#allocation148_spill] sm:$0xff] %v4657_v45  ;;  %v4661_v62 = vpop.permute.xlu2 %1481  ;;  %v4684_v45 = vor.u32 %v1561_v6, %v6641_v58  ;;  %v6644_v58 = vshll.u32 %v4606_v34, 16 }
 0x1d5   : > { %6836 = vst [vmem:[#allocation149_spill] sm:$0xff] %v4661_v62  ;;  %v4663_v7 = vpop.permute.xlu1 %1463 }
 0x1d6   : > { %6837 = vst [vmem:[#allocation150_spill] sm:$0xff] %v4663_v7  ;;  %v1554_v63 = vrot.slane %v6644_v58, 1  ;;  %v6646_v58 = vshll.u32 %v4625_v42, 16  ;;  %v6660_v7 = vrot.slane %v4637_v24, 1 }
 0x1d8   : > { %v4722_v30 = vor.u32 %v1554_v63, %v6645_v59  ;;  %v1575_v62 = vrot.slane %v6646_v58, 1  ;;  %v6851_v58 = vrot.slane %v3741_v27, 1 }
 0x1d9   : > { %1583 = vrot.lane.b32.xlu0 %v3855_v41, %s3559_s27 }
 0x1da   : > { %1593 = vrot.lane.b32.xlu2 %v3813_v23, %s3559_s27 }
 0x1db   : > { %v4670_v26 = vpop.permute.xlu0 %1455  ;;  %1597 = vrot.lane.b32.xlu1 %v3973_v57, %s3559_s27 }
 0x1dc   : > { %6838 = vst [vmem:[#allocation151_spill] sm:$0xff] %v4670_v26  ;;  %v4677_v16 = vpop.permute.xlu2 %1487 }
 0x1dd   : > { %6839 = vst [vmem:[#allocation152_spill] sm:$0xff] %v4677_v16  ;;  %v4679_v15 = vpop.permute.xlu1 %1473 }
 0x1de   : > { %6840 = vst [vmem:[#allocation153_spill] sm:$0xff] %v4679_v15 }
 0x1e1   : > { %1589 = vrot.lane.b32.xlu0 %v3898_v25, %s3559_s27 }
 0x1e2   : > { %1599 = vrot.lane.b32.xlu2 %v3988_v61, %s3559_s27 }
 0x1e3   : > { %v4693_v16 = vpop.permute.xlu0 %1461  ;;  %1603 = vrot.lane.b32.xlu1 %v4684_v45, %s3559_s27 }
 0x1e4   : > { %6841 = vst [vmem:[#allocation154_spill] sm:$0xff] %v4693_v16  ;;  %v4697_v15 = vpop.permute.xlu2 %1493 }
 0x1e5   : > { %6842 = vst [vmem:[#allocation155_spill] sm:$0xff] %v4697_v15  ;;  %v4699_v6 = vpop.permute.xlu1 %1479 }
 0x1e6   : > { %6843 = vst [vmem:[#allocation156_spill] sm:$0xff] %v4699_v6  ;;  %v6845_v6 = vrot.slane %v3702_v51, 1 }
 0x1e9   : > { %1595 = vrot.lane.b32.xlu0 %v3955_v38, %s3559_s27 }
 0x1ea   : > { %1605 = vrot.lane.b32.xlu2 %v4704_v4, %s3559_s27 }
 0x1eb   : > { %v4713_v15 = vpop.permute.xlu0 %1467  ;;  %1613 = vrot.lane.b32.xlu1 %v6845_v6, %s3560_s28 }
 0x1ec   : > { %6844 = vst [vmem:[#allocation157_spill] sm:$0xff] %v4713_v15  ;;  %v4718_v36 = vpop.permute.xlu2 %1499  ;;  %v6647_v15 = vshrl.u32 %v4625_v42, 16 }
 0x1ed   : > { %6846 = vst [vmem:[#allocation158_spill] sm:$0xff] %v4718_v36  ;;  %v4724_v3 = vpop.permute.xlu1 %1485 }
 0x1ee   : > { %6847 = vst [vmem:[#allocation159_spill] sm:$0xff] %v4724_v3  ;;  %v4742_v6 = vor.u32 %v1575_v62, %v6647_v15  ;;  %v237_v3 = vld [vmem:[%s3612_s17 + $0x1b0] sm:$0xff] }
 0x1f1   : > { %1601 = vrot.lane.b32.xlu0 %v4722_v30, %s3559_s27 }
 0x1f2   : > { %1615 = vrot.lane.b32.xlu2 %v4024_v31, %s3560_s28 }
 0x1f3   : > { %v4734_v51 = vpop.permute.xlu0 %1477  ;;  %1619 = vrot.lane.b32.xlu1 %v4008_v43, %s3560_s28 }
 0x1f4   : > { %6848 = vst [vmem:[#allocation160_spill] sm:$0xff] %v4734_v51  ;;  %v4738_v63 = vpop.permute.xlu2 %1517 }
 0x1f5   : > { %6849 = vst [vmem:[#allocation161_spill] sm:$0xff] %v4738_v63  ;;  %v4744_v59 = vpop.permute.xlu1 %1491  ;;  %v6858_v63 = vld [vmem:[#allocation19_spill] sm:$0xff] }
 0x1f6   : > { %6850 = vst [vmem:[#allocation162_spill] sm:$0xff] %v4744_v59 }
 0x1f9   : > { %1607 = vrot.lane.b32.xlu0 %v4742_v6, %s3559_s27 }
 0x1fa   : > { %1621 = vrot.lane.b32.xlu2 %v6851_v58, %s3560_s28 }
 0x1fb   : > { %v4751_v36 = vpop.permute.xlu0 %1483  ;;  %1625 = vrot.lane.b32.xlu1 %v4027_v52, %s3560_s28 }
 0x1fc   : > { %6852 = vst [vmem:[#allocation163_spill] sm:$0xff] %v4751_v36  ;;  %v4755_v51 = vpop.permute.xlu2 %1523  ;;  %v1609_v36 = vrot.slane %v4606_v34, 1 }
 0x1fd   : > { %6853 = vst [vmem:[#allocation164_spill] sm:$0xff] %v4755_v51  ;;  %v4757_v62 = vpop.permute.xlu1 %1497  ;;  %v238_v51 = vld [vmem:[%s3612_s17 + $0x1b8] sm:$0xff] }
 0x1fe   : > { %6854 = vst [vmem:[#allocation165_spill] sm:$0xff] %v4757_v62  ;;  %v245_v62 = vld [vmem:[%s3612_s17 + $0x1f0] sm:$0xff] }
 0x1ff   : > { %v277_v18 = vmax.f32 %v237_v3, %v245_v62 }
 0x201   : > { %1617 = vrot.lane.b32.xlu0 %v3991_v37, %s3560_s28 }
 0x202   : > { %1627 = vrot.lane.b32.xlu2 %v4064_v22, %s3560_s28 }
 0x203   : > { %v4763_v15 = vpop.permute.xlu0 %1489  ;;  %1631 = vrot.lane.b32.xlu1 %v4047_v8, %s3560_s28 }
 0x204   : > { %6855 = vst [vmem:[#allocation166_spill] sm:$0xff] %v4763_v15  ;;  %v4767_v58 = vpop.permute.xlu2 %1529  ;;  %v278_v15 = vmax.f32 %v238_v51, %v246_v11  ;;  %v6863_v11 = vrot.slane %v3779_v55, 1 }
 0x205   : > { %6856 = vst [vmem:[#allocation167_spill] sm:$0xff] %v4767_v58  ;;  %v4769_v59 = vpop.permute.xlu1 %1503 }
 0x206   : > { %6857 = vst [vmem:[#allocation168_spill] sm:$0xff] %v4769_v59  ;;  %v294_v59 = vmax.f32 %v277_v18, %v278_v15 }
 0x208   : > { %v356_v14 = vrot.slane %v294_v59, 2  ;;  %v357_v10 = vrot.slane %v294_v59, 4  ;;  %v358_v3 = vrot.slane %v294_v59, 6  ;;  %v3440_v62 = vrot.slane %v294_v59, 9 }
 0x209   : > { %1623 = vrot.lane.b32.xlu0 %v6858_v63, %s3560_s28 }
 0x20a   : > { %1633 = vrot.lane.b32.xlu2 %v6859_v46, %s3560_s28  ;;  %v3441_v28 = vrot.slane %v356_v14, 9  ;;  %v3442_v17 = vrot.slane %v357_v10, 9  ;;  %v659_v51 = vmax.f32 %v294_v59, %v3440_v62 }
 0x20b   : > { %v4780_v13 = vpop.permute.xlu0 %1495  ;;  %1637 = vrot.lane.b32.xlu1 %v1609_v36, %s3560_s28  ;;  %v3443_v36 = vrot.slane %v358_v3, 9 }
 0x20c   : > { %6860 = vst [vmem:[#allocation19_spill] sm:$0xff] %v4780_v13  ;;  %v4783_v21 = vpop.permute.xlu2 %1535  ;;  %v660_v15 = vmax.f32 %v356_v14, %v3441_v28  ;;  %v661_v18 = vmax.f32 %v357_v10, %v3442_v17  ;;  %v6867_v10 = vld [vmem:[#allocation20_spill] sm:$0xff] }
 0x20d   : > { %6861 = vst [vmem:[#allocation22_spill] sm:$0xff] %v4783_v21  ;;  %v4785_v16 = vpop.permute.xlu1 %1521  ;;  %v662_v13 = vmax.f32 %v358_v3, %v3443_v36  ;;  %v6871_v3 = vld [vmem:[#allocation29_spill] sm:$0xff] }
 0x20e   : > { %6862 = vst [vmem:[#allocation169_spill] sm:$0xff] %v4785_v16  ;;  %v824_v16 = vperm.slane %v659_v51, 0  ;;  %v825_v35 = vperm.slane %v660_v15, 0 }
 0x20f   : > { %v827_v59 = vperm.slane %v662_v13, 0 }
 0x210   : > { %v876_v62 = vsel %vm828_vm1, %v825_v35, %v824_v16  ;;  %v6659_v16 = vrot.slane %v4610_v2, 1  ;;  %vm2232_vm1 = vcmask 457728  }
 0x211   : > { %1629 = vrot.lane.b32.xlu0 %v6863_v11, %s3560_s28  ;;  %v826_v11 = vperm.slane %v661_v18, 0 }
 0x212   : > { %1639 = vrot.lane.b32.xlu2 %v6660_v7, %s3560_s28  ;;  %v6882_v7 = vld [vmem:[#allocation28_spill] sm:$0xff] }
 0x213   : > { %v4795_v21 = vpop.permute.xlu0 %1501  ;;  %1643 = vrot.lane.b32.xlu1 %v6658_v32, %s3560_s28  ;;  %v877_v14 = vsel %vm830_vm2, %v826_v11, %v876_v62  ;;  %v6879_v62 = vld [vmem:[#allocation34_spill] sm:$0xff]  ;;  %vm2199_vm2 = vcmask 424960  }
 0x214   : > { %6864 = vst [vmem:[#allocation170_spill] sm:$0xff] %v4795_v21  ;;  %v4800_v33 = vpop.permute.xlu2 %1541  ;;  %v878_v28 = vsel %vm832_vm3, %v827_v59, %v877_v14  ;;  %vm6685_vm3 = vcmask 523264  }
 0x215   : > { %6865 = vst [vmem:[#allocation171_spill] sm:$0xff] %v4800_v33  ;;  %v4802_v58 = vpop.permute.xlu1 %1527 }
 0x216   : > { %6866 = vst [vmem:[#allocation172_spill] sm:$0xff] %v4802_v58 }
 0x217   : > { %912 = vst.msk [vmem:[#allocation2 + $0xe1] sm:$0xf] %vm896_vm4, %v878_v28  ;;  %vm2265_vm4 = vcmask 490496  }
 0x219   : > { %1635 = vrot.lane.b32.xlu0 %v6867_v10, %s3560_s28 }
 0x21a   : > { %1648 = vrot.lane.b32.xlu2 %v3838_v60, %s3561_s29 }
 0x21b   : > { %v4812_v17 = vpop.permute.xlu0 %1519  ;;  %1652 = vrot.lane.b32.xlu1 %v3835_v50, %s3561_s29 }
 0x21c   : > { %6868 = vst [vmem:[#allocation20_spill] sm:$0xff] %v4812_v17  ;;  %v4816_v13 = vpop.permute.xlu2 %1547 }
 0x21d   : > { %6869 = vst [vmem:[#allocation173_spill] sm:$0xff] %v4816_v13  ;;  %v4819_v35 = vpop.permute.xlu1 %1533  ;;  %v946_v13 = vld [vmem:[#allocation2 + $0x108] sm:$0x3f] }
 0x21e   : > { %6870 = vst [vmem:[#allocation174_spill] sm:$0xff] %v4819_v35  ;;  %v941_v14 = vld [vmem:[#allocation2 + $0xe0] sm:$0x3f] }
 0x221   : > { %1641 = vrot.lane.b32.xlu0 %v6659_v16, %s3560_s28  ;;  %v4858_v16 = vpack.c.bf16 %v941_v14, %v941_v14 }
 0x222   : > { %1654 = vrot.lane.b32.xlu2 %v6871_v3, %s3561_s29 }
 0x223   : > { %v4826_v36 = vpop.permute.xlu0 %1525  ;;  %1658 = vrot.lane.b32.xlu1 %v3878_v40, %s3561_s29  ;;  %v1646_v33 = vunpack.c.l.b16 %v4858_v16 }
 0x224   : > { %6872 = vst [vmem:[#allocation29_spill] sm:$0xff] %v4826_v36  ;;  %v4830_v60 = vpop.permute.xlu2 %1581  ;;  %v6895_v36 = vld [vmem:[#allocation41_spill] sm:$0xff] }
 0x225   : > { %6873 = vst [vmem:[#allocation175_spill] sm:$0xff] %v4830_v60  ;;  %v4832_v51 = vpop.permute.xlu1 %1539 }
 0x226   : > { %6874 = vst [vmem:[#allocation176_spill] sm:$0xff] %v4832_v51 }
 0x229   : > { %1650 = vrot.lane.b32.xlu0 %v3860_v44, %s3561_s29 }
 0x22a   : > { %1660 = vrot.lane.b32.xlu2 %v3894_v19, %s3561_s29 }
 0x22b   : > { %v4838_v15 = vpop.permute.xlu0 %1531  ;;  %1664 = vrot.lane.b32.xlu1 %v3941_v9, %s3561_s29 }
 0x22c   : > { %6875 = vst [vmem:[#allocation177_spill] sm:$0xff] %v4838_v15  ;;  %v4842_v18 = vpop.permute.xlu2 %1587 }
 0x22d   : > { %6876 = vst [vmem:[#allocation178_spill] sm:$0xff] %v4842_v18  ;;  %v4844_v11 = vpop.permute.xlu1 %1545  ;;  %v4873_v18 = vpack.c.b16 %v1646_v33, %v1646_v33 }
 0x22e   : > { %6877 = vst [vmem:[#allocation179_spill] sm:$0xff] %v4844_v11 }
 0x231   : > { %1656 = vrot.lane.b32.xlu0 %v3921_v12, %s3561_s29 }
 0x232   : > { %1666 = vrot.lane.b32.xlu2 %v3957_v54, %s3561_s29 }
 0x233   : > { %v4850_v59 = vpop.permute.xlu0 %1537  ;;  %1670 = vrot.lane.b32.xlu1 %v6879_v62, %s3561_s29 }
 0x234   : > { %6878 = vst [vmem:[#allocation180_spill] sm:$0xff] %v4850_v59  ;;  %v4854_v28 = vpop.permute.xlu2 %1593 }
 0x235   : > { %6880 = vst [vmem:[#allocation34_spill] sm:$0xff] %v4854_v28  ;;  %v4856_v32 = vpop.permute.xlu1 %1579 }
 0x236   : > { %6881 = vst [vmem:[#allocation181_spill] sm:$0xff] %v4856_v32 }
 0x239   : > { %1662 = vrot.lane.b32.xlu0 %v6882_v7, %s3561_s29 }
 0x23a   : > { %1672 = vrot.lane.b32.xlu2 %v4637_v24, %s3561_s29 }
 0x23b   : > { %v4865_v21 = vpop.permute.xlu0 %1543  ;;  %1676 = vrot.lane.b32.xlu1 %v4625_v42, %s3561_s29 }
 0x23c   : > { %6883 = vst [vmem:[#allocation28_spill] sm:$0xff] %v4865_v21  ;;  %v4869_v35 = vpop.permute.xlu2 %1599 }
 0x23d   : > { %6884 = vst [vmem:[#allocation182_spill] sm:$0xff] %v4869_v35  ;;  %v4871_v28 = vpop.permute.xlu1 %1585 }
 0x23e   : > { %6885 = vst [vmem:[#allocation183_spill] sm:$0xff] %v4871_v28  ;;  %v6892_v28 = vld [vmem:[#allocation47_spill] sm:$0xff] }
 0x241   : > { %1668 = vrot.lane.b32.xlu0 %v3975_v5, %s3561_s29 }
 0x242   : > { %1678 = vrot.lane.b32.xlu2 %v4873_v18, %s3561_s29 }
 0x243   : > { %v4879_v14 = vpop.permute.xlu0 %1577  ;;  %1689 = vrot.lane.b32.xlu1 %v3876_v39, %s3562_s30 }
 0x244   : > { %6886 = vst [vmem:[#allocation184_spill] sm:$0xff] %v4879_v14  ;;  %v4883_v21 = vpop.permute.xlu2 %1605 }
 0x245   : > { %6887 = vst [vmem:[#allocation185_spill] sm:$0xff] %v4883_v21  ;;  %v4885_v58 = vpop.permute.xlu1 %1591  ;;  %v6979_v21 = vshll.u32 %v4637_v24, 16 }
 0x246   : > { %6888 = vst [vmem:[#allocation186_spill] sm:$0xff] %v4885_v58 }
 0x249   : > { %1674 = vrot.lane.b32.xlu0 %v4610_v2, %s3561_s29  ;;  %s3379_s29 = sshll.u32 %s7330_s13, 1 }
 0x24a   : > { %1691 = vrot.lane.b32.xlu2 %v3855_v41, %s3562_s30 }
 0x24b   : > { %v4891_v33 = vpop.permute.xlu0 %1583  ;;  %1695 = vrot.lane.b32.xlu1 %v3935_v49, %s3562_s30 }
 0x24c   : > { %6889 = vst [vmem:[#allocation187_spill] sm:$0xff] %v4891_v33  ;;  %v4895_v60 = vpop.permute.xlu2 %1615 }
 0x24d   : > { %6890 = vst [vmem:[#allocation188_spill] sm:$0xff] %v4895_v60  ;;  %v4897_v14 = vpop.permute.xlu1 %1597 }
 0x24e   : > { %6891 = vst [vmem:[#allocation189_spill] sm:$0xff] %v4897_v14 }
 0x251   : > { %1687 = vrot.lane.b32.xlu0 %v3858_v47, %s3562_s30 }
 0x252   : > { %1697 = vrot.lane.b32.xlu2 %v3898_v25, %s3562_s30 }
 0x253   : > { %v4903_v39 = vpop.permute.xlu0 %1589  ;;  %1701 = vrot.lane.b32.xlu1 %v6892_v28, %s3562_s30 }
 0x254   : > { %v4907_v41 = vpop.permute.xlu2 %1621 }
 0x255   : > { %6893 = vst [vmem:[#allocation47_spill] sm:$0xff] %v4907_v41  ;;  %v4909_v33 = vpop.permute.xlu1 %1603 }
 0x256   : > { %6894 = vst [vmem:[#allocation190_spill] sm:$0xff] %v4909_v33  ;;  %v6899_v33 = vld [vmem:[#allocation56_spill] sm:$0xff] }
 0x259   : > { %1693 = vrot.lane.b32.xlu0 %v6895_v36, %s3562_s30 }
 0x25a   : > { %1703 = vrot.lane.b32.xlu2 %v3955_v38, %s3562_s30 }
 0x25b   : > { %v4915_v60 = vpop.permute.xlu0 %1595  ;;  %1707 = vrot.lane.b32.xlu1 %v3988_v61, %s3562_s30 }
 0x25c   : > { %6896 = vst [vmem:[#allocation41_spill] sm:$0xff] %v4915_v60  ;;  %v4919_v47 = vpop.permute.xlu2 %1627 }
 0x25d   : > { %6897 = vst [vmem:[#allocation191_spill] sm:$0xff] %v4919_v47  ;;  %v4921_v25 = vpop.permute.xlu1 %1613 }
 0x25e   : > { %6898 = vst [vmem:[#allocation192_spill] sm:$0xff] %v4921_v25 }
 0x261   : > { %1699 = vrot.lane.b32.xlu0 %v3916_v0, %s3562_s30 }
 0x262   : > { %1709 = vrot.lane.b32.xlu2 %v6899_v33, %s3562_s30 }
 0x263   : > { %v4927_v41 = vpop.permute.xlu0 %1601  ;;  %1713 = vrot.lane.b32.xlu1 %v4704_v4, %s3562_s30 }
 0x264   : > { %6900 = vst [vmem:[#allocation56_spill] sm:$0xff] %v4927_v41  ;;  %v4931_v32 = vpop.permute.xlu2 %1633 }
 0x265   : > { %6901 = vst [vmem:[#allocation193_spill] sm:$0xff] %v4931_v32  ;;  %v4933_v60 = vpop.permute.xlu1 %1619  ;;  %v6661_v32 = vshll.u32 %v4873_v18, 16 }
 0x266   : > { %6902 = vst [vmem:[#allocation194_spill] sm:$0xff] %v4933_v60 }
 0x267   : > { %v1685_v60 = vrot.slane %v6661_v32, 1 }
 0x269   : > { %1705 = vrot.lane.b32.xlu0 %v3973_v57, %s3562_s30  ;;  %v6662_v57 = vshrl.u32 %v4873_v18, 16 }
 0x26a   : > { %1715 = vrot.lane.b32.xlu2 %v4742_v6, %s3562_s30 }
 0x26b   : > { %v4939_v61 = vpop.permute.xlu0 %1607  ;;  %1720 = vrot.lane.b32.xlu1 %v4024_v31, %s3563_s4  ;;  %v6907_v31 = vld [vmem:[#allocation61_spill] sm:$0xff] }
 0x26c   : > { %6903 = vst [vmem:[#allocation195_spill] sm:$0xff] %v4939_v61  ;;  %v4943_v0 = vpop.permute.xlu2 %1639  ;;  %v944_v61 = vld [vmem:[#allocation2 + $0xf8] sm:$0x3f] }
 0x26d   : > { %6904 = vst [vmem:[#allocation196_spill] sm:$0xff] %v4943_v0  ;;  %v4945_v41 = vpop.permute.xlu1 %1625 }
 0x26e   : > { %6905 = vst [vmem:[#allocation197_spill] sm:$0xff] %v4945_v41  ;;  %v4963_v41 = vor.u32 %v1685_v60, %v6662_v57  ;;  %v6913_v60 = vld [vmem:[#allocation70_spill] sm:$0xff] }
 0x271   : > { %1711 = vrot.lane.b32.xlu0 %v4684_v45, %s3562_s30 }
 0x272   : > { %1722 = vrot.lane.b32.xlu2 %v3991_v37, %s3563_s4 }
 0x273   : > { %v4955_v25 = vpop.permute.xlu0 %1617  ;;  %1726 = vrot.lane.b32.xlu1 %v6907_v31, %s3563_s4 }
 0x274   : > { %6906 = vst [vmem:[#allocation198_spill] sm:$0xff] %v4955_v25  ;;  %v4959_v0 = vpop.permute.xlu2 %1648 }
 0x275   : > { %6908 = vst [vmem:[#allocation61_spill] sm:$0xff] %v4959_v0  ;;  %v4965_v47 = vpop.permute.xlu1 %1631 }
 0x276   : > { %6909 = vst [vmem:[#allocation199_spill] sm:$0xff] %v4965_v47 }
 0x279   : > { %1717 = vrot.lane.b32.xlu0 %v4963_v41, %s3562_s30 }
 0x27a   : > { %1728 = vrot.lane.b32.xlu2 %v6858_v63, %s3563_s4 }
 0x27b   : > { %v4971_v37 = vpop.permute.xlu0 %1623  ;;  %1732 = vrot.lane.b32.xlu1 %v4064_v22, %s3563_s4 }
 0x27c   : > { %6910 = vst [vmem:[#allocation200_spill] sm:$0xff] %v4971_v37  ;;  %v4975_v31 = vpop.permute.xlu2 %1654  ;;  %v6944_v37 = vld [vmem:[#allocation98_spill] sm:$0xff] }
 0x27d   : > { %6911 = vst [vmem:[#allocation201_spill] sm:$0xff] %v4975_v31  ;;  %v4977_v32 = vpop.permute.xlu1 %1637 }
 0x27e   : > { %6912 = vst [vmem:[#allocation202_spill] sm:$0xff] %v4977_v32 }
 0x281   : > { %1724 = vrot.lane.b32.xlu0 %v4008_v43, %s3563_s4  ;;  %v6918_v43 = vrot.slane %v4637_v24, 1 }
 0x282   : > { %1734 = vrot.lane.b32.xlu2 %v6913_v60, %s3563_s4 }
 0x283   : > { %v4983_v57 = vpop.permute.xlu0 %1629  ;;  %1738 = vrot.lane.b32.xlu1 %v6859_v46, %s3563_s4  ;;  %v1719_v46 = vrot.slane %v4873_v18, 1 }
 0x284   : > { %6914 = vst [vmem:[#allocation70_spill] sm:$0xff] %v4983_v57  ;;  %v4987_v63 = vpop.permute.xlu2 %1660 }
 0x285   : > { %6915 = vst [vmem:[#allocation203_spill] sm:$0xff] %v4987_v63  ;;  %v4989_v47 = vpop.permute.xlu1 %1643 }
 0x286   : > { %6916 = vst [vmem:[#allocation204_spill] sm:$0xff] %v4989_v47 }
 0x289   : > { %1730 = vrot.lane.b32.xlu0 %v4027_v52, %s3563_s4  ;;  %v6921_v52 = vrot.slane %v4610_v2, 1 }
 0x28a   : > { %1740 = vrot.lane.b32.xlu2 %v6867_v10, %s3563_s4 }
 0x28b   : > { %v4995_v22 = vpop.permute.xlu0 %1635  ;;  %1744 = vrot.lane.b32.xlu1 %v6918_v43, %s3563_s4 }
 0x28c   : > { %6917 = vst [vmem:[#allocation205_spill] sm:$0xff] %v4995_v22  ;;  %v5000_v60 = vpop.permute.xlu2 %1666 }
 0x28d   : > { %6919 = vst [vmem:[#allocation206_spill] sm:$0xff] %v5000_v60  ;;  %v5002_v32 = vpop.permute.xlu1 %1652 }
 0x28e   : > { %6920 = vst [vmem:[#allocation207_spill] sm:$0xff] %v5002_v32 }
 0x291   : > { %1736 = vrot.lane.b32.xlu0 %v4047_v8, %s3563_s4 }
 0x292   : > { %1746 = vrot.lane.b32.xlu2 %v6921_v52, %s3563_s4 }
 0x293   : > { %v5010_v10 = vpop.permute.xlu0 %1641  ;;  %1750 = vrot.lane.b32.xlu1 %v1719_v46, %s3563_s4  ;;  %v6928_v46 = vrot.slane %v4625_v42, 1 }
 0x294   : > { %6922 = vst [vmem:[#allocation208_spill] sm:$0xff] %v5010_v10  ;;  %v5013_v47 = vpop.permute.xlu2 %1672 }
 0x295   : > { %6923 = vst [vmem:[#allocation209_spill] sm:$0xff] %v5013_v47  ;;  %v5015_v43 = vpop.permute.xlu1 %1658  ;;  %v6929_v47 = vld [vmem:[#allocation85_spill] sm:$0xff] }
 0x296   : > { %6924 = vst [vmem:[#allocation210_spill] sm:$0xff] %v5015_v43 }
 0x299   : > { %1742 = vrot.lane.b32.xlu0 %v4283_v56, %s3563_s4 }
 0x29a   : > { %1755 = vrot.lane.b32.xlu2 %v3860_v44, %s3564_s5 }
 0x29b   : > { %v5021_v8 = vpop.permute.xlu0 %1650  ;;  %1759 = vrot.lane.b32.xlu1 %v6871_v3, %s3564_s5 }
 0x29c   : > { %6925 = vst [vmem:[#allocation211_spill] sm:$0xff] %v5021_v8  ;;  %v5025_v52 = vpop.permute.xlu2 %1678 }
 0x29d   : > { %6926 = vst [vmem:[#allocation212_spill] sm:$0xff] %v5025_v52  ;;  %v5027_v10 = vpop.permute.xlu1 %1664 }
 0x29e   : > { %6927 = vst [vmem:[#allocation213_spill] sm:$0xff] %v5027_v10 }
 0x2a1   : > { %1748 = vrot.lane.b32.xlu0 %v6928_v46, %s3563_s4 }
 0x2a2   : > { %1761 = vrot.lane.b32.xlu2 %v6929_v47, %s3564_s5 }
 0x2a3   : > { %v5034_v56 = vpop.permute.xlu0 %1656  ;;  %1765 = vrot.lane.b32.xlu1 %v3894_v19, %s3564_s5 }
 0x2a4   : > { %6930 = vst [vmem:[#allocation85_spill] sm:$0xff] %v5034_v56  ;;  %v5038_v44 = vpop.permute.xlu2 %1691  ;;  %v6963_v56 = vshll.u32 %v3894_v19, 16 }
 0x2a5   : > { %6931 = vst [vmem:[#allocation214_spill] sm:$0xff] %v5038_v44  ;;  %v5040_v60 = vpop.permute.xlu1 %1670 }
 0x2a6   : > { %6932 = vst [vmem:[#allocation215_spill] sm:$0xff] %v5040_v60  ;;  %v942_v60 = vld [vmem:[#allocation2 + $0xe8] sm:$0x3f] }
 0x2a7   : > { %v5066_v57 = vpack.c.bf16 %v942_v60, %v942_v60 }
 0x2a9   : > { %1757 = vrot.lane.b32.xlu0 %v3835_v50, %s3564_s5  ;;  %v6937_v50 = vld [vmem:[#allocation91_spill] sm:$0xff] }
 0x2aa   : > { %1767 = vrot.lane.b32.xlu2 %v6882_v7, %s3564_s5 }
 0x2ab   : > { %v5046_v3 = vpop.permute.xlu0 %1662  ;;  %1771 = vrot.lane.b32.xlu1 %v3957_v54, %s3564_s5 }
 0x2ac   : > { %6933 = vst [vmem:[#allocation216_spill] sm:$0xff] %v5046_v3  ;;  %v5050_v47 = vpop.permute.xlu2 %1697  ;;  %v6959_v3 = vshrl.u32 %v3894_v19, 16  ;;  %v6966_v19 = vshrl.u32 %v3957_v54, 16 }
 0x2ad   : > { %6934 = vst [vmem:[#allocation217_spill] sm:$0xff] %v5050_v47  ;;  %v5052_v46 = vpop.permute.xlu1 %1676 }
 0x2ae   : > { %6935 = vst [vmem:[#allocation218_spill] sm:$0xff] %v5052_v46  ;;  %v1753_v46 = vunpack.c.l.b16 %v5066_v57  ;;  %v2343_v0 = vrot.slane %v6959_v3, 7 }
 0x2b0   : > { %v5081_v43 = vpack.c.b16 %v1753_v46, %v1753_v46 }
 0x2b1   : > { %1763 = vrot.lane.b32.xlu0 %v3878_v40, %s3564_s5 }
 0x2b2   : > { %1773 = vrot.lane.b32.xlu2 %v3975_v5, %s3564_s5 }
 0x2b3   : > { %v5058_v52 = vpop.permute.xlu0 %1668  ;;  %1777 = vrot.lane.b32.xlu1 %v6937_v50, %s3564_s5 }
 0x2b4   : > { %6936 = vst [vmem:[#allocation219_spill] sm:$0xff] %v5058_v52  ;;  %v5062_v22 = vpop.permute.xlu2 %1703 }
 0x2b5   : > { %6938 = vst [vmem:[#allocation91_spill] sm:$0xff] %v5062_v22  ;;  %v5064_v10 = vpop.permute.xlu1 %1689 }
 0x2b6   : > { %6939 = vst [vmem:[#allocation220_spill] sm:$0xff] %v5064_v10 }
 0x2b9   : > { %1769 = vrot.lane.b32.xlu0 %v4343_v20, %s3564_s5 }
 0x2ba   : > { %1779 = vrot.lane.b32.xlu2 %v4610_v2, %s3564_s5 }
 0x2bb   : > { %v5073_v47 = vpop.permute.xlu0 %1674  ;;  %1783 = vrot.lane.b32.xlu1 %v4873_v18, %s3564_s5 }
 0x2bc   : > { %6940 = vst [vmem:[#allocation221_spill] sm:$0xff] %v5073_v47  ;;  %v5077_v52 = vpop.permute.xlu2 %1709 }
 0x2bd   : > { %6941 = vst [vmem:[#allocation222_spill] sm:$0xff] %v5077_v52  ;;  %v5079_v22 = vpop.permute.xlu1 %1695 }
 0x2be   : > { %6942 = vst [vmem:[#allocation223_spill] sm:$0xff] %v5079_v22 }
 0x2c1   : > { %1775 = vrot.lane.b32.xlu0 %v6879_v62, %s3564_s5 }
 0x2c2   : > { %1785 = vrot.lane.b32.xlu2 %v5081_v43, %s3564_s5 }
 0x2c3   : > { %v5087_v60 = vpop.permute.xlu0 %1687  ;;  %2307 = vrot.lane.b32.xlu1 %v6944_v37, %s3551_s19  ;;  %v6950_v37 = vld [vmem:[#allocation114_spill] sm:$0xff] }
 0x2c4   : > { %6943 = vst [vmem:[#allocation224_spill] sm:$0xff] %v5087_v60  ;;  %v5091_v47 = vpop.permute.xlu2 %1715 }
 0x2c5   : > { %6945 = vst [vmem:[#allocation98_spill] sm:$0xff] %v5091_v47  ;;  %v5093_v44 = vpop.permute.xlu1 %1701  ;;  %v6951_v47 = vshrl.u32 %v3741_v27, 16 }
 0x2c6   : > { %6946 = vst [vmem:[#allocation225_spill] sm:$0xff] %v5093_v44 }
 0x2c7   : > { %v2337_v25 = vrot.slane %v6951_v47, 7  ;;  %v6957_v47 = vshrl.u32 %v3921_v12, 16 }
 0x2c9   : > { %1781 = vrot.lane.b32.xlu0 %v4625_v42, %s3564_s5  ;;  %v2339_v60 = vrot.slane %v6957_v47, 7  ;;  %v5145_v47 = vor.u32 %v2343_v0, %v6963_v56  ;;  %v2349_v0 = vrot.slane %v6966_v19, 7  ;;  %s181_s5 = scalar_lea.vmem %s6547_s3, %s3379_s29 }
 0x2ca   : > { %2309 = vrot.lane.b32.xlu2 %v6892_v28, %s3551_s19 }
 0x2cb   : > { %v5099_v46 = vpop.permute.xlu0 %1693  ;;  %2313 = vrot.lane.b32.xlu1 %v6899_v33, %s3551_s19 }
 0x2cc   : > { %6947 = vst [vmem:[#allocation226_spill] sm:$0xff] %v5099_v46  ;;  %v5103_v52 = vpop.permute.xlu2 %1722 }
 0x2cd   : > { %6948 = vst [vmem:[#allocation227_spill] sm:$0xff] %v5103_v52  ;;  %v5105_v32 = vpop.permute.xlu1 %1707 }
 0x2ce   : > { %6949 = vst [vmem:[#allocation228_spill] sm:$0xff] %v5105_v32  ;;  %v6955_v32 = vshll.u32 %v3741_v27, 16 }
 0x2d0   : > { %v2338_v44 = vor.u32 %v2337_v25, %v6955_v32  ;;  %v6663_v32 = vshll.u32 %v5081_v43, 16  ;;  %v6962_v25 = vshll.u32 %v3921_v12, 16 }
 0x2d1   : > { %2305 = vrot.lane.b32.xlu0 %v6895_v36, %s3551_s19  ;;  %v6956_v36 = vld [vmem:[#allocation105_spill] sm:$0xff] }
 0x2d2   : > { %2315 = vrot.lane.b32.xlu2 %v6950_v37, %s3551_s19  ;;  %v5141_v22 = vor.u32 %v2339_v60, %v6962_v25  ;;  %v2303_v3 = vrot.slane %v6663_v32, 1 }
 0x2d3   : > { %v5113_v63 = vpop.permute.xlu0 %1699  ;;  %2319 = vrot.lane.b32.xlu1 %v4742_v6, %s3551_s19 }
 0x2d4   : > { %6952 = vst [vmem:[#allocation114_spill] sm:$0xff] %v5113_v63  ;;  %v5117_v46 = vpop.permute.xlu2 %1728 }
 0x2d5   : > { %6953 = vst [vmem:[#allocation229_spill] sm:$0xff] %v5117_v46  ;;  %v5119_v31 = vpop.permute.xlu1 %1713 }
 0x2d6   : > { %6954 = vst [vmem:[#allocation230_spill] sm:$0xff] %v5119_v31 }
 0x2d9   : > { %2311 = vrot.lane.b32.xlu0 %v6956_v36, %s3551_s19 }
 0x2da   : > { %2321 = vrot.lane.b32.xlu2 %v4963_v41, %s3551_s19 }
 0x2db   : > { %v5129_v63 = vpop.permute.xlu0 %1705  ;;  %2389 = vrot.lane.b32.xlu1 %v2338_v44, %s3550_s18  ;;  %v6666_v44 = vshrl.u32 %v5081_v43, 16 }
 0x2dc   : > { %6958 = vst [vmem:[#allocation105_spill] sm:$0xff] %v5129_v63  ;;  %v5134_v31 = vpop.permute.xlu2 %1734  ;;  %v943_v63 = vld [vmem:[#allocation2 + $0xf0] sm:$0x3f] }
 0x2dd   : > { %6960 = vst [vmem:[#allocation231_spill] sm:$0xff] %v5134_v31  ;;  %v5136_v46 = vpop.permute.xlu1 %1720  ;;  %v979_v56 = vpack.c.bf16 %v943_v63, %v943_v63  ;;  %v5166_v32 = vor.u32 %v2303_v3, %v6666_v44  ;;  %v6971_v63 = vshrl.u32 %v3878_v40, 16  ;;  %v6972_v3 = vshrl.u32 %v3975_v5, 16 }
 0x2de   : > { %6961 = vst [vmem:[#allocation232_spill] sm:$0xff] %v5136_v46  ;;  %v6964_v46 = vshrl.u32 %v3779_v55, 16 }
 0x2df   : > { %v2329_v17 = vunpack.c.l.b16 %v979_v56  ;;  %v2341_v19 = vrot.slane %v6971_v63, 7  ;;  %v2351_v44 = vrot.slane %v6972_v3, 7  ;;  %v982_v56 = vpack.c.bf16 %v946_v13, %v946_v13 }
 0x2e0   : > { %v2345_v31 = vrot.slane %v6964_v46, 7  ;;  %v6969_v46 = vshll.u32 %v3779_v55, 16  ;;  %v6976_v63 = vshll.u32 %v3878_v40, 16  ;;  %v6980_v40 = vshrl.u32 %v3941_v9, 16 }
 0x2e1   : > { %2317 = vrot.lane.b32.xlu0 %v4704_v4, %s3551_s19  ;;  %v2332_v13 = vunpack.c.l.b16 %v982_v56 }
 0x2e2   : > { %2391 = vrot.lane.b32.xlu2 %v5141_v22, %s3550_s18  ;;  %v2346_v10 = vor.u32 %v2345_v31, %v6969_v46 }
 0x2e3   : > { %v5156_v60 = vpop.permute.xlu0 %1711  ;;  %2395 = vrot.lane.b32.xlu1 %v5145_v47, %s3550_s18  ;;  %v5225_v56 = vpack.c.b16 %v2332_v13, %v2332_v13  ;;  %v6987_v13 = vshrl.u32 %v4606_v34, 16 }
 0x2e4   : > { %6965 = vst [vmem:[#allocation233_spill] sm:$0xff] %v5156_v60  ;;  %v5162_v25 = vpop.permute.xlu2 %1740  ;;  %v6970_v60 = vshll.u32 %v3957_v54, 16  ;;  %v6974_v54 = vshrl.u32 %v4637_v24, 16 }
 0x2e5   : > { %6967 = vst [vmem:[#allocation234_spill] sm:$0xff] %v5162_v25  ;;  %v5168_v52 = vpop.permute.xlu1 %1726  ;;  %v980_v25 = vpack.c.bf16 %v944_v61, %v944_v61  ;;  %v6978_v61 = vshll.u32 %v3975_v5, 16  ;;  %v6981_v5 = vshrl.u32 %v4610_v2, 16  ;;  %v6675_v35 = vshrl.u32 %v5225_v56, 16 }
 0x2e6   : > { %6968 = vst [vmem:[#allocation235_spill] sm:$0xff] %v5168_v52  ;;  %v5174_v8 = vor.u32 %v2349_v0, %v6970_v60  ;;  %v2355_v60 = vrot.slane %v6974_v54, 7  ;;  %v5189_v0 = vpack.c.b16 %v2329_v17, %v2329_v17 }
 0x2e7   : > { %v5201_v3 = vor.u32 %v2351_v44, %v6978_v61  ;;  %v2357_v44 = vrot.slane %v6981_v5, 7  ;;  %v6984_v61 = vshll.u32 %v3941_v9, 16  ;;  %v6986_v5 = vshll.u32 %v4610_v2, 16 }
 0x2e8   : > { %v5205_v11 = vor.u32 %v2355_v60, %v6979_v21  ;;  %v6669_v17 = vshrl.u32 %v5189_v0, 16  ;;  %v2365_v60 = vshll.u32 %v5189_v0, 16 }
 0x2e9   : > { %2323 = vrot.lane.b32.xlu0 %v5166_v32, %s3551_s19 }
 0x2ea   : > { %2397 = vrot.lane.b32.xlu2 %v2346_v10, %s3550_s18  ;;  %v5195_v10 = vor.u32 %v2341_v19, %v6976_v63  ;;  %v2347_v19 = vrot.slane %v6980_v40, 7  ;;  %v2364_v21 = vrot.slane %v6669_v17, 7 }
 0x2eb   : > { %v5183_v31 = vpop.permute.xlu0 %1717  ;;  %2401 = vrot.lane.b32.xlu1 %v5174_v8, %s3550_s18 }
 0x2ec   : > { %6973 = vst [vmem:[#allocation236_spill] sm:$0xff] %v5183_v31  ;;  %v5191_v46 = vpop.permute.xlu2 %1746  ;;  %v2330_v31 = vunpack.c.l.b16 %v980_v25  ;;  %v5231_v40 = vor.u32 %v2347_v19, %v6984_v61  ;;  %v2367_v17 = vor.u32 %v2365_v60, %v2364_v21  ;;  %v2385_v21 = vrot.slane %v6675_v35, 7 }
 0x2ed   : > { %6975 = vst [vmem:[#allocation237_spill] sm:$0xff] %v5191_v46  ;;  %v5197_v52 = vpop.permute.xlu1 %1732  ;;  %v5237_v46 = vor.u32 %v2357_v44, %v6986_v5 }
 0x2ee   : > { %6977 = vst [vmem:[#allocation238_spill] sm:$0xff] %v5197_v52  ;;  %v5216_v25 = vpack.c.b16 %v2330_v31, %v2330_v31  ;;  %v945_v52 = vld [vmem:[#allocation2 + $0x100] sm:$0x3f] }
 0x2ef   : > { %v981_v19 = vpack.c.bf16 %v945_v52, %v945_v52  ;;  %v6990_v52 = vshll.u32 %v4606_v34, 16 }
 0x2f0   : > { %v2372_v61 = vshll.u32 %v5216_v25, 16 }
 0x2f1   : > { %2393 = vrot.lane.b32.xlu0 %v5195_v10, %s3550_s18  ;;  %v2331_v59 = vunpack.c.l.b16 %v981_v19 }
 0x2f2   : > { %2403 = vrot.lane.b32.xlu2 %v5201_v3, %s3550_s18 }
 0x2f3   : > { %v5218_v54 = vpop.permute.xlu0 %1724  ;;  %2407 = vrot.lane.b32.xlu1 %v5205_v11, %s3550_s18  ;;  %v5271_v58 = vpack.c.b16 %v2331_v59, %v2331_v59 }
 0x2f4   : > { %6982 = vst [vmem:[#allocation239_spill] sm:$0xff] %v5218_v54  ;;  %v5227_v63 = vpop.permute.xlu2 %1755  ;;  %v6674_v54 = vshrl.u32 %v5216_v25, 16 }
 0x2f5   : > { %6983 = vst [vmem:[#allocation240_spill] sm:$0xff] %v5227_v63  ;;  %v5233_v31 = vpop.permute.xlu1 %1738  ;;  %v2353_v63 = vrot.slane %v6987_v13, 7 }
 0x2f6   : > { %6985 = vst [vmem:[#allocation241_spill] sm:$0xff] %v5233_v31  ;;  %v2371_v44 = vrot.slane %v6674_v54, 7  ;;  %v6677_v31 = vshll.u32 %v5225_v56, 16 }
 0x2f7   : > { %v2354_v13 = vor.u32 %v2353_v63, %v6990_v52 }
 0x2f8   : > { %v5262_v54 = vor.u32 %v2372_v61, %v2371_v44  ;;  %v6995_v44 = vshll.u32 %v4625_v42, 16 }
 0x2f9   : > { %2399 = vrot.lane.b32.xlu0 %v5231_v40, %s3550_s18 }
 0x2fa   : > { %2409 = vrot.lane.b32.xlu2 %v5237_v46, %s3550_s18 }
 0x2fb   : > { %v5250_v5 = vpop.permute.xlu0 %1730  ;;  %2413 = vrot.lane.b32.xlu1 %v2367_v17, %s3550_s18  ;;  %v6992_v17 = vshrl.u32 %v4625_v42, 16 }
 0x2fc   : > { %6988 = vst [vmem:[#allocation242_spill] sm:$0xff] %v5250_v5  ;;  %v5256_v51 = vpop.permute.xlu2 %1761  ;;  %v5266_v5 = vor.u32 %v6677_v31, %v2385_v21 }
 0x2fd   : > { %6989 = vst [vmem:[#allocation243_spill] sm:$0xff] %v5256_v51  ;;  %v5260_v14 = vpop.permute.xlu1 %1744  ;;  %v2359_v35 = vrot.slane %v6992_v17, 7  ;;  %v2379_v17 = vshll.u32 %v5271_v58, 16 }
 0x2fe   : > { %6991 = vst [vmem:[#allocation244_spill] sm:$0xff] %v5260_v14 }
 0x2ff   : > { %v5283_v21 = vor.u32 %v2359_v35, %v6995_v44 }
 0x301   : > { %2405 = vrot.lane.b32.xlu0 %v2354_v13, %s3550_s18  ;;  %v2376_v13 = vshrl.u32 %v5271_v58, 16 }
 0x302   : > { %2415 = vrot.lane.b32.xlu2 %v5262_v54, %s3550_s18 }
 0x303   : > { %v5275_v63 = vpop.permute.xlu0 %1736  ;;  %2419 = vrot.lane.b32.xlu1 %v5266_v5, %s3550_s18  ;;  %v2378_v59 = vrot.slane %v2376_v13, 7 }
 0x304   : > { %6993 = vst [vmem:[#allocation245_spill] sm:$0xff] %v5275_v63  ;;  %v5279_v19 = vpop.permute.xlu2 %1767 }
 0x305   : > { %6994 = vst [vmem:[#allocation246_spill] sm:$0xff] %v5279_v19  ;;  %v5285_v52 = vpop.permute.xlu1 %1750  ;;  %v5299_v44 = vor.u32 %v2379_v17, %v2378_v59  ;;  %v7015_v19 = vld [vmem:[#allocation78_spill] sm:$0xff] }
 0x306   : > { %6996 = vst [vmem:[#allocation247_spill] sm:$0xff] %v5285_v52 }
 0x309   : > { %2411 = vrot.lane.b32.xlu0 %v5283_v21, %s3550_s18 }
 0x30a   : > { %2421 = vrot.lane.b32.xlu2 %v3741_v27, %s3552_s20 }
 0x30b   : > { %v5293_v31 = vpop.permute.xlu0 %1742  ;;  %2425 = vrot.lane.b32.xlu1 %v4606_v34, %s3552_s20 }
 0x30c   : > { %6997 = vst [vmem:[#allocation248_spill] sm:$0xff] %v5293_v31  ;;  %v5297_v35 = vpop.permute.xlu2 %1773  ;;  %v2441_v31 = vrot.slane %v2365_v60, 1  ;;  %v2443_v60 = vrot.slane %v2372_v61, 1 }
 0x30d   : > { %6998 = vst [vmem:[#allocation249_spill] sm:$0xff] %v5297_v35  ;;  %v5301_v52 = vpop.permute.xlu1 %1759 }
 0x30e   : > { %6999 = vst [vmem:[#allocation250_spill] sm:$0xff] %v5301_v52 }
 0x311   : > { %2417 = vrot.lane.b32.xlu0 %v5299_v44, %s3550_s18 }
 0x312   : > { %2427 = vrot.lane.b32.xlu2 %v4637_v24, %s3552_s20 }
 0x313   : > { %v5307_v14 = vpop.permute.xlu0 %1748  ;;  %2431 = vrot.lane.b32.xlu1 %v4625_v42, %s3552_s20 }
 0x314   : > { %7000 = vst [vmem:[#allocation251_spill] sm:$0xff] %v5307_v14  ;;  %v5311_v27 = vpop.permute.xlu2 %1779 }
 0x315   : > { %7001 = vst [vmem:[#allocation252_spill] sm:$0xff] %v5311_v27  ;;  %v5313_v34 = vpop.permute.xlu1 %1765  ;;  %v7006_v27 = vshrl.u32 %v5189_v0, 16 }
 0x316   : > { %7002 = vst [vmem:[#allocation253_spill] sm:$0xff] %v5313_v34 }
 0x317   : > { %v2442_v63 = vor.u32 %v2441_v31, %v7006_v27 }
 0x319   : > { %2423 = vrot.lane.b32.xlu0 %v3779_v55, %s3552_s20 }
 0x31a   : > { %2433 = vrot.lane.b32.xlu2 %v5189_v0, %s3552_s20 }
 0x31b   : > { %v5319_v59 = vpop.permute.xlu0 %1757  ;;  %2437 = vrot.lane.b32.xlu1 %v5271_v58, %s3552_s20 }
 0x31c   : > { %7003 = vst [vmem:[#allocation254_spill] sm:$0xff] %v5319_v59  ;;  %v5323_v35 = vpop.permute.xlu2 %1785 }
 0x31d   : > { %7004 = vst [vmem:[#allocation255_spill] sm:$0xff] %v5323_v35  ;;  %v5325_v14 = vpop.permute.xlu1 %1771 }
 0x31e   : > { %7005 = vst [vmem:[#allocation256_spill] sm:$0xff] %v5325_v14 }
 0x321   : > { %2429 = vrot.lane.b32.xlu0 %v4610_v2, %s3552_s20 }
 0x322   : > { %2439 = vrot.lane.b32.xlu2 %v5225_v56, %s3552_s20 }
 0x323   : > { %v5333_v55 = vpop.permute.xlu0 %1763  ;;  %2451 = vrot.lane.b32.xlu1 %v3813_v23, %s3553_s21  ;;  %v7011_v23 = vshrl.u32 %v5216_v25, 16 }
 0x324   : > { %7007 = vst [vmem:[#allocation257_spill] sm:$0xff] %v5333_v55  ;;  %v2310_v34 = vpop.permute.xlu2 %2309 }
 0x325   : > { %v5337_v52 = vpop.permute.xlu1 %1777  ;;  %v5353_v35 = vor.u32 %v2443_v60, %v7011_v23 }
 0x326   : > { %7008 = vst [vmem:[#allocation258_spill] sm:$0xff] %v5337_v52 }
 0x329   : > { %2435 = vrot.lane.b32.xlu0 %v5216_v25, %s3552_s20 }
 0x32a   : > { %2453 = vrot.lane.b32.xlu2 %v4722_v30, %s3553_s21  ;;  %v2445_v30 = vrot.slane %v2379_v17, 1 }
 0x32b   : > { %v5343_v0 = vpop.permute.xlu0 %1769  ;;  %2457 = vrot.lane.b32.xlu1 %v4704_v4, %s3553_s21 }
 0x32c   : > { %7009 = vst [vmem:[#allocation259_spill] sm:$0xff] %v5343_v0  ;;  %v5347_v31 = vpop.permute.xlu2 %2315 }
 0x32d   : > { %v5349_v27 = vpop.permute.xlu1 %1783 }
 0x32e   : > { %7010 = vst [vmem:[#allocation260_spill] sm:$0xff] %v5349_v27  ;;  %v5365_v27 = vor.u32 %v2445_v30, %v2376_v13 }
 0x331   : > { %2449 = vrot.lane.b32.xlu0 %v3777_v53, %s3553_s21 }
 0x332   : > { %2459 = vrot.lane.b32.xlu2 %v4742_v6, %s3553_s21 }
 0x333   : > { %v5359_v52 = vpop.permute.xlu0 %1775  ;;  %2463 = vrot.lane.b32.xlu1 %v5353_v35, %s3553_s21 }
 0x334   : > { %7012 = vst [vmem:[#allocation261_spill] sm:$0xff] %v5359_v52  ;;  %v5363_v61 = vpop.permute.xlu2 %2321 }
 0x335   : > { %v2308_v14 = vpop.permute.xlu1 %2307 }
 0x339   : > { %2455 = vrot.lane.b32.xlu0 %v4684_v45, %s3553_s21 }
 0x33a   : > { %2465 = vrot.lane.b32.xlu2 %v5365_v27, %s3553_s21 }
 0x33b   : > { %v5371_v53 = vpop.permute.xlu0 %1781  ;;  %2487 = vrot.lane.b32.xlu1 %v5195_v10, %s3554_s22 }
 0x33c   : > { %7013 = vst [vmem:[#allocation262_spill] sm:$0xff] %v5371_v53  ;;  %v5375_v17 = vpop.permute.xlu2 %2391  ;;  %v7014_v53 = vshrl.u32 %v6882_v7, 16 }
 0x33d   : > { %v2314_v60 = vpop.permute.xlu1 %2313 }
 0x33e   : > { %v2472_v52 = vrot.slane %v7014_v53, 7 }
 0x341   : > { %2461 = vrot.lane.b32.xlu0 %v2442_v63, %s3553_s21 }
 0x342   : > { %2489 = vrot.lane.b32.xlu2 %v5145_v47, %s3554_s22 }
 0x343   : > { %v2306_v13 = vpop.permute.xlu0 %2305  ;;  %2517 = vrot.lane.b32.xlu1 %v3921_v12, %s3555_s23 }
 0x344   : > { %v5382_v23 = vpop.permute.xlu2 %2397 }
 0x345   : > { %v2320_v30 = vpop.permute.xlu1 %2319 }
 0x349   : > { %2485 = vrot.lane.b32.xlu0 %v5141_v22, %s3554_s22  ;;  %v7017_v22 = vshll.u32 %v6882_v7, 16 }
 0x34a   : > { %2539 = vrot.lane.b32.xlu2 %v3935_v49, %s3556_s24  ;;  %v7018_v49 = vld [vmem:[#allocation31_spill] sm:$0xff] }
 0x34b   : > { %v2312_v63 = vpop.permute.xlu0 %2311  ;;  %2577 = vrot.lane.b32.xlu1 %v5145_v47, %s3557_s25  ;;  %v2473_v55 = vor.u32 %v2472_v52, %v7017_v22  ;;  %v2663_v59 = vsel %vm1787_vm5, %v7018_v49, %v2314_v60  ;;  %v7022_v49 = vshrl.u32 %v4343_v20, 16 }
 0x34c   : > { %v2660_v12 = vsel %vm1787_vm5, %v7015_v19, %v2312_v63  ;;  %v2404_v51 = vpop.permute.xlu2 %2403  ;;  %v7019_v19 = vshrl.u32 %v6879_v62, 16 }
 0x34d   : > { %v5395_v0 = vsel %vm1836_vm6, %v2660_v12, %v2404_v51  ;;  %v2390_v53 = vpop.permute.xlu1 %2389  ;;  %v7020_v12 = vld [vmem:[#allocation82_spill] sm:$0xff] }
 0x34e   : > { %7016 = vst [vmem:[#allocation78_spill] sm:$0xff] %v5395_v0  ;;  %v2474_v63 = vrot.slane %v7019_v19, 7  ;;  %v2654_v0 = vsel %vm1787_vm5, %v7020_v12, %v2308_v14  ;;  %v2672_v19 = vsel %vm1787_vm5, %v4608_v48, %v2320_v30  ;;  %v7024_v12 = vshll.u32 %v4343_v20, 16  ;;  %v7025_v48 = vld [vmem:[#allocation44_spill] sm:$0xff] }
 0x34f   : > { %v7026_v30 = vld [vmem:[#allocation12_spill] sm:$0xff] }
 0x351   : > { %2491 = vrot.lane.b32.xlu0 %v2473_v55, %s3554_s22 }
 0x352   : > { %2579 = vrot.lane.b32.xlu2 %v2473_v55, %s3557_s25  ;;  %v7021_v55 = vshll.u32 %v6879_v62, 16 }
 0x353   : > { %v2318_v47 = vpop.permute.xlu0 %2317  ;;  %2493 = vrot.lane.b32.xlu1 %v5231_v40, %s3554_s22  ;;  %v2562_v40 = vrot.slane %v7022_v49, 7  ;;  %v5442_v49 = vsel %vm1787_vm5, %v7026_v30, %v7025_v48 }
 0x354   : > { %v2410_v51 = vpop.permute.xlu2 %2409  ;;  %v2475_v60 = vor.u32 %v2474_v63, %v7021_v55  ;;  %v2669_v30 = vsel %vm1787_vm5, %v4591_v1, %v2318_v47 }
 0x355   : > { %v5410_v52 = vsel %vm1836_vm6, %v2663_v59, %v2410_v51  ;;  %v2396_v22 = vpop.permute.xlu1 %2395 }
 0x356   : > { %v5413_v15 = vsel %vm1836_vm6, %v2654_v0, %v2396_v22  ;;  %v7023_v0 = vld [vmem:[#allocation24_spill] sm:$0xff]  ;;  %v2563_v22 = vor.u32 %v2562_v40, %v7024_v12  ;;  %v2680_v40 = vsel %vm1836_vm6, %v5442_v49, %v2390_v53 }
 0x357   : > { %v2657_v51 = vsel %vm1787_vm5, %v7023_v0, %v2310_v34  ;;  %v7027_v34 = vld [vmem:[#allocation26_spill] sm:$0xff] }
 0x359   : > { %2575 = vrot.lane.b32.xlu0 %v5195_v10, %s3557_s25 }
 0x35a   : > { %2495 = vrot.lane.b32.xlu2 %v5174_v8, %s3554_s22 }
 0x35b   : > { %v2324_v14 = vpop.permute.xlu0 %2323  ;;  %2499 = vrot.lane.b32.xlu1 %v2475_v60, %s3554_s22 }
 0x35c   : > { %v2416_v59 = vpop.permute.xlu2 %2415  ;;  %v2678_v1 = vsel %vm1787_vm5, %v5066_v57, %v2324_v14  ;;  %v7034_v57 = vld [vmem:[#allocation39_spill] sm:$0xff]  ;;  %v7035_v14 = vld [vmem:[#allocation17_spill] sm:$0xff] }
 0x35d   : > { %v5429_v63 = vsel %vm1836_vm6, %v2672_v19, %v2416_v59  ;;  %v2402_v10 = vpop.permute.xlu1 %2401  ;;  %v2651_v19 = vsel %vm1787_vm5, %v7027_v34, %v2306_v13 }
 0x35e   : > { %v5434_v55 = vsel %vm1836_vm6, %v2657_v51, %v2402_v10  ;;  %v7029_v10 = vld [vmem:[#allocation18_spill] sm:$0xff] }
 0x361   : > { %2581 = vrot.lane.b32.xlu0 %v2563_v22, %s3557_s25  ;;  %v7028_v22 = vld [vmem:[#allocation51_spill] sm:$0xff] }
 0x362   : > { %2607 = vrot.lane.b32.xlu2 %v6882_v7, %s3558_s26  ;;  %v5459_v13 = vsel %vm1787_vm5, %v7029_v10, %v7028_v22  ;;  %v7032_v22 = vshll.u32 %v6937_v50, 16 }
 0x363   : > { %v2394_v59 = vpop.permute.xlu0 %2393  ;;  %2519 = vrot.lane.b32.xlu1 %v3941_v9, %s3555_s23  ;;  %7030 = vst [vmem:[#allocation31_spill] sm:$0xff] %v5459_v13 }
 0x364   : > { %v5451_v0 = vsel %vm1836_vm6, %v2651_v19, %v2394_v59  ;;  %v2422_v7 = vpop.permute.xlu2 %2421 }
 0x365   : > { %v5454_v51 = vsel %vm1869_vm7, %v2680_v40, %v2422_v7  ;;  %v2408_v12 = vpop.permute.xlu1 %2407 }
 0x366   : > { %v2698_v9 = vsel %vm1836_vm6, %v5459_v13, %v2408_v12 }
 0x369   : > { %2497 = vrot.lane.b32.xlu0 %v5201_v3, %s3554_s22 }
 0x36a   : > { %2629 = vrot.lane.b32.xlu2 %v6892_v28, %s3559_s27  ;;  %v7031_v28 = vshrl.u32 %v6937_v50, 16 }
 0x36b   : > { %v5467_v53 = vpop.permute.xlu0 %2399  ;;  %2541 = vrot.lane.b32.xlu1 %v3955_v38, %s3556_s24 }
 0x36c   : > { %v2428_v48 = vpop.permute.xlu2 %2427  ;;  %v2564_v40 = vrot.slane %v7031_v28, 7 }
 0x36d   : > { %v5474_v34 = vsel %vm1869_vm7, %v2698_v9, %v2428_v48  ;;  %v2414_v19 = vpop.permute.xlu1 %2413  ;;  %v5503_v48 = vsel %vm1787_vm5, %v7035_v14, %v7034_v57  ;;  %v7040_v14 = vshll.u32 %v4873_v18, 16 }
 0x36e   : > { %v2704_v59 = vsel %vm1836_vm6, %v2669_v30, %v2414_v19  ;;  %7036 = vst [vmem:[#allocation82_spill] sm:$0xff] %v5503_v48 }
 0x371   : > { %2609 = vrot.lane.b32.xlu0 %v4343_v20, %s3558_s26  ;;  %v2565_v20 = vor.u32 %v2564_v40, %v7032_v22  ;;  %v2675_v40 = vsel %vm1787_vm5, %v4858_v16, %v5363_v61  ;;  %v7038_v61 = vld [vmem:[#allocation42_spill] sm:$0xff] }
 0x372   : > { %2583 = vrot.lane.b32.xlu2 %v5174_v8, %s3557_s25  ;;  %v7033_v8 = vld [vmem:[#allocation87_spill] sm:$0xff] }
 0x373   : > { %v2406_v38 = vpop.permute.xlu0 %2405  ;;  %2587 = vrot.lane.b32.xlu1 %v2475_v60, %s3557_s25  ;;  %v2666_v60 = vsel %vm1787_vm5, %v7033_v8, %v5347_v31 }
 0x374   : > { %v2434_v7 = vpop.permute.xlu2 %2433 }
 0x375   : > { %v5487_v47 = vsel %vm1869_vm7, %v2704_v59, %v2434_v7  ;;  %v2420_v12 = vpop.permute.xlu1 %2419 }
 0x376   : > { %v2710_v10 = vsel %vm1836_vm6, %v2678_v1, %v2420_v12 }
 0x379   : > { %2631 = vrot.lane.b32.xlu0 %v6956_v36, %s3559_s27  ;;  %v2696_v36 = vsel %vm1836_vm6, %v5503_v48, %v2406_v38  ;;  %v7064_v48 = vld [vmem:[#allocation81_spill] sm:$0xff] }
 0x37a   : > { %2589 = vrot.lane.b32.xlu2 %v2565_v20, %s3557_s25  ;;  %v7037_v20 = vshrl.u32 %v4873_v18, 16 }
 0x37b   : > { %v2412_v9 = vpop.permute.xlu0 %2411  ;;  %2503 = vrot.lane.b32.xlu1 %v5237_v46, %s3554_s22 }
 0x37c   : > { %v2702_v30 = vsel %vm1836_vm6, %v2666_v60, %v2412_v9  ;;  %v2440_v19 = vpop.permute.xlu2 %2439  ;;  %v2476_v16 = vrot.slane %v7037_v20, 7 }
 0x37d   : > { %v5509_v59 = vsel %vm1869_vm7, %v2710_v10, %v2440_v19  ;;  %v2426_v28 = vpop.permute.xlu1 %2425  ;;  %v7039_v10 = vld [vmem:[#allocation13_spill] sm:$0xff] }
 0x37e   : > { %v2722_v31 = vsel %vm1869_vm7, %v2696_v36, %v2426_v28 }
 0x381   : > { %2585 = vrot.lane.b32.xlu0 %v5201_v3, %s3557_s25 }
 0x382   : > { %2505 = vrot.lane.b32.xlu2 %v5283_v21, %s3554_s22 }
 0x383   : > { %v2418_v7 = vpop.permute.xlu0 %2417  ;;  %2611 = vrot.lane.b32.xlu1 %v6879_v62, %s3558_s26  ;;  %v5533_v62 = vsel %vm1787_vm5, %v7039_v10, %v7038_v61 }
 0x384   : > { %v2708_v38 = vsel %vm1836_vm6, %v2675_v40, %v2418_v7  ;;  %v2454_v1 = vpop.permute.xlu2 %2453  ;;  %v2688_v8 = vsel %vm1836_vm6, %v5533_v62, %v5382_v23  ;;  %v7041_v7 = vld [vmem:[#allocation66_spill] sm:$0xff] }
 0x385   : > { %v5523_v12 = vsel %vm1902_vm8, %v2722_v31, %v2454_v1  ;;  %v2432_v22 = vpop.permute.xlu1 %2431 }
 0x386   : > { %v2728_v3 = vsel %vm1869_vm7, %v2702_v30, %v2432_v22  ;;  %v2477_v30 = vor.u32 %v2476_v16, %v7040_v14  ;;  %v7043_v22 = vld [vmem:[#allocation102_spill] sm:$0xff]  ;;  %v7044_v16 = vshrl.u32 %v5225_v56, 16 }
 0x389   : > { %2501 = vrot.lane.b32.xlu0 %v5205_v11, %s3554_s22 }
 0x38a   : > { %2613 = vrot.lane.b32.xlu2 %v6937_v50, %s3558_s26 }
 0x38b   : > { %v2424_v60 = vpop.permute.xlu0 %2423  ;;  %2523 = vrot.lane.b32.xlu1 %v4610_v2, %s3555_s23 }
 0x38c   : > { %v2717_v11 = vsel %vm1869_vm7, %v2688_v8, %v2424_v60  ;;  %v2460_v9 = vpop.permute.xlu2 %2459  ;;  %v7045_v60 = vld [vmem:[#allocation38_spill] sm:$0xff] }
 0x38d   : > { %v5544_v57 = vsel %vm1902_vm8, %v2728_v3, %v2460_v9  ;;  %v2438_v19 = vpop.permute.xlu1 %2437 }
 0x38e   : > { %v2734_v50 = vsel %vm1869_vm7, %v2708_v38, %v2438_v19  ;;  %v2714_v38 = vsel %vm1869_vm7, %v5451_v0, %v7041_v7  ;;  %v7047_v19 = vld [vmem:[#allocation123_spill] sm:$0xff] }
 0x38f   : > { %v2740_v0 = vsel %vm1902_vm8, %v2714_v38, %v7043_v22 }
 0x391   : > { %2507 = vrot.lane.b32.xlu0 %v2477_v30, %s3554_s22 }
 0x392   : > { %2525 = vrot.lane.b32.xlu2 %v4625_v42, %s3555_s23 }
 0x393   : > { %v2430_v23 = vpop.permute.xlu0 %2429  ;;  %2633 = vrot.lane.b32.xlu1 %v6899_v33, %s3559_s27  ;;  %v7042_v33 = vshll.u32 %v5225_v56, 16 }
 0x394   : > { %v2726_v2 = vsel %vm1869_vm7, %v5410_v52, %v2430_v23  ;;  %v2466_v36 = vpop.permute.xlu2 %2465 }
 0x395   : > { %v5557_v28 = vsel %vm1902_vm8, %v2734_v50, %v2466_v36  ;;  %v2452_v31 = vpop.permute.xlu1 %2451  ;;  %v2447_v52 = vrot.slane %v7042_v33, 1  ;;  %v7051_v33 = vld [vmem:[#allocation14_spill] sm:$0xff] }
 0x396   : > { %v5560_v40 = vsel %vm1902_vm8, %v2717_v11, %v2452_v31  ;;  %v7046_v11 = vld [vmem:[#allocation10_spill] sm:$0xff] }
 0x397   : > { %v5596_v9 = vsel %vm1787_vm5, %v7046_v11, %v7045_v60 }
 0x399   : > { %2521 = vrot.lane.b32.xlu0 %v4637_v24, %s3555_s23 }
 0x39a   : > { %2635 = vrot.lane.b32.xlu2 %v6950_v37, %s3559_s27 }
 0x39b   : > { %v2436_v42 = vpop.permute.xlu0 %2435  ;;  %2545 = vrot.lane.b32.xlu1 %v4704_v4, %s3556_s24  ;;  %v5583_v4 = vor.u32 %v2447_v52, %v7044_v16  ;;  %v947_v16 = vld [vmem:[#allocation2 + $0x110] sm:$0x3f] }
 0x39c   : > { %v2732_v1 = vsel %vm1869_vm7, %v5429_v63, %v2436_v42  ;;  %v2490_v3 = vpop.permute.xlu2 %2489  ;;  %v7050_v42 = vld [vmem:[#allocation36_spill] sm:$0xff]  ;;  %v983_v60 = vpack.c.bf16 %v947_v16, %v947_v16 }
 0x39d   : > { %v2768_v24 = vsel %vm1935_vm9, %v2740_v0, %v2490_v3  ;;  %v2458_v20 = vpop.permute.xlu1 %2457  ;;  %v7052_v0 = vld [vmem:[#allocation84_spill] sm:$0xff]  ;;  %v7053_v3 = vshll.u32 %v5081_v43, 16 }
 0x39e   : > { %v5579_v37 = vsel %vm1902_vm8, %v2726_v2, %v2458_v20  ;;  %v2798_v50 = vsel %vm6687_vm10, %v2768_v24, %v7047_v19  ;;  %v7049_v2 = vshrl.u32 %v5081_v43, 16 }
 0x3a0   : > { %v2566_v36 = vrot.slane %v7049_v2, 7 }
 0x3a1   : > { %2527 = vrot.lane.b32.xlu0 %v4873_v18, %s3555_s23 }
 0x3a2   : > { %2547 = vrot.lane.b32.xlu2 %v4742_v6, %s3556_s24  ;;  %v2682_v6 = vsel %vm1836_vm6, %v5596_v9, %v5375_v17  ;;  %v2567_v24 = vor.u32 %v2566_v36, %v7053_v3 }
 0x3a3   : > { %v2450_v63 = vpop.permute.xlu0 %2449  ;;  %2467 = vrot.lane.b32.xlu1 %v5583_v4, %s3553_s21 }
 0x3a4   : > { %v2738_v61 = vsel %vm1902_vm8, %v5454_v51, %v2450_v63  ;;  %v2540_v10 = vpop.permute.xlu2 %2539  ;;  %v7048_v51 = vld [vmem:[#allocation74_spill] sm:$0xff]  ;;  %v7054_v63 = vld [vmem:[#allocation69_spill] sm:$0xff] }
 0x3a5   : > { %v2464_v8 = vpop.permute.xlu1 %2463  ;;  %v2713_v23 = vsel %vm1869_vm7, %v2682_v6, %v7048_v51  ;;  %v7055_v6 = vld [vmem:[#allocation106_spill] sm:$0xff] }
 0x3a6   : > { %v5599_v14 = vsel %vm1902_vm8, %v2732_v1, %v2464_v8 }
 0x3a9   : > { %2543 = vrot.lane.b32.xlu0 %v4684_v45, %s3556_s24  ;;  %v2824_v45 = vsel %vm2001_vm11, %v2798_v50, %v4670_v26 }
 0x3aa   : > { %2591 = vrot.lane.b32.xlu2 %v5237_v46, %s3557_s25  ;;  %v5624_v46 = vsel %vm1787_vm5, %v7051_v33, %v7050_v42 }
 0x3ab   : > { %v2456_v31 = vpop.permute.xlu0 %2455  ;;  %2595 = vrot.lane.b32.xlu1 %v2477_v30, %s3557_s25  ;;  %v2739_v30 = vsel %vm1902_vm8, %v2713_v23, %v7052_v0 }
 0x3ac   : > { %v5617_v17 = vsel %vm1902_vm8, %v5474_v34, %v2456_v31  ;;  %v2580_v38 = vpop.permute.xlu2 %2579  ;;  %v2690_v34 = vsel %vm1836_vm6, %v5624_v46, %v5467_v53  ;;  %v2470_v31 = vunpack.c.l.b16 %v983_v60 }
 0x3ad   : > { %v2852_v52 = vsel %vm2034_vm12, %v2824_v45, %v2580_v38  ;;  %v2488_v1 = vpop.permute.xlu1 %2487  ;;  %v2718_v8 = vsel %vm1869_vm7, %v2690_v34, %v7054_v63 }
 0x3ae   : > { %v5635_v20 = vsel %vm1935_vm9, %v2739_v30, %v2488_v1  ;;  %v2744_v50 = vsel %vm1902_vm8, %v2718_v8, %v7055_v6  ;;  %v5655_v45 = vpack.c.b16 %v2470_v31, %v2470_v31  ;;  %v948_v8 = vld [vmem:[#allocation2 + $0x118] sm:$0x3f] }
 0x3b1   : > { %2549 = vrot.lane.b32.xlu0 %v4963_v41, %s3556_s24 }
 0x3b2   : > { %2597 = vrot.lane.b32.xlu2 %v2567_v24, %s3557_s25 }
 0x3b3   : > { %v2462_v11 = vpop.permute.xlu0 %2461  ;;  %2511 = vrot.lane.b32.xlu1 %v5299_v44, %s3554_s22 }
 0x3b4   : > { %v5646_v53 = vsel %vm1902_vm8, %v5487_v47, %v2462_v11  ;;  %v2496_v23 = vpop.permute.xlu2 %2495 }
 0x3b5   : > { %v5651_v2 = vsel %vm1935_vm9, %v2744_v50, %v2496_v23  ;;  %v2518_v36 = vpop.permute.xlu1 %2517 }
 0x3b9   : > { %2593 = vrot.lane.b32.xlu0 %v5283_v21, %s3557_s25  ;;  %v2479_v21 = vshrl.u32 %v5655_v45, 16 }
 0x3ba   : > { %2513 = vrot.lane.b32.xlu2 %v5266_v5, %s3554_s22 }
 0x3bb   : > { %v2486_v38 = vpop.permute.xlu0 %2485  ;;  %2615 = vrot.lane.b32.xlu1 %v4873_v18, %s3558_s26  ;;  %v2481_v3 = vrot.slane %v2479_v21, 7  ;;  %v2482_v18 = vshll.u32 %v5655_v45, 16 }
 0x3bc   : > { %v2764_v47 = vsel %vm1935_vm9, %v2738_v61, %v2486_v38  ;;  %v2608_v42 = vpop.permute.xlu2 %2607 }
 0x3bd   : > { %v2796_v33 = vsel %vm6687_vm10, %v2764_v47, %v2518_v36  ;;  %v2882_v1 = vsel %vm6684_vm13, %v2852_v52, %v2608_v42  ;;  %v5664_v30 = vpop.permute.xlu1 %2577  ;;  %v2484_v16 = vor.u32 %v2482_v18, %v2481_v3 }
 0x3be   : > { %v2822_v34 = vsel %vm2001_vm11, %v2796_v33, %v2540_v10 }
 0x3c1   : > { %2509 = vrot.lane.b32.xlu0 %v5262_v54, %s3554_s22 }
 0x3c2   : > { %2617 = vrot.lane.b32.xlu2 %v5081_v43, %s3558_s26  ;;  %v984_v43 = vpack.c.bf16 %v948_v8, %v948_v8 }
 0x3c3   : > { %v2492_v61 = vpop.permute.xlu0 %2491  ;;  %2531 = vrot.lane.b32.xlu1 %v5271_v58, %s3555_s23 }
 0x3c4   : > { %v2630_v52 = vpop.permute.xlu2 %2629  ;;  %v2560_v50 = vunpack.c.l.b16 %v984_v43 }
 0x3c5   : > { %v5676_v24 = vsel %vm2100_vm14, %v2882_v1, %v2630_v52  ;;  %v2494_v10 = vpop.permute.xlu1 %2493  ;;  %v2537_v52 = vrot.slane %v2482_v18, 1 }
 0x3c6   : > { %v5693_v36 = vpack.c.b16 %v2560_v50, %v2560_v50 }
 0x3c7   : > { %v2538_v43 = vor.u32 %v2537_v52, %v2479_v21 }
 0x3c8   : > { %v6679_v38 = vshrl.u32 %v5693_v36, 16  ;;  %v6680_v47 = vshll.u32 %v5693_v36, 16 }
 0x3c9   : > { %2515 = vrot.lane.b32.xlu0 %v2484_v16, %s3554_s22 }
 0x3ca   : > { %2533 = vrot.lane.b32.xlu2 %v5225_v56, %s3555_s23 }
 0x3cb   : > { %v2576_v54 = vpop.permute.xlu0 %2575  ;;  %2637 = vrot.lane.b32.xlu1 %v4963_v41, %s3559_s27 }
 0x3cc   : > { %v5683_v60 = vpop.permute.xlu2 %2583 }
 0x3cd   : > { %v5685_v11 = vpop.permute.xlu1 %2499 }
 0x3d1   : > { %2529 = vrot.lane.b32.xlu0 %v5216_v25, %s3555_s23 }
 0x3d2   : > { %2639 = vrot.lane.b32.xlu2 %v5166_v32, %s3559_s27  ;;  %v2571_v32 = vrot.slane %v6679_v38, 7  ;;  %v7059_v38 = vld [vmem:[#allocation137_spill] sm:$0xff] }
 0x3d3   : > { %v2582_v23 = vpop.permute.xlu0 %2581  ;;  %2553 = vrot.lane.b32.xlu1 %v5365_v27, %s3556_s24 }
 0x3d4   : > { %v5695_v31 = vpop.permute.xlu2 %2589  ;;  %v2574_v3 = vor.u32 %v6680_v47, %v2571_v32  ;;  %v7060_v47 = vld [vmem:[#allocation136_spill] sm:$0xff] }
 0x3d5   : > { %v2520_v41 = vpop.permute.xlu1 %2519 }
 0x3d9   : > { %2535 = vrot.lane.b32.xlu0 %v5655_v45, %s3555_s23 }
 0x3da   : > { %2555 = vrot.lane.b32.xlu2 %v5583_v4, %s3556_s24 }
 0x3db   : > { %v5702_v25 = vpop.permute.xlu0 %2497  ;;  %2599 = vrot.lane.b32.xlu1 %v5299_v44, %s3557_s25 }
 0x3dc   : > { %v2506_v42 = vpop.permute.xlu2 %2505 }
 0x3dd   : > { %v2784_v33 = vsel %vm1935_vm9, %v5579_v37, %v2506_v42  ;;  %v2542_v1 = vpop.permute.xlu1 %2541  ;;  %v2848_v37 = vsel %vm2034_vm12, %v2822_v34, %v2576_v54  ;;  %v7056_v42 = vld [vmem:[#allocation83_spill] sm:$0xff]  ;;  %v7058_v34 = vld [vmem:[#allocation97_spill] sm:$0xff] }
 0x3de   : > { %v2715_v32 = vsel %vm1869_vm7, %v5413_v15, %v7056_v42 }
 0x3df   : > { %v2741_v54 = vsel %vm1902_vm8, %v2715_v32, %v7058_v34 }
 0x3e1   : > { %2551 = vrot.lane.b32.xlu0 %v5353_v35, %s3556_s24  ;;  %v7057_v35 = vld [vmem:[#allocation167_spill] sm:$0xff] }
 0x3e2   : > { %2601 = vrot.lane.b32.xlu2 %v5266_v5, %s3557_s25  ;;  %v2797_v5 = vsel %vm6687_vm10, %v5635_v20, %v4561_v29  ;;  %v2879_v21 = vsel %vm6684_vm13, %v2848_v37, %v7057_v35 }
 0x3e3   : > { %v2610_v44 = vpop.permute.xlu0 %2609  ;;  %2605 = vrot.lane.b32.xlu1 %v2574_v3, %s3557_s25  ;;  %v2770_v3 = vsel %vm1935_vm9, %v2741_v54, %v2492_v61  ;;  %v2823_v20 = vsel %vm2001_vm11, %v2797_v5, %v7059_v38  ;;  %v2905_v37 = vsel %vm2100_vm14, %v2879_v21, %v4903_v39  ;;  %v7061_v61 = vld [vmem:[#allocation177_spill] sm:$0xff]  ;;  %v2772_v54 = vsel %vm1935_vm9, %v5560_v40, %v2494_v10  ;;  %v7062_v5 = vld [vmem:[#allocation147_spill] sm:$0xff] }
 0x3e4   : > { %v5718_v8 = vpop.permute.xlu2 %2613  ;;  %v2799_v32 = vsel %vm6687_vm10, %v2770_v3, %v7060_v47  ;;  %v2933_v13 = vshll.u32 %v2905_v37, 16  ;;  %v2931_v26 = vshrl.u32 %v2905_v37, 16 }
 0x3e5   : > { %v5720_v50 = vpop.permute.xlu1 %2587  ;;  %v2825_v21 = vsel %vm2001_vm11, %v2799_v32, %v7062_v5  ;;  %v7065_v32 = vld [vmem:[#allocation78_spill] sm:$0xff] }
 0x3e6   : > { %v2935_v10 = vrot.slane %v2933_v13, 1 }
 0x3e9   : > { %2557 = vrot.lane.b32.xlu0 %v2538_v43, %s3556_s24 }
 0x3ea   : > { %2619 = vrot.lane.b32.xlu2 %v5271_v58, %s3558_s26 }
 0x3eb   : > { %v2632_v18 = vpop.permute.xlu0 %2631  ;;  %2623 = vrot.lane.b32.xlu1 %v5655_v45, %s3558_s26  ;;  %v2850_v45 = vsel %vm2034_vm12, %v2823_v20, %v5664_v30  ;;  %v2801_v30 = vsel %vm6687_vm10, %v2772_v54, %v2520_v41  ;;  %v2720_v41 = vsel %vm1869_vm7, %v7065_v32, %v7064_v48 }
 0x3ec   : > { %v2526_v15 = vpop.permute.xlu2 %2525  ;;  %v2827_v3 = vsel %vm2001_vm11, %v2801_v30, %v2542_v1  ;;  %v7066_v1 = vld [vmem:[#allocation88_spill] sm:$0xff]  ;;  %v2936_v30 = vor.u32 %v2935_v10, %v2931_v26  ;;  %v7070_v26 = vld [vmem:[#allocation135_spill] sm:$0xff]  ;;  %v7071_v10 = vld [vmem:[#allocation189_spill] sm:$0xff] }
 0x3ed   : > { %v5740_v52 = vsel %vm6687_vm10, %v2784_v33, %v2526_v15  ;;  %v5742_v58 = vpop.permute.xlu1 %2503  ;;  %v2880_v33 = vsel %vm6684_vm13, %v2850_v45, %v7061_v61  ;;  %v7063_v45 = vld [vmem:[#allocation186_spill] sm:$0xff] }
 0x3ee   : > { %v2906_v40 = vsel %vm2100_vm14, %v2880_v33, %v7063_v45  ;;  %v7067_v33 = vld [vmem:[#allocation93_spill] sm:$0xff] }
 0x3ef   : > { %v2746_v13 = vsel %vm1902_vm8, %v2720_v41, %v7067_v33 }
 0x3f1   : > { %2603 = vrot.lane.b32.xlu0 %v2484_v16, %s3557_s25  ;;  %v2854_v16 = vsel %vm2034_vm12, %v2825_v21, %v2582_v23  ;;  %v2939_v23 = vshll.u32 %v2906_v40, 16  ;;  %v2719_v21 = vsel %vm1869_vm7, %v5434_v55, %v7066_v1  ;;  %s3483_s25 = sshll.u32 %s7330_s13, 6 }
 0x3f2   : > { %2625 = vrot.lane.b32.xlu2 %v5693_v36, %s3558_s26  ;;  %v2884_v6 = vsel %vm6684_vm13, %v2854_v16, %v2610_v44  ;;  %v7069_v16 = vld [vmem:[#allocation101_spill] sm:$0xff]  ;;  %s6503_s28 = scalar_lea.vmem %s6546_s2, %s3483_s25 }
 0x3f3   : > { %v2586_v15 = vpop.permute.xlu0 %2585  ;;  %2643 = vrot.lane.b32.xlu1 %v5583_v4, %s3559_s27  ;;  %v2910_v54 = vsel %vm2100_vm14, %v2884_v6, %v2632_v18  ;;  %v2856_v4 = vsel %vm2034_vm12, %v2827_v3, %v5683_v60  ;;  %v2778_v6 = vsel %vm1935_vm9, %v2746_v13, %v5685_v11  ;;  %v7068_v18 = vld [vmem:[#allocation180_spill] sm:$0xff]  ;;  %v2941_v55 = vrot.slane %v2939_v23, 1  ;;  %v7072_v23 = vld [vmem:[#allocation143_spill] sm:$0xff] }
 0x3f4   : > { %v2636_v20 = vpop.permute.xlu2 %2635  ;;  %v2951_v44 = vshll.u32 %v2910_v54, 16  ;;  %v2885_v37 = vsel %vm6684_vm13, %v2856_v4, %v7068_v18  ;;  %v2745_v3 = vsel %vm1902_vm8, %v2719_v21, %v7069_v16  ;;  %v2937_v13 = vshrl.u32 %v2906_v40, 16  ;;  %v7073_v21 = vld [vmem:[#allocation139_spill] sm:$0xff] }
 0x3f5   : > { %v2612_v63 = vpop.permute.xlu1 %2611  ;;  %v2776_v11 = vsel %vm1935_vm9, %v2745_v3, %v5702_v25  ;;  %v7074_v25 = vshll.u32 %v5693_v36, 16  ;;  %v7076_v3 = vld [vmem:[#allocation150_spill] sm:$0xff] }
 0x3f6   : > { %v2953_v41 = vrot.slane %v2951_v44, 1  ;;  %v2803_v48 = vsel %vm6687_vm10, %v2776_v11, %v7073_v21  ;;  %v2942_v1 = vor.u32 %v2941_v55, %v2937_v13  ;;  %v7075_v44 = vld [vmem:[#allocation126_spill] sm:$0xff] }
 0x3f7   : > { %v2802_v40 = vsel %vm6687_vm10, %v5651_v2, %v7075_v44  ;;  %v7077_v2 = vld [vmem:[#allocation154_spill] sm:$0xff] }
 0x3f9   : > { %2621 = vrot.lane.b32.xlu0 %v5225_v56, %s3558_s26  ;;  %v2804_v56 = vsel %vm6687_vm10, %v2778_v6, %v7070_v26  ;;  %v7117_v26 = vld [vmem:[#allocation29_spill] sm:$0xff] }
 0x3fa   : > { %2645 = vrot.lane.b32.xlu2 %v2538_v43, %s3559_s27  ;;  %v2911_v43 = vsel %vm2100_vm14, %v2885_v37, %v7071_v10  ;;  %v2830_v33 = vsel %vm2001_vm11, %v2804_v56, %v7072_v23  ;;  %v2627_v37 = vrot.slane %v7074_v25, 1  ;;  %v2829_v56 = vsel %vm2001_vm11, %v2803_v48, %v7076_v3  ;;  %v7079_v23 = vld [vmem:[#allocation176_spill] sm:$0xff] }
 0x3fb   : > { %v5787_v60 = vpop.permute.xlu0 %2501  ;;  %3027 = vrot.lane.b32.xlu1 %v2936_v30, %s3565_s6  ;;  %v2949_v30 = vshrl.u32 %v2910_v54, 16  ;;  %v2957_v16 = vshll.u32 %v2911_v43, 16  ;;  %v2862_v54 = vsel %vm2034_vm12, %v2830_v33, %v5695_v31  ;;  %v2860_v11 = vsel %vm2034_vm12, %v2829_v56, %v5720_v50 }
 0x3fc   : > { %v5792_v32 = vpop.permute.xlu2 %2547  ;;  %v2888_v31 = vsel %vm6684_vm13, %v2860_v11, %v2612_v63  ;;  %v7078_v48 = vshrl.u32 %v5693_v36, 16  ;;  %v2955_v44 = vshrl.u32 %v2911_v43, 16  ;;  %v2945_v50 = vshll.u32 %v5676_v24, 16  ;;  %v7080_v43 = vld [vmem:[#allocation182_spill] sm:$0xff] }
 0x3fd   : > { %v5800_v4 = vpop.permute.xlu1 %2523  ;;  %v2954_v6 = vor.u32 %v2953_v41, %v2949_v30  ;;  %v2959_v13 = vrot.slane %v2957_v16, 1 }
 0x3fe   : > { %v2628_v33 = vor.u32 %v2627_v37, %v7078_v48  ;;  %v2947_v36 = vrot.slane %v2945_v50, 1 }
 0x3ff   : > { %v2960_v56 = vor.u32 %v2959_v13, %v2955_v44 }
 0x401   : > { %2641 = vrot.lane.b32.xlu0 %v5365_v27, %s3559_s27  ;;  %v2890_v27 = vsel %vm6684_vm13, %v2862_v54, %v5718_v8 }
 0x402   : > { %3029 = vrot.lane.b32.xlu2 %v2942_v1, %s3565_s6  ;;  %v2828_v1 = vsel %vm2001_vm11, %v2802_v40, %v7077_v2  ;;  %v2916_v30 = vsel %vm2100_vm14, %v2890_v27, %v2636_v20  ;;  %v7114_v2 = vld [vmem:[#allocation149_spill] sm:$0xff] }
 0x403   : > { %v2508_v55 = vpop.permute.xlu0 %2507  ;;  %3033 = vrot.lane.b32.xlu1 %v2954_v6, %s3565_s6  ;;  %v2858_v6 = vsel %vm2034_vm12, %v2828_v1, %v2586_v15  ;;  %v2975_v16 = vshll.u32 %v2916_v30, 16  ;;  %v2973_v13 = vshrl.u32 %v2916_v30, 16 }
 0x404   : > { %v2592_v41 = vpop.permute.xlu2 %2591  ;;  %v2886_v40 = vsel %vm6684_vm13, %v2858_v6, %v7079_v23 }
 0x405   : > { %v2634_v25 = vpop.permute.xlu1 %2633  ;;  %v2912_v27 = vsel %vm2100_vm14, %v2886_v40, %v7080_v43  ;;  %v2977_v11 = vrot.slane %v2975_v16, 1  ;;  %v2780_v40 = vsel %vm1935_vm9, %v5523_v12, %v5787_v60  ;;  %v2786_v12 = vsel %vm1935_vm9, %v5544_v57, %v2508_v55 }
 0x406   : > { %v2914_v8 = vsel %vm2100_vm14, %v2888_v31, %v2634_v25  ;;  %v2943_v31 = vshrl.u32 %v5676_v24, 16 }
 0x407   : > { %v2969_v54 = vshll.u32 %v2914_v8, 16  ;;  %v2967_v63 = vshrl.u32 %v2914_v8, 16  ;;  %v2978_v25 = vor.u32 %v2977_v11, %v2973_v13  ;;  %v7081_v11 = vld [vmem:[#allocation179_spill] sm:$0xff] }
 0x408   : > { %v2948_v48 = vor.u32 %v2947_v36, %v2943_v31  ;;  %v7082_v31 = vld [vmem:[#allocation185_spill] sm:$0xff] }
 0x409   : > { %2647 = vrot.lane.b32.xlu0 %v2628_v33, %s3559_s27  ;;  %v2971_v20 = vrot.slane %v2969_v54, 1  ;;  %v2963_v33 = vshll.u32 %v2912_v27, 16  ;;  %v2961_v54 = vshrl.u32 %v2912_v27, 16 }
 0x40a   : > { %3035 = vrot.lane.b32.xlu2 %v2960_v56, %s3565_s6 }
 0x40b   : > { %v2522_v37 = vpop.permute.xlu0 %2521  ;;  %v2972_v15 = vor.u32 %v2971_v20, %v2967_v63  ;;  %v2965_v6 = vrot.slane %v2963_v33, 1 }
 0x40c   : > { %v2598_v1 = vpop.permute.xlu2 %2597  ;;  %v2806_v63 = vsel %vm6687_vm10, %v2780_v40, %v2522_v37 }
 0x40d   : > { %v2546_v44 = vpop.permute.xlu1 %2545  ;;  %3039 = vrot.lane.b32.xlu1 %v2972_v15, %s3565_s6  ;;  %v2966_v30 = vor.u32 %v2965_v6, %v2961_v54 }
 0x411   : > { %3031 = vrot.lane.b32.xlu0 %v2948_v48, %s3565_s6 }
 0x412   : > { %3041 = vrot.lane.b32.xlu2 %v2978_v25, %s3565_s6 }
 0x413   : > { %v2528_v8 = vpop.permute.xlu0 %2527 }
 0x414   : > { %v2514_v50 = vpop.permute.xlu2 %2513 }
 0x415   : > { %v5844_v16 = vsel %vm1935_vm9, %v5557_v28, %v2514_v50  ;;  %v2468_v24 = vpop.permute.xlu1 %2467  ;;  %v2812_v50 = vsel %vm6687_vm10, %v2786_v12, %v2528_v8 }
 0x416   : > { %v5848_v56 = vsel %vm1902_vm8, %v5509_v59, %v2468_v24 }
 0x419   : > { %3037 = vrot.lane.b32.xlu0 %v2966_v30, %s3565_s6  ;;  %v2782_v30 = vsel %vm1935_vm9, %v5617_v17, %v5742_v58  ;;  %v7084_v17 = vld [vmem:[#allocation195_spill] sm:$0xff] }
 0x41a   : > { %v2808_v55 = vsel %vm6687_vm10, %v2782_v30, %v5800_v4 }
 0x41b   : > { %v2544_v20 = vpop.permute.xlu0 %2543  ;;  %v2834_v8 = vsel %vm2001_vm11, %v2808_v55, %v2546_v44 }
 0x41c   : > { %v2832_v36 = vsel %vm2001_vm11, %v2806_v63, %v2544_v20  ;;  %v2618_v15 = vpop.permute.xlu2 %2617 }
 0x41d   : > { %v2864_v28 = vsel %vm2034_vm12, %v2832_v36, %v2592_v41  ;;  %v2596_v27 = vpop.permute.xlu1 %2595 }
 0x41e   : > { %v2891_v59 = vsel %vm6684_vm13, %v2864_v28, %v7081_v11  ;;  %v7083_v28 = vld [vmem:[#allocation173_spill] sm:$0xff] }
 0x41f   : > { %v2917_v13 = vsel %vm2100_vm14, %v2891_v59, %v7082_v31  ;;  %v7115_v31 = vld [vmem:[#allocation45_spill] sm:$0xff] }
 0x420   : > { %v2981_v48 = vshll.u32 %v2917_v13, 16  ;;  %v2979_v33 = vshrl.u32 %v2917_v13, 16 }
 0x422   : > { %v2983_v25 = vrot.slane %v2981_v48, 1 }
 0x423   : > { %v2550_v6 = vpop.permute.xlu0 %2549 }
 0x424   : > { %v2984_v60 = vor.u32 %v2983_v25, %v2979_v33  ;;  %v5863_v37 = vpop.permute.xlu2 %2533  ;;  %v2838_v54 = vsel %vm2001_vm11, %v2812_v50, %v2550_v6 }
 0x425   : > { %v2512_v41 = vpop.permute.xlu1 %2511  ;;  %v2870_v57 = vsel %vm2034_vm12, %v2838_v54, %v2598_v1 }
 0x426   : > { %3043 = vrot.lane.b32.xlu0 %v2984_v60, %s3565_s6  ;;  %v5870_v24 = vsel %vm1935_vm9, %v5599_v14, %v2512_v41  ;;  %v2896_v20 = vsel %vm6684_vm13, %v2870_v57, %v2618_v15  ;;  %v2836_v41 = vsel %vm2001_vm11, %v5740_v52, %v5792_v32 }
 0x427   : > { %v2868_v30 = vsel %vm2034_vm12, %v2836_v41, %v2596_v27  ;;  %v7085_v27 = vld [vmem:[#allocation37_spill] sm:$0xff]  ;;  %v3490_v41 = vld [vmem:[%s6545_s1 + $0x30] sm:$0xff] }
 0x42b   : > { %v2594_v40 = vpop.permute.xlu0 %2593 }
 0x42c   : > { %v2866_v63 = vsel %vm2034_vm12, %v2834_v8, %v2594_v40  ;;  %v2640_v36 = vpop.permute.xlu2 %2639 }
 0x42d   : > { %v2892_v14 = vsel %vm6684_vm13, %v2866_v63, %v7083_v28  ;;  %v2922_v59 = vsel %vm2100_vm14, %v2896_v20, %v2640_v36  ;;  %v2616_v13 = vpop.permute.xlu1 %2615 }
 0x42e   : > { %v2918_v58 = vsel %vm2100_vm14, %v2892_v14, %v7084_v17  ;;  %v2999_v1 = vshll.u32 %v2922_v59, 16  ;;  %v2997_v4 = vshrl.u32 %v2922_v59, 16  ;;  %v2894_v55 = vsel %vm6684_vm13, %v2868_v30, %v2616_v13  ;;  %v7089_v30 = vld [vmem:[#allocation86_spill] sm:$0xff] }
 0x42f   : > { %v2987_v48 = vshll.u32 %v2918_v58, 16  ;;  %v2985_v44 = vshrl.u32 %v2918_v58, 16 }
 0x430   : > { %v3001_v33 = vrot.slane %v2999_v1, 1  ;;  %v7086_v1 = vld [vmem:[#allocation3_spill] sm:$0xff] }
 0x431   : > { %v2989_v25 = vrot.slane %v2987_v48, 1  ;;  %v1793_v13 = vsel %vm1787_vm5, %v7086_v1, %v7085_v27 }
 0x432   : > { %v3002_v6 = vor.u32 %v3001_v33, %v2997_v4  ;;  %v3491_v4 = vld [vmem:[%s6545_s1 + $0x38] sm:$0xff] }
 0x433   : > { %v5886_v12 = vpop.permute.xlu0 %2509  ;;  %v2990_v15 = vor.u32 %v2989_v25, %v2985_v44  ;;  %3193 = vmatpush.bf16.msra.mxu0 %v3491_v4  ;;  %3492 = vmatpush.bf16.msra.mxu1 %v3491_v4  ;;  %v7087_v44 = vld [vmem:[#allocation21_spill] sm:$0xff] }
 0x434   : > { %3049 = vrot.lane.b32.xlu0 %v3002_v6, %s3565_s6  ;;  %v5889_v60 = vpop.permute.xlu2 %2555  ;;  %v1840_v25 = vsel %vm1836_vm6, %v1793_v13, %v7087_v44  ;;  %3493 = vmatpush.bf16.msra.mxu2 %v3491_v4  ;;  %v7088_v6 = vld [vmem:[#allocation72_spill] sm:$0xff]  ;;  %v3489_v13 = vld [vmem:[%s6545_s1 + $0x28] sm:$0xff] }
 0x435   : > { %3045 = vrot.lane.b32.xlu1 %v2990_v15, %s3565_s6  ;;  %v5892_v50 = vpop.permute.xlu1 %2531  ;;  %3494 = vmatpush.bf16.msra.mxu3 %v3491_v4  ;;  %v1873_v15 = vsel %vm1869_vm7, %v1840_v25, %v7088_v6  ;;  %v7093_v4 = vld [vmem:[#allocation146_spill] sm:$0xff]  ;;  %v7094_v6 = vld [vmem:[#allocation23_spill] sm:$0xff] }
 0x437   : > { %3194 = vmatpush.bf16.msra.mxu0 %v3490_v41  ;;  %3495 = vmatpush.bf16.msra.mxu1 %v3490_v41 }
 0x438   : > { %3496 = vmatpush.bf16.msra.mxu2 %v3490_v41 }
 0x439   : > { %3497 = vmatpush.bf16.msra.mxu3 %v3490_v41  ;;  %v7096_v41 = vld [vmem:[#allocation20_spill] sm:$0xff] }
 0x43b   : > { %v5897_v54 = vpop.permute.xlu0 %2515  ;;  %3195 = vmatpush.bf16.msra.mxu0 %v3489_v13  ;;  %3498 = vmatpush.bf16.msra.mxu1 %v3489_v13 }
 0x43c   : > { %v5900_v57 = vpop.permute.xlu2 %2601  ;;  %3499 = vmatpush.bf16.msra.mxu2 %v3489_v13 }
 0x43d   : > { %v2638_v8 = vpop.permute.xlu1 %2637  ;;  %3500 = vmatpush.bf16.msra.mxu3 %v3489_v13  ;;  %v7103_v13 = vld [vmem:[#allocation33_spill] sm:$0xff] }
 0x43e   : > { %v2920_v40 = vsel %vm2100_vm14, %v2894_v55, %v2638_v8  ;;  %v1906_v55 = vsel %vm1902_vm8, %v1873_v15, %v7089_v30  ;;  %v7090_v8 = vld [vmem:[#allocation96_spill] sm:$0xff]  ;;  %v7095_v15 = vld [vmem:[#allocation7_spill] sm:$0xff] }
 0x43f   : > { %v2993_v63 = vshll.u32 %v2920_v40, 16  ;;  %v2991_v20 = vshrl.u32 %v2920_v40, 16  ;;  %v1939_v40 = vsel %vm1935_vm9, %v1906_v55, %v7090_v8  ;;  %v1802_v30 = vsel %vm1787_vm5, %v7095_v15, %v7094_v6  ;;  %v7097_v8 = vld [vmem:[#allocation43_spill] sm:$0xff]  ;;  %v7101_v6 = vld [vmem:[#allocation90_spill] sm:$0xff] }
 0x441   : > { %v2995_v36 = vrot.slane %v2993_v63, 1  ;;  %v7091_v63 = vld [vmem:[#allocation128_spill] sm:$0xff] }
 0x443   : > { %v5904_v14 = vpop.permute.xlu0 %2529  ;;  %v2996_v59 = vor.u32 %v2995_v36, %v2991_v20  ;;  %v1972_v20 = vsel %vm6687_vm10, %v1939_v40, %v7091_v63  ;;  %v1846_v40 = vsel %vm1836_vm6, %v1802_v30, %v7097_v8  ;;  %v7098_v63 = vld [vmem:[#allocation181_spill] sm:$0xff]  ;;  %v7102_v30 = vld [vmem:[#allocation211_spill] sm:$0xff] }
 0x444   : > { %v5906_v58 = vpop.permute.xlu2 %2619 }
 0x445   : > { %v5908_v52 = vpop.permute.xlu1 %2553  ;;  %3047 = vrot.lane.b32.xlu2 %v2996_v59, %s3565_s6  ;;  %v7092_v59 = vld [vmem:[#allocation138_spill] sm:$0xff] }
 0x446   : > { %v2005_v27 = vsel %vm2001_vm11, %v1972_v20, %v7092_v59  ;;  %v7099_v59 = vld [vmem:[#allocation75_spill] sm:$0xff] }
 0x447   : > { %v2038_v44 = vsel %vm2034_vm12, %v2005_v27, %v7093_v4  ;;  %v1879_v27 = vsel %vm1869_vm7, %v1846_v40, %v7099_v59  ;;  %v7100_v4 = vld [vmem:[#allocation188_spill] sm:$0xff] }
 0x448   : > { %v2071_v55 = vsel %vm6684_vm13, %v2038_v44, %v7096_v41  ;;  %v3488_v44 = vld [vmem:[%s6545_s1 + $0x20] sm:$0xff]  ;;  %v1912_v15 = vsel %vm1902_vm8, %v1879_v27, %v7101_v6  ;;  %v7105_v40 = vld [vmem:[#allocation100_spill] sm:$0xff]  ;;  %v7108_v6 = vld [vmem:[#allocation227_spill] sm:$0xff] }
 0x449   : > { %v2104_v20 = vsel %vm2100_vm14, %v2071_v55, %v7098_v63  ;;  %v7104_v55 = vld [vmem:[#allocation4_spill] sm:$0xff]  ;;  %v1945_v63 = vsel %vm1935_vm9, %v1912_v15, %v7105_v40  ;;  %3196 = vmatpush.bf16.msra.mxu0 %v3488_v44  ;;  %3501 = vmatpush.bf16.msra.mxu1 %v3488_v44 }
 0x44a   : > { %v2137_v17 = vsel %vm2133_vm15, %v2104_v20, %v7100_v4  ;;  %v1790_v8 = vsel %vm1787_vm5, %v7104_v55, %v7103_v13  ;;  %v7106_v20 = vld [vmem:[#allocation220_spill] sm:$0xff]  ;;  %v7107_v4 = vld [vmem:[#allocation130_spill] sm:$0xff]  ;;  %3502 = vmatpush.bf16.msra.mxu2 %v3488_v44  ;;  %3503 = vmatpush.bf16.msra.mxu3 %v3488_v44  ;;  %v7109_v13 = vld [vmem:[#allocation141_spill] sm:$0xff] }
 0x44b   : > { %v5911_v32 = vpop.permute.xlu0 %2535  ;;  %v2170_v41 = vsel %vm2166_vm0, %v2137_v17, %v7102_v30  ;;  %v1978_v27 = vsel %vm6687_vm10, %v1945_v63, %v7107_v4  ;;  %v7110_v55 = vld [vmem:[#allocation254_spill] sm:$0xff]  ;;  %v7111_v63 = vld [vmem:[#allocation35_spill] sm:$0xff] }
 0x44c   : > { %v5916_v48 = vpop.permute.xlu2 %2625  ;;  %v2203_v59 = vsel %vm2199_vm2, %v2170_v41, %v7106_v20  ;;  %v2011_v15 = vsel %vm2001_vm11, %v1978_v27, %v7109_v13  ;;  %v3487_v20 = vld [vmem:[%s6545_s1 + $0x18] sm:$0xff]  ;;  %v7112_v4 = vld [vmem:[#allocation6_spill] sm:$0xff] }
 0x44d   : > { %v5921_v33 = vpop.permute.xlu1 %2599  ;;  %v2236_v17 = vsel %vm2232_vm1, %v2203_v59, %v7108_v6  ;;  %v1799_v59 = vsel %vm1787_vm5, %v7112_v4, %v7111_v63  ;;  %v7113_v6 = vld [vmem:[#allocation25_spill] sm:$0xff]  ;;  %v2044_v44 = vsel %vm2034_vm12, %v2011_v15, %v7114_v2  ;;  %3197 = vmatpush.bf16.msra.mxu0 %v3487_v20  ;;  %3504 = vmatpush.bf16.msra.mxu1 %v3487_v20  ;;  %v7119_v2 = vld [vmem:[#allocation79_spill] sm:$0xff]  ;;  %v7122_v4 = vld [vmem:[#allocation92_spill] sm:$0xff] }
 0x44e   : > { %v2269_v41 = vsel %vm2265_vm4, %v2236_v17, %v7110_v55  ;;  %v1838_v28 = vsel %vm1836_vm6, %v1790_v8, %v7113_v6  ;;  %v1852_v17 = vsel %vm1836_vm6, %v5596_v9, %v7115_v31  ;;  %v7116_v55 = vld [vmem:[#allocation50_spill] sm:$0xff]  ;;  %v2077_v3 = vsel %vm6684_vm13, %v2044_v44, %v7117_v26  ;;  %v7118_v8 = vld [vmem:[#allocation55_spill] sm:$0xff]  ;;  %3505 = vmatpush.bf16.msra.mxu2 %v3487_v20 }
 0x44f   : > { %v1844_v11 = vsel %vm1836_vm6, %v1799_v59, %v7116_v55  ;;  %v1871_v63 = vsel %vm1869_vm7, %v1838_v28, %v7118_v8  ;;  %v1885_v15 = vsel %vm1869_vm7, %v1852_v17, %v7119_v2  ;;  %3506 = vmatpush.bf16.msra.mxu3 %v3487_v20  ;;  %v7121_v9 = vld [vmem:[#allocation59_spill] sm:$0xff]  ;;  %v7123_v59 = vld [vmem:[#allocation94_spill] sm:$0xff] }
 0x450   : > { %v1877_v31 = vsel %vm1869_vm7, %v1844_v11, %v7121_v9  ;;  %v1904_v26 = vsel %vm1902_vm8, %v1871_v63, %v7122_v4  ;;  %v1918_v6 = vsel %vm1902_vm8, %v1885_v15, %v7123_v59  ;;  %v7124_v44 = vld [vmem:[#allocation47_spill] sm:$0xff]  ;;  %v7127_v11 = vld [vmem:[#allocation104_spill] sm:$0xff]  ;;  %v7128_v63 = vld [vmem:[#allocation85_spill] sm:$0xff]  ;;  %v2818_v4 = vsel %vm6687_vm10, %v5844_v16, %v5863_v37 }
 0x451   : > { %v7125_v17 = vld [vmem:[#allocation95_spill] sm:$0xff]  ;;  %v1937_v8 = vsel %vm1935_vm9, %v1904_v26, %v7127_v11  ;;  %v7129_v15 = vld [vmem:[#allocation113_spill] sm:$0xff]  ;;  %v7134_v11 = vld [vmem:[#allocation144_spill] sm:$0xff] }
 0x452   : > { %v7126_v20 = vld [vmem:[#allocation103_spill] sm:$0xff]  ;;  %v7135_v37 = vld [vmem:[#allocation257_spill] sm:$0xff] }
 0x453   : > { %v5936_v36 = vpop.permute.xlu0 %2551  ;;  %v1951_v55 = vsel %vm1935_vm9, %v1918_v6, %v7126_v20  ;;  %v7132_v6 = vld [vmem:[#allocation229_spill] sm:$0xff] }
 0x454   : > { %v5940_v1 = vpop.permute.xlu2 %2645 }
 0x455   : > { %v5947_v25 = vpop.permute.xlu1 %2605 }
 0x45b   : > { %v5980_v30 = vpop.permute.xlu0 %2557 }
 0x45c   : > { %v3030_v40 = vpop.permute.xlu2 %3029 }
 0x45d   : > { %v3063_v27 = vsel %vm6685_vm3, %v2269_v41, %v3030_v40  ;;  %v2624_v13 = vpop.permute.xlu1 %2623  ;;  %v7120_v41 = vld [vmem:[#allocation183_spill] sm:$0xff] }
 0x45e   : > { %3094 = vst [vmem:[#allocation1 + $0x1] ss:$4 sm:$0xff] %v3063_v27  ;;  %v2110_v40 = vsel %vm2100_vm14, %v2077_v3, %v7120_v41  ;;  %v3486_v27 = vld [vmem:[%s6545_s1 + $0x10] sm:$0xff]  ;;  %v1910_v3 = vsel %vm1902_vm8, %v1877_v31, %v7125_v17  ;;  %v1970_v41 = vsel %vm6687_vm10, %v1937_v8, %v7129_v15  ;;  %v7131_v31 = vld [vmem:[#allocation133_spill] sm:$0xff]  ;;  %v7133_v17 = vld [vmem:[#allocation142_spill] sm:$0xff] }
 0x45f   : > { %v2143_v28 = vsel %vm2133_vm15, %v2110_v40, %v7124_v44  ;;  %v7130_v40 = vld [vmem:[#allocation223_spill] sm:$0xff]  ;;  %3198 = vmatpush.bf16.msra.mxu0 %v3486_v27  ;;  %3507 = vmatpush.bf16.msra.mxu1 %v3486_v27  ;;  %v1984_v59 = vsel %vm6687_vm10, %v1951_v55, %v7131_v31  ;;  %v2844_v44 = vsel %vm2001_vm11, %v2818_v4, %v5889_v60  ;;  %v7136_v60 = vld [vmem:[#allocation152_spill] sm:$0xff]  ;;  %v7138_v31 = vld [vmem:[#allocation161_spill] sm:$0xff] }
 0x460   : > { %v2176_v2 = vsel %vm2166_vm0, %v2143_v28, %v7128_v63  ;;  %3508 = vmatpush.bf16.msra.mxu2 %v3486_v27  ;;  %3509 = vmatpush.bf16.msra.mxu3 %v3486_v27  ;;  %v2003_v20 = vsel %vm2001_vm11, %v1970_v41, %v7133_v17  ;;  %v2017_v16 = vsel %vm2001_vm11, %v1984_v59, %v7134_v11  ;;  %v7137_v27 = vld [vmem:[#allocation153_spill] sm:$0xff] }
 0x461   : > { %v2209_v9 = vsel %vm2199_vm2, %v2176_v2, %v7130_v40  ;;  %v3485_v2 = vld [vmem:[%s6545_s1 + $0x8] sm:$0xff]  ;;  %v2050_v15 = vsel %vm2034_vm12, %v2017_v16, %v7136_v60  ;;  %v2036_v40 = vsel %vm2034_vm12, %v2003_v20, %v7137_v27  ;;  %v7145_v27 = vld [vmem:[#allocation117_spill] sm:$0xff] }
 0x462   : > { %v2242_v26 = vsel %vm2232_vm1, %v2209_v9, %v7132_v6  ;;  %v2069_v59 = vsel %vm6684_vm13, %v2036_v40, %v7138_v31  ;;  %v2083_v6 = vsel %vm6684_vm13, %v2050_v15, %v7061_v61  ;;  %v2816_v61 = vsel %vm6687_vm10, %v5870_v24, %v5892_v50  ;;  %v7141_v16 = vld [vmem:[#allocation191_spill] sm:$0xff]  ;;  %v7144_v15 = vld [vmem:[#allocation216_spill] sm:$0xff] }
 0x463   : > { %v2604_v28 = vpop.permute.xlu0 %2603  ;;  %v2275_v8 = vsel %vm2265_vm4, %v2242_v26, %v7135_v37  ;;  %3199 = vmatpush.bf16.msra.mxu0 %v3485_v2  ;;  %3510 = vmatpush.bf16.msra.mxu1 %v3485_v2  ;;  %v2116_v17 = vsel %vm2100_vm14, %v2083_v6, %v7063_v45  ;;  %v7143_v45 = vld [vmem:[#allocation61_spill] sm:$0xff]  ;;  %v7146_v40 = vld [vmem:[#allocation224_spill] sm:$0xff] }
 0x464   : > { %v2876_v55 = vsel %vm2034_vm12, %v2844_v44, %v2604_v28  ;;  %v3036_v63 = vpop.permute.xlu2 %3035  ;;  %v3484_v44 = vld [vmem:[%s6545_s1] sm:$0xff]  ;;  %3511 = vmatpush.bf16.msra.mxu2 %v3485_v2  ;;  %3512 = vmatpush.bf16.msra.mxu3 %v3485_v2  ;;  %v2149_v37 = vsel %vm2133_vm15, %v2116_v17, %v7141_v16 }
 0x465   : > { %v2902_v41 = vsel %vm6684_vm13, %v2876_v55, %v2624_v13  ;;  %v3069_v9 = vsel %vm6685_vm3, %v2275_v8, %v3036_v63  ;;  %v2644_v4 = vpop.permute.xlu1 %2643  ;;  %v7139_v13 = vld [vmem:[#allocation184_spill] sm:$0xff]  ;;  %v2842_v63 = vsel %vm2001_vm11, %v2816_v61, %v5908_v52  ;;  %v2182_v24 = vsel %vm2166_vm0, %v2149_v37, %v7144_v15  ;;  %v7148_v52 = vld [vmem:[#allocation231_spill] sm:$0xff] }
 0x466   : > { %v2928_v26 = vsel %vm2100_vm14, %v2902_v41, %v5940_v1  ;;  %3100 = vst [vmem:[#allocation1 + $0x20] ss:$4 sm:$0xff] %v3069_v9  ;;  %v2102_v28 = vsel %vm2100_vm14, %v2069_v59, %v7139_v13  ;;  %v7140_v1 = vld [vmem:[#allocation108_spill] sm:$0xff]  ;;  %v7147_v9 = vld [vmem:[#allocation225_spill] sm:$0xff] }
 0x467   : > { %v3017_v20 = vshll.u32 %v2928_v26, 16  ;;  %v1943_v11 = vsel %vm1935_vm9, %v1910_v3, %v7140_v1  ;;  %v7142_v8 = vld [vmem:[#allocation192_spill] sm:$0xff]  ;;  %v3015_v50 = vshrl.u32 %v2928_v26, 16  ;;  %v2215_v31 = vsel %vm2199_vm2, %v2182_v24, %v7147_v9  ;;  %3200 = vmatpush.bf16.msra.mxu0 %v3484_v44  ;;  %3513 = vmatpush.bf16.msra.mxu1 %v3484_v44  ;;  %v7151_v1 = vld [vmem:[#allocation259_spill] sm:$0xff] }
 0x468   : > { %v2135_v55 = vsel %vm2133_vm15, %v2102_v28, %v7142_v8  ;;  %v1976_v3 = vsel %vm6687_vm10, %v1943_v11, %v7145_v27  ;;  %v2248_v59 = vsel %vm2232_vm1, %v2215_v31, %v7148_v52  ;;  %v2874_v26 = vsel %vm2034_vm12, %v2842_v63, %v5900_v57  ;;  %3514 = vmatpush.bf16.msra.mxu2 %v3484_v44  ;;  %v7149_v28 = vld [vmem:[#allocation145_spill] sm:$0xff]  ;;  %v7150_v61 = vld [vmem:[#allocation232_spill] sm:$0xff] }
 0x469   : > { %v2168_v60 = vsel %vm2166_vm0, %v2135_v55, %v7143_v45  ;;  %v3019_v2 = vrot.slane %v3017_v20, 1  ;;  %3515 = vmatpush.bf16.msra.mxu3 %v3484_v44  ;;  %v2009_v17 = vsel %vm2001_vm11, %v1976_v3, %v7149_v28  ;;  %v2281_v11 = vsel %vm2265_vm4, %v2248_v59, %v7151_v1  ;;  %v7152_v8 = vld [vmem:[#allocation240_spill] sm:$0xff]  ;;  %v7157_v52 = vld [vmem:[#allocation53_spill] sm:$0xff] }
 0x46a   : > { %v2201_v41 = vsel %vm2199_vm2, %v2168_v60, %v7146_v40  ;;  %v2788_v57 = vsel %vm1935_vm9, %v5646_v53, %v5886_v12  ;;  %v7153_v60 = vld [vmem:[#allocation156_spill] sm:$0xff]  ;;  %v1850_v59 = vsel %vm1836_vm6, %v5442_v49, %v7157_v52  ;;  %v7160_v28 = vld [vmem:[#allocation5_spill] sm:$0xff] }
 0x46b   : > { %v3020_v6 = vor.u32 %v3019_v2, %v3015_v50  ;;  %v2622_v13 = vpop.permute.xlu0 %2621  ;;  %v2234_v20 = vsel %vm2232_vm1, %v2201_v41, %v7150_v61  ;;  %v2042_v15 = vsel %vm2034_vm12, %v2009_v17, %v7153_v60  ;;  %v2814_v24 = vsel %vm6687_vm10, %v2788_v57, %v5904_v14  ;;  %v7154_v27 = vld [vmem:[#allocation164_spill] sm:$0xff]  ;;  %v7156_v14 = vld [vmem:[#allocation194_spill] sm:$0xff]  ;;  %v7161_v61 = vld [vmem:[#allocation63_spill] sm:$0xff] }
 0x46c   : > { %v2900_v16 = vsel %vm6684_vm13, %v2874_v26, %v2622_v13  ;;  %v3042_v37 = vpop.permute.xlu2 %3041  ;;  %v2267_v55 = vsel %vm2265_vm4, %v2234_v20, %v7152_v8  ;;  %v2075_v53 = vsel %vm6684_vm13, %v2042_v15, %v7154_v27  ;;  %v2840_v12 = vsel %vm2001_vm11, %v2814_v24, %v5936_v36  ;;  %v7159_v26 = vld [vmem:[#allocation30_spill] sm:$0xff]  ;;  %v7164_v8 = vld [vmem:[#allocation99_spill] sm:$0xff] }
 0x46d   : > { %v2926_v44 = vsel %vm2100_vm14, %v2900_v16, %v2644_v4  ;;  %v3075_v63 = vsel %vm6685_vm3, %v2281_v11, %v3042_v37  ;;  %3055 = vrot.lane.b32.xlu0 %v3020_v6, %s3565_s6  ;;  %v3028_v45 = vpop.permute.xlu1 %3027  ;;  %v7155_v4 = vld [vmem:[#allocation187_spill] sm:$0xff]  ;;  %v2872_v40 = vsel %vm2034_vm12, %v2840_v12, %v5921_v33  ;;  %v7158_v6 = vld [vmem:[#allocation201_spill] sm:$0xff]  ;;  %v1796_v17 = vsel %vm1787_vm5, %v7160_v28, %v7159_v26  ;;  %v7162_v20 = vld [vmem:[#allocation226_spill] sm:$0xff] }
 0x46e   : > { %v3011_v50 = vshll.u32 %v2926_v44, 16  ;;  %3106 = vst [vmem:[#allocation1 + $0x23] ss:$4 sm:$0xff] %v3075_v63  ;;  %v3061_v2 = vsel %vm6685_vm3, %v2267_v55, %v3028_v45  ;;  %v2108_v3 = vsel %vm2100_vm14, %v2075_v53, %v7155_v4  ;;  %v3009_v41 = vshrl.u32 %v2926_v44, 16  ;;  %v7163_v37 = vld [vmem:[#allocation54_spill] sm:$0xff]  ;;  %v7165_v57 = vld [vmem:[#allocation235_spill] sm:$0xff] }
 0x46f   : > { %3092 = vst [vmem:[#allocation1] ss:$4 sm:$0xff] %v3061_v2  ;;  %v2141_v31 = vsel %vm2133_vm15, %v2108_v3, %v7156_v14  ;;  %v1883_v33 = vsel %vm1869_vm7, %v1850_v59, %v7161_v61  ;;  %v2898_v16 = vsel %vm6684_vm13, %v2872_v40, %v5906_v58  ;;  %v1842_v49 = vsel %vm1836_vm6, %v1796_v17, %v7163_v37  ;;  %v7166_v45 = vld [vmem:[#allocation111_spill] sm:$0xff]  ;;  %v7169_v12 = vld [vmem:[#allocation120_spill] sm:$0xff] }
 0x470   : > { %v3013_v9 = vrot.slane %v3011_v50, 1  ;;  %v2174_v13 = vsel %vm2166_vm0, %v2141_v31, %v7158_v6  ;;  %v1916_v55 = vsel %vm1902_vm8, %v1883_v33, %v7164_v8  ;;  %v7167_v15 = vld [vmem:[#allocation243_spill] sm:$0xff]  ;;  %v2794_v58 = vsel %vm1935_vm9, %v5848_v56, %v5897_v54  ;;  %v7171_v31 = vld [vmem:[#allocation76_spill] sm:$0xff] }
 0x471   : > { %v2207_v1 = vsel %vm2199_vm2, %v2174_v13, %v7162_v20  ;;  %v1949_v60 = vsel %vm1935_vm9, %v1916_v55, %v7166_v45  ;;  %v7168_v27 = vld [vmem:[#allocation67_spill] sm:$0xff]  ;;  %v2820_v3 = vsel %vm6687_vm10, %v2794_v58, %v5911_v32  ;;  %v7173_v13 = vld [vmem:[#allocation112_spill] sm:$0xff] }
 0x472   : > { %v3014_v36 = vor.u32 %v3013_v9, %v3009_v41  ;;  %v2240_v44 = vsel %vm2232_vm1, %v2207_v1, %v7165_v57  ;;  %v1875_v53 = vsel %vm1869_vm7, %v1842_v49, %v7168_v27  ;;  %v1982_v4 = vsel %vm6687_vm10, %v1949_v60, %v7169_v12  ;;  %v7170_v41 = vld [vmem:[#allocation148_spill] sm:$0xff]  ;;  %v7172_v59 = vld [vmem:[#allocation159_spill] sm:$0xff]  ;;  %v7176_v1 = vld [vmem:[#allocation197_spill] sm:$0xff] }
 0x473   : > { %v2642_v11 = vpop.permute.xlu0 %2641  ;;  %v2273_v24 = vsel %vm2265_vm4, %v2240_v44, %v7167_v15  ;;  %v2015_v9 = vsel %vm2001_vm11, %v1982_v4, %v7170_v41  ;;  %v2846_v14 = vsel %vm2001_vm11, %v2820_v3, %v5980_v30  ;;  %v1908_v52 = vsel %vm1902_vm8, %v1875_v53, %v7171_v31  ;;  %v7174_v30 = vld [vmem:[#allocation124_spill] sm:$0xff]  ;;  %v7175_v33 = vld [vmem:[#allocation131_spill] sm:$0xff]  ;;  %v7182_v60 = vld [vmem:[#allocation169_spill] sm:$0xff] }
 0x474   : > { %v2924_v63 = vsel %vm2100_vm14, %v2898_v16, %v2642_v11  ;;  %3053 = vrot.lane.b32.xlu2 %v3014_v36, %s3565_s6  ;;  %v2048_v6 = vsel %vm2034_vm12, %v2015_v9, %v7172_v59  ;;  %v2878_v32 = vsel %vm2034_vm12, %v2846_v14, %v5947_v25  ;;  %v1941_v36 = vsel %vm1935_vm9, %v1908_v52, %v7173_v13  ;;  %v7178_v37 = vld [vmem:[#allocation11_spill] sm:$0xff]  ;;  %v7179_v8 = vld [vmem:[#allocation160_spill] sm:$0xff]  ;;  %v7183_v15 = vld [vmem:[#allocation114_spill] sm:$0xff] }
 0x475   : > { %v3005_v50 = vshll.u32 %v2924_v63, 16  ;;  %v3034_v2 = vpop.permute.xlu1 %3033  ;;  %v3003_v56 = vshrl.u32 %v2924_v63, 16  ;;  %v2081_v26 = vsel %vm6684_vm13, %v2048_v6, %v7057_v35  ;;  %v1974_v17 = vsel %vm6687_vm10, %v1941_v36, %v7174_v30  ;;  %v7177_v35 = vld [vmem:[#allocation32_spill] sm:$0xff]  ;;  %v7181_v63 = vld [vmem:[#allocation58_spill] sm:$0xff]  ;;  %v7185_v27 = vld [vmem:[#allocation175_spill] sm:$0xff] }
 0x476   : > { %v3067_v40 = vsel %vm6685_vm3, %v2273_v24, %v3034_v2  ;;  %v2114_v61 = vsel %vm2100_vm14, %v2081_v26, %v4903_v39  ;;  %v2007_v20 = vsel %vm2001_vm11, %v1974_v17, %v7175_v33  ;;  %v2904_v16 = vsel %vm6684_vm13, %v2878_v32, %v5916_v48  ;;  %v7180_v39 = vld [vmem:[#allocation203_spill] sm:$0xff]  ;;  %v7186_v12 = vld [vmem:[#allocation238_spill] sm:$0xff]  ;;  %v7189_v31 = vld [vmem:[#allocation80_spill] sm:$0xff] }
 0x477   : > { %v3007_v54 = vrot.slane %v3005_v50, 1  ;;  %3098 = vst [vmem:[#allocation1 + $0x3] ss:$4 sm:$0xff] %v3067_v40  ;;  %v2147_v11 = vsel %vm2133_vm15, %v2114_v61, %v7176_v1  ;;  %v1805_v49 = vsel %vm1787_vm5, %v7178_v37, %v7177_v35  ;;  %v2040_v55 = vsel %vm2034_vm12, %v2007_v20, %v7179_v8  ;;  %v7184_v50 = vld [vmem:[#allocation71_spill] sm:$0xff]  ;;  %v7187_v3 = vld [vmem:[#allocation198_spill] sm:$0xff]  ;;  %v7191_v13 = vld [vmem:[#allocation116_spill] sm:$0xff] }
 0x478   : > { %v2180_v57 = vsel %vm2166_vm0, %v2147_v11, %v7180_v39  ;;  %v1848_v45 = vsel %vm1836_vm6, %v1805_v49, %v7181_v63  ;;  %v2073_v48 = vsel %vm6684_vm13, %v2040_v55, %v7182_v60  ;;  %v7188_v41 = vld [vmem:[#allocation246_spill] sm:$0xff]  ;;  %v7190_v59 = vld [vmem:[#allocation207_spill] sm:$0xff]  ;;  %v7198_v55 = vld [vmem:[#allocation172_spill] sm:$0xff] }
 0x479   : > { %v3008_v28 = vor.u32 %v3007_v54, %v3003_v56  ;;  %v2213_v24 = vsel %vm2199_vm2, %v2180_v57, %v7183_v15  ;;  %v1881_v2 = vsel %vm1869_vm7, %v1848_v45, %v7184_v50  ;;  %v2106_v53 = vsel %vm2100_vm14, %v2073_v48, %v7185_v27  ;;  %v7192_v26 = vld [vmem:[#allocation214_spill] sm:$0xff]  ;;  %v7193_v17 = vld [vmem:[#allocation127_spill] sm:$0xff]  ;;  %v7200_v63 = vld [vmem:[#allocation200_spill] sm:$0xff] }
 0x47a   : > { %v2246_v4 = vsel %vm2232_vm1, %v2213_v24, %v7186_v12  ;;  %v2139_v40 = vsel %vm2133_vm15, %v2106_v53, %v7187_v3  ;;  %v1914_v52 = vsel %vm1902_vm8, %v1881_v2, %v7189_v31  ;;  %v7194_v33 = vld [vmem:[#allocation239_spill] sm:$0xff]  ;;  %v7195_v1 = vld [vmem:[#allocation134_spill] sm:$0xff]  ;;  %v7202_v15 = vld [vmem:[#allocation217_spill] sm:$0xff] }
 0x47b   : > { %v2648_v25 = vpop.permute.xlu0 %2647  ;;  %3051 = vrot.lane.b32.xlu1 %v3008_v28, %s3565_s6  ;;  %v2279_v9 = vsel %vm2265_vm4, %v2246_v4, %v7188_v41  ;;  %v2172_v6 = vsel %vm2166_vm0, %v2139_v40, %v7190_v59  ;;  %v1947_v36 = vsel %vm1935_vm9, %v1914_v52, %v7191_v13  ;;  %v7197_v37 = vld [vmem:[#allocation163_spill] sm:$0xff]  ;;  %v7199_v57 = vld [vmem:[#allocation178_spill] sm:$0xff]  ;;  %v7204_v50 = vld [vmem:[#allocation8_spill] sm:$0xff] }
 0x47c   : > { %v2930_v44 = vsel %vm2100_vm14, %v2904_v16, %v2648_v25  ;;  %v2205_v28 = vsel %vm2199_vm2, %v2172_v6, %v7192_v26  ;;  %v1980_v61 = vsel %vm6687_vm10, %v1947_v36, %v7193_v17  ;;  %v7196_v25 = vld [vmem:[#allocation250_spill] sm:$0xff]  ;;  %v7207_v3 = vld [vmem:[#allocation253_spill] sm:$0xff]  ;;  %v7208_v31 = vld [vmem:[#allocation119_spill] sm:$0xff] }
 0x47d   : > { %v3023_v58 = vshll.u32 %v2930_v44, 16  ;;  %v3021_v14 = vshrl.u32 %v2930_v44, 16  ;;  %v2238_v20 = vsel %vm2232_vm1, %v2205_v28, %v7194_v33  ;;  %v2013_v11 = vsel %vm2001_vm11, %v1980_v61, %v7195_v1  ;;  %v7201_v60 = vld [vmem:[#allocation210_spill] sm:$0xff]  ;;  %v7210_v13 = vld [vmem:[#allocation49_spill] sm:$0xff] }
 0x47e   : > { %v2271_v16 = vsel %vm2265_vm4, %v2238_v20, %v7196_v25  ;;  %v2046_v49 = vsel %vm2034_vm12, %v2013_v11, %v7197_v37  ;;  %v7205_v27 = vld [vmem:[#allocation242_spill] sm:$0xff]  ;;  %v1858_v36 = vsel %vm1836_vm6, %v5533_v62, %v7210_v13  ;;  %v7215_v20 = vld [vmem:[#allocation107_spill] sm:$0xff]  ;;  %v7216_v62 = vld [vmem:[#allocation213_spill] sm:$0xff] }
 0x47f   : > { %v3025_v56 = vrot.slane %v3023_v58, 1  ;;  %v3040_v54 = vpop.permute.xlu1 %3039  ;;  %v2079_v39 = vsel %vm6684_vm13, %v2046_v49, %v7198_v55  ;;  %v7203_v58 = vld [vmem:[#allocation27_spill] sm:$0xff]  ;;  %vm6686_vm13 = vcmask 883712   ;;  %v7206_v12 = vld [vmem:[#allocation62_spill] sm:$0xff]  ;;  %v1891_v28 = vsel %vm1869_vm7, %v1858_v36, %v7056_v42  ;;  %v7220_v55 = vld [vmem:[#allocation256_spill] sm:$0xff] }
 0x480   : > { %v3073_v32 = vsel %vm6685_vm3, %v2279_v9, %v3040_v54  ;;  %v2112_v44 = vsel %vm2100_vm14, %v2079_v39, %v7199_v57  ;;  %v1814_v2 = vsel %vm1787_vm5, %v7204_v50, %v7203_v58  ;;  %v7217_v25 = vld [vmem:[#allocation91_spill] sm:$0xff]  ;;  %v7226_v58 = vld [vmem:[#allocation77_spill] sm:$0xff] }
 0x481   : > { %v3026_v30 = vor.u32 %v3025_v56, %v3021_v14  ;;  %3104 = vst [vmem:[#allocation1 + $0x22] ss:$4 sm:$0xff] %v3073_v32  ;;  %v2145_v45 = vsel %vm2133_vm15, %v2112_v44, %v7200_v63  ;;  %v1854_v4 = vsel %vm1836_vm6, %v1814_v2, %v7206_v12  ;;  %v7209_v32 = vld [vmem:[#allocation166_spill] sm:$0xff]  ;;  %v7219_v49 = vld [vmem:[#allocation155_spill] sm:$0xff]  ;;  %v7221_v44 = vld [vmem:[#allocation48_spill] sm:$0xff] }
 0x482   : > { %v2178_v48 = vsel %vm2166_vm0, %v2145_v45, %v7201_v60  ;;  %v1887_v9 = vsel %vm1869_vm7, %v1854_v4, %v7048_v51  ;;  %v7222_v63 = vld [vmem:[#allocation15_spill] sm:$0xff]  ;;  %v7223_v45 = vld [vmem:[#allocation65_spill] sm:$0xff] }
 0x483   : > { %v3032_v35 = vpop.permute.xlu0 %3031  ;;  %3057 = vrot.lane.b32.xlu1 %v3026_v30, %s3565_s6  ;;  %v2211_v24 = vsel %vm2199_vm2, %v2178_v48, %v7202_v15  ;;  %v1920_v54 = vsel %vm1902_vm8, %v1887_v9, %v7052_v0  ;;  %v7211_v0 = vld [vmem:[#allocation174_spill] sm:$0xff]  ;;  %v1860_v60 = vsel %vm1836_vm6, %v5624_v46, %v7223_v45  ;;  %v7225_v15 = vld [vmem:[#allocation57_spill] sm:$0xff]  ;;  %v7237_v36 = vld [vmem:[#allocation19_spill] sm:$0xff] }
 0x484   : > { %v3065_v8 = vsel %vm6685_vm3, %v2271_v16, %v3032_v35  ;;  %v2244_v53 = vsel %vm2232_vm1, %v2211_v24, %v7205_v27  ;;  %v1953_v52 = vsel %vm1935_vm9, %v1920_v54, %v7208_v31  ;;  %v7213_v30 = vld [vmem:[#allocation34_spill] sm:$0xff]  ;;  %v7218_v35 = vld [vmem:[#allocation245_spill] sm:$0xff]  ;;  %v1893_v50 = vsel %vm1869_vm7, %v1860_v60, %v7226_v58  ;;  %v7233_v54 = vld [vmem:[#allocation228_spill] sm:$0xff] }
 0x485   : > { %3096 = vst [vmem:[#allocation1 + $0x2] ss:$4 sm:$0xff] %v3065_v8  ;;  %v2277_v40 = vsel %vm2265_vm4, %v2244_v53, %v7207_v3  ;;  %v1986_v59 = vsel %vm6687_vm10, %v1953_v52, %v4561_v29  ;;  %v1924_v29 = vsel %vm1902_vm8, %v1891_v28, %v7058_v34  ;;  %v7227_v53 = vld [vmem:[#allocation89_spill] sm:$0xff]  ;;  %v7229_v3 = vld [vmem:[#allocation122_spill] sm:$0xff] }
 0x486   : > { %v2019_v6 = vsel %vm2001_vm11, %v1986_v59, %v7059_v38  ;;  %v7214_v38 = vld [vmem:[#allocation70_spill] sm:$0xff]  ;;  %v1957_v1 = vsel %vm1935_vm9, %v1924_v29, %v7215_v20  ;;  %v1926_v46 = vsel %vm1902_vm8, %v1893_v50, %v7227_v53  ;;  %v7228_v12 = vld [vmem:[#allocation193_spill] sm:$0xff]  ;;  %v7234_v59 = vld [vmem:[#allocation140_spill] sm:$0xff] }
 0x487   : > { %v2052_v51 = vsel %vm2034_vm12, %v2019_v6, %v7209_v32  ;;  %v1990_v42 = vsel %vm6687_vm10, %v1957_v1, %v7060_v47  ;;  %v1817_v47 = vsel %vm1787_vm5, %v7222_v63, %v7221_v44  ;;  %v7235_v6 = vld [vmem:[#allocation234_spill] sm:$0xff]  ;;  %v7244_v1 = vld [vmem:[#allocation41_spill] sm:$0xff] }
 0x488   : > { %v2023_v34 = vsel %vm2001_vm11, %v1990_v42, %v7062_v5  ;;  %v1856_v24 = vsel %vm1836_vm6, %v1817_v47, %v7225_v15  ;;  %v7252_v44 = vld [vmem:[#allocation241_spill] sm:$0xff]  ;;  %v7253_v47 = vld [vmem:[#allocation258_spill] sm:$0xff] }
 0x489   : > { %v2056_v8 = vsel %vm2034_vm12, %v2023_v34, %v7219_v49  ;;  %v1889_v27 = vsel %vm1869_vm7, %v1856_v24, %v7041_v7  ;;  %v7247_v34 = vld [vmem:[#allocation215_spill] sm:$0xff]  ;;  %v7249_v49 = vld [vmem:[#allocation222_spill] sm:$0xff] }
 0x48a   : > { %v1922_v4 = vsel %vm1902_vm8, %v1889_v27, %v7043_v22  ;;  %v7259_v27 = vld [vmem:[#allocation16_spill] sm:$0xff] }
 0x48b   : > { %v3038_v41 = vpop.permute.xlu0 %3037 }
 0x48c   : > { %v3071_v14 = vsel %vm6685_vm3, %v2277_v40, %v3038_v41  ;;  %v3107_v56 = vld.sshfl [vmem:[#allocation1] sm:$0xff pattern:$0x73625140]  ;;  %vm7212_vm3 = vcmask 293888   ;;  %v1959_v40 = vsel %vm1935_vm9, %v1926_v46, %v7229_v3  ;;  %v7230_v41 = vld [vmem:[#allocation219_spill] sm:$0xff]  ;;  %v7260_v46 = vld [vmem:[#allocation52_spill] sm:$0xff] }
 0x48d   : > { %3102 = vst [vmem:[#allocation1 + $0x21] ss:$4 sm:$0xff] %v3071_v14  ;;  %3476 = vmatmul.msk.bf16.vlgmr.msra.gmra.mxu0 %vm6686_vm13, %v3107_v56  ;;  %v2085_v26 = vsel %vm7212_vm3, %v2052_v51, %v7211_v0  ;;  %v2089_v5 = vsel %vm7212_vm3, %v2056_v8, %v7068_v18  ;;  %v7232_v56 = vld [vmem:[#allocation132_spill] sm:$0xff]  ;;  %v7236_v51 = vld [vmem:[#allocation151_spill] sm:$0xff]  ;;  %v7262_v3 = vld [vmem:[#allocation101_spill] sm:$0xff] }
 0x48e   : > { %v2118_v17 = vsel %vm2100_vm14, %v2085_v26, %v7213_v30  ;;  %v2122_v2 = vsel %vm2100_vm14, %v2089_v5, %v7071_v10  ;;  %v7231_v10 = vld [vmem:[#allocation115_spill] sm:$0xff]  ;;  %v1992_v7 = vsel %vm6687_vm10, %v1959_v40, %v7232_v56  ;;  %v7238_v26 = vld [vmem:[#allocation261_spill] sm:$0xff] }
 0x48f   : > { %v2151_v61 = vsel %vm2133_vm15, %v2118_v17, %v7214_v38  ;;  %v2155_v18 = vsel %vm2133_vm15, %v2122_v2, %v7228_v12  ;;  %v1955_v14 = vsel %vm1935_vm9, %v1922_v4, %v7231_v10  ;;  %v2025_v22 = vsel %vm2001_vm11, %v1992_v7, %v7234_v59  ;;  %v7239_v17 = vld [vmem:[#allocation162_spill] sm:$0xff]  ;;  %v7254_v5 = vld [vmem:[#allocation249_spill] sm:$0xff] }
 0x490   : > { %v2184_v11 = vsel %vm2166_vm0, %v2151_v61, %v7216_v62  ;;  %v2188_v9 = vsel %vm2166_vm0, %v2155_v18, %v7230_v41  ;;  %v1988_v52 = vsel %vm6687_vm10, %v1955_v14, %v7047_v19  ;;  %v2058_v0 = vsel %vm2034_vm12, %v2025_v22, %v7237_v36  ;;  %v7242_v61 = vld [vmem:[#allocation22_spill] sm:$0xff]  ;;  %v7261_v18 = vld [vmem:[#allocation88_spill] sm:$0xff] }
 0x491   : > { %v2217_v16 = vsel %vm2199_vm2, %v2184_v11, %v7217_v25  ;;  %v2221_v31 = vsel %vm2199_vm2, %v2188_v9, %v7233_v54  ;;  %v2021_v13 = vsel %vm2001_vm11, %v1988_v52, %v7236_v51  ;;  %v7245_v11 = vld [vmem:[#allocation205_spill] sm:$0xff]  ;;  %v7246_v25 = vld [vmem:[#allocation199_spill] sm:$0xff]  ;;  %v7258_v2 = vld [vmem:[#allocation46_spill] sm:$0xff] }
 0x492   : > { %v2250_v37 = vsel %vm2232_vm1, %v2217_v16, %v7218_v35  ;;  %v2254_v32 = vsel %vm2232_vm1, %v2221_v31, %v7235_v6  ;;  %v2054_v29 = vsel %vm2034_vm12, %v2021_v13, %v7239_v17  ;;  %v7248_v35 = vld [vmem:[#allocation206_spill] sm:$0xff]  ;;  %v1829_v53 = vsel %vm1787_vm5, %v7259_v27, %v7258_v2  ;;  %v7267_v31 = vld [vmem:[#allocation28_spill] sm:$0xff]  ;;  %v7271_v51 = vld [vmem:[#allocation221_spill] sm:$0xff] }
 0x493   : > { %v2283_v39 = vsel %vm2265_vm4, %v2250_v37, %v7220_v55  ;;  %v2287_v28 = vsel %vm2265_vm4, %v2254_v32, %v7238_v26  ;;  %v1864_v12 = vsel %vm1836_vm6, %v1829_v53, %v7260_v46  ;;  %v7263_v41 = vld [vmem:[#allocation110_spill] sm:$0xff]  ;;  %v7270_v6 = vld [vmem:[#allocation196_spill] sm:$0xff] }
 0x494   : > { %v3108_v33 = vld.sshfl [vmem:[#allocation1 + $0x20] sm:$0xff pattern:$0x73625140]  ;;  %v1897_v4 = vsel %vm1869_vm7, %v1864_v12, %v7261_v18  ;;  %v7293_v27 = vld [vmem:[#allocation60_spill] sm:$0xff]  ;;  %v7294_v12 = vld [vmem:[#allocation69_spill] sm:$0xff] }
 0x495   : > { %3477 = vmatmul.msk.bf16.vlgmr.msra.gmra.mxu1 %vm6686_vm13, %v3108_v33  ;;  %vm7224_vm13 = vcmask 523264   ;;  %v1930_v40 = vsel %vm1902_vm8, %v1897_v4, %v7262_v3  ;;  %v7265_v14 = vld [vmem:[#allocation150_spill] sm:$0xff] }
 0x496   : > { %v1963_v9 = vsel %vm1935_vm9, %v1930_v40, %v7263_v41  ;;  %v7266_v7 = vld [vmem:[#allocation158_spill] sm:$0xff] }
 0x497   : > { %v7269_v59 = vld [vmem:[#allocation190_spill] sm:$0xff] }
 0x498   : > { %v3044_v57 = vpop.permute.xlu0 %3043  ;;  %v7272_v36 = vld [vmem:[#allocation230_spill] sm:$0xff] }
 0x499   : > { %v3077_v48 = vsel %vm7224_vm13, %v2283_v39, %v3044_v57  ;;  %vm7240_vm13 = vmmov %vm7212_vm3  ;;  %vm7241_vm3 = vcmask 523264   ;;  %v7251_v39 = vld [vmem:[#allocation248_spill] sm:$0xff]  ;;  %v7295_v4 = vld [vmem:[#allocation106_spill] sm:$0xff] }
 0x49a   : > { %3109 = vst [vmem:[#allocation1] ss:$4 sm:$0xff] %v3077_v48  ;;  %v2091_v19 = vsel %vm7240_vm13, %v2058_v0, %v7079_v23  ;;  %vm7243_vm10 = vmmov %vm7240_vm13  ;;  %v7273_v0 = vld [vmem:[#allocation237_spill] sm:$0xff]  ;;  %v7296_v40 = vld [vmem:[#allocation118_spill] sm:$0xff] }
 0x49b   : > { %v2087_v33 = vsel %vm7243_vm10, %v2054_v29, %v7242_v61  ;;  %v2124_v20 = vsel %vm2100_vm14, %v2091_v19, %v7080_v43  ;;  %v7250_v43 = vld [vmem:[#allocation105_spill] sm:$0xff]  ;;  %vm7255_vm10 = vmmov %vm7241_vm3  ;;  %v7276_v19 = vld [vmem:[#allocation68_spill] sm:$0xff] }
 0x49c   : > { %v2120_v62 = vsel %vm2100_vm14, %v2087_v33, %v7244_v1  ;;  %v2157_v42 = vsel %vm2133_vm15, %v2124_v20, %v7245_v11  ;;  %vm7256_vm13 = vmmov %vm7241_vm3  ;;  %v7278_v33 = vld [vmem:[#allocation81_spill] sm:$0xff] }
 0x49d   : > { %v2153_v16 = vsel %vm2133_vm15, %v2120_v62, %v7246_v25  ;;  %v2190_v23 = vsel %vm2166_vm0, %v2157_v42, %v7247_v34  ;;  %v7279_v1 = vld [vmem:[#allocation93_spill] sm:$0xff]  ;;  %v7281_v25 = vld [vmem:[#allocation135_spill] sm:$0xff] }
 0x49e   : > { %v2186_v37 = vsel %vm2166_vm0, %v2153_v16, %v7248_v35  ;;  %v2223_v8 = vsel %vm2199_vm2, %v2190_v23, %v7249_v49  ;;  %v7280_v11 = vld [vmem:[#allocation125_spill] sm:$0xff]  ;;  %v7282_v34 = vld [vmem:[#allocation143_spill] sm:$0xff]  ;;  %v7283_v35 = vld [vmem:[#allocation170_spill] sm:$0xff] }
 0x49f   : > { %v3048_v30 = vpop.permute.xlu2 %3047  ;;  %v2219_v55 = vsel %vm2199_vm2, %v2186_v37, %v7250_v43  ;;  %v2256_v57 = vsel %vm2232_vm1, %v2223_v8, %v7251_v39  ;;  %v7284_v49 = vld [vmem:[#allocation179_spill] sm:$0xff]  ;;  %v7285_v43 = vld [vmem:[#allocation185_spill] sm:$0xff]  ;;  %v7286_v39 = vld [vmem:[#allocation208_spill] sm:$0xff] }
 0x4a0   : > { %v3081_v38 = vsel %vm7241_vm3, %v2287_v28, %v3048_v30  ;;  %v2252_v63 = vsel %vm2232_vm1, %v2219_v55, %v7252_v44  ;;  %v2289_v45 = vsel %vm2265_vm4, %v2256_v57, %v7253_v47  ;;  %vm7257_vm3 = vcmask 883712   ;;  %v7274_v28 = vld [vmem:[#allocation262_spill] sm:$0xff] }
 0x4a1   : > { %3111 = vst [vmem:[#allocation1 + $0x2] ss:$4 sm:$0xff] %v3081_v38  ;;  %v2285_v48 = vsel %vm2265_vm4, %v2252_v63, %v7254_v5  ;;  %v7277_v38 = vld [vmem:[#allocation82_spill] sm:$0xff] }
 0x4a2   : > { %v1866_v61 = vsel %vm1836_vm6, %v7277_v38, %v7276_v19  ;;  %v7287_v44 = vld [vmem:[#allocation218_spill] sm:$0xff]  ;;  %v7311_v38 = vld [vmem:[#allocation233_spill] sm:$0xff] }
 0x4a3   : > { %v1899_v20 = vsel %vm1869_vm7, %v1866_v61, %v7278_v33  ;;  %v7288_v47 = vld [vmem:[#allocation98_spill] sm:$0xff]  ;;  %v7312_v33 = vld [vmem:[#allocation129_spill] sm:$0xff] }
 0x4a4   : > { %v1932_v62 = vsel %vm1902_vm8, %v1899_v20, %v7279_v1  ;;  %v7314_v1 = vld [vmem:[#allocation244_spill] sm:$0xff] }
 0x4a5   : > { %v1965_v42 = vsel %vm1935_vm9, %v1932_v62, %v7280_v11  ;;  %v7315_v11 = vld [vmem:[#allocation157_spill] sm:$0xff] }
 0x4a6   : > { %v3050_v60 = vpop.permute.xlu0 %3049 }
 0x4a7   : > { %v3046_v15 = vpop.permute.xlu1 %3045  ;;  %v3083_v24 = vsel %vm7255_vm10, %v2289_v45, %v3050_v60  ;;  %vm7264_vm10 = vcmask 195584   ;;  %v7289_v60 = vld [vmem:[#allocation251_spill] sm:$0xff] }
 0x4a8   : > { %v3079_v58 = vsel %vm7256_vm13, %v2285_v48, %v3046_v15  ;;  %3112 = vst [vmem:[#allocation1 + $0x3] ss:$4 sm:$0xff] %v3083_v24  ;;  %v1996_v10 = vsel %vm7264_vm10, %v1963_v9, %v7073_v21  ;;  %vm7268_vm13 = vcmask 293888   ;;  %v1998_v16 = vsel %vm7264_vm10, %v1965_v42, %v7281_v25  ;;  %v7290_v48 = vld [vmem:[#allocation40_spill] sm:$0xff]  ;;  %v7291_v15 = vld [vmem:[#allocation9_spill] sm:$0xff]  ;;  %v7297_v9 = vld [vmem:[#allocation126_spill] sm:$0xff] }
 0x4a9   : > { %3110 = vst [vmem:[#allocation1 + $0x1] ss:$4 sm:$0xff] %v3079_v58  ;;  %v2029_v56 = vsel %vm2001_vm11, %v1996_v10, %v7265_v14  ;;  %v2031_v23 = vsel %vm2001_vm11, %v1998_v16, %v7282_v34  ;;  %v1826_v24 = vsel %vm1787_vm5, %v7291_v15, %v7290_v48  ;;  %v7292_v58 = vld [vmem:[#allocation260_spill] sm:$0xff]  ;;  %vm7298_vm5 = vmmov %vm7264_vm10  ;;  %v7299_v14 = vld [vmem:[#allocation154_spill] sm:$0xff] }
 0x4aa   : > { %v2062_v54 = vsel %vm2034_vm12, %v2029_v56, %v7266_v7  ;;  %v2064_v37 = vsel %vm2034_vm12, %v2031_v23, %v7283_v35  ;;  %v1862_v53 = vsel %vm1836_vm6, %v1826_v24, %v7293_v27  ;;  %v7300_v7 = vld [vmem:[#allocation165_spill] sm:$0xff]  ;;  %vm7302_vm10 = vmmov %vm7268_vm13  ;;  %v7316_v25 = vld [vmem:[#allocation252_spill] sm:$0xff] }
 0x4ab   : > { %v2095_v52 = vsel %vm7268_vm13, %v2062_v54, %v7267_v31  ;;  %v2097_v8 = vsel %vm7268_vm13, %v2064_v37, %v7284_v49  ;;  %v1895_v18 = vsel %vm1869_vm7, %v1862_v53, %v7294_v12  ;;  %v7301_v31 = vld [vmem:[#allocation171_spill] sm:$0xff]  ;;  %vm7313_vm13 = vmmov %vm7298_vm5  ;;  %v7317_v23 = vld [vmem:[#allocation168_spill] sm:$0xff] }
 0x4ac   : > { %v2128_v22 = vsel %vm2100_vm14, %v2095_v52, %v7269_v59  ;;  %v2130_v55 = vsel %vm2100_vm14, %v2097_v8, %v7285_v43  ;;  %v1928_v3 = vsel %vm1902_vm8, %v1895_v18, %v7295_v4  ;;  %v7303_v59 = vld [vmem:[#allocation64_spill] sm:$0xff]  ;;  %v7319_v49 = vld [vmem:[#allocation173_spill] sm:$0xff]  ;;  %v7321_v43 = vld [vmem:[#allocation195_spill] sm:$0xff] }
 0x4ad   : > { %v2161_v32 = vsel %vm2133_vm15, %v2128_v22, %v7270_v6  ;;  %v2163_v57 = vsel %vm2133_vm15, %v2130_v55, %v7286_v39  ;;  %v1961_v41 = vsel %vm1935_vm9, %v1928_v3, %v7296_v40  ;;  %v7304_v22 = vld [vmem:[#allocation31_spill] sm:$0xff]  ;;  %v7322_v39 = vld [vmem:[#allocation204_spill] sm:$0xff] }
 0x4ae   : > { %v2194_v13 = vsel %vm2166_vm0, %v2161_v32, %v7271_v51  ;;  %v2196_v63 = vsel %vm2166_vm0, %v2163_v57, %v7287_v44  ;;  %v1994_v10 = vsel %vm7298_vm5, %v1961_v41, %v7297_v9  ;;  %v1868_v6 = vsel %vm1836_vm6, %v7304_v22, %v7303_v59  ;;  %v7305_v32 = vld [vmem:[#allocation56_spill] sm:$0xff]  ;;  %v7326_v48 = vld [vmem:[#allocation255_spill] sm:$0xff] }
 0x4af   : > { %v2227_v21 = vsel %vm2199_vm2, %v2194_v13, %v7272_v36  ;;  %v2229_v45 = vsel %vm2199_vm2, %v2196_v63, %v7288_v47  ;;  %v2027_v56 = vsel %vm2001_vm11, %v1994_v10, %v7299_v14  ;;  %v7306_v13 = vld [vmem:[#allocation73_spill] sm:$0xff]  ;;  %v7323_v44 = vld [vmem:[#allocation212_spill] sm:$0xff] }
 0x4b0   : > { %v3117_v50 = vld.sshfl [vmem:[#allocation1] sm:$0xff pattern:$0x73625140]  ;;  %v2260_v26 = vsel %vm2232_vm1, %v2227_v21, %v7273_v0  ;;  %v2262_v5 = vsel %vm2232_vm1, %v2229_v45, %v7289_v60  ;;  %v2060_v54 = vsel %vm2034_vm12, %v2027_v56, %v7300_v7  ;;  %v1901_v36 = vsel %vm1869_vm7, %v1868_v6, %v7306_v13  ;;  %v7324_v47 = vld [vmem:[#allocation236_spill] sm:$0xff]  ;;  %v7325_v60 = vld [vmem:[#allocation247_spill] sm:$0xff] }
 0x4b1   : > { %3478 = vmatmul.msk.bf16.vlgmr.msra.gmra.mxu2 %vm7257_vm3, %v3117_v50  ;;  %v2293_v30 = vsel %vm2265_vm4, %v2260_v26, %v7274_v28  ;;  %vm7275_vm3 = vcmask 523264   ;;  %v2295_v50 = vsel %vm2265_vm4, %v2262_v5, %v7292_v58  ;;  %v2093_v52 = vsel %vm7302_vm10, %v2060_v54, %v7301_v31  ;;  %v7307_v21 = vld [vmem:[#allocation202_spill] sm:$0xff]  ;;  %v7308_v26 = vld [vmem:[#allocation109_spill] sm:$0xff] }
 0x4b2   : > { %v2126_v51 = vsel %vm2100_vm14, %v2093_v52, %v7305_v32  ;;  %v1934_v28 = vsel %vm1902_vm8, %v1901_v36, %v7308_v26  ;;  %vm7318_vm7 = vmmov %vm7275_vm3 }
 0x4b3   : > { %v2159_v0 = vsel %vm2133_vm15, %v2126_v51, %v7307_v21  ;;  %vm7320_vm8 = vmmov %vm7302_vm10 }
 0x4ce   : > { %v3054_v17 = vpop.permute.xlu2 %3053 }
 0x4cf   : > { %v3087_v29 = vsel %vm7275_vm3, %v2293_v30, %v3054_v17  ;;  %v7309_v30 = vld [vmem:[#allocation209_spill] sm:$0xff] }
 0x4d0   : > { %3114 = vst [vmem:[#allocation1 + $0x21] ss:$4 sm:$0xff] %v3087_v29  ;;  %v2192_v17 = vsel %vm2166_vm0, %v2159_v0, %v7309_v30  ;;  %v7310_v29 = vld [vmem:[#allocation121_spill] sm:$0xff] }
 0x4d1   : > { %v1967_v19 = vsel %vm1935_vm9, %v1934_v28, %v7310_v29  ;;  %v2225_v61 = vsel %vm2199_vm2, %v2192_v17, %v7311_v38  ;;  %vm7327_vm9 = vmmov %vm7275_vm3 }
 0x4d2   : > { %v2000_v20 = vsel %vm7313_vm13, %v1967_v19, %v7312_v33  ;;  %v2258_v62 = vsel %vm2232_vm1, %v2225_v61, %v7314_v1 }
 0x4d3   : > { %v2033_v42 = vsel %vm2001_vm11, %v2000_v20, %v7315_v11  ;;  %v2291_v16 = vsel %vm2265_vm4, %v2258_v62, %v7316_v25  ;;  %vm7328_vm11 = vcmask 883712  }
 0x4d4   : > { %v2066_v35 = vsel %vm2034_vm12, %v2033_v42, %v7317_v23  ;;  %vm3280_vm12 = vcmask 1040384  }
 0x4d5   : > { %v2099_v8 = vsel %vm7320_vm8, %v2066_v35, %v7319_v49 }
 0x4d6   : > { %v2132_v55 = vsel %vm2100_vm14, %v2099_v8, %v7321_v43 }
 0x4d7   : > { %v2165_v57 = vsel %vm2133_vm15, %v2132_v55, %v7322_v39 }
 0x4d8   : > { %v2198_v63 = vsel %vm2166_vm0, %v2165_v57, %v7323_v44 }
 0x4d9   : > { %v2231_v45 = vsel %vm2199_vm2, %v2198_v63, %v7324_v47 }
 0x4da   : > { %v2264_v5 = vsel %vm2232_vm1, %v2231_v45, %v7325_v60 }
 0x4db   : > { %v2297_v15 = vsel %vm2265_vm4, %v2264_v5, %v7326_v48 }
 0x4df   : > { %v3056_v2 = vpop.permute.xlu0 %3055 }
 0x4e0   : > { %v3089_v46 = vsel %vm7275_vm3, %v2295_v50, %v3056_v2 }
 0x4e1   : > { %3115 = vst [vmem:[#allocation1 + $0x22] ss:$4 sm:$0xff] %v3089_v46 }
 0x4ed   : > { %v3052_v34 = vpop.permute.xlu1 %3051 }
 0x4ee   : > { %v3085_v37 = vsel %vm7318_vm7, %v2291_v16, %v3052_v34 }
 0x4ef   : > { %3113 = vst [vmem:[#allocation1 + $0x20] ss:$4 sm:$0xff] %v3085_v37 }
 0x4f5   : > { %v3058_v24 = vpop.permute.xlu1 %3057 }
 0x4f6   : > { %v3091_v58 = vsel %vm7327_vm9, %v2297_v15, %v3058_v24 }
 0x4f7   : > { %3116 = vst [vmem:[#allocation1 + $0x23] ss:$4 sm:$0xff] %v3091_v58 }
 0x4fe   : > { %v3118_v50 = vld.sshfl [vmem:[#allocation1 + $0x20] sm:$0xff pattern:$0x73625140] }
 0x4ff   : > { %3479 = vmatmul.msk.bf16.vlgmr.msra.gmra.mxu3 %vm7328_vm11, %v3118_v50 }
 0x50a   : > { %v3202_v2 = vpop.f32.mrf.mxu0 }
 0x50b   : > { %3222 = vst.msk [vmem:[%s6503_s28] sm:$0xff] %vm1836_vm6, %v3202_v2  ;;  %v3251_v27 = vmul.f32 %v3202_v2, %v3202_v2  ;;  %v3230_v12 = vsel %vm1836_vm6, %v3202_v2, 0.0 }
 0x50d   : > { %v3259_v41 = vsel %vm1836_vm6, %v3251_v27, 0.0 }
 0x512   : > { %v3204_v53 = vpop.f32.mrf.mxu0  ;;  %v3207_v46 = vpop.f32.mrf.mxu1 }
 0x513   : > { %3223 = vst.msk [vmem:[%s6503_s28 + $0x8] sm:$0xff] %vm1836_vm6, %v3204_v53  ;;  %v3231_v18 = vsel %vm1836_vm6, %v3204_v53, 0.0  ;;  %v3252_v4 = vmul.f32 %v3204_v53, %v3204_v53  ;;  %v3253_v3 = vmul.f32 %v3207_v46, %v3207_v46  ;;  %v3233_v10 = vsel %vm1836_vm6, %v3207_v46, 0.0 }
 0x514   : > { %v3232_v40 = vadd.f32 %v3231_v18, %v3230_v12  ;;  %3224 = vst.msk [vmem:[%s6503_s28 + $0x10] sm:$0xff] %vm1836_vm6, %v3207_v46 }
 0x515   : > { %v3260_v9 = vsel %vm1836_vm6, %v3252_v4, 0.0  ;;  %v3262_v7 = vsel %vm1836_vm6, %v3253_v3, 0.0 }
 0x516   : > { %v3261_v14 = vadd.f32 %v3260_v9, %v3259_v41  ;;  %v3234_v56 = vadd.f32 %v3233_v10, %v3232_v40 }
 0x518   : > { %v3263_v54 = vadd.f32 %v3262_v7, %v3261_v14 }
 0x51a   : > { %v3209_v31 = vpop.f32.mrf.mxu1 }
 0x51b   : > { %3225 = vst.msk [vmem:[%s6503_s28 + $0x18] sm:$0xff] %vm1836_vm6, %v3209_v31  ;;  %v3235_v52 = vsel %vm1836_vm6, %v3209_v31, 0.0  ;;  %v3254_v59 = vmul.f32 %v3209_v31, %v3209_v31 }
 0x51c   : > { %v3236_v22 = vadd.f32 %v3235_v52, %v3234_v56 }
 0x51d   : > { %v3264_v6 = vsel %vm1836_vm6, %v3254_v59, 0.0 }
 0x51e   : > { %v3265_v32 = vadd.f32 %v3264_v6, %v3263_v54 }
 0x534   : > { %v3212_v51 = vpop.f32.mrf.mxu2 }
 0x535   : > { %3226 = vst.msk [vmem:[%s6503_s28 + $0x20] sm:$0xff] %vm1836_vm6, %v3212_v51  ;;  %v3237_v13 = vsel %vm1836_vm6, %v3212_v51, 0.0  ;;  %v3255_v36 = vmul.f32 %v3212_v51, %v3212_v51 }
 0x536   : > { %v3238_v21 = vadd.f32 %v3237_v13, %v3236_v22 }
 0x537   : > { %v3266_v0 = vsel %vm1836_vm6, %v3255_v36, 0.0 }
 0x538   : > { %v3267_v26 = vadd.f32 %v3266_v0, %v3265_v32 }
 0x53c   : > { %v3214_v28 = vpop.f32.mrf.mxu2 }
 0x53d   : > { %3227 = vst.msk [vmem:[%s6503_s28 + $0x28] sm:$0xff] %vm1836_vm6, %v3214_v28  ;;  %v3239_v30 = vsel %vm1836_vm6, %v3214_v28, 0.0  ;;  %v3256_v17 = vmul.f32 %v3214_v28, %v3214_v28 }
 0x53e   : > { %v3240_v29 = vadd.f32 %v3239_v30, %v3238_v21 }
 0x53f   : > { %v3268_v19 = vsel %vm1836_vm6, %v3256_v17, 0.0 }
 0x540   : > { %v3269_v38 = vadd.f32 %v3268_v19, %v3267_v26 }
 0x582   : > { %v3217_v61 = vpop.f32.mrf.mxu3 }
 0x583   : > { %3228 = vst.msk [vmem:[%s6503_s28 + $0x30] sm:$0xff] %vm1836_vm6, %v3217_v61  ;;  %v3257_v33 = vmul.f32 %v3217_v61, %v3217_v61  ;;  %v3241_v20 = vsel %vm1836_vm6, %v3217_v61, 0.0 }
 0x584   : > { %v3242_v62 = vadd.f32 %v3241_v20, %v3240_v29 }
 0x585   : > { %v3270_v1 = vsel %vm1836_vm6, %v3257_v33, 0.0 }
 0x586   : > { %v3271_v16 = vadd.f32 %v3270_v1, %v3269_v38 }
 0x58a   : > { %v3219_v11 = vpop.f32.mrf.mxu3 }
 0x58b   : > { %3229 = vst.msk [vmem:[%s6503_s28 + $0x38] sm:$0xff] %vm1836_vm6, %v3219_v11  ;;  %v3243_v42 = vsel %vm1836_vm6, %v3219_v11, 0.0  ;;  %v3258_v25 = vmul.f32 %v3219_v11, %v3219_v11 }
 0x58c   : > { %v3244_v34 = vadd.f32 %v3243_v42, %v3242_v62 }
 0x58d   : > { %v3272_v23 = vsel %vm1836_vm6, %v3258_v25, 0.0  ;;  %vm3282_vm6 = vcmask 58368  }
 0x58e   : > { %v3245_v35 = vrot.slane %v3244_v34, 4  ;;  %v3273_v37 = vadd.f32 %v3272_v23, %v3271_v16 }
 0x590   : > { %v3246_v49 = vadd.f32 %v3245_v35, %v3244_v34  ;;  %v3274_v8 = vrot.slane %v3273_v37, 4 }
 0x592   : > { %v3247_v43 = vrot.slane %v3246_v49, 2  ;;  %v3275_v55 = vadd.f32 %v3274_v8, %v3273_v37 }
 0x594   : > { %v3248_v39 = vadd.f32 %v3247_v43, %v3246_v49  ;;  %v3276_v57 = vrot.slane %v3275_v55, 2 }
 0x596   : > { %v3249_v44 = vrot.slane %v3248_v39, 1  ;;  %v3277_v63 = vadd.f32 %v3276_v57, %v3275_v55 }
 0x598   : > { %v3278_v47 = vrot.slane %v3277_v63, 1  ;;  %v3250_v45 = vadd.f32 %v3249_v44, %v3248_v39 }
 0x59a   : > { %v3279_v60 = vadd.f32 %v3278_v47, %v3277_v63 }
 0x59c   : > { %v3281_v5 = vsel %vm3280_vm12, %v3250_v45, %v3279_v60 }
 0x59d   : > { %3283 = vst.msk [vmem:[%s181_s5] sm:$0x3] %vm3282_vm6, %v3281_v5 }
 0x59e PF: > { %s14_s12 = sadd.s32 1, %s3547_s12  }
 0x59f   : > { %p11_p4 = scmp.ge.s32.totalorder %s14_s12, 4  }
 0x5a1   :  { %13 = sbr.rel (!%p11_p4) target bundleno = 1 (0x1), region = 78 }

</bundles_post_ra>
